<compile_context>
chip_gen: v5e
topology: v5e:2x2
jax: 0.10.0
libtpu: 0.0.40
codegen_flags: <defaults>
</compile_context>

<pallas_src>
import functools

import jax
import jax.numpy as jnp
from jax.experimental import pallas as pl
from jax.experimental.pallas import tpu as pltpu


# ------------------------------ fused CNN kernel ---------------------------------- #

def _cnn_fused_kernel(xq_ref, w1q_ref, b1_ref, w2p_ref, b2_ref,
                      w1p_ref, f1b_ref, f2w_ref, f2b_ref, f3w_ref, f3b_ref,
                      out_ref,
                      h1d_ref, acc2_ref, hp2_ref, feats_ref, *, B):
    """Processes one block of B images.

    xq_ref:   (B, 196, 300) bf16  quad-im2col conv1 input (row = pooled position,
                                  lanes = 4 x (5x5x3) patches of its 2x2 pool window)
    w1q_ref:  (300, 256) bf16     block-diagonal conv1 weights (4 copies of (75,64))
    w2p_ref:  (15, 128, 128) bf16 conv2 tap-pair weights, pair (i,p) covers kw=2p,2p+1
    w1p_ref:  (25, 128, 120) bf16 fc1 weights per spatial position (CHW flatten folded in)
    h1d_ref:  (208, 128) bf16     h1 with lanes[0:64]=h1[r], lanes[64:128]=h1[r+1]
    acc2_ref: (144, 128) f32      conv2 wrap-layout accumulator (row r = h*14 + w)
    hp2_ref:  (72, 128)  f32      horizontally pooled conv2 rows
    feats_ref:(B, 25, 128) bf16   pooled conv2 features for the whole block
    """
    R1 = 196   # h1 rows (14*14), row r = h*14 + w
    M2 = 144   # conv2 wrap rows (>= 9*14+10, rounded up to a sublane multiple)

    # Zero h1d padding rows once per step: rows >= R1 are read by the shifted copy and
    # by the tap-pair loads; valid pooled positions never consume them, but they must be
    # finite (and row 196 exactly 0 for the zero-padded last tap pair).
    h1d_ref[pl.ds(R1, 12), :] = jnp.zeros((12, 128), jnp.bfloat16)

    b1v = b1_ref[...]          # (1, 64)  f32
    b2v = b2_ref[...]          # (1, 128) f32

    for b in range(B):
        # ---- conv1: one deep matmul on the quad-im2col input ----------------------
        xq = xq_ref[b]                                                   # (196, 300)
        y = jnp.dot(xq, w1q_ref[...], preferred_element_type=jnp.float32)  # (196, 256)
        # 2x2 max-pool == max over the four 64-lane blocks (one per window position);
        # relu(max + bias) == pool(relu(conv + bias)) since bias is per-channel.
        pooled1 = jnp.maximum(jnp.maximum(y[:, 0:64], y[:, 64:128]),
                              jnp.maximum(y[:, 128:192], y[:, 192:256]))  # (196, 64)
        h1 = jnp.maximum(pooled1 + b1v, 0.0).astype(jnp.bfloat16)         # (196, 64)

        # ---- h1d: duplicated, row-shifted copy of h1 for K=128 tap pairing ---------
        h1d_ref[pl.ds(0, R1), 0:64] = h1
        shifted = h1d_ref[pl.ds(1, R1), 0:64]        # h1[r+1]; row 196 is zero
        h1d_ref[pl.ds(0, R1), 64:128] = shifted

        # ---- conv2: 15 K=128 tap-pair matmuls, accumulated in registers ------------
        acc2 = None
        for i in range(5):
            for p in range(3):
                off = i * 14 + 2 * p
                lhs = h1d_ref[pl.ds(off, M2), :]                          # (144, 128)
                c = jnp.dot(lhs, w2p_ref[i * 3 + p],
                            preferred_element_type=jnp.float32)           # (144, 128)
                acc2 = c if acc2 is None else acc2 + c
        acc2_ref[...] = acc2

        # ---- conv2 2x2 max-pool + bias + ReLU -> features (25, 128) ----------------
        # horizontal pairs: conv-row parity == w parity (row stride 14 is even)
        hp2_ref[pl.ds(0, 70), :] = jnp.maximum(acc2_ref[pl.ds(0, 70, 2), :],
                                               acc2_ref[pl.ds(1, 70, 2), :])
        for ph in range(5):
            top = hp2_ref[pl.ds((2 * ph) * 7, 5), :]                      # (5, 128)
            bot = hp2_ref[pl.ds((2 * ph + 1) * 7, 5), :]
            prow = jnp.maximum(jnp.maximum(top, bot) + b2v, 0.0).astype(jnp.bfloat16)
            feats_ref[b, ph * 5:(ph + 1) * 5, :] = prow

    # ---- fused fc1 -> fc2 -> fc3 over the whole batch block ------------------------
    h = None
    for p in range(25):
        lhs = feats_ref[:, p, :]                                          # (B, 128)
        c = jnp.dot(lhs, w1p_ref[p], preferred_element_type=jnp.float32)
        h = c if h is None else h + c
    h = jnp.maximum(h + f1b_ref[...], 0.0).astype(jnp.bfloat16)           # (B, 120)
    h = jnp.dot(h, f2w_ref[...], preferred_element_type=jnp.float32)
    h = jnp.maximum(h + f2b_ref[...], 0.0).astype(jnp.bfloat16)           # (B, 84)
    o = jnp.dot(h, f3w_ref[...], preferred_element_type=jnp.float32) + f3b_ref[...]
    out_ref[...] = o.astype(out_ref.dtype)


# --------------------------- wrapper / parameter prep ------------------------------ #

def _build_conv1_quad_patches(x_nchw):
    """(N,3,32,32) f32 -> (N,196,300) bf16 quad-im2col: one row per pooled position,
    lanes = [patch(2ph,2pw) ; patch(2ph,2pw+1) ; patch(2ph+1,2pw) ; patch(2ph+1,2pw+1)],
    each patch in (i, j, c) order."""
    x = jnp.transpose(x_nchw, (0, 2, 3, 1)).astype(jnp.bfloat16)          # (N,32,32,3)
    pats = [x[:, i:i + 28, j:j + 28, :] for i in range(5) for j in range(5)]
    pat = jnp.concatenate(pats, axis=-1)                                  # (N,28,28,75)
    quad = jnp.concatenate([pat[:, 0::2, 0::2, :], pat[:, 0::2, 1::2, :],
                            pat[:, 1::2, 0::2, :], pat[:, 1::2, 1::2, :]], axis=-1)
    return quad.reshape(x.shape[0], 196, 300)                             # (N,196,300)


def prepare_params(p):
    """One-time re-layout + bf16 cast (hoisted out of the forward pass)."""
    bf16, f32 = jnp.bfloat16, jnp.float32

    # conv1: (64,3,5,5) -> (75,64) rows ordered (i,j,c), replicated block-diagonally x4
    w1m = jnp.transpose(p["conv1_w"], (2, 3, 1, 0)).reshape(75, 64)
    w1q = jnp.zeros((300, 256), jnp.float32)
    for q in range(4):
        w1q = w1q.at[q * 75:(q + 1) * 75, q * 64:(q + 1) * 64].set(w1m)

    # conv2: (128,64,5,5) -> tap-pair packed (15,128,128); pair p covers kw = 2p, 2p+1
    w2m = jnp.transpose(p["conv2_w"], (2, 3, 1, 0))                       # (5,5,64,128)
    pairs = []
    for i in range(5):
        for pp in range(3):
            hi = w2m[i, 2 * pp]
            lo = w2m[i, 2 * pp + 1] if 2 * pp + 1 < 5 else jnp.zeros_like(hi)
            pairs.append(jnp.concatenate([hi, lo], axis=0))               # (128,128)
    w2p = jnp.stack(pairs, axis=0)                                        # (15,128,128)

    # fc1: PyTorch flatten index = c*25 + (ph*5+pw)  ->  per-position weights (25,128,120)
    w1p = jnp.transpose(p["fc1_w"].reshape(120, 128, 25), (2, 1, 0))

    return {
        "w1q": w1q.astype(bf16), "b1": p["conv1_b"].reshape(1, 64).astype(f32),
        "w2p": w2p.astype(bf16), "b2": p["conv2_b"].reshape(1, 128).astype(f32),
        "w1p": w1p.astype(bf16), "f1b": p["fc1_b"].reshape(1, 120).astype(f32),
        "f2w": p["fc2_w"].T.astype(bf16), "f2b": p["fc2_b"].reshape(1, 84).astype(f32),
        "f3w": p["fc3_w"].T.astype(bf16), "f3b": p["fc3_b"].reshape(1, 10).astype(f32),
    }


@jax.jit
def cnn_forward(x_nchw, prep):
    N = x_nchw.shape[0]
    B = min(8, N)                      # batch block; fits VMEM comfortably even on v7x
    Np = ((N + B - 1) // B) * B
    xq = _build_conv1_quad_patches(x_nchw)                                # (N,196,300)
    if Np != N:
        xq = jnp.pad(xq, ((0, Np - N), (0, 0), (0, 0)))

    kernel = functools.partial(_cnn_fused_kernel, B=B)
    out = pl.pallas_call(
        kernel,
        out_shape=jax.ShapeDtypeStruct((Np, 10), jnp.float32),
        grid_spec=pltpu.PrefetchScalarGridSpec(
            num_scalar_prefetch=0,
            grid=(Np // B,),
            in_specs=[
                pl.BlockSpec((B, 196, 300), lambda n: (n, 0, 0)),
                pl.BlockSpec((300, 256), lambda n: (0, 0)),
                pl.BlockSpec((1, 64), lambda n: (0, 0)),
                pl.BlockSpec((15, 128, 128), lambda n: (0, 0, 0)),
                pl.BlockSpec((1, 128), lambda n: (0, 0)),
                pl.BlockSpec((25, 128, 120), lambda n: (0, 0, 0)),
                pl.BlockSpec((1, 120), lambda n: (0, 0)),
                pl.BlockSpec((120, 84), lambda n: (0, 0)),
                pl.BlockSpec((1, 84), lambda n: (0, 0)),
                pl.BlockSpec((84, 10), lambda n: (0, 0)),
                pl.BlockSpec((1, 10), lambda n: (0, 0)),
            ],
            out_specs=pl.BlockSpec((B, 10), lambda n: (n, 0)),
            scratch_shapes=[
                pltpu.VMEM((208, 128), jnp.bfloat16),    # h1d (duplicated/shifted h1)
                pltpu.VMEM((144, 128), jnp.float32),     # conv2 accumulator
                pltpu.VMEM((72, 128), jnp.float32),      # horizontally pooled conv2
                pltpu.VMEM((B, 25, 128), jnp.bfloat16),  # pooled features for the block
            ],
        ),
        compiler_params=pltpu.CompilerParams(dimension_semantics=("parallel",)),
    )(xq, prep["w1q"], prep["b1"], prep["w2p"], prep["b2"],
      prep["w1p"], prep["f1b"], prep["f2w"], prep["f2b"], prep["f3w"], prep["f3b"])
    return out[:N]


# ---------------------------- init + pure-JAX reference ----------------------------- #

def init_params(key):
    ks = jax.random.split(key, 10)

    def u(k, shape, fan_in):
        bound = 1.0 / jnp.sqrt(fan_in)
        return jax.random.uniform(k, shape, jnp.float32, -bound, bound)

    return {
        "conv1_w": u(ks[0], (64, 3, 5, 5), 3 * 5 * 5),
        "conv1_b": u(ks[1], (64,), 3 * 5 * 5),
        "conv2_w": u(ks[2], (128, 64, 5, 5), 64 * 5 * 5),
        "conv2_b": u(ks[3], (128,), 64 * 5 * 5),
        "fc1_w": u(ks[4], (120, 128 * 5 * 5), 128 * 5 * 5),   # PyTorch (out, in)
        "fc1_b": u(ks[5], (120,), 128 * 5 * 5),
        "fc2_w": u(ks[6], (84, 120), 120),
        "fc2_b": u(ks[7], (84,), 120),
        "fc3_w": u(ks[8], (10, 84), 84),
        "fc3_b": u(ks[9], (10,), 84),
    }


def reference_forward(x, p):
    dn = ("NCHW", "OIHW", "NCHW")
    y = jax.lax.conv_general_dilated(x, p["conv1_w"], (1, 1), "VALID", dimension_numbers=dn)
    y = jax.nn.relu(y + p["conv1_b"][None, :, None, None])
    y = jax.lax.reduce_window(y, -jnp.inf, jax.lax.max, (1, 1, 2, 2), (1, 1, 2, 2), "VALID")
    y = jax.lax.conv_general_dilated(y, p["conv2_w"], (1, 1), "VALID", dimension_numbers=dn)
    y = jax.nn.relu(y + p["conv2_b"][None, :, None, None])
    y = jax.lax.reduce_window(y, -jnp.inf, jax.lax.max, (1, 1, 2, 2), (1, 1, 2, 2), "VALID")
    y = y.reshape(y.shape[0], -1)
    y = jax.nn.relu(y @ p["fc1_w"].T + p["fc1_b"])
    y = jax.nn.relu(y @ p["fc2_w"].T + p["fc2_b"])
    return y @ p["fc3_w"].T + p["fc3_b"]


if __name__ == "__main__":
    key = jax.random.PRNGKey(0)
    pkey, xkey = jax.random.split(key)
    params = init_params(pkey)
    prep = prepare_params(params)
    # The module's 128*5*5 flatten requires 32x32 inputs; batch=2, channels=3.
    x = jax.random.normal(xkey, (2, 3, 32, 32), jnp.float32)

    out = jax.block_until_ready(cnn_forward(x, prep))
    assert out.shape == (2, 10) and out.dtype == jnp.float32

    ref = reference_forward(x, params)
    err = float(jnp.max(jnp.abs(out - ref)))
    assert bool(jnp.all(jnp.isfinite(out))) and err < 5e-2, f"mismatch vs reference: {err}"
    print("KERNEL_OK")
</pallas_src>

<mosaic_0001>
module attributes {stable_mosaic.version = 11 : i64} {
  func.func @_cnn_fused_kernel(%arg0: i32, %arg1: memref<2x196x300xbf16, #tpu.memory_space<vmem>>, %arg2: memref<300x256xbf16, #tpu.memory_space<vmem>>, %arg3: memref<1x64xf32, #tpu.memory_space<vmem>>, %arg4: memref<15x128x128xbf16, #tpu.memory_space<vmem>>, %arg5: memref<1x128xf32, #tpu.memory_space<vmem>>, %arg6: memref<25x128x120xbf16, #tpu.memory_space<vmem>>, %arg7: memref<1x120xf32, #tpu.memory_space<vmem>>, %arg8: memref<120x84xbf16, #tpu.memory_space<vmem>>, %arg9: memref<1x84xf32, #tpu.memory_space<vmem>>, %arg10: memref<84x10xbf16, #tpu.memory_space<vmem>>, %arg11: memref<1x10xf32, #tpu.memory_space<vmem>>, %arg12: memref<2x10xf32, #tpu.memory_space<vmem>>, %arg13: memref<208x128xbf16, #tpu.memory_space<vmem>>, %arg14: memref<144x128xf32, #tpu.memory_space<vmem>>, %arg15: memref<72x128xf32, #tpu.memory_space<vmem>>, %arg16: memref<2x25x128xbf16, #tpu.memory_space<vmem>>) attributes {dimension_semantics = [#tpu.dimension_semantics<parallel>], iteration_bounds = array<i64: 1>, scalar_prefetch = 0 : i64, scratch_operands = 4 : i64, tpu.core_type = #tpu.core_type<tc>, window_params = [{transform_indices = @transform_0, window_bounds = array<i64: 2, 196, 300>}, {pipeline_mode = #tpu.pipeline_mode<synchronous>, transform_indices = @transform_1, window_bounds = array<i64: 300, 256>}, {pipeline_mode = #tpu.pipeline_mode<synchronous>, transform_indices = @transform_2, window_bounds = array<i64: 1, 64>}, {pipeline_mode = #tpu.pipeline_mode<synchronous>, transform_indices = @transform_3, window_bounds = array<i64: 15, 128, 128>}, {pipeline_mode = #tpu.pipeline_mode<synchronous>, transform_indices = @transform_4, window_bounds = array<i64: 1, 128>}, {pipeline_mode = #tpu.pipeline_mode<synchronous>, transform_indices = @transform_5, window_bounds = array<i64: 25, 128, 120>}, {pipeline_mode = #tpu.pipeline_mode<synchronous>, transform_indices = @transform_6, window_bounds = array<i64: 1, 120>}, {pipeline_mode = #tpu.pipeline_mode<synchronous>, transform_indices = @transform_7, window_bounds = array<i64: 120, 84>}, {pipeline_mode = #tpu.pipeline_mode<synchronous>, transform_indices = @transform_8, window_bounds = array<i64: 1, 84>}, {pipeline_mode = #tpu.pipeline_mode<synchronous>, transform_indices = @transform_9, window_bounds = array<i64: 84, 10>}, {pipeline_mode = #tpu.pipeline_mode<synchronous>, transform_indices = @transform_10, window_bounds = array<i64: 1, 10>}, {transform_indices = @transform_11, window_bounds = array<i64: 2, 10>}]} {
    %cst = arith.constant 0.000000e+00 : bf16
    %0 = vector.broadcast %cst : bf16 to vector<12x128xbf16>
    %c196 = arith.constant 196 : index
    %c0 = arith.constant 0 : index
    %1 = vector.load %arg13[%c196, %c0] : memref<208x128xbf16, #tpu.memory_space<vmem>>, vector<12x128xbf16>
    tpu.vector_store %arg13[%c196, %c0], %0 {strides = array<i32>} : memref<208x128xbf16, #tpu.memory_space<vmem>>, vector<12x128xbf16>,
    %c0_0 = arith.constant 0 : index
    %c0_1 = arith.constant 0 : index
    %2 = vector.load %arg3[%c0_0, %c0_1] : memref<1x64xf32, #tpu.memory_space<vmem>>, vector<1x64xf32>
    %c0_2 = arith.constant 0 : index
    %c0_3 = arith.constant 0 : index
    %3 = vector.load %arg5[%c0_2, %c0_3] : memref<1x128xf32, #tpu.memory_space<vmem>>, vector<1x128xf32>
    %c0_4 = arith.constant 0 : index
    %c0_5 = arith.constant 0 : index
    %c0_6 = arith.constant 0 : index
    %4 = vector.load %arg1[%c0_4, %c0_5, %c0_6] : memref<2x196x300xbf16, #tpu.memory_space<vmem>>, vector<1x196x300xbf16>
    %5 = vector.shape_cast %4 : vector<1x196x300xbf16> to vector<196x300xbf16>
    %c0_7 = arith.constant 0 : index
    %c0_8 = arith.constant 0 : index
    %6 = vector.load %arg2[%c0_7, %c0_8] : memref<300x256xbf16, #tpu.memory_space<vmem>>, vector<300x256xbf16>
    %cst_9 = arith.constant dense<0.000000e+00> : vector<196x256xf32>
    %7 = tpu.matmul %5, %6, %cst_9 {dimension_numbers = #tpu.dot_dimension_numbers<[1], [0], [0], [1], [0, 0, 1, 1], [], []>} : vector<196x300xbf16>, vector<300x256xbf16>, vector<196x256xf32> -> vector<196x256xf32>
    %8 = vector.extract_strided_slice %7 {offsets = [0, 0], sizes = [196, 64], strides = [1, 1]} : vector<196x256xf32> to vector<196x64xf32>
    %9 = vector.extract_strided_slice %7 {offsets = [0, 64], sizes = [196, 64], strides = [1, 1]} : vector<196x256xf32> to vector<196x64xf32>
    %10 = arith.maximumf %8, %9 : vector<196x64xf32>
    %11 = vector.extract_strided_slice %7 {offsets = [0, 128], sizes = [196, 64], strides = [1, 1]} : vector<196x256xf32> to vector<196x64xf32>
    %12 = vector.extract_strided_slice %7 {offsets = [0, 192], sizes = [196, 64], strides = [1, 1]} : vector<196x256xf32> to vector<196x64xf32>
    %13 = arith.maximumf %11, %12 : vector<196x64xf32>
    %14 = arith.maximumf %10, %13 : vector<196x64xf32>
    %15 = vector.broadcast %2 : vector<1x64xf32> to vector<196x64xf32>
    %16 = arith.addf %14, %15 : vector<196x64xf32>
    %cst_10 = arith.constant 0.000000e+00 : f32
    %17 = vector.broadcast %cst_10 : f32 to vector<196x64xf32>
    %18 = arith.maximumf %16, %17 : vector<196x64xf32>
    %19 = arith.truncf %18 : vector<196x64xf32> to vector<196x64xbf16>
    %c0_11 = arith.constant 0 : index
    %c0_12 = arith.constant 0 : index
    %20 = vector.load %arg13[%c0_11, %c0_12] : memref<208x128xbf16, #tpu.memory_space<vmem>>, vector<196x64xbf16>
    tpu.vector_store %arg13[%c0_11, %c0_12], %19 {strides = array<i32>} : memref<208x128xbf16, #tpu.memory_space<vmem>>, vector<196x64xbf16>,
    %c1 = arith.constant 1 : index
    %c0_13 = arith.constant 0 : index
    %21 = vector.load %arg13[%c1, %c0_13] : memref<208x128xbf16, #tpu.memory_space<vmem>>, vector<196x64xbf16>
    %c0_14 = arith.constant 0 : index
    %c64 = arith.constant 64 : index
    %22 = vector.load %arg13[%c0_14, %c64] : memref<208x128xbf16, #tpu.memory_space<vmem>>, vector<196x64xbf16>
    tpu.vector_store %arg13[%c0_14, %c64], %21 {strides = array<i32>} : memref<208x128xbf16, #tpu.memory_space<vmem>>, vector<196x64xbf16>,
    %c0_15 = arith.constant 0 : index
    %c0_16 = arith.constant 0 : index
    %23 = vector.load %arg13[%c0_15, %c0_16] : memref<208x128xbf16, #tpu.memory_space<vmem>>, vector<144x128xbf16>
    %c0_17 = arith.constant 0 : index
    %c0_18 = arith.constant 0 : index
    %c0_19 = arith.constant 0 : index
    %24 = vector.load %arg4[%c0_17, %c0_18, %c0_19] : memref<15x128x128xbf16, #tpu.memory_space<vmem>>, vector<1x128x128xbf16>
    %25 = vector.shape_cast %24 : vector<1x128x128xbf16> to vector<128x128xbf16>
    %cst_20 = arith.constant dense<0.000000e+00> : vector<144x128xf32>
    %26 = tpu.matmul %23, %25, %cst_20 {dimension_numbers = #tpu.dot_dimension_numbers<[1], [0], [0], [1], [0, 0, 1, 1], [], []>} : vector<144x128xbf16>, vector<128x128xbf16>, vector<144x128xf32> -> vector<144x128xf32>
    %c2 = arith.constant 2 : index
    %c0_21 = arith.constant 0 : index
    %27 = vector.load %arg13[%c2, %c0_21] : memref<208x128xbf16, #tpu.memory_space<vmem>>, vector<144x128xbf16>
    %c1_22 = arith.constant 1 : index
    %c0_23 = arith.constant 0 : index
    %c0_24 = arith.constant 0 : index
    %28 = vector.load %arg4[%c1_22, %c0_23, %c0_24] : memref<15x128x128xbf16, #tpu.memory_space<vmem>>, vector<1x128x128xbf16>
    %29 = vector.shape_cast %28 : vector<1x128x128xbf16> to vector<128x128xbf16>
    %cst_25 = arith.constant dense<0.000000e+00> : vector<144x128xf32>
    %30 = tpu.matmul %27, %29, %cst_25 {dimension_numbers = #tpu.dot_dimension_numbers<[1], [0], [0], [1], [0, 0, 1, 1], [], []>} : vector<144x128xbf16>, vector<128x128xbf16>, vector<144x128xf32> -> vector<144x128xf32>
    %31 = arith.addf %26, %30 : vector<144x128xf32>
    %c4 = arith.constant 4 : index
    %c0_26 = arith.constant 0 : index
    %32 = vector.load %arg13[%c4, %c0_26] : memref<208x128xbf16, #tpu.memory_space<vmem>>, vector<144x128xbf16>
    %c2_27 = arith.constant 2 : index
    %c0_28 = arith.constant 0 : index
    %c0_29 = arith.constant 0 : index
    %33 = vector.load %arg4[%c2_27, %c0_28, %c0_29] : memref<15x128x128xbf16, #tpu.memory_space<vmem>>, vector<1x128x128xbf16>
    %34 = vector.shape_cast %33 : vector<1x128x128xbf16> to vector<128x128xbf16>
    %cst_30 = arith.constant dense<0.000000e+00> : vector<144x128xf32>
    %35 = tpu.matmul %32, %34, %cst_30 {dimension_numbers = #tpu.dot_dimension_numbers<[1], [0], [0], [1], [0, 0, 1, 1], [], []>} : vector<144x128xbf16>, vector<128x128xbf16>, vector<144x128xf32> -> vector<144x128xf32>
    %36 = arith.addf %31, %35 : vector<144x128xf32>
    %c14 = arith.constant 14 : index
    %c0_31 = arith.constant 0 : index
    %37 = vector.load %arg13[%c14, %c0_31] : memref<208x128xbf16, #tpu.memory_space<vmem>>, vector<144x128xbf16>
    %c3 = arith.constant 3 : index
    %c0_32 = arith.constant 0 : index
    %c0_33 = arith.constant 0 : index
    %38 = vector.load %arg4[%c3, %c0_32, %c0_33] : memref<15x128x128xbf16, #tpu.memory_space<vmem>>, vector<1x128x128xbf16>
    %39 = vector.shape_cast %38 : vector<1x128x128xbf16> to vector<128x128xbf16>
    %cst_34 = arith.constant dense<0.000000e+00> : vector<144x128xf32>
    %40 = tpu.matmul %37, %39, %cst_34 {dimension_numbers = #tpu.dot_dimension_numbers<[1], [0], [0], [1], [0, 0, 1, 1], [], []>} : vector<144x128xbf16>, vector<128x128xbf16>, vector<144x128xf32> -> vector<144x128xf32>
    %41 = arith.addf %36, %40 : vector<144x128xf32>
    %c16 = arith.constant 16 : index
    %c0_35 = arith.constant 0 : index
    %42 = vector.load %arg13[%c16, %c0_35] : memref<208x128xbf16, #tpu.memory_space<vmem>>, vector<144x128xbf16>
    %c4_36 = arith.constant 4 : index
    %c0_37 = arith.constant 0 : index
    %c0_38 = arith.constant 0 : index
    %43 = vector.load %arg4[%c4_36, %c0_37, %c0_38] : memref<15x128x128xbf16, #tpu.memory_space<vmem>>, vector<1x128x128xbf16>
    %44 = vector.shape_cast %43 : vector<1x128x128xbf16> to vector<128x128xbf16>
    %cst_39 = arith.constant dense<0.000000e+00> : vector<144x128xf32>
    %45 = tpu.matmul %42, %44, %cst_39 {dimension_numbers = #tpu.dot_dimension_numbers<[1], [0], [0], [1], [0, 0, 1, 1], [], []>} : vector<144x128xbf16>, vector<128x128xbf16>, vector<144x128xf32> -> vector<144x128xf32>
    %46 = arith.addf %41, %45 : vector<144x128xf32>
    %c18 = arith.constant 18 : index
    %c0_40 = arith.constant 0 : index
    %47 = vector.load %arg13[%c18, %c0_40] : memref<208x128xbf16, #tpu.memory_space<vmem>>, vector<144x128xbf16>
    %c5 = arith.constant 5 : index
    %c0_41 = arith.constant 0 : index
    %c0_42 = arith.constant 0 : index
    %48 = vector.load %arg4[%c5, %c0_41, %c0_42] : memref<15x128x128xbf16, #tpu.memory_space<vmem>>, vector<1x128x128xbf16>
    %49 = vector.shape_cast %48 : vector<1x128x128xbf16> to vector<128x128xbf16>
    %cst_43 = arith.constant dense<0.000000e+00> : vector<144x128xf32>
    %50 = tpu.matmul %47, %49, %cst_43 {dimension_numbers = #tpu.dot_dimension_numbers<[1], [0], [0], [1], [0, 0, 1, 1], [], []>} : vector<144x128xbf16>, vector<128x128xbf16>, vector<144x128xf32> -> vector<144x128xf32>
    %51 = arith.addf %46, %50 : vector<144x128xf32>
    %c28 = arith.constant 28 : index
    %c0_44 = arith.constant 0 : index
    %52 = vector.load %arg13[%c28, %c0_44] : memref<208x128xbf16, #tpu.memory_space<vmem>>, vector<144x128xbf16>
    %c6 = arith.constant 6 : index
    %c0_45 = arith.constant 0 : index
    %c0_46 = arith.constant 0 : index
    %53 = vector.load %arg4[%c6, %c0_45, %c0_46] : memref<15x128x128xbf16, #tpu.memory_space<vmem>>, vector<1x128x128xbf16>
    %54 = vector.shape_cast %53 : vector<1x128x128xbf16> to vector<128x128xbf16>
    %cst_47 = arith.constant dense<0.000000e+00> : vector<144x128xf32>
    %55 = tpu.matmul %52, %54, %cst_47 {dimension_numbers = #tpu.dot_dimension_numbers<[1], [0], [0], [1], [0, 0, 1, 1], [], []>} : vector<144x128xbf16>, vector<128x128xbf16>, vector<144x128xf32> -> vector<144x128xf32>
    %56 = arith.addf %51, %55 : vector<144x128xf32>
    %c30 = arith.constant 30 : index
    %c0_48 = arith.constant 0 : index
    %57 = vector.load %arg13[%c30, %c0_48] : memref<208x128xbf16, #tpu.memory_space<vmem>>, vector<144x128xbf16>
    %c7 = arith.constant 7 : index
    %c0_49 = arith.constant 0 : index
    %c0_50 = arith.constant 0 : index
    %58 = vector.load %arg4[%c7, %c0_49, %c0_50] : memref<15x128x128xbf16, #tpu.memory_space<vmem>>, vector<1x128x128xbf16>
    %59 = vector.shape_cast %58 : vector<1x128x128xbf16> to vector<128x128xbf16>
    %cst_51 = arith.constant dense<0.000000e+00> : vector<144x128xf32>
    %60 = tpu.matmul %57, %59, %cst_51 {dimension_numbers = #tpu.dot_dimension_numbers<[1], [0], [0], [1], [0, 0, 1, 1], [], []>} : vector<144x128xbf16>, vector<128x128xbf16>, vector<144x128xf32> -> vector<144x128xf32>
    %61 = arith.addf %56, %60 : vector<144x128xf32>
    %c32 = arith.constant 32 : index
    %c0_52 = arith.constant 0 : index
    %62 = vector.load %arg13[%c32, %c0_52] : memref<208x128xbf16, #tpu.memory_space<vmem>>, vector<144x128xbf16>
    %c8 = arith.constant 8 : index
    %c0_53 = arith.constant 0 : index
    %c0_54 = arith.constant 0 : index
    %63 = vector.load %arg4[%c8, %c0_53, %c0_54] : memref<15x128x128xbf16, #tpu.memory_space<vmem>>, vector<1x128x128xbf16>
    %64 = vector.shape_cast %63 : vector<1x128x128xbf16> to vector<128x128xbf16>
    %cst_55 = arith.constant dense<0.000000e+00> : vector<144x128xf32>
    %65 = tpu.matmul %62, %64, %cst_55 {dimension_numbers = #tpu.dot_dimension_numbers<[1], [0], [0], [1], [0, 0, 1, 1], [], []>} : vector<144x128xbf16>, vector<128x128xbf16>, vector<144x128xf32> -> vector<144x128xf32>
    %66 = arith.addf %61, %65 : vector<144x128xf32>
    %c42 = arith.constant 42 : index
    %c0_56 = arith.constant 0 : index
    %67 = vector.load %arg13[%c42, %c0_56] : memref<208x128xbf16, #tpu.memory_space<vmem>>, vector<144x128xbf16>
    %c9 = arith.constant 9 : index
    %c0_57 = arith.constant 0 : index
    %c0_58 = arith.constant 0 : index
    %68 = vector.load %arg4[%c9, %c0_57, %c0_58] : memref<15x128x128xbf16, #tpu.memory_space<vmem>>, vector<1x128x128xbf16>
    %69 = vector.shape_cast %68 : vector<1x128x128xbf16> to vector<128x128xbf16>
    %cst_59 = arith.constant dense<0.000000e+00> : vector<144x128xf32>
    %70 = tpu.matmul %67, %69, %cst_59 {dimension_numbers = #tpu.dot_dimension_numbers<[1], [0], [0], [1], [0, 0, 1, 1], [], []>} : vector<144x128xbf16>, vector<128x128xbf16>, vector<144x128xf32> -> vector<144x128xf32>
    %71 = arith.addf %66, %70 : vector<144x128xf32>
    %c44 = arith.constant 44 : index
    %c0_60 = arith.constant 0 : index
    %72 = vector.load %arg13[%c44, %c0_60] : memref<208x128xbf16, #tpu.memory_space<vmem>>, vector<144x128xbf16>
    %c10 = arith.constant 10 : index
    %c0_61 = arith.constant 0 : index
    %c0_62 = arith.constant 0 : index
    %73 = vector.load %arg4[%c10, %c0_61, %c0_62] : memref<15x128x128xbf16, #tpu.memory_space<vmem>>, vector<1x128x128xbf16>
    %74 = vector.shape_cast %73 : vector<1x128x128xbf16> to vector<128x128xbf16>
    %cst_63 = arith.constant dense<0.000000e+00> : vector<144x128xf32>
    %75 = tpu.matmul %72, %74, %cst_63 {dimension_numbers = #tpu.dot_dimension_numbers<[1], [0], [0], [1], [0, 0, 1, 1], [], []>} : vector<144x128xbf16>, vector<128x128xbf16>, vector<144x128xf32> -> vector<144x128xf32>
    %76 = arith.addf %71, %75 : vector<144x128xf32>
    %c46 = arith.constant 46 : index
    %c0_64 = arith.constant 0 : index
    %77 = vector.load %arg13[%c46, %c0_64] : memref<208x128xbf16, #tpu.memory_space<vmem>>, vector<144x128xbf16>
    %c11 = arith.constant 11 : index
    %c0_65 = arith.constant 0 : index
    %c0_66 = arith.constant 0 : index
    %78 = vector.load %arg4[%c11, %c0_65, %c0_66] : memref<15x128x128xbf16, #tpu.memory_space<vmem>>, vector<1x128x128xbf16>
    %79 = vector.shape_cast %78 : vector<1x128x128xbf16> to vector<128x128xbf16>
    %cst_67 = arith.constant dense<0.000000e+00> : vector<144x128xf32>
    %80 = tpu.matmul %77, %79, %cst_67 {dimension_numbers = #tpu.dot_dimension_numbers<[1], [0], [0], [1], [0, 0, 1, 1], [], []>} : vector<144x128xbf16>, vector<128x128xbf16>, vector<144x128xf32> -> vector<144x128xf32>
    %81 = arith.addf %76, %80 : vector<144x128xf32>
    %c56 = arith.constant 56 : index
    %c0_68 = arith.constant 0 : index
    %82 = vector.load %arg13[%c56, %c0_68] : memref<208x128xbf16, #tpu.memory_space<vmem>>, vector<144x128xbf16>
    %c12 = arith.constant 12 : index
    %c0_69 = arith.constant 0 : index
    %c0_70 = arith.constant 0 : index
    %83 = vector.load %arg4[%c12, %c0_69, %c0_70] : memref<15x128x128xbf16, #tpu.memory_space<vmem>>, vector<1x128x128xbf16>
    %84 = vector.shape_cast %83 : vector<1x128x128xbf16> to vector<128x128xbf16>
    %cst_71 = arith.constant dense<0.000000e+00> : vector<144x128xf32>
    %85 = tpu.matmul %82, %84, %cst_71 {dimension_numbers = #tpu.dot_dimension_numbers<[1], [0], [0], [1], [0, 0, 1, 1], [], []>} : vector<144x128xbf16>, vector<128x128xbf16>, vector<144x128xf32> -> vector<144x128xf32>
    %86 = arith.addf %81, %85 : vector<144x128xf32>
    %c58 = arith.constant 58 : index
    %c0_72 = arith.constant 0 : index
    %87 = vector.load %arg13[%c58, %c0_72] : memref<208x128xbf16, #tpu.memory_space<vmem>>, vector<144x128xbf16>
    %c13 = arith.constant 13 : index
    %c0_73 = arith.constant 0 : index
    %c0_74 = arith.constant 0 : index
    %88 = vector.load %arg4[%c13, %c0_73, %c0_74] : memref<15x128x128xbf16, #tpu.memory_space<vmem>>, vector<1x128x128xbf16>
    %89 = vector.shape_cast %88 : vector<1x128x128xbf16> to vector<128x128xbf16>
    %cst_75 = arith.constant dense<0.000000e+00> : vector<144x128xf32>
    %90 = tpu.matmul %87, %89, %cst_75 {dimension_numbers = #tpu.dot_dimension_numbers<[1], [0], [0], [1], [0, 0, 1, 1], [], []>} : vector<144x128xbf16>, vector<128x128xbf16>, vector<144x128xf32> -> vector<144x128xf32>
    %91 = arith.addf %86, %90 : vector<144x128xf32>
    %c60 = arith.constant 60 : index
    %c0_76 = arith.constant 0 : index
    %92 = vector.load %arg13[%c60, %c0_76] : memref<208x128xbf16, #tpu.memory_space<vmem>>, vector<144x128xbf16>
    %c14_77 = arith.constant 14 : index
    %c0_78 = arith.constant 0 : index
    %c0_79 = arith.constant 0 : index
    %93 = vector.load %arg4[%c14_77, %c0_78, %c0_79] : memref<15x128x128xbf16, #tpu.memory_space<vmem>>, vector<1x128x128xbf16>
    %94 = vector.shape_cast %93 : vector<1x128x128xbf16> to vector<128x128xbf16>
    %cst_80 = arith.constant dense<0.000000e+00> : vector<144x128xf32>
    %95 = tpu.matmul %92, %94, %cst_80 {dimension_numbers = #tpu.dot_dimension_numbers<[1], [0], [0], [1], [0, 0, 1, 1], [], []>} : vector<144x128xbf16>, vector<128x128xbf16>, vector<144x128xf32> -> vector<144x128xf32>
    %96 = arith.addf %91, %95 : vector<144x128xf32>
    %c0_81 = arith.constant 0 : index
    %c0_82 = arith.constant 0 : index
    %97 = vector.load %arg14[%c0_81, %c0_82] : memref<144x128xf32, #tpu.memory_space<vmem>>, vector<144x128xf32>
    tpu.vector_store %arg14[%c0_81, %c0_82], %96 {strides = array<i32>} : memref<144x128xf32, #tpu.memory_space<vmem>>, vector<144x128xf32>,
    %c0_83 = arith.constant 0 : index
    %c0_84 = arith.constant 0 : index
    %98 = tpu.strided_load %arg14[%c0_83, %c0_84] {strides = array<i32: 2, 1>} : memref<144x128xf32, #tpu.memory_space<vmem>>, vector<70x128xf32>
    %c1_85 = arith.constant 1 : index
    %c0_86 = arith.constant 0 : index
    %99 = tpu.strided_load %arg14[%c1_85, %c0_86] {strides = array<i32: 2, 1>} : memref<144x128xf32, #tpu.memory_space<vmem>>, vector<70x128xf32>
    %100 = arith.maximumf %98, %99 : vector<70x128xf32>
    %c0_87 = arith.constant 0 : index
    %c0_88 = arith.constant 0 : index
    %101 = vector.load %arg15[%c0_87, %c0_88] : memref<72x128xf32, #tpu.memory_space<vmem>>, vector<70x128xf32>
    tpu.vector_store %arg15[%c0_87, %c0_88], %100 {strides = array<i32>} : memref<72x128xf32, #tpu.memory_space<vmem>>, vector<70x128xf32>,
    %c0_89 = arith.constant 0 : index
    %c0_90 = arith.constant 0 : index
    %102 = vector.load %arg15[%c0_89, %c0_90] : memref<72x128xf32, #tpu.memory_space<vmem>>, vector<5x128xf32>
    %c7_91 = arith.constant 7 : index
    %c0_92 = arith.constant 0 : index
    %103 = vector.load %arg15[%c7_91, %c0_92] : memref<72x128xf32, #tpu.memory_space<vmem>>, vector<5x128xf32>
    %104 = arith.maximumf %102, %103 : vector<5x128xf32>
    %105 = vector.broadcast %3 : vector<1x128xf32> to vector<5x128xf32>
    %106 = arith.addf %104, %105 : vector<5x128xf32>
    %cst_93 = arith.constant 0.000000e+00 : f32
    %107 = vector.broadcast %cst_93 : f32 to vector<5x128xf32>
    %108 = arith.maximumf %106, %107 : vector<5x128xf32>
    %109 = arith.truncf %108 : vector<5x128xf32> to vector<5x128xbf16>
    %c0_94 = arith.constant 0 : index
    %c0_95 = arith.constant 0 : index
    %c0_96 = arith.constant 0 : index
    %110 = vector.load %arg16[%c0_94, %c0_95, %c0_96] : memref<2x25x128xbf16, #tpu.memory_space<vmem>>, vector<1x5x128xbf16>
    %111 = vector.shape_cast %110 : vector<1x5x128xbf16> to vector<5x128xbf16>
    %112 = vector.shape_cast %109 : vector<5x128xbf16> to vector<1x5x128xbf16>
    tpu.vector_store %arg16[%c0_94, %c0_95, %c0_96], %112 {strides = array<i32>} : memref<2x25x128xbf16, #tpu.memory_space<vmem>>, vector<1x5x128xbf16>,
    %c14_97 = arith.constant 14 : index
    %c0_98 = arith.constant 0 : index
    %113 = vector.load %arg15[%c14_97, %c0_98] : memref<72x128xf32, #tpu.memory_space<vmem>>, vector<5x128xf32>
    %c21 = arith.constant 21 : index
    %c0_99 = arith.constant 0 : index
    %114 = vector.load %arg15[%c21, %c0_99] : memref<72x128xf32, #tpu.memory_space<vmem>>, vector<5x128xf32>
    %115 = arith.maximumf %113, %114 : vector<5x128xf32>
    %116 = vector.broadcast %3 : vector<1x128xf32> to vector<5x128xf32>
    %117 = arith.addf %115, %116 : vector<5x128xf32>
    %cst_100 = arith.constant 0.000000e+00 : f32
    %118 = vector.broadcast %cst_100 : f32 to vector<5x128xf32>
    %119 = arith.maximumf %117, %118 : vector<5x128xf32>
    %120 = arith.truncf %119 : vector<5x128xf32> to vector<5x128xbf16>
    %c0_101 = arith.constant 0 : index
    %c5_102 = arith.constant 5 : index
    %c0_103 = arith.constant 0 : index
    %121 = vector.load %arg16[%c0_101, %c5_102, %c0_103] : memref<2x25x128xbf16, #tpu.memory_space<vmem>>, vector<1x5x128xbf16>
    %122 = vector.shape_cast %121 : vector<1x5x128xbf16> to vector<5x128xbf16>
    %123 = vector.shape_cast %120 : vector<5x128xbf16> to vector<1x5x128xbf16>
    tpu.vector_store %arg16[%c0_101, %c5_102, %c0_103], %123 {strides = array<i32>} : memref<2x25x128xbf16, #tpu.memory_space<vmem>>, vector<1x5x128xbf16>,
    %c28_104 = arith.constant 28 : index
    %c0_105 = arith.constant 0 : index
    %124 = vector.load %arg15[%c28_104, %c0_105] : memref<72x128xf32, #tpu.memory_space<vmem>>, vector<5x128xf32>
    %c35 = arith.constant 35 : index
    %c0_106 = arith.constant 0 : index
    %125 = vector.load %arg15[%c35, %c0_106] : memref<72x128xf32, #tpu.memory_space<vmem>>, vector<5x128xf32>
    %126 = arith.maximumf %124, %125 : vector<5x128xf32>
    %127 = vector.broadcast %3 : vector<1x128xf32> to vector<5x128xf32>
    %128 = arith.addf %126, %127 : vector<5x128xf32>
    %cst_107 = arith.constant 0.000000e+00 : f32
    %129 = vector.broadcast %cst_107 : f32 to vector<5x128xf32>
    %130 = arith.maximumf %128, %129 : vector<5x128xf32>
    %131 = arith.truncf %130 : vector<5x128xf32> to vector<5x128xbf16>
    %c0_108 = arith.constant 0 : index
    %c10_109 = arith.constant 10 : index
    %c0_110 = arith.constant 0 : index
    %132 = vector.load %arg16[%c0_108, %c10_109, %c0_110] : memref<2x25x128xbf16, #tpu.memory_space<vmem>>, vector<1x5x128xbf16>
    %133 = vector.shape_cast %132 : vector<1x5x128xbf16> to vector<5x128xbf16>
    %134 = vector.shape_cast %131 : vector<5x128xbf16> to vector<1x5x128xbf16>
    tpu.vector_store %arg16[%c0_108, %c10_109, %c0_110], %134 {strides = array<i32>} : memref<2x25x128xbf16, #tpu.memory_space<vmem>>, vector<1x5x128xbf16>,
    %c42_111 = arith.constant 42 : index
    %c0_112 = arith.constant 0 : index
    %135 = vector.load %arg15[%c42_111, %c0_112] : memref<72x128xf32, #tpu.memory_space<vmem>>, vector<5x128xf32>
    %c49 = arith.constant 49 : index
    %c0_113 = arith.constant 0 : index
    %136 = vector.load %arg15[%c49, %c0_113] : memref<72x128xf32, #tpu.memory_space<vmem>>, vector<5x128xf32>
    %137 = arith.maximumf %135, %136 : vector<5x128xf32>
    %138 = vector.broadcast %3 : vector<1x128xf32> to vector<5x128xf32>
    %139 = arith.addf %137, %138 : vector<5x128xf32>
    %cst_114 = arith.constant 0.000000e+00 : f32
    %140 = vector.broadcast %cst_114 : f32 to vector<5x128xf32>
    %141 = arith.maximumf %139, %140 : vector<5x128xf32>
    %142 = arith.truncf %141 : vector<5x128xf32> to vector<5x128xbf16>
    %c0_115 = arith.constant 0 : index
    %c15 = arith.constant 15 : index
    %c0_116 = arith.constant 0 : index
    %143 = vector.load %arg16[%c0_115, %c15, %c0_116] : memref<2x25x128xbf16, #tpu.memory_space<vmem>>, vector<1x5x128xbf16>
    %144 = vector.shape_cast %143 : vector<1x5x128xbf16> to vector<5x128xbf16>
    %145 = vector.shape_cast %142 : vector<5x128xbf16> to vector<1x5x128xbf16>
    tpu.vector_store %arg16[%c0_115, %c15, %c0_116], %145 {strides = array<i32>} : memref<2x25x128xbf16, #tpu.memory_space<vmem>>, vector<1x5x128xbf16>,
    %c56_117 = arith.constant 56 : index
    %c0_118 = arith.constant 0 : index
    %146 = vector.load %arg15[%c56_117, %c0_118] : memref<72x128xf32, #tpu.memory_space<vmem>>, vector<5x128xf32>
    %c63 = arith.constant 63 : index
    %c0_119 = arith.constant 0 : index
    %147 = vector.load %arg15[%c63, %c0_119] : memref<72x128xf32, #tpu.memory_space<vmem>>, vector<5x128xf32>
    %148 = arith.maximumf %146, %147 : vector<5x128xf32>
    %149 = vector.broadcast %3 : vector<1x128xf32> to vector<5x128xf32>
    %150 = arith.addf %148, %149 : vector<5x128xf32>
    %cst_120 = arith.constant 0.000000e+00 : f32
    %151 = vector.broadcast %cst_120 : f32 to vector<5x128xf32>
    %152 = arith.maximumf %150, %151 : vector<5x128xf32>
    %153 = arith.truncf %152 : vector<5x128xf32> to vector<5x128xbf16>
    %c0_121 = arith.constant 0 : index
    %c20 = arith.constant 20 : index
    %c0_122 = arith.constant 0 : index
    %154 = vector.load %arg16[%c0_121, %c20, %c0_122] : memref<2x25x128xbf16, #tpu.memory_space<vmem>>, vector<1x5x128xbf16>
    %155 = vector.shape_cast %154 : vector<1x5x128xbf16> to vector<5x128xbf16>
    %156 = vector.shape_cast %153 : vector<5x128xbf16> to vector<1x5x128xbf16>
    tpu.vector_store %arg16[%c0_121, %c20, %c0_122], %156 {strides = array<i32>} : memref<2x25x128xbf16, #tpu.memory_space<vmem>>, vector<1x5x128xbf16>,
    %c1_123 = arith.constant 1 : index
    %c0_124 = arith.constant 0 : index
    %c0_125 = arith.constant 0 : index
    %157 = vector.load %arg1[%c1_123, %c0_124, %c0_125] : memref<2x196x300xbf16, #tpu.memory_space<vmem>>, vector<1x196x300xbf16>
    %158 = vector.shape_cast %157 : vector<1x196x300xbf16> to vector<196x300xbf16>
    %c0_126 = arith.constant 0 : index
    %c0_127 = arith.constant 0 : index
    %159 = vector.load %arg2[%c0_126, %c0_127] : memref<300x256xbf16, #tpu.memory_space<vmem>>, vector<300x256xbf16>
    %cst_128 = arith.constant dense<0.000000e+00> : vector<196x256xf32>
    %160 = tpu.matmul %158, %159, %cst_128 {dimension_numbers = #tpu.dot_dimension_numbers<[1], [0], [0], [1], [0, 0, 1, 1], [], []>} : vector<196x300xbf16>, vector<300x256xbf16>, vector<196x256xf32> -> vector<196x256xf32>
    %161 = vector.extract_strided_slice %160 {offsets = [0, 0], sizes = [196, 64], strides = [1, 1]} : vector<196x256xf32> to vector<196x64xf32>
    %162 = vector.extract_strided_slice %160 {offsets = [0, 64], sizes = [196, 64], strides = [1, 1]} : vector<196x256xf32> to vector<196x64xf32>
    %163 = arith.maximumf %161, %162 : vector<196x64xf32>
    %164 = vector.extract_strided_slice %160 {offsets = [0, 128], sizes = [196, 64], strides = [1, 1]} : vector<196x256xf32> to vector<196x64xf32>
    %165 = vector.extract_strided_slice %160 {offsets = [0, 192], sizes = [196, 64], strides = [1, 1]} : vector<196x256xf32> to vector<196x64xf32>
    %166 = arith.maximumf %164, %165 : vector<196x64xf32>
    %167 = arith.maximumf %163, %166 : vector<196x64xf32>
    %168 = vector.broadcast %2 : vector<1x64xf32> to vector<196x64xf32>
    %169 = arith.addf %167, %168 : vector<196x64xf32>
    %cst_129 = arith.constant 0.000000e+00 : f32
    %170 = vector.broadcast %cst_129 : f32 to vector<196x64xf32>
    %171 = arith.maximumf %169, %170 : vector<196x64xf32>
    %172 = arith.truncf %171 : vector<196x64xf32> to vector<196x64xbf16>
    %c0_130 = arith.constant 0 : index
    %c0_131 = arith.constant 0 : index
    %173 = vector.load %arg13[%c0_130, %c0_131] : memref<208x128xbf16, #tpu.memory_space<vmem>>, vector<196x64xbf16>
    tpu.vector_store %arg13[%c0_130, %c0_131], %172 {strides = array<i32>} : memref<208x128xbf16, #tpu.memory_space<vmem>>, vector<196x64xbf16>,
    %c1_132 = arith.constant 1 : index
    %c0_133 = arith.constant 0 : index
    %174 = vector.load %arg13[%c1_132, %c0_133] : memref<208x128xbf16, #tpu.memory_space<vmem>>, vector<196x64xbf16>
    %c0_134 = arith.constant 0 : index
    %c64_135 = arith.constant 64 : index
    %175 = vector.load %arg13[%c0_134, %c64_135] : memref<208x128xbf16, #tpu.memory_space<vmem>>, vector<196x64xbf16>
    tpu.vector_store %arg13[%c0_134, %c64_135], %174 {strides = array<i32>} : memref<208x128xbf16, #tpu.memory_space<vmem>>, vector<196x64xbf16>,
    %c0_136 = arith.constant 0 : index
    %c0_137 = arith.constant 0 : index
    %176 = vector.load %arg13[%c0_136, %c0_137] : memref<208x128xbf16, #tpu.memory_space<vmem>>, vector<144x128xbf16>
    %c0_138 = arith.constant 0 : index
    %c0_139 = arith.constant 0 : index
    %c0_140 = arith.constant 0 : index
    %177 = vector.load %arg4[%c0_138, %c0_139, %c0_140] : memref<15x128x128xbf16, #tpu.memory_space<vmem>>, vector<1x128x128xbf16>
    %178 = vector.shape_cast %177 : vector<1x128x128xbf16> to vector<128x128xbf16>
    %cst_141 = arith.constant dense<0.000000e+00> : vector<144x128xf32>
    %179 = tpu.matmul %176, %178, %cst_141 {dimension_numbers = #tpu.dot_dimension_numbers<[1], [0], [0], [1], [0, 0, 1, 1], [], []>} : vector<144x128xbf16>, vector<128x128xbf16>, vector<144x128xf32> -> vector<144x128xf32>
    %c2_142 = arith.constant 2 : index
    %c0_143 = arith.constant 0 : index
    %180 = vector.load %arg13[%c2_142, %c0_143] : memref<208x128xbf16, #tpu.memory_space<vmem>>, vector<144x128xbf16>
    %c1_144 = arith.constant 1 : index
    %c0_145 = arith.constant 0 : index
    %c0_146 = arith.constant 0 : index
    %181 = vector.load %arg4[%c1_144, %c0_145, %c0_146] : memref<15x128x128xbf16, #tpu.memory_space<vmem>>, vector<1x128x128xbf16>
    %182 = vector.shape_cast %181 : vector<1x128x128xbf16> to vector<128x128xbf16>
    %cst_147 = arith.constant dense<0.000000e+00> : vector<144x128xf32>
    %183 = tpu.matmul %180, %182, %cst_147 {dimension_numbers = #tpu.dot_dimension_numbers<[1], [0], [0], [1], [0, 0, 1, 1], [], []>} : vector<144x128xbf16>, vector<128x128xbf16>, vector<144x128xf32> -> vector<144x128xf32>
    %184 = arith.addf %179, %183 : vector<144x128xf32>
    %c4_148 = arith.constant 4 : index
    %c0_149 = arith.constant 0 : index
    %185 = vector.load %arg13[%c4_148, %c0_149] : memref<208x128xbf16, #tpu.memory_space<vmem>>, vector<144x128xbf16>
    %c2_150 = arith.constant 2 : index
    %c0_151 = arith.constant 0 : index
    %c0_152 = arith.constant 0 : index
    %186 = vector.load %arg4[%c2_150, %c0_151, %c0_152] : memref<15x128x128xbf16, #tpu.memory_space<vmem>>, vector<1x128x128xbf16>
    %187 = vector.shape_cast %186 : vector<1x128x128xbf16> to vector<128x128xbf16>
    %cst_153 = arith.constant dense<0.000000e+00> : vector<144x128xf32>
    %188 = tpu.matmul %185, %187, %cst_153 {dimension_numbers = #tpu.dot_dimension_numbers<[1], [0], [0], [1], [0, 0, 1, 1], [], []>} : vector<144x128xbf16>, vector<128x128xbf16>, vector<144x128xf32> -> vector<144x128xf32>
    %189 = arith.addf %184, %188 : vector<144x128xf32>
    %c14_154 = arith.constant 14 : index
    %c0_155 = arith.constant 0 : index
    %190 = vector.load %arg13[%c14_154, %c0_155] : memref<208x128xbf16, #tpu.memory_space<vmem>>, vector<144x128xbf16>
    %c3_156 = arith.constant 3 : index
    %c0_157 = arith.constant 0 : index
    %c0_158 = arith.constant 0 : index
    %191 = vector.load %arg4[%c3_156, %c0_157, %c0_158] : memref<15x128x128xbf16, #tpu.memory_space<vmem>>, vector<1x128x128xbf16>
    %192 = vector.shape_cast %191 : vector<1x128x128xbf16> to vector<128x128xbf16>
    %cst_159 = arith.constant dense<0.000000e+00> : vector<144x128xf32>
    %193 = tpu.matmul %190, %192, %cst_159 {dimension_numbers = #tpu.dot_dimension_numbers<[1], [0], [0], [1], [0, 0, 1, 1], [], []>} : vector<144x128xbf16>, vector<128x128xbf16>, vector<144x128xf32> -> vector<144x128xf32>
    %194 = arith.addf %189, %193 : vector<144x128xf32>
    %c16_160 = arith.constant 16 : index
    %c0_161 = arith.constant 0 : index
    %195 = vector.load %arg13[%c16_160, %c0_161] : memref<208x128xbf16, #tpu.memory_space<vmem>>, vector<144x128xbf16>
    %c4_162 = arith.constant 4 : index
    %c0_163 = arith.constant 0 : index
    %c0_164 = arith.constant 0 : index
    %196 = vector.load %arg4[%c4_162, %c0_163, %c0_164] : memref<15x128x128xbf16, #tpu.memory_space<vmem>>, vector<1x128x128xbf16>
    %197 = vector.shape_cast %196 : vector<1x128x128xbf16> to vector<128x128xbf16>
    %cst_165 = arith.constant dense<0.000000e+00> : vector<144x128xf32>
    %198 = tpu.matmul %195, %197, %cst_165 {dimension_numbers = #tpu.dot_dimension_numbers<[1], [0], [0], [1], [0, 0, 1, 1], [], []>} : vector<144x128xbf16>, vector<128x128xbf16>, vector<144x128xf32> -> vector<144x128xf32>
    %199 = arith.addf %194, %198 : vector<144x128xf32>
    %c18_166 = arith.constant 18 : index
    %c0_167 = arith.constant 0 : index
    %200 = vector.load %arg13[%c18_166, %c0_167] : memref<208x128xbf16, #tpu.memory_space<vmem>>, vector<144x128xbf16>
    %c5_168 = arith.constant 5 : index
    %c0_169 = arith.constant 0 : index
    %c0_170 = arith.constant 0 : index
    %201 = vector.load %arg4[%c5_168, %c0_169, %c0_170] : memref<15x128x128xbf16, #tpu.memory_space<vmem>>, vector<1x128x128xbf16>
    %202 = vector.shape_cast %201 : vector<1x128x128xbf16> to vector<128x128xbf16>
    %cst_171 = arith.constant dense<0.000000e+00> : vector<144x128xf32>
    %203 = tpu.matmul %200, %202, %cst_171 {dimension_numbers = #tpu.dot_dimension_numbers<[1], [0], [0], [1], [0, 0, 1, 1], [], []>} : vector<144x128xbf16>, vector<128x128xbf16>, vector<144x128xf32> -> vector<144x128xf32>
    %204 = arith.addf %199, %203 : vector<144x128xf32>
    %c28_172 = arith.constant 28 : index
    %c0_173 = arith.constant 0 : index
    %205 = vector.load %arg13[%c28_172, %c0_173] : memref<208x128xbf16, #tpu.memory_space<vmem>>, vector<144x128xbf16>
    %c6_174 = arith.constant 6 : index
    %c0_175 = arith.constant 0 : index
    %c0_176 = arith.constant 0 : index
    %206 = vector.load %arg4[%c6_174, %c0_175, %c0_176] : memref<15x128x128xbf16, #tpu.memory_space<vmem>>, vector<1x128x128xbf16>
    %207 = vector.shape_cast %206 : vector<1x128x128xbf16> to vector<128x128xbf16>
    %cst_177 = arith.constant dense<0.000000e+00> : vector<144x128xf32>
    %208 = tpu.matmul %205, %207, %cst_177 {dimension_numbers = #tpu.dot_dimension_numbers<[1], [0], [0], [1], [0, 0, 1, 1], [], []>} : vector<144x128xbf16>, vector<128x128xbf16>, vector<144x128xf32> -> vector<144x128xf32>
    %209 = arith.addf %204, %208 : vector<144x128xf32>
    %c30_178 = arith.constant 30 : index
    %c0_179 = arith.constant 0 : index
    %210 = vector.load %arg13[%c30_178, %c0_179] : memref<208x128xbf16, #tpu.memory_space<vmem>>, vector<144x128xbf16>
    %c7_180 = arith.constant 7 : index
    %c0_181 = arith.constant 0 : index
    %c0_182 = arith.constant 0 : index
    %211 = vector.load %arg4[%c7_180, %c0_181, %c0_182] : memref<15x128x128xbf16, #tpu.memory_space<vmem>>, vector<1x128x128xbf16>
    %212 = vector.shape_cast %211 : vector<1x128x128xbf16> to vector<128x128xbf16>
    %cst_183 = arith.constant dense<0.000000e+00> : vector<144x128xf32>
    %213 = tpu.matmul %210, %212, %cst_183 {dimension_numbers = #tpu.dot_dimension_numbers<[1], [0], [0], [1], [0, 0, 1, 1], [], []>} : vector<144x128xbf16>, vector<128x128xbf16>, vector<144x128xf32> -> vector<144x128xf32>
    %214 = arith.addf %209, %213 : vector<144x128xf32>
    %c32_184 = arith.constant 32 : index
    %c0_185 = arith.constant 0 : index
    %215 = vector.load %arg13[%c32_184, %c0_185] : memref<208x128xbf16, #tpu.memory_space<vmem>>, vector<144x128xbf16>
    %c8_186 = arith.constant 8 : index
    %c0_187 = arith.constant 0 : index
    %c0_188 = arith.constant 0 : index
    %216 = vector.load %arg4[%c8_186, %c0_187, %c0_188] : memref<15x128x128xbf16, #tpu.memory_space<vmem>>, vector<1x128x128xbf16>
    %217 = vector.shape_cast %216 : vector<1x128x128xbf16> to vector<128x128xbf16>
    %cst_189 = arith.constant dense<0.000000e+00> : vector<144x128xf32>
    %218 = tpu.matmul %215, %217, %cst_189 {dimension_numbers = #tpu.dot_dimension_numbers<[1], [0], [0], [1], [0, 0, 1, 1], [], []>} : vector<144x128xbf16>, vector<128x128xbf16>, vector<144x128xf32> -> vector<144x128xf32>
    %219 = arith.addf %214, %218 : vector<144x128xf32>
    %c42_190 = arith.constant 42 : index
    %c0_191 = arith.constant 0 : index
    %220 = vector.load %arg13[%c42_190, %c0_191] : memref<208x128xbf16, #tpu.memory_space<vmem>>, vector<144x128xbf16>
    %c9_192 = arith.constant 9 : index
    %c0_193 = arith.constant 0 : index
    %c0_194 = arith.constant 0 : index
    %221 = vector.load %arg4[%c9_192, %c0_193, %c0_194] : memref<15x128x128xbf16, #tpu.memory_space<vmem>>, vector<1x128x128xbf16>
    %222 = vector.shape_cast %221 : vector<1x128x128xbf16> to vector<128x128xbf16>
    %cst_195 = arith.constant dense<0.000000e+00> : vector<144x128xf32>
    %223 = tpu.matmul %220, %222, %cst_195 {dimension_numbers = #tpu.dot_dimension_numbers<[1], [0], [0], [1], [0, 0, 1, 1], [], []>} : vector<144x128xbf16>, vector<128x128xbf16>, vector<144x128xf32> -> vector<144x128xf32>
    %224 = arith.addf %219, %223 : vector<144x128xf32>
    %c44_196 = arith.constant 44 : index
    %c0_197 = arith.constant 0 : index
    %225 = vector.load %arg13[%c44_196, %c0_197] : memref<208x128xbf16, #tpu.memory_space<vmem>>, vector<144x128xbf16>
    %c10_198 = arith.constant 10 : index
    %c0_199 = arith.constant 0 : index
    %c0_200 = arith.constant 0 : index
    %226 = vector.load %arg4[%c10_198, %c0_199, %c0_200] : memref<15x128x128xbf16, #tpu.memory_space<vmem>>, vector<1x128x128xbf16>
    %227 = vector.shape_cast %226 : vector<1x128x128xbf16> to vector<128x128xbf16>
    %cst_201 = arith.constant dense<0.000000e+00> : vector<144x128xf32>
    %228 = tpu.matmul %225, %227, %cst_201 {dimension_numbers = #tpu.dot_dimension_numbers<[1], [0], [0], [1], [0, 0, 1, 1], [], []>} : vector<144x128xbf16>, vector<128x128xbf16>, vector<144x128xf32> -> vector<144x128xf32>
    %229 = arith.addf %224, %228 : vector<144x128xf32>
    %c46_202 = arith.constant 46 : index
    %c0_203 = arith.constant 0 : index
    %230 = vector.load %arg13[%c46_202, %c0_203] : memref<208x128xbf16, #tpu.memory_space<vmem>>, vector<144x128xbf16>
    %c11_204 = arith.constant 11 : index
    %c0_205 = arith.constant 0 : index
    %c0_206 = arith.constant 0 : index
    %231 = vector.load %arg4[%c11_204, %c0_205, %c0_206] : memref<15x128x128xbf16, #tpu.memory_space<vmem>>, vector<1x128x128xbf16>
    %232 = vector.shape_cast %231 : vector<1x128x128xbf16> to vector<128x128xbf16>
    %cst_207 = arith.constant dense<0.000000e+00> : vector<144x128xf32>
    %233 = tpu.matmul %230, %232, %cst_207 {dimension_numbers = #tpu.dot_dimension_numbers<[1], [0], [0], [1], [0, 0, 1, 1], [], []>} : vector<144x128xbf16>, vector<128x128xbf16>, vector<144x128xf32> -> vector<144x128xf32>
    %234 = arith.addf %229, %233 : vector<144x128xf32>
    %c56_208 = arith.constant 56 : index
    %c0_209 = arith.constant 0 : index
    %235 = vector.load %arg13[%c56_208, %c0_209] : memref<208x128xbf16, #tpu.memory_space<vmem>>, vector<144x128xbf16>
    %c12_210 = arith.constant 12 : index
    %c0_211 = arith.constant 0 : index
    %c0_212 = arith.constant 0 : index
    %236 = vector.load %arg4[%c12_210, %c0_211, %c0_212] : memref<15x128x128xbf16, #tpu.memory_space<vmem>>, vector<1x128x128xbf16>
    %237 = vector.shape_cast %236 : vector<1x128x128xbf16> to vector<128x128xbf16>
    %cst_213 = arith.constant dense<0.000000e+00> : vector<144x128xf32>
    %238 = tpu.matmul %235, %237, %cst_213 {dimension_numbers = #tpu.dot_dimension_numbers<[1], [0], [0], [1], [0, 0, 1, 1], [], []>} : vector<144x128xbf16>, vector<128x128xbf16>, vector<144x128xf32> -> vector<144x128xf32>
    %239 = arith.addf %234, %238 : vector<144x128xf32>
    %c58_214 = arith.constant 58 : index
    %c0_215 = arith.constant 0 : index
    %240 = vector.load %arg13[%c58_214, %c0_215] : memref<208x128xbf16, #tpu.memory_space<vmem>>, vector<144x128xbf16>
    %c13_216 = arith.constant 13 : index
    %c0_217 = arith.constant 0 : index
    %c0_218 = arith.constant 0 : index
    %241 = vector.load %arg4[%c13_216, %c0_217, %c0_218] : memref<15x128x128xbf16, #tpu.memory_space<vmem>>, vector<1x128x128xbf16>
    %242 = vector.shape_cast %241 : vector<1x128x128xbf16> to vector<128x128xbf16>
    %cst_219 = arith.constant dense<0.000000e+00> : vector<144x128xf32>
    %243 = tpu.matmul %240, %242, %cst_219 {dimension_numbers = #tpu.dot_dimension_numbers<[1], [0], [0], [1], [0, 0, 1, 1], [], []>} : vector<144x128xbf16>, vector<128x128xbf16>, vector<144x128xf32> -> vector<144x128xf32>
    %244 = arith.addf %239, %243 : vector<144x128xf32>
    %c60_220 = arith.constant 60 : index
    %c0_221 = arith.constant 0 : index
    %245 = vector.load %arg13[%c60_220, %c0_221] : memref<208x128xbf16, #tpu.memory_space<vmem>>, vector<144x128xbf16>
    %c14_222 = arith.constant 14 : index
    %c0_223 = arith.constant 0 : index
    %c0_224 = arith.constant 0 : index
    %246 = vector.load %arg4[%c14_222, %c0_223, %c0_224] : memref<15x128x128xbf16, #tpu.memory_space<vmem>>, vector<1x128x128xbf16>
    %247 = vector.shape_cast %246 : vector<1x128x128xbf16> to vector<128x128xbf16>
    %cst_225 = arith.constant dense<0.000000e+00> : vector<144x128xf32>
    %248 = tpu.matmul %245, %247, %cst_225 {dimension_numbers = #tpu.dot_dimension_numbers<[1], [0], [0], [1], [0, 0, 1, 1], [], []>} : vector<144x128xbf16>, vector<128x128xbf16>, vector<144x128xf32> -> vector<144x128xf32>
    %249 = arith.addf %244, %248 : vector<144x128xf32>
    %c0_226 = arith.constant 0 : index
    %c0_227 = arith.constant 0 : index
    %250 = vector.load %arg14[%c0_226, %c0_227] : memref<144x128xf32, #tpu.memory_space<vmem>>, vector<144x128xf32>
    tpu.vector_store %arg14[%c0_226, %c0_227], %249 {strides = array<i32>} : memref<144x128xf32, #tpu.memory_space<vmem>>, vector<144x128xf32>,
    %c0_228 = arith.constant 0 : index
    %c0_229 = arith.constant 0 : index
    %251 = tpu.strided_load %arg14[%c0_228, %c0_229] {strides = array<i32: 2, 1>} : memref<144x128xf32, #tpu.memory_space<vmem>>, vector<70x128xf32>
    %c1_230 = arith.constant 1 : index
    %c0_231 = arith.constant 0 : index
    %252 = tpu.strided_load %arg14[%c1_230, %c0_231] {strides = array<i32: 2, 1>} : memref<144x128xf32, #tpu.memory_space<vmem>>, vector<70x128xf32>
    %253 = arith.maximumf %251, %252 : vector<70x128xf32>
    %c0_232 = arith.constant 0 : index
    %c0_233 = arith.constant 0 : index
    %254 = vector.load %arg15[%c0_232, %c0_233] : memref<72x128xf32, #tpu.memory_space<vmem>>, vector<70x128xf32>
    tpu.vector_store %arg15[%c0_232, %c0_233], %253 {strides = array<i32>} : memref<72x128xf32, #tpu.memory_space<vmem>>, vector<70x128xf32>,
    %c0_234 = arith.constant 0 : index
    %c0_235 = arith.constant 0 : index
    %255 = vector.load %arg15[%c0_234, %c0_235] : memref<72x128xf32, #tpu.memory_space<vmem>>, vector<5x128xf32>
    %c7_236 = arith.constant 7 : index
    %c0_237 = arith.constant 0 : index
    %256 = vector.load %arg15[%c7_236, %c0_237] : memref<72x128xf32, #tpu.memory_space<vmem>>, vector<5x128xf32>
    %257 = arith.maximumf %255, %256 : vector<5x128xf32>
    %258 = vector.broadcast %3 : vector<1x128xf32> to vector<5x128xf32>
    %259 = arith.addf %257, %258 : vector<5x128xf32>
    %cst_238 = arith.constant 0.000000e+00 : f32
    %260 = vector.broadcast %cst_238 : f32 to vector<5x128xf32>
    %261 = arith.maximumf %259, %260 : vector<5x128xf32>
    %262 = arith.truncf %261 : vector<5x128xf32> to vector<5x128xbf16>
    %c1_239 = arith.constant 1 : index
    %c0_240 = arith.constant 0 : index
    %c0_241 = arith.constant 0 : index
    %263 = vector.load %arg16[%c1_239, %c0_240, %c0_241] : memref<2x25x128xbf16, #tpu.memory_space<vmem>>, vector<1x5x128xbf16>
    %264 = vector.shape_cast %263 : vector<1x5x128xbf16> to vector<5x128xbf16>
    %265 = vector.shape_cast %262 : vector<5x128xbf16> to vector<1x5x128xbf16>
    tpu.vector_store %arg16[%c1_239, %c0_240, %c0_241], %265 {strides = array<i32>} : memref<2x25x128xbf16, #tpu.memory_space<vmem>>, vector<1x5x128xbf16>,
    %c14_242 = arith.constant 14 : index
    %c0_243 = arith.constant 0 : index
    %266 = vector.load %arg15[%c14_242, %c0_243] : memref<72x128xf32, #tpu.memory_space<vmem>>, vector<5x128xf32>
    %c21_244 = arith.constant 21 : index
    %c0_245 = arith.constant 0 : index
    %267 = vector.load %arg15[%c21_244, %c0_245] : memref<72x128xf32, #tpu.memory_space<vmem>>, vector<5x128xf32>
    %268 = arith.maximumf %266, %267 : vector<5x128xf32>
    %269 = vector.broadcast %3 : vector<1x128xf32> to vector<5x128xf32>
    %270 = arith.addf %268, %269 : vector<5x128xf32>
    %cst_246 = arith.constant 0.000000e+00 : f32
    %271 = vector.broadcast %cst_246 : f32 to vector<5x128xf32>
    %272 = arith.maximumf %270, %271 : vector<5x128xf32>
    %273 = arith.truncf %272 : vector<5x128xf32> to vector<5x128xbf16>
    %c1_247 = arith.constant 1 : index
    %c5_248 = arith.constant 5 : index
    %c0_249 = arith.constant 0 : index
    %274 = vector.load %arg16[%c1_247, %c5_248, %c0_249] : memref<2x25x128xbf16, #tpu.memory_space<vmem>>, vector<1x5x128xbf16>
    %275 = vector.shape_cast %274 : vector<1x5x128xbf16> to vector<5x128xbf16>
    %276 = vector.shape_cast %273 : vector<5x128xbf16> to vector<1x5x128xbf16>
    tpu.vector_store %arg16[%c1_247, %c5_248, %c0_249], %276 {strides = array<i32>} : memref<2x25x128xbf16, #tpu.memory_space<vmem>>, vector<1x5x128xbf16>,
    %c28_250 = arith.constant 28 : index
    %c0_251 = arith.constant 0 : index
    %277 = vector.load %arg15[%c28_250, %c0_251] : memref<72x128xf32, #tpu.memory_space<vmem>>, vector<5x128xf32>
    %c35_252 = arith.constant 35 : index
    %c0_253 = arith.constant 0 : index
    %278 = vector.load %arg15[%c35_252, %c0_253] : memref<72x128xf32, #tpu.memory_space<vmem>>, vector<5x128xf32>
    %279 = arith.maximumf %277, %278 : vector<5x128xf32>
    %280 = vector.broadcast %3 : vector<1x128xf32> to vector<5x128xf32>
    %281 = arith.addf %279, %280 : vector<5x128xf32>
    %cst_254 = arith.constant 0.000000e+00 : f32
    %282 = vector.broadcast %cst_254 : f32 to vector<5x128xf32>
    %283 = arith.maximumf %281, %282 : vector<5x128xf32>
    %284 = arith.truncf %283 : vector<5x128xf32> to vector<5x128xbf16>
    %c1_255 = arith.constant 1 : index
    %c10_256 = arith.constant 10 : index
    %c0_257 = arith.constant 0 : index
    %285 = vector.load %arg16[%c1_255, %c10_256, %c0_257] : memref<2x25x128xbf16, #tpu.memory_space<vmem>>, vector<1x5x128xbf16>
    %286 = vector.shape_cast %285 : vector<1x5x128xbf16> to vector<5x128xbf16>
    %287 = vector.shape_cast %284 : vector<5x128xbf16> to vector<1x5x128xbf16>
    tpu.vector_store %arg16[%c1_255, %c10_256, %c0_257], %287 {strides = array<i32>} : memref<2x25x128xbf16, #tpu.memory_space<vmem>>, vector<1x5x128xbf16>,
    %c42_258 = arith.constant 42 : index
    %c0_259 = arith.constant 0 : index
    %288 = vector.load %arg15[%c42_258, %c0_259] : memref<72x128xf32, #tpu.memory_space<vmem>>, vector<5x128xf32>
    %c49_260 = arith.constant 49 : index
    %c0_261 = arith.constant 0 : index
    %289 = vector.load %arg15[%c49_260, %c0_261] : memref<72x128xf32, #tpu.memory_space<vmem>>, vector<5x128xf32>
    %290 = arith.maximumf %288, %289 : vector<5x128xf32>
    %291 = vector.broadcast %3 : vector<1x128xf32> to vector<5x128xf32>
    %292 = arith.addf %290, %291 : vector<5x128xf32>
    %cst_262 = arith.constant 0.000000e+00 : f32
    %293 = vector.broadcast %cst_262 : f32 to vector<5x128xf32>
    %294 = arith.maximumf %292, %293 : vector<5x128xf32>
    %295 = arith.truncf %294 : vector<5x128xf32> to vector<5x128xbf16>
    %c1_263 = arith.constant 1 : index
    %c15_264 = arith.constant 15 : index
    %c0_265 = arith.constant 0 : index
    %296 = vector.load %arg16[%c1_263, %c15_264, %c0_265] : memref<2x25x128xbf16, #tpu.memory_space<vmem>>, vector<1x5x128xbf16>
    %297 = vector.shape_cast %296 : vector<1x5x128xbf16> to vector<5x128xbf16>
    %298 = vector.shape_cast %295 : vector<5x128xbf16> to vector<1x5x128xbf16>
    tpu.vector_store %arg16[%c1_263, %c15_264, %c0_265], %298 {strides = array<i32>} : memref<2x25x128xbf16, #tpu.memory_space<vmem>>, vector<1x5x128xbf16>,
    %c56_266 = arith.constant 56 : index
    %c0_267 = arith.constant 0 : index
    %299 = vector.load %arg15[%c56_266, %c0_267] : memref<72x128xf32, #tpu.memory_space<vmem>>, vector<5x128xf32>
    %c63_268 = arith.constant 63 : index
    %c0_269 = arith.constant 0 : index
    %300 = vector.load %arg15[%c63_268, %c0_269] : memref<72x128xf32, #tpu.memory_space<vmem>>, vector<5x128xf32>
    %301 = arith.maximumf %299, %300 : vector<5x128xf32>
    %302 = vector.broadcast %3 : vector<1x128xf32> to vector<5x128xf32>
    %303 = arith.addf %301, %302 : vector<5x128xf32>
    %cst_270 = arith.constant 0.000000e+00 : f32
    %304 = vector.broadcast %cst_270 : f32 to vector<5x128xf32>
    %305 = arith.maximumf %303, %304 : vector<5x128xf32>
    %306 = arith.truncf %305 : vector<5x128xf32> to vector<5x128xbf16>
    %c1_271 = arith.constant 1 : index
    %c20_272 = arith.constant 20 : index
    %c0_273 = arith.constant 0 : index
    %307 = vector.load %arg16[%c1_271, %c20_272, %c0_273] : memref<2x25x128xbf16, #tpu.memory_space<vmem>>, vector<1x5x128xbf16>
    %308 = vector.shape_cast %307 : vector<1x5x128xbf16> to vector<5x128xbf16>
    %309 = vector.shape_cast %306 : vector<5x128xbf16> to vector<1x5x128xbf16>
    tpu.vector_store %arg16[%c1_271, %c20_272, %c0_273], %309 {strides = array<i32>} : memref<2x25x128xbf16, #tpu.memory_space<vmem>>, vector<1x5x128xbf16>,
    %c0_274 = arith.constant 0 : index
    %c0_275 = arith.constant 0 : index
    %c0_276 = arith.constant 0 : index
    %310 = vector.load %arg16[%c0_274, %c0_275, %c0_276] : memref<2x25x128xbf16, #tpu.memory_space<vmem>>, vector<2x1x128xbf16>
    %311 = vector.shape_cast %310 : vector<2x1x128xbf16> to vector<2x128xbf16>
    %c0_277 = arith.constant 0 : index
    %c0_278 = arith.constant 0 : index
    %c0_279 = arith.constant 0 : index
    %312 = vector.load %arg6[%c0_277, %c0_278, %c0_279] : memref<25x128x120xbf16, #tpu.memory_space<vmem>>, vector<1x128x120xbf16>
    %313 = vector.shape_cast %312 : vector<1x128x120xbf16> to vector<128x120xbf16>
    %cst_280 = arith.constant dense<0.000000e+00> : vector<2x120xf32>
    %314 = tpu.matmul %311, %313, %cst_280 {dimension_numbers = #tpu.dot_dimension_numbers<[1], [0], [0], [1], [0, 0, 1, 1], [], []>} : vector<2x128xbf16>, vector<128x120xbf16>, vector<2x120xf32> -> vector<2x120xf32>
    %c0_281 = arith.constant 0 : index
    %c1_282 = arith.constant 1 : index
    %c0_283 = arith.constant 0 : index
    %315 = vector.load %arg16[%c0_281, %c1_282, %c0_283] : memref<2x25x128xbf16, #tpu.memory_space<vmem>>, vector<2x1x128xbf16>
    %316 = vector.shape_cast %315 : vector<2x1x128xbf16> to vector<2x128xbf16>
    %c1_284 = arith.constant 1 : index
    %c0_285 = arith.constant 0 : index
    %c0_286 = arith.constant 0 : index
    %317 = vector.load %arg6[%c1_284, %c0_285, %c0_286] : memref<25x128x120xbf16, #tpu.memory_space<vmem>>, vector<1x128x120xbf16>
    %318 = vector.shape_cast %317 : vector<1x128x120xbf16> to vector<128x120xbf16>
    %cst_287 = arith.constant dense<0.000000e+00> : vector<2x120xf32>
    %319 = tpu.matmul %316, %318, %cst_287 {dimension_numbers = #tpu.dot_dimension_numbers<[1], [0], [0], [1], [0, 0, 1, 1], [], []>} : vector<2x128xbf16>, vector<128x120xbf16>, vector<2x120xf32> -> vector<2x120xf32>
    %320 = arith.addf %314, %319 : vector<2x120xf32>
    %c0_288 = arith.constant 0 : index
    %c2_289 = arith.constant 2 : index
    %c0_290 = arith.constant 0 : index
    %321 = vector.load %arg16[%c0_288, %c2_289, %c0_290] : memref<2x25x128xbf16, #tpu.memory_space<vmem>>, vector<2x1x128xbf16>
    %322 = vector.shape_cast %321 : vector<2x1x128xbf16> to vector<2x128xbf16>
    %c2_291 = arith.constant 2 : index
    %c0_292 = arith.constant 0 : index
    %c0_293 = arith.constant 0 : index
    %323 = vector.load %arg6[%c2_291, %c0_292, %c0_293] : memref<25x128x120xbf16, #tpu.memory_space<vmem>>, vector<1x128x120xbf16>
    %324 = vector.shape_cast %323 : vector<1x128x120xbf16> to vector<128x120xbf16>
    %cst_294 = arith.constant dense<0.000000e+00> : vector<2x120xf32>
    %325 = tpu.matmul %322, %324, %cst_294 {dimension_numbers = #tpu.dot_dimension_numbers<[1], [0], [0], [1], [0, 0, 1, 1], [], []>} : vector<2x128xbf16>, vector<128x120xbf16>, vector<2x120xf32> -> vector<2x120xf32>
    %326 = arith.addf %320, %325 : vector<2x120xf32>
    %c0_295 = arith.constant 0 : index
    %c3_296 = arith.constant 3 : index
    %c0_297 = arith.constant 0 : index
    %327 = vector.load %arg16[%c0_295, %c3_296, %c0_297] : memref<2x25x128xbf16, #tpu.memory_space<vmem>>, vector<2x1x128xbf16>
    %328 = vector.shape_cast %327 : vector<2x1x128xbf16> to vector<2x128xbf16>
    %c3_298 = arith.constant 3 : index
    %c0_299 = arith.constant 0 : index
    %c0_300 = arith.constant 0 : index
    %329 = vector.load %arg6[%c3_298, %c0_299, %c0_300] : memref<25x128x120xbf16, #tpu.memory_space<vmem>>, vector<1x128x120xbf16>
    %330 = vector.shape_cast %329 : vector<1x128x120xbf16> to vector<128x120xbf16>
    %cst_301 = arith.constant dense<0.000000e+00> : vector<2x120xf32>
    %331 = tpu.matmul %328, %330, %cst_301 {dimension_numbers = #tpu.dot_dimension_numbers<[1], [0], [0], [1], [0, 0, 1, 1], [], []>} : vector<2x128xbf16>, vector<128x120xbf16>, vector<2x120xf32> -> vector<2x120xf32>
    %332 = arith.addf %326, %331 : vector<2x120xf32>
    %c0_302 = arith.constant 0 : index
    %c4_303 = arith.constant 4 : index
    %c0_304 = arith.constant 0 : index
    %333 = vector.load %arg16[%c0_302, %c4_303, %c0_304] : memref<2x25x128xbf16, #tpu.memory_space<vmem>>, vector<2x1x128xbf16>
    %334 = vector.shape_cast %333 : vector<2x1x128xbf16> to vector<2x128xbf16>
    %c4_305 = arith.constant 4 : index
    %c0_306 = arith.constant 0 : index
    %c0_307 = arith.constant 0 : index
    %335 = vector.load %arg6[%c4_305, %c0_306, %c0_307] : memref<25x128x120xbf16, #tpu.memory_space<vmem>>, vector<1x128x120xbf16>
    %336 = vector.shape_cast %335 : vector<1x128x120xbf16> to vector<128x120xbf16>
    %cst_308 = arith.constant dense<0.000000e+00> : vector<2x120xf32>
    %337 = tpu.matmul %334, %336, %cst_308 {dimension_numbers = #tpu.dot_dimension_numbers<[1], [0], [0], [1], [0, 0, 1, 1], [], []>} : vector<2x128xbf16>, vector<128x120xbf16>, vector<2x120xf32> -> vector<2x120xf32>
    %338 = arith.addf %332, %337 : vector<2x120xf32>
    %c0_309 = arith.constant 0 : index
    %c5_310 = arith.constant 5 : index
    %c0_311 = arith.constant 0 : index
    %339 = vector.load %arg16[%c0_309, %c5_310, %c0_311] : memref<2x25x128xbf16, #tpu.memory_space<vmem>>, vector<2x1x128xbf16>
    %340 = vector.shape_cast %339 : vector<2x1x128xbf16> to vector<2x128xbf16>
    %c5_312 = arith.constant 5 : index
    %c0_313 = arith.constant 0 : index
    %c0_314 = arith.constant 0 : index
    %341 = vector.load %arg6[%c5_312, %c0_313, %c0_314] : memref<25x128x120xbf16, #tpu.memory_space<vmem>>, vector<1x128x120xbf16>
    %342 = vector.shape_cast %341 : vector<1x128x120xbf16> to vector<128x120xbf16>
    %cst_315 = arith.constant dense<0.000000e+00> : vector<2x120xf32>
    %343 = tpu.matmul %340, %342, %cst_315 {dimension_numbers = #tpu.dot_dimension_numbers<[1], [0], [0], [1], [0, 0, 1, 1], [], []>} : vector<2x128xbf16>, vector<128x120xbf16>, vector<2x120xf32> -> vector<2x120xf32>
    %344 = arith.addf %338, %343 : vector<2x120xf32>
    %c0_316 = arith.constant 0 : index
    %c6_317 = arith.constant 6 : index
    %c0_318 = arith.constant 0 : index
    %345 = vector.load %arg16[%c0_316, %c6_317, %c0_318] : memref<2x25x128xbf16, #tpu.memory_space<vmem>>, vector<2x1x128xbf16>
    %346 = vector.shape_cast %345 : vector<2x1x128xbf16> to vector<2x128xbf16>
    %c6_319 = arith.constant 6 : index
    %c0_320 = arith.constant 0 : index
    %c0_321 = arith.constant 0 : index
    %347 = vector.load %arg6[%c6_319, %c0_320, %c0_321] : memref<25x128x120xbf16, #tpu.memory_space<vmem>>, vector<1x128x120xbf16>
    %348 = vector.shape_cast %347 : vector<1x128x120xbf16> to vector<128x120xbf16>
    %cst_322 = arith.constant dense<0.000000e+00> : vector<2x120xf32>
    %349 = tpu.matmul %346, %348, %cst_322 {dimension_numbers = #tpu.dot_dimension_numbers<[1], [0], [0], [1], [0, 0, 1, 1], [], []>} : vector<2x128xbf16>, vector<128x120xbf16>, vector<2x120xf32> -> vector<2x120xf32>
    %350 = arith.addf %344, %349 : vector<2x120xf32>
    %c0_323 = arith.constant 0 : index
    %c7_324 = arith.constant 7 : index
    %c0_325 = arith.constant 0 : index
    %351 = vector.load %arg16[%c0_323, %c7_324, %c0_325] : memref<2x25x128xbf16, #tpu.memory_space<vmem>>, vector<2x1x128xbf16>
    %352 = vector.shape_cast %351 : vector<2x1x128xbf16> to vector<2x128xbf16>
    %c7_326 = arith.constant 7 : index
    %c0_327 = arith.constant 0 : index
    %c0_328 = arith.constant 0 : index
    %353 = vector.load %arg6[%c7_326, %c0_327, %c0_328] : memref<25x128x120xbf16, #tpu.memory_space<vmem>>, vector<1x128x120xbf16>
    %354 = vector.shape_cast %353 : vector<1x128x120xbf16> to vector<128x120xbf16>
    %cst_329 = arith.constant dense<0.000000e+00> : vector<2x120xf32>
    %355 = tpu.matmul %352, %354, %cst_329 {dimension_numbers = #tpu.dot_dimension_numbers<[1], [0], [0], [1], [0, 0, 1, 1], [], []>} : vector<2x128xbf16>, vector<128x120xbf16>, vector<2x120xf32> -> vector<2x120xf32>
    %356 = arith.addf %350, %355 : vector<2x120xf32>
    %c0_330 = arith.constant 0 : index
    %c8_331 = arith.constant 8 : index
    %c0_332 = arith.constant 0 : index
    %357 = vector.load %arg16[%c0_330, %c8_331, %c0_332] : memref<2x25x128xbf16, #tpu.memory_space<vmem>>, vector<2x1x128xbf16>
    %358 = vector.shape_cast %357 : vector<2x1x128xbf16> to vector<2x128xbf16>
    %c8_333 = arith.constant 8 : index
    %c0_334 = arith.constant 0 : index
    %c0_335 = arith.constant 0 : index
    %359 = vector.load %arg6[%c8_333, %c0_334, %c0_335] : memref<25x128x120xbf16, #tpu.memory_space<vmem>>, vector<1x128x120xbf16>
    %360 = vector.shape_cast %359 : vector<1x128x120xbf16> to vector<128x120xbf16>
    %cst_336 = arith.constant dense<0.000000e+00> : vector<2x120xf32>
    %361 = tpu.matmul %358, %360, %cst_336 {dimension_numbers = #tpu.dot_dimension_numbers<[1], [0], [0], [1], [0, 0, 1, 1], [], []>} : vector<2x128xbf16>, vector<128x120xbf16>, vector<2x120xf32> -> vector<2x120xf32>
    %362 = arith.addf %356, %361 : vector<2x120xf32>
    %c0_337 = arith.constant 0 : index
    %c9_338 = arith.constant 9 : index
    %c0_339 = arith.constant 0 : index
    %363 = vector.load %arg16[%c0_337, %c9_338, %c0_339] : memref<2x25x128xbf16, #tpu.memory_space<vmem>>, vector<2x1x128xbf16>
    %364 = vector.shape_cast %363 : vector<2x1x128xbf16> to vector<2x128xbf16>
    %c9_340 = arith.constant 9 : index
    %c0_341 = arith.constant 0 : index
    %c0_342 = arith.constant 0 : index
    %365 = vector.load %arg6[%c9_340, %c0_341, %c0_342] : memref<25x128x120xbf16, #tpu.memory_space<vmem>>, vector<1x128x120xbf16>
    %366 = vector.shape_cast %365 : vector<1x128x120xbf16> to vector<128x120xbf16>
    %cst_343 = arith.constant dense<0.000000e+00> : vector<2x120xf32>
    %367 = tpu.matmul %364, %366, %cst_343 {dimension_numbers = #tpu.dot_dimension_numbers<[1], [0], [0], [1], [0, 0, 1, 1], [], []>} : vector<2x128xbf16>, vector<128x120xbf16>, vector<2x120xf32> -> vector<2x120xf32>
    %368 = arith.addf %362, %367 : vector<2x120xf32>
    %c0_344 = arith.constant 0 : index
    %c10_345 = arith.constant 10 : index
    %c0_346 = arith.constant 0 : index
    %369 = vector.load %arg16[%c0_344, %c10_345, %c0_346] : memref<2x25x128xbf16, #tpu.memory_space<vmem>>, vector<2x1x128xbf16>
    %370 = vector.shape_cast %369 : vector<2x1x128xbf16> to vector<2x128xbf16>
    %c10_347 = arith.constant 10 : index
    %c0_348 = arith.constant 0 : index
    %c0_349 = arith.constant 0 : index
    %371 = vector.load %arg6[%c10_347, %c0_348, %c0_349] : memref<25x128x120xbf16, #tpu.memory_space<vmem>>, vector<1x128x120xbf16>
    %372 = vector.shape_cast %371 : vector<1x128x120xbf16> to vector<128x120xbf16>
    %cst_350 = arith.constant dense<0.000000e+00> : vector<2x120xf32>
    %373 = tpu.matmul %370, %372, %cst_350 {dimension_numbers = #tpu.dot_dimension_numbers<[1], [0], [0], [1], [0, 0, 1, 1], [], []>} : vector<2x128xbf16>, vector<128x120xbf16>, vector<2x120xf32> -> vector<2x120xf32>
    %374 = arith.addf %368, %373 : vector<2x120xf32>
    %c0_351 = arith.constant 0 : index
    %c11_352 = arith.constant 11 : index
    %c0_353 = arith.constant 0 : index
    %375 = vector.load %arg16[%c0_351, %c11_352, %c0_353] : memref<2x25x128xbf16, #tpu.memory_space<vmem>>, vector<2x1x128xbf16>
    %376 = vector.shape_cast %375 : vector<2x1x128xbf16> to vector<2x128xbf16>
    %c11_354 = arith.constant 11 : index
    %c0_355 = arith.constant 0 : index
    %c0_356 = arith.constant 0 : index
    %377 = vector.load %arg6[%c11_354, %c0_355, %c0_356] : memref<25x128x120xbf16, #tpu.memory_space<vmem>>, vector<1x128x120xbf16>
    %378 = vector.shape_cast %377 : vector<1x128x120xbf16> to vector<128x120xbf16>
    %cst_357 = arith.constant dense<0.000000e+00> : vector<2x120xf32>
    %379 = tpu.matmul %376, %378, %cst_357 {dimension_numbers = #tpu.dot_dimension_numbers<[1], [0], [0], [1], [0, 0, 1, 1], [], []>} : vector<2x128xbf16>, vector<128x120xbf16>, vector<2x120xf32> -> vector<2x120xf32>
    %380 = arith.addf %374, %379 : vector<2x120xf32>
    %c0_358 = arith.constant 0 : index
    %c12_359 = arith.constant 12 : index
    %c0_360 = arith.constant 0 : index
    %381 = vector.load %arg16[%c0_358, %c12_359, %c0_360] : memref<2x25x128xbf16, #tpu.memory_space<vmem>>, vector<2x1x128xbf16>
    %382 = vector.shape_cast %381 : vector<2x1x128xbf16> to vector<2x128xbf16>
    %c12_361 = arith.constant 12 : index
    %c0_362 = arith.constant 0 : index
    %c0_363 = arith.constant 0 : index
    %383 = vector.load %arg6[%c12_361, %c0_362, %c0_363] : memref<25x128x120xbf16, #tpu.memory_space<vmem>>, vector<1x128x120xbf16>
    %384 = vector.shape_cast %383 : vector<1x128x120xbf16> to vector<128x120xbf16>
    %cst_364 = arith.constant dense<0.000000e+00> : vector<2x120xf32>
    %385 = tpu.matmul %382, %384, %cst_364 {dimension_numbers = #tpu.dot_dimension_numbers<[1], [0], [0], [1], [0, 0, 1, 1], [], []>} : vector<2x128xbf16>, vector<128x120xbf16>, vector<2x120xf32> -> vector<2x120xf32>
    %386 = arith.addf %380, %385 : vector<2x120xf32>
    %c0_365 = arith.constant 0 : index
    %c13_366 = arith.constant 13 : index
    %c0_367 = arith.constant 0 : index
    %387 = vector.load %arg16[%c0_365, %c13_366, %c0_367] : memref<2x25x128xbf16, #tpu.memory_space<vmem>>, vector<2x1x128xbf16>
    %388 = vector.shape_cast %387 : vector<2x1x128xbf16> to vector<2x128xbf16>
    %c13_368 = arith.constant 13 : index
    %c0_369 = arith.constant 0 : index
    %c0_370 = arith.constant 0 : index
    %389 = vector.load %arg6[%c13_368, %c0_369, %c0_370] : memref<25x128x120xbf16, #tpu.memory_space<vmem>>, vector<1x128x120xbf16>
    %390 = vector.shape_cast %389 : vector<1x128x120xbf16> to vector<128x120xbf16>
    %cst_371 = arith.constant dense<0.000000e+00> : vector<2x120xf32>
    %391 = tpu.matmul %388, %390, %cst_371 {dimension_numbers = #tpu.dot_dimension_numbers<[1], [0], [0], [1], [0, 0, 1, 1], [], []>} : vector<2x128xbf16>, vector<128x120xbf16>, vector<2x120xf32> -> vector<2x120xf32>
    %392 = arith.addf %386, %391 : vector<2x120xf32>
    %c0_372 = arith.constant 0 : index
    %c14_373 = arith.constant 14 : index
    %c0_374 = arith.constant 0 : index
    %393 = vector.load %arg16[%c0_372, %c14_373, %c0_374] : memref<2x25x128xbf16, #tpu.memory_space<vmem>>, vector<2x1x128xbf16>
    %394 = vector.shape_cast %393 : vector<2x1x128xbf16> to vector<2x128xbf16>
    %c14_375 = arith.constant 14 : index
    %c0_376 = arith.constant 0 : index
    %c0_377 = arith.constant 0 : index
    %395 = vector.load %arg6[%c14_375, %c0_376, %c0_377] : memref<25x128x120xbf16, #tpu.memory_space<vmem>>, vector<1x128x120xbf16>
    %396 = vector.shape_cast %395 : vector<1x128x120xbf16> to vector<128x120xbf16>
    %cst_378 = arith.constant dense<0.000000e+00> : vector<2x120xf32>
    %397 = tpu.matmul %394, %396, %cst_378 {dimension_numbers = #tpu.dot_dimension_numbers<[1], [0], [0], [1], [0, 0, 1, 1], [], []>} : vector<2x128xbf16>, vector<128x120xbf16>, vector<2x120xf32> -> vector<2x120xf32>
    %398 = arith.addf %392, %397 : vector<2x120xf32>
    %c0_379 = arith.constant 0 : index
    %c15_380 = arith.constant 15 : index
    %c0_381 = arith.constant 0 : index
    %399 = vector.load %arg16[%c0_379, %c15_380, %c0_381] : memref<2x25x128xbf16, #tpu.memory_space<vmem>>, vector<2x1x128xbf16>
    %400 = vector.shape_cast %399 : vector<2x1x128xbf16> to vector<2x128xbf16>
    %c15_382 = arith.constant 15 : index
    %c0_383 = arith.constant 0 : index
    %c0_384 = arith.constant 0 : index
    %401 = vector.load %arg6[%c15_382, %c0_383, %c0_384] : memref<25x128x120xbf16, #tpu.memory_space<vmem>>, vector<1x128x120xbf16>
    %402 = vector.shape_cast %401 : vector<1x128x120xbf16> to vector<128x120xbf16>
    %cst_385 = arith.constant dense<0.000000e+00> : vector<2x120xf32>
    %403 = tpu.matmul %400, %402, %cst_385 {dimension_numbers = #tpu.dot_dimension_numbers<[1], [0], [0], [1], [0, 0, 1, 1], [], []>} : vector<2x128xbf16>, vector<128x120xbf16>, vector<2x120xf32> -> vector<2x120xf32>
    %404 = arith.addf %398, %403 : vector<2x120xf32>
    %c0_386 = arith.constant 0 : index
    %c16_387 = arith.constant 16 : index
    %c0_388 = arith.constant 0 : index
    %405 = vector.load %arg16[%c0_386, %c16_387, %c0_388] : memref<2x25x128xbf16, #tpu.memory_space<vmem>>, vector<2x1x128xbf16>
    %406 = vector.shape_cast %405 : vector<2x1x128xbf16> to vector<2x128xbf16>
    %c16_389 = arith.constant 16 : index
    %c0_390 = arith.constant 0 : index
    %c0_391 = arith.constant 0 : index
    %407 = vector.load %arg6[%c16_389, %c0_390, %c0_391] : memref<25x128x120xbf16, #tpu.memory_space<vmem>>, vector<1x128x120xbf16>
    %408 = vector.shape_cast %407 : vector<1x128x120xbf16> to vector<128x120xbf16>
    %cst_392 = arith.constant dense<0.000000e+00> : vector<2x120xf32>
    %409 = tpu.matmul %406, %408, %cst_392 {dimension_numbers = #tpu.dot_dimension_numbers<[1], [0], [0], [1], [0, 0, 1, 1], [], []>} : vector<2x128xbf16>, vector<128x120xbf16>, vector<2x120xf32> -> vector<2x120xf32>
    %410 = arith.addf %404, %409 : vector<2x120xf32>
    %c0_393 = arith.constant 0 : index
    %c17 = arith.constant 17 : index
    %c0_394 = arith.constant 0 : index
    %411 = vector.load %arg16[%c0_393, %c17, %c0_394] : memref<2x25x128xbf16, #tpu.memory_space<vmem>>, vector<2x1x128xbf16>
    %412 = vector.shape_cast %411 : vector<2x1x128xbf16> to vector<2x128xbf16>
    %c17_395 = arith.constant 17 : index
    %c0_396 = arith.constant 0 : index
    %c0_397 = arith.constant 0 : index
    %413 = vector.load %arg6[%c17_395, %c0_396, %c0_397] : memref<25x128x120xbf16, #tpu.memory_space<vmem>>, vector<1x128x120xbf16>
    %414 = vector.shape_cast %413 : vector<1x128x120xbf16> to vector<128x120xbf16>
    %cst_398 = arith.constant dense<0.000000e+00> : vector<2x120xf32>
    %415 = tpu.matmul %412, %414, %cst_398 {dimension_numbers = #tpu.dot_dimension_numbers<[1], [0], [0], [1], [0, 0, 1, 1], [], []>} : vector<2x128xbf16>, vector<128x120xbf16>, vector<2x120xf32> -> vector<2x120xf32>
    %416 = arith.addf %410, %415 : vector<2x120xf32>
    %c0_399 = arith.constant 0 : index
    %c18_400 = arith.constant 18 : index
    %c0_401 = arith.constant 0 : index
    %417 = vector.load %arg16[%c0_399, %c18_400, %c0_401] : memref<2x25x128xbf16, #tpu.memory_space<vmem>>, vector<2x1x128xbf16>
    %418 = vector.shape_cast %417 : vector<2x1x128xbf16> to vector<2x128xbf16>
    %c18_402 = arith.constant 18 : index
    %c0_403 = arith.constant 0 : index
    %c0_404 = arith.constant 0 : index
    %419 = vector.load %arg6[%c18_402, %c0_403, %c0_404] : memref<25x128x120xbf16, #tpu.memory_space<vmem>>, vector<1x128x120xbf16>
    %420 = vector.shape_cast %419 : vector<1x128x120xbf16> to vector<128x120xbf16>
    %cst_405 = arith.constant dense<0.000000e+00> : vector<2x120xf32>
    %421 = tpu.matmul %418, %420, %cst_405 {dimension_numbers = #tpu.dot_dimension_numbers<[1], [0], [0], [1], [0, 0, 1, 1], [], []>} : vector<2x128xbf16>, vector<128x120xbf16>, vector<2x120xf32> -> vector<2x120xf32>
    %422 = arith.addf %416, %421 : vector<2x120xf32>
    %c0_406 = arith.constant 0 : index
    %c19 = arith.constant 19 : index
    %c0_407 = arith.constant 0 : index
    %423 = vector.load %arg16[%c0_406, %c19, %c0_407] : memref<2x25x128xbf16, #tpu.memory_space<vmem>>, vector<2x1x128xbf16>
    %424 = vector.shape_cast %423 : vector<2x1x128xbf16> to vector<2x128xbf16>
    %c19_408 = arith.constant 19 : index
    %c0_409 = arith.constant 0 : index
    %c0_410 = arith.constant 0 : index
    %425 = vector.load %arg6[%c19_408, %c0_409, %c0_410] : memref<25x128x120xbf16, #tpu.memory_space<vmem>>, vector<1x128x120xbf16>
    %426 = vector.shape_cast %425 : vector<1x128x120xbf16> to vector<128x120xbf16>
    %cst_411 = arith.constant dense<0.000000e+00> : vector<2x120xf32>
    %427 = tpu.matmul %424, %426, %cst_411 {dimension_numbers = #tpu.dot_dimension_numbers<[1], [0], [0], [1], [0, 0, 1, 1], [], []>} : vector<2x128xbf16>, vector<128x120xbf16>, vector<2x120xf32> -> vector<2x120xf32>
    %428 = arith.addf %422, %427 : vector<2x120xf32>
    %c0_412 = arith.constant 0 : index
    %c20_413 = arith.constant 20 : index
    %c0_414 = arith.constant 0 : index
    %429 = vector.load %arg16[%c0_412, %c20_413, %c0_414] : memref<2x25x128xbf16, #tpu.memory_space<vmem>>, vector<2x1x128xbf16>
    %430 = vector.shape_cast %429 : vector<2x1x128xbf16> to vector<2x128xbf16>
    %c20_415 = arith.constant 20 : index
    %c0_416 = arith.constant 0 : index
    %c0_417 = arith.constant 0 : index
    %431 = vector.load %arg6[%c20_415, %c0_416, %c0_417] : memref<25x128x120xbf16, #tpu.memory_space<vmem>>, vector<1x128x120xbf16>
    %432 = vector.shape_cast %431 : vector<1x128x120xbf16> to vector<128x120xbf16>
    %cst_418 = arith.constant dense<0.000000e+00> : vector<2x120xf32>
    %433 = tpu.matmul %430, %432, %cst_418 {dimension_numbers = #tpu.dot_dimension_numbers<[1], [0], [0], [1], [0, 0, 1, 1], [], []>} : vector<2x128xbf16>, vector<128x120xbf16>, vector<2x120xf32> -> vector<2x120xf32>
    %434 = arith.addf %428, %433 : vector<2x120xf32>
    %c0_419 = arith.constant 0 : index
    %c21_420 = arith.constant 21 : index
    %c0_421 = arith.constant 0 : index
    %435 = vector.load %arg16[%c0_419, %c21_420, %c0_421] : memref<2x25x128xbf16, #tpu.memory_space<vmem>>, vector<2x1x128xbf16>
    %436 = vector.shape_cast %435 : vector<2x1x128xbf16> to vector<2x128xbf16>
    %c21_422 = arith.constant 21 : index
    %c0_423 = arith.constant 0 : index
    %c0_424 = arith.constant 0 : index
    %437 = vector.load %arg6[%c21_422, %c0_423, %c0_424] : memref<25x128x120xbf16, #tpu.memory_space<vmem>>, vector<1x128x120xbf16>
    %438 = vector.shape_cast %437 : vector<1x128x120xbf16> to vector<128x120xbf16>
    %cst_425 = arith.constant dense<0.000000e+00> : vector<2x120xf32>
    %439 = tpu.matmul %436, %438, %cst_425 {dimension_numbers = #tpu.dot_dimension_numbers<[1], [0], [0], [1], [0, 0, 1, 1], [], []>} : vector<2x128xbf16>, vector<128x120xbf16>, vector<2x120xf32> -> vector<2x120xf32>
    %440 = arith.addf %434, %439 : vector<2x120xf32>
    %c0_426 = arith.constant 0 : index
    %c22 = arith.constant 22 : index
    %c0_427 = arith.constant 0 : index
    %441 = vector.load %arg16[%c0_426, %c22, %c0_427] : memref<2x25x128xbf16, #tpu.memory_space<vmem>>, vector<2x1x128xbf16>
    %442 = vector.shape_cast %441 : vector<2x1x128xbf16> to vector<2x128xbf16>
    %c22_428 = arith.constant 22 : index
    %c0_429 = arith.constant 0 : index
    %c0_430 = arith.constant 0 : index
    %443 = vector.load %arg6[%c22_428, %c0_429, %c0_430] : memref<25x128x120xbf16, #tpu.memory_space<vmem>>, vector<1x128x120xbf16>
    %444 = vector.shape_cast %443 : vector<1x128x120xbf16> to vector<128x120xbf16>
    %cst_431 = arith.constant dense<0.000000e+00> : vector<2x120xf32>
    %445 = tpu.matmul %442, %444, %cst_431 {dimension_numbers = #tpu.dot_dimension_numbers<[1], [0], [0], [1], [0, 0, 1, 1], [], []>} : vector<2x128xbf16>, vector<128x120xbf16>, vector<2x120xf32> -> vector<2x120xf32>
    %446 = arith.addf %440, %445 : vector<2x120xf32>
    %c0_432 = arith.constant 0 : index
    %c23 = arith.constant 23 : index
    %c0_433 = arith.constant 0 : index
    %447 = vector.load %arg16[%c0_432, %c23, %c0_433] : memref<2x25x128xbf16, #tpu.memory_space<vmem>>, vector<2x1x128xbf16>
    %448 = vector.shape_cast %447 : vector<2x1x128xbf16> to vector<2x128xbf16>
    %c23_434 = arith.constant 23 : index
    %c0_435 = arith.constant 0 : index
    %c0_436 = arith.constant 0 : index
    %449 = vector.load %arg6[%c23_434, %c0_435, %c0_436] : memref<25x128x120xbf16, #tpu.memory_space<vmem>>, vector<1x128x120xbf16>
    %450 = vector.shape_cast %449 : vector<1x128x120xbf16> to vector<128x120xbf16>
    %cst_437 = arith.constant dense<0.000000e+00> : vector<2x120xf32>
    %451 = tpu.matmul %448, %450, %cst_437 {dimension_numbers = #tpu.dot_dimension_numbers<[1], [0], [0], [1], [0, 0, 1, 1], [], []>} : vector<2x128xbf16>, vector<128x120xbf16>, vector<2x120xf32> -> vector<2x120xf32>
    %452 = arith.addf %446, %451 : vector<2x120xf32>
    %c0_438 = arith.constant 0 : index
    %c24 = arith.constant 24 : index
    %c0_439 = arith.constant 0 : index
    %453 = vector.load %arg16[%c0_438, %c24, %c0_439] : memref<2x25x128xbf16, #tpu.memory_space<vmem>>, vector<2x1x128xbf16>
    %454 = vector.shape_cast %453 : vector<2x1x128xbf16> to vector<2x128xbf16>
    %c24_440 = arith.constant 24 : index
    %c0_441 = arith.constant 0 : index
    %c0_442 = arith.constant 0 : index
    %455 = vector.load %arg6[%c24_440, %c0_441, %c0_442] : memref<25x128x120xbf16, #tpu.memory_space<vmem>>, vector<1x128x120xbf16>
    %456 = vector.shape_cast %455 : vector<1x128x120xbf16> to vector<128x120xbf16>
    %cst_443 = arith.constant dense<0.000000e+00> : vector<2x120xf32>
    %457 = tpu.matmul %454, %456, %cst_443 {dimension_numbers = #tpu.dot_dimension_numbers<[1], [0], [0], [1], [0, 0, 1, 1], [], []>} : vector<2x128xbf16>, vector<128x120xbf16>, vector<2x120xf32> -> vector<2x120xf32>
    %458 = arith.addf %452, %457 : vector<2x120xf32>
    %c0_444 = arith.constant 0 : index
    %c0_445 = arith.constant 0 : index
    %459 = vector.load %arg7[%c0_444, %c0_445] : memref<1x120xf32, #tpu.memory_space<vmem>>, vector<1x120xf32>
    %460 = vector.broadcast %459 : vector<1x120xf32> to vector<2x120xf32>
    %461 = arith.addf %458, %460 : vector<2x120xf32>
    %cst_446 = arith.constant 0.000000e+00 : f32
    %462 = vector.broadcast %cst_446 : f32 to vector<2x120xf32>
    %463 = arith.maximumf %461, %462 : vector<2x120xf32>
    %464 = arith.truncf %463 : vector<2x120xf32> to vector<2x120xbf16>
    %c0_447 = arith.constant 0 : index
    %c0_448 = arith.constant 0 : index
    %465 = vector.load %arg8[%c0_447, %c0_448] : memref<120x84xbf16, #tpu.memory_space<vmem>>, vector<120x84xbf16>
    %cst_449 = arith.constant dense<0.000000e+00> : vector<2x84xf32>
    %466 = tpu.matmul %464, %465, %cst_449 {dimension_numbers = #tpu.dot_dimension_numbers<[1], [0], [0], [1], [0, 0, 1, 1], [], []>} : vector<2x120xbf16>, vector<120x84xbf16>, vector<2x84xf32> -> vector<2x84xf32>
    %c0_450 = arith.constant 0 : index
    %c0_451 = arith.constant 0 : index
    %467 = vector.load %arg9[%c0_450, %c0_451] : memref<1x84xf32, #tpu.memory_space<vmem>>, vector<1x84xf32>
    %468 = vector.broadcast %467 : vector<1x84xf32> to vector<2x84xf32>
    %469 = arith.addf %466, %468 : vector<2x84xf32>
    %cst_452 = arith.constant 0.000000e+00 : f32
    %470 = vector.broadcast %cst_452 : f32 to vector<2x84xf32>
    %471 = arith.maximumf %469, %470 : vector<2x84xf32>
    %472 = arith.truncf %471 : vector<2x84xf32> to vector<2x84xbf16>
    %c0_453 = arith.constant 0 : index
    %c0_454 = arith.constant 0 : index
    %473 = vector.load %arg10[%c0_453, %c0_454] : memref<84x10xbf16, #tpu.memory_space<vmem>>, vector<84x10xbf16>
    %cst_455 = arith.constant dense<0.000000e+00> : vector<2x10xf32>
    %474 = tpu.matmul %472, %473, %cst_455 {dimension_numbers = #tpu.dot_dimension_numbers<[1], [0], [0], [1], [0, 0, 1, 1], [], []>} : vector<2x84xbf16>, vector<84x10xbf16>, vector<2x10xf32> -> vector<2x10xf32>
    %c0_456 = arith.constant 0 : index
    %c0_457 = arith.constant 0 : index
    %475 = vector.load %arg11[%c0_456, %c0_457] : memref<1x10xf32, #tpu.memory_space<vmem>>, vector<1x10xf32>
    %476 = vector.broadcast %475 : vector<1x10xf32> to vector<2x10xf32>
    %477 = arith.addf %474, %476 : vector<2x10xf32>
    %c0_458 = arith.constant 0 : index
    %c0_459 = arith.constant 0 : index
    %478 = vector.load %arg12[%c0_458, %c0_459] : memref<2x10xf32, #tpu.memory_space<vmem>>, vector<2x10xf32>
    tpu.vector_store %arg12[%c0_458, %c0_459], %477 {strides = array<i32>} : memref<2x10xf32, #tpu.memory_space<vmem>>, vector<2x10xf32>,
    return
  }
  func.func @transform_0(%arg0: i32) -> (i32, i32, i32) {
    %c0_i32 = arith.constant 0 : i32
    %c0_i32_0 = arith.constant 0 : i32
    %c0_i32_1 = arith.constant 0 : i32
    return %arg0, %c0_i32, %c0_i32_0 : i32, i32, i32
  }
  func.func @transform_1(%arg0: i32) -> (i32, i32) {
    %c0_i32 = arith.constant 0 : i32
    %c0_i32_0 = arith.constant 0 : i32
    %c0_i32_1 = arith.constant 0 : i32
    return %c0_i32, %c0_i32_0 : i32, i32
  }
  func.func @transform_2(%arg0: i32) -> (i32, i32) {
    %c0_i32 = arith.constant 0 : i32
    %c0_i32_0 = arith.constant 0 : i32
    %c0_i32_1 = arith.constant 0 : i32
    return %c0_i32, %c0_i32_0 : i32, i32
  }
  func.func @transform_3(%arg0: i32) -> (i32, i32, i32) {
    %c0_i32 = arith.constant 0 : i32
    %c0_i32_0 = arith.constant 0 : i32
    %c0_i32_1 = arith.constant 0 : i32
    %c0_i32_2 = arith.constant 0 : i32
    return %c0_i32, %c0_i32_0, %c0_i32_1 : i32, i32, i32
  }
  func.func @transform_4(%arg0: i32) -> (i32, i32) {
    %c0_i32 = arith.constant 0 : i32
    %c0_i32_0 = arith.constant 0 : i32
    %c0_i32_1 = arith.constant 0 : i32
    return %c0_i32, %c0_i32_0 : i32, i32
  }
  func.func @transform_5(%arg0: i32) -> (i32, i32, i32) {
    %c0_i32 = arith.constant 0 : i32
    %c0_i32_0 = arith.constant 0 : i32
    %c0_i32_1 = arith.constant 0 : i32
    %c0_i32_2 = arith.constant 0 : i32
    return %c0_i32, %c0_i32_0, %c0_i32_1 : i32, i32, i32
  }
  func.func @transform_6(%arg0: i32) -> (i32, i32) {
    %c0_i32 = arith.constant 0 : i32
    %c0_i32_0 = arith.constant 0 : i32
    %c0_i32_1 = arith.constant 0 : i32
    return %c0_i32, %c0_i32_0 : i32, i32
  }
  func.func @transform_7(%arg0: i32) -> (i32, i32) {
    %c0_i32 = arith.constant 0 : i32
    %c0_i32_0 = arith.constant 0 : i32
    %c0_i32_1 = arith.constant 0 : i32
    return %c0_i32, %c0_i32_0 : i32, i32
  }
  func.func @transform_8(%arg0: i32) -> (i32, i32) {
    %c0_i32 = arith.constant 0 : i32
    %c0_i32_0 = arith.constant 0 : i32
    %c0_i32_1 = arith.constant 0 : i32
    return %c0_i32, %c0_i32_0 : i32, i32
  }
  func.func @transform_9(%arg0: i32) -> (i32, i32) {
    %c0_i32 = arith.constant 0 : i32
    %c0_i32_0 = arith.constant 0 : i32
    %c0_i32_1 = arith.constant 0 : i32
    return %c0_i32, %c0_i32_0 : i32, i32
  }
  func.func @transform_10(%arg0: i32) -> (i32, i32) {
    %c0_i32 = arith.constant 0 : i32
    %c0_i32_0 = arith.constant 0 : i32
    %c0_i32_1 = arith.constant 0 : i32
    return %c0_i32, %c0_i32_0 : i32, i32
  }
  func.func @transform_11(%arg0: i32) -> (i32, i32) {
    %c0_i32 = arith.constant 0 : i32
    %c0_i32_0 = arith.constant 0 : i32
    return %arg0, %c0_i32 : i32, i32
  }
}

</mosaic_0001>

<bundles_post_ra>
// kernel: cnn_forward.1
= control target key start
LH: loop header
LB: loop body
LE: loop exit
PB: predicated region body
PF: predicated region fallthrough
CT: control target
= control target key end

     0   :  { %vm550_vm0 = vcmask 1045504   ;;  %vm510_vm1 = vcmask 359424   ;;  %s22706_s0 = inlined_call_operand.vmem [shape: bf16[2,196,300], index: 0, kind: input, shape index: {}]   ;;  %s22707_s1 = inlined_call_operand.vmem [shape: bf16[300,256], index: 1, kind: input, shape index: {}]   ;;  %s22708_s2 = inlined_call_operand.vmem [shape: f32[1,64], index: 2, kind: input, shape index: {}]   ;;  %s22709_s3 = inlined_call_operand.vmem [shape: bf16[15,128,128], index: 3, kind: input, shape index: {}]   ;;  %s22710_s4 = inlined_call_operand.vmem [shape: f32[1,128], index: 4, kind: input, shape index: {}]   ;;  %s22711_s5 = inlined_call_operand.vmem [shape: bf16[25,128,120], index: 5, kind: input, shape index: {}]   ;;  %s22712_s6 = inlined_call_operand.vmem [shape: f32[1,120], index: 6, kind: input, shape index: {}]   ;;  %s22713_s7 = inlined_call_operand.vmem [shape: bf16[120,84], index: 7, kind: input, shape index: {}]   ;;  %s22714_s8 = inlined_call_operand.vmem [shape: f32[1,84], index: 8, kind: input, shape index: {}]   ;;  %s22715_s9 = inlined_call_operand.vmem [shape: bf16[84,10], index: 9, kind: input, shape index: {}]   ;;  %s22716_s10 = inlined_call_operand.vmem [shape: f32[1,10], index: 10, kind: input, shape index: {}]   ;;  %s22717_s11 = inlined_call_operand.hbm [shape: f32[2,10], index: 11, kind: output, shape index: {}]  }
   0x1   :  { %v12135_v0 = vld [vmem:[%s22707_s1 + $0x70] sm:$0xf]  ;;  %v15682_v1 = vld [vmem:[%s22707_s1 + $0x74] sm:$0xf0]  ;;  %v12127_v5 = vld [vmem:[%s22707_s1 + $0x60] sm:$0xf] }
   0x2   :  { %v12199_v2 = vld [vmem:[%s22707_s1 + $0xf0] sm:$0xf]  ;;  %v12136_v3 = vor.u32 %v15682_v1, %v12135_v0  ;;  %v15698_v4 = vld [vmem:[%s22707_s1 + $0xf4] sm:$0xf0]  ;;  %v15680_v6 = vld [vmem:[%s22707_s1 + $0x64] sm:$0xf0] }
   0x3   :  { %v12200_v7 = vor.u32 %v15698_v4, %v12199_v2  ;;  %v12191_v8 = vld [vmem:[%s22707_s1 + $0xe0] sm:$0xf]  ;;  %v15696_v9 = vld [vmem:[%s22707_s1 + $0xe4] sm:$0xf0]  ;;  %v12128_v11 = vor.u32 %v15680_v6, %v12127_v5  ;;  %v12119_v15 = vld [vmem:[%s22707_s1 + $0x50] sm:$0xf] }
   0x4   :  { %v12223_v10 = vld [vmem:[%s22707_s1 + $0x120] sm:$0xf]  ;;  %557 = vmatpush.bf16.msra.mxu0 %v12136_v3  ;;  %v15704_v12 = vld [vmem:[%s22707_s1 + $0x124] sm:$0x30]  ;;  %v12192_v13 = vor.u32 %v15696_v9, %v12191_v8  ;;  %v15678_v16 = vld [vmem:[%s22707_s1 + $0x54] sm:$0xf0] }
   0x5   :  { %630 = vmatpush.bf16.msra.mxu1 %v12200_v7  ;;  %v12224_v14 = vor.u32 %v15704_v12, %v12223_v10  ;;  %v12183_v17 = vld [vmem:[%s22707_s1 + $0xd0] sm:$0xf]  ;;  %v15694_v18 = vld [vmem:[%s22707_s1 + $0xd4] sm:$0xf0]  ;;  %v12120_v22 = vor.u32 %v15678_v16, %v12119_v15  ;;  %v12111_v24 = vld [vmem:[%s22707_s1 + $0x40] sm:$0xf] }
   0x6   :  { %v12215_v19 = vld [vmem:[%s22707_s1 + $0x110] sm:$0xf]  ;;  %v15702_v20 = vld [vmem:[%s22707_s1 + $0x114] sm:$0xf0]  ;;  %v12184_v25 = vor.u32 %v15694_v18, %v12183_v17  ;;  %v15676_v26 = vld [vmem:[%s22707_s1 + $0x44] sm:$0xf0] }
   0x7   :  { %v552_v21 = vsel %vm550_vm0, %v12224_v14, 0  ;;  %v12216_v23 = vor.u32 %v15702_v20, %v12215_v19  ;;  %v12207_v27 = vld [vmem:[%s22707_s1 + $0x100] sm:$0xf]  ;;  %v15700_v28 = vld [vmem:[%s22707_s1 + $0x104] sm:$0xf0]  ;;  %v12112_v31 = vor.u32 %v15676_v26, %v12111_v24 }
   0x8   :  { %558 = vmatpush.bf16.msra.mxu0 %v12128_v11  ;;  %708 = vmatpush.bf16.msra.mxu2 %v552_v21  ;;  %v12175_v29 = vld [vmem:[%s22707_s1 + $0xc0] sm:$0xf]  ;;  %v15692_v30 = vld [vmem:[%s22707_s1 + $0xc4] sm:$0xf0]  ;;  %v12208_v32 = vor.u32 %v15700_v28, %v12207_v27  ;;  %v15633_v34 = vld [vmem:[%s22706_s0 + $0x10] sm:$0xf0] }
   0x9   :  { %631 = vmatpush.bf16.msra.mxu1 %v12192_v13  ;;  %v11943_v33 = vld [vmem:[%s22706_s0 + $0x8] sm:$0xf]  ;;  %v12176_v35 = vor.u32 %v15692_v30, %v12175_v29  ;;  %v12103_v36 = vld [vmem:[%s22707_s1 + $0x30] sm:$0xf]  ;;  %v15674_v37 = vld [vmem:[%s22707_s1 + $0x34] sm:$0xf0] }
   0xa   :  { %v12167_v38 = vld [vmem:[%s22707_s1 + $0xb0] sm:$0xf]  ;;  %v15690_v39 = vld [vmem:[%s22707_s1 + $0xb4] sm:$0xf0]  ;;  %v16913_v40 = vor.u32 %v15633_v34, %v11943_v33  ;;  %v12104_v41 = vor.u32 %v15674_v37, %v12103_v36  ;;  %v12095_v43 = vld [vmem:[%s22707_s1 + $0x20] sm:$0xf] }
   0xb   :  { %v12168_v42 = vor.u32 %v15690_v39, %v12167_v38  ;;  %v15672_v44 = vld [vmem:[%s22707_s1 + $0x24] sm:$0xf0]  ;;  %v12159_v45 = vld [vmem:[%s22707_s1 + $0xa0] sm:$0xf]  ;;  %v12087_v48 = vld [vmem:[%s22707_s1 + $0x10] sm:$0xf] }
   0xc   :  { %559 = vmatpush.bf16.msra.mxu0 %v12120_v22  ;;  %709 = vmatpush.bf16.msra.mxu2 %v12216_v23  ;;  %v15688_v46 = vld [vmem:[%s22707_s1 + $0xa4] sm:$0xf0]  ;;  %v12096_v47 = vor.u32 %v15672_v44, %v12095_v43  ;;  %v15670_v50 = vld [vmem:[%s22707_s1 + $0x14] sm:$0xf0] }
   0xd   :  { %632 = vmatpush.bf16.msra.mxu1 %v12184_v25  ;;  %v12160_v49 = vor.u32 %v15688_v46, %v12159_v45 }
  0x10   :  { %560 = vmatpush.bf16.msra.mxu0 %v12112_v31  ;;  %710 = vmatpush.bf16.msra.mxu2 %v12208_v32 }
  0x11   :  { %633 = vmatpush.bf16.msra.mxu1 %v12176_v35 }
  0x13   :  { %12229 = vmatmul.msk.bf16.vlgmr.msra.gmra.mxu2 %vm510_vm1, %v16913_v40 }
  0x14   :  { %561 = vmatpush.bf16.msra.mxu0 %v12104_v41 }
  0x15   :  { %634 = vmatpush.bf16.msra.mxu1 %v12168_v42 }
  0x16   :  { %16 = vsyncpa [#allocation7], 0  ;;  %v12151_v51 = vld [vmem:[%s22707_s1 + $0x90] sm:$0xf]  ;;  %v15686_v52 = vld [vmem:[%s22707_s1 + $0x94] sm:$0xf0]  ;;  %v12088_v53 = vor.u32 %v15670_v50, %v12087_v48 }
  0x17   :  { %v12152_v54 = vor.u32 %v15686_v52, %v12151_v51  ;;  %v12079_v55 = vld [vmem:[%s22707_s1] sm:$0xf]  ;;  %v15668_v56 = vld [vmem:[%s22707_s1 + $0x4] sm:$0xf0]  ;;  %v15632_v61 = vld [vmem:[%s22706_s0 + $0x8] sm:$0xf0] }
  0x18   :  { %562 = vmatpush.bf16.msra.mxu0 %v12096_v47  ;;  %v12143_v57 = vld [vmem:[%s22707_s1 + $0x80] sm:$0xf]  ;;  %v15684_v58 = vld [vmem:[%s22707_s1 + $0x84] sm:$0xf0]  ;;  %v12080_v60 = vor.u32 %v15668_v56, %v12079_v55  ;;  %v15636_v63 = vld [vmem:[%s22706_s0 + $0x28] sm:$0xf0] }
  0x19   :  { %635 = vmatpush.bf16.msra.mxu1 %v12160_v49  ;;  %v11935_v59 = vld [vmem:[%s22706_s0] sm:$0xf]  ;;  %v12144_v0 = vor.u32 %v15684_v58, %v12143_v57  ;;  %v15631_v1 = vld [vmem:[%s22706_s0 + $0x4] sm:$0xf]  ;;  %v11937_v2 = vld [vmem:[%s22706_s0 + $0xc] sm:$0xf0] }
  0x1a   :  { %v11955_v62 = vld [vmem:[%s22706_s0 + $0x20] sm:$0xf]  ;;  %v16971_v3 = vor.u32 %v15632_v61, %v11935_v59  ;;  %v16975_v5 = vor.u32 %v15631_v1, %v11937_v2  ;;  %v11947_v6 = vld [vmem:[%s22706_s0 + $0x18] sm:$0xf]  ;;  %v15635_v7 = vld [vmem:[%s22706_s0 + $0x20] sm:$0xf0] }
  0x1b   :  { %v16973_v4 = vor.u32 %v15636_v63, %v11955_v62  ;;  %v11967_v8 = vld [vmem:[%s22706_s0 + $0x38] sm:$0xf]  ;;  %v15639_v9 = vld [vmem:[%s22706_s0 + $0x40] sm:$0xf0]  ;;  %v15634_v10 = vld [vmem:[%s22706_s0 + $0x1c] sm:$0xf]  ;;  %v16999_v12 = vor.u32 %v15635_v7, %v11947_v6 }
  0x1c   :  { %563 = vmatpush.bf16.msra.mxu0 %v12088_v53  ;;  %v11949_v11 = vld [vmem:[%s22706_s0 + $0x24] sm:$0xf0]  ;;  %v17001_v13 = vor.u32 %v15639_v9, %v11967_v8  ;;  %v15697_v15 = vld [vmem:[%s22707_s1 + $0xf4] sm:$0xf]  ;;  %v12201_v16 = vld [vmem:[%s22707_s1 + $0xf8] sm:$0xf0] }
  0x1d   :  { %636 = vmatpush.bf16.msra.mxu1 %v12152_v54  ;;  %v17003_v14 = vor.u32 %v15634_v10, %v11949_v11  ;;  %v15703_v17 = vld [vmem:[%s22707_s1 + $0x124] sm:$0xf]  ;;  %v12204_v18 = vor.u32 %v15697_v15, %v12201_v16  ;;  %v12225_v19 = vld [vmem:[%s22707_s1 + $0x128] sm:$0x30]  ;;  %v11959_v22 = vld [vmem:[%s22706_s0 + $0x30] sm:$0xf] }
  0x1e   :  { %v12228_v20 = vor.u32 %v15703_v17, %v12225_v19  ;;  %v15638_v23 = vld [vmem:[%s22706_s0 + $0x38] sm:$0xf0]  ;;  %v11979_v24 = vld [vmem:[%s22706_s0 + $0x50] sm:$0xf]  ;;  %v15637_v26 = vld [vmem:[%s22706_s0 + $0x34] sm:$0xf] }
  0x1f   :  { %849 = vmatpush.bf16.msrb.mxu2 %v12204_v18  ;;  %v15642_v25 = vld [vmem:[%s22706_s0 + $0x58] sm:$0xf0]  ;;  %v11961_v27 = vld [vmem:[%s22706_s0 + $0x3c] sm:$0xf0]  ;;  %v17040_v28 = vor.u32 %v15638_v23, %v11959_v22  ;;  %v15695_v31 = vld [vmem:[%s22707_s1 + $0xe4] sm:$0xf] }
  0x20   :  { %564 = vmatpush.bf16.msra.mxu0 %v12080_v60  ;;  %v555_v21 = vsel %vm550_vm0, %v12228_v20, 0  ;;  %v17042_v29 = vor.u32 %v15642_v25, %v11979_v24  ;;  %v17044_v30 = vor.u32 %v15637_v26, %v11961_v27  ;;  %v12193_v32 = vld [vmem:[%s22707_s1 + $0xe8] sm:$0xf0]  ;;  %v11971_v34 = vld [vmem:[%s22706_s0 + $0x48] sm:$0xf]  ;;  %s16765_s28 = smov 64  }
  0x21   :  { %637 = vmatpush.bf16.msra.mxu1 %v12144_v0  ;;  %v12196_v33 = vor.u32 %v15695_v31, %v12193_v32  ;;  %v15641_v35 = vld [vmem:[%s22706_s0 + $0x50] sm:$0xf0]  ;;  %v11991_v36 = vld [vmem:[%s22706_s0 + $0x68] sm:$0xf]  ;;  %v15640_v38 = vld [vmem:[%s22706_s0 + $0x4c] sm:$0xf] }
  0x22   :  { %v15645_v37 = vld [vmem:[%s22706_s0 + $0x70] sm:$0xf0]  ;;  %v11973_v39 = vld [vmem:[%s22706_s0 + $0x54] sm:$0xf0]  ;;  %v17074_v41 = vor.u32 %v15641_v35, %v11971_v34  ;;  %v11983_v44 = vld [vmem:[%s22706_s0 + $0x60] sm:$0xf] }
  0x23   :  { %565 = vmatmul.bf16.vlgmr.msra.gmra.mxu0 %v16971_v3  ;;  %12230 = vmatmul.msk.bf16.gmra.mxu2 %vm510_vm1, %v16973_v4  ;;  %v17076_v42 = vor.u32 %v15645_v37, %v11991_v36  ;;  %v17078_v43 = vor.u32 %v15640_v38, %v11973_v39  ;;  %v15644_v45 = vld [vmem:[%s22706_s0 + $0x68] sm:$0xf0]  ;;  %v12003_v46 = vld [vmem:[%s22706_s0 + $0x80] sm:$0xf]  ;;  %v15643_v48 = vld [vmem:[%s22706_s0 + $0x64] sm:$0xf] }
  0x24   :  { %638 = vmatmul.bf16.vlgmr.msra.gmra.mxu1 %v16975_v5  ;;  %927 = vmatpush.bf16.msrb.mxu0 %v555_v21  ;;  %v15648_v47 = vld [vmem:[%s22706_s0 + $0x88] sm:$0xf0]  ;;  %v11985_v49 = vld [vmem:[%s22706_s0 + $0x6c] sm:$0xf0]  ;;  %v17102_v50 = vor.u32 %v15644_v45, %v11983_v44  ;;  %v15693_v53 = vld [vmem:[%s22707_s1 + $0xd4] sm:$0xf] }
  0x25   :  { %850 = vmatpush.bf16.msrb.mxu2 %v12196_v33  ;;  %v17104_v51 = vor.u32 %v15648_v47, %v12003_v46  ;;  %v17106_v52 = vor.u32 %v15643_v48, %v11985_v49  ;;  %v12185_v54 = vld [vmem:[%s22707_s1 + $0xd8] sm:$0xf0]  ;;  %v11995_v56 = vld [vmem:[%s22706_s0 + $0x78] sm:$0xf]  ;;  %v15647_v57 = vld [vmem:[%s22706_s0 + $0x80] sm:$0xf0] }
  0x26   :  { %v12188_v55 = vor.u32 %v15693_v53, %v12185_v54  ;;  %v12015_v58 = vld [vmem:[%s22706_s0 + $0x98] sm:$0xf]  ;;  %v15651_v59 = vld [vmem:[%s22706_s0 + $0xa0] sm:$0xf0]  ;;  %v15646_v60 = vld [vmem:[%s22706_s0 + $0x7c] sm:$0xf]  ;;  %v17136_v62 = vor.u32 %v15647_v57, %v11995_v56 }
  0x27   :  { %v11997_v61 = vld [vmem:[%s22706_s0 + $0x84] sm:$0xf0]  ;;  %v17138_v63 = vor.u32 %v15651_v59, %v12015_v58  ;;  %v12007_v1 = vld [vmem:[%s22706_s0 + $0x90] sm:$0xf]  ;;  %v15650_v2 = vld [vmem:[%s22706_s0 + $0x98] sm:$0xf0] }
  0x28   :  { %v17140_v0 = vor.u32 %v15646_v60, %v11997_v61  ;;  %v12027_v6 = vld [vmem:[%s22706_s0 + $0xb0] sm:$0xf]  ;;  %v15654_v7 = vld [vmem:[%s22706_s0 + $0xb8] sm:$0xf0]  ;;  %v15649_v8 = vld [vmem:[%s22706_s0 + $0x94] sm:$0xf]  ;;  %v17164_v10 = vor.u32 %v15650_v2, %v12007_v1 }
  0x29   :  { %851 = vmatpush.bf16.msrb.mxu2 %v12188_v55  ;;  %v12009_v9 = vld [vmem:[%s22706_s0 + $0x9c] sm:$0xf0]  ;;  %v17166_v11 = vor.u32 %v15654_v7, %v12027_v6  ;;  %v15691_v16 = vld [vmem:[%s22707_s1 + $0xc4] sm:$0xf]  ;;  %v12177_v17 = vld [vmem:[%s22707_s1 + $0xc8] sm:$0xf0] }
  0x2a   :  { %v17168_v15 = vor.u32 %v15649_v8, %v12009_v9  ;;  %v15701_v18 = vld [vmem:[%s22707_s1 + $0x114] sm:$0xf]  ;;  %v12180_v19 = vor.u32 %v15691_v16, %v12177_v17  ;;  %v12217_v20 = vld [vmem:[%s22707_s1 + $0x118] sm:$0xf0]  ;;  %v12019_v22 = vld [vmem:[%s22706_s0 + $0xa8] sm:$0xf] }
  0x2b   :  { %v12220_v21 = vor.u32 %v15701_v18, %v12217_v20  ;;  %v15653_v23 = vld [vmem:[%s22706_s0 + $0xb0] sm:$0xf0]  ;;  %v12039_v24 = vld [vmem:[%s22706_s0 + $0xc8] sm:$0xf]  ;;  %v15652_v26 = vld [vmem:[%s22706_s0 + $0xac] sm:$0xf] }
  0x2c   :  { %v15657_v25 = vld [vmem:[%s22706_s0 + $0xd0] sm:$0xf0]  ;;  %v12021_v27 = vld [vmem:[%s22706_s0 + $0xb4] sm:$0xf0]  ;;  %v17204_v31 = vor.u32 %v15653_v23, %v12019_v22  ;;  %v12031_v35 = vld [vmem:[%s22706_s0 + $0xc0] sm:$0xf] }
  0x2d   :  { %852 = vmatpush.bf16.msrb.mxu2 %v12180_v19  ;;  %928 = vmatpush.bf16.msrb.mxu0 %v12220_v21  ;;  %v17206_v32 = vor.u32 %v15657_v25, %v12039_v24  ;;  %v17208_v33 = vor.u32 %v15652_v26, %v12021_v27  ;;  %v15656_v36 = vld [vmem:[%s22706_s0 + $0xc8] sm:$0xf0]  ;;  %v12051_v37 = vld [vmem:[%s22706_s0 + $0xe0] sm:$0xf]  ;;  %v15689_v39 = vld [vmem:[%s22707_s1 + $0xb4] sm:$0xf] }
  0x2e   :  { %v15660_v38 = vld [vmem:[%s22706_s0 + $0xe8] sm:$0xf0]  ;;  %v12169_v44 = vld [vmem:[%s22707_s1 + $0xb8] sm:$0xf0]  ;;  %v15655_v45 = vld [vmem:[%s22706_s0 + $0xc4] sm:$0xf]  ;;  %v17238_v49 = vor.u32 %v15656_v36, %v12031_v35 }
  0x2f   :  { %v12033_v46 = vld [vmem:[%s22706_s0 + $0xcc] sm:$0xf0]  ;;  %v12172_v47 = vor.u32 %v15689_v39, %v12169_v44  ;;  %v17240_v53 = vor.u32 %v15660_v38, %v12051_v37  ;;  %v15681_v58 = vld [vmem:[%s22707_s1 + $0x74] sm:$0xf]  ;;  %v12137_v59 = vld [vmem:[%s22707_s1 + $0x78] sm:$0xf0] }
  0x30   :  { %v17242_v55 = vor.u32 %v15655_v45, %v12033_v46  ;;  %v12140_v61 = vor.u32 %v15681_v58, %v12137_v59  ;;  %v15679_v2 = vld [vmem:[%s22707_s1 + $0x64] sm:$0xf]  ;;  %v12129_v6 = vld [vmem:[%s22707_s1 + $0x68] sm:$0xf0]  ;;  %v15677_v17 = vld [vmem:[%s22707_s1 + $0x54] sm:$0xf] }
  0x31   :  { %853 = vmatpush.bf16.msrb.mxu2 %v12172_v47  ;;  %v12132_v7 = vor.u32 %v15679_v2, %v12129_v6  ;;  %v12121_v18 = vld [vmem:[%s22707_s1 + $0x58] sm:$0xf0]  ;;  %v12043_v19 = vld [vmem:[%s22706_s0 + $0xd8] sm:$0xf]  ;;  %v15659_v22 = vld [vmem:[%s22706_s0 + $0xe0] sm:$0xf0] }
  0x32   :  { %776 = vmatpush.bf16.msra.mxu3 %v12140_v61  ;;  %v12124_v20 = vor.u32 %v15677_v17, %v12121_v18  ;;  %v12063_v23 = vld [vmem:[%s22706_s0 + $0xf8] sm:$0xf]  ;;  %v15663_v24 = vld [vmem:[%s22706_s0 + $0x100] sm:$0xf0]  ;;  %v15658_v25 = vld [vmem:[%s22706_s0 + $0xdc] sm:$0xf]  ;;  %v17298_v36 = vor.u32 %v15659_v22, %v12043_v19 }
  0x33   :  { %570 = vmatmul.bf16.gmra.mxu0 %v16999_v12  ;;  %12231 = vmatmul.msk.bf16.gmra.mxu2 %vm510_vm1, %v17001_v13  ;;  %v12045_v26 = vld [vmem:[%s22706_s0 + $0xe4] sm:$0xf0]  ;;  %v12113_v35 = vld [vmem:[%s22707_s1 + $0x48] sm:$0xf0]  ;;  %v17300_v37 = vor.u32 %v15663_v24, %v12063_v23  ;;  %v15673_v47 = vld [vmem:[%s22707_s1 + $0x34] sm:$0xf] }
  0x34   :  { %643 = vmatmul.bf16.gmra.mxu1 %v17003_v14  ;;  %v17302_v44 = vor.u32 %v15658_v25, %v12045_v26  ;;  %v15687_v58 = vld [vmem:[%s22707_s1 + $0xa4] sm:$0xf]  ;;  %v12161_v59 = vld [vmem:[%s22707_s1 + $0xa8] sm:$0xf0]  ;;  %v12089_v17 = vld [vmem:[%s22707_s1 + $0x18] sm:$0xf0] }
  0x35   :  { %v15671_v61 = vld [vmem:[%s22707_s1 + $0x24] sm:$0xf]  ;;  %v12164_v2 = vor.u32 %v15687_v58, %v12161_v59  ;;  %v15685_v18 = vld [vmem:[%s22707_s1 + $0x94] sm:$0xf]  ;;  %v12055_v19 = vld [vmem:[%s22706_s0 + $0xf0] sm:$0xf] }
  0x36   :  { %777 = vmatpush.bf16.msra.mxu3 %v12132_v7  ;;  %v12153_v22 = vld [vmem:[%s22707_s1 + $0x98] sm:$0xf0]  ;;  %v12075_v25 = vld [vmem:[%s22706_s0 + $0x110] sm:$0xf]  ;;  %v12145_v58 = vld [vmem:[%s22707_s1 + $0x88] sm:$0xf0] }
  0x37   :  { %854 = vmatpush.bf16.msrb.mxu2 %v12164_v2  ;;  %v15662_v24 = vld [vmem:[%s22706_s0 + $0xf8] sm:$0xf0]  ;;  %vm1348_vm2 = vcmask 519168   ;;  %vm1400_vm3 = vsmask.f32 3328  ;;  %vm1727_vm6 = vcmask 1043968  }
  0x38   :  { %v15666_v26 = vld [vmem:[%s22706_s0 + $0x118] sm:$0xf0]  ;;  %vm1401_vm4 = vsmask.f32 7440  ;;  %vm1855_vm7 = vcmask 1046528   ;;  %vm2358_vm8 = vcmask 1044480  }
  0x39   :  { %vm17600_vm5 = vmor %vm1400_vm3, %vm1401_vm4  ;;  %vm1373_vm9 = vcmask 517120   ;;  %vm1752_vm10 = vcmask 1041920   ;;  %vm4732_vm11 = vcmask 1042432   ;;  %vm4733_vm12 = vsmask.f32 2304  ;;  %s11924_s24 = sshll.u32 %s22717_s11, 4  ;;  %s11925_s24 = int_to_ptr.hbm [resolvable:$true] %s11924_s24 }
  0x3a   :  { %778 = vmatpush.bf16.msra.mxu3 %v12124_v20  ;;  %vm19942_vm13 = vmand %vm4732_vm11, %vm4733_vm12  ;;  %vm4755_vm14 = vcmask 1043458   ;;  %vm4756_vm15 = vsmask.f32 7946  ;;  %vm4771_vm11 = vcmask 1043457  }
  0x3b   :  { %vm20001_vm4 = vmand %vm4755_vm14, %vm4756_vm15  ;;  %vm4794_vm14 = vsmask.f32 7950 }
  0x3c   :  { %vm20024_vm12 = vmand %vm4771_vm11, %vm1400_vm3  ;;  %vm4793_vm3 = vcmask 1043459   ;;  %vm4812_vm11 = vcmask 1040384  }
  0x3d   :  { %vm20053_vm15 = vmand %vm4793_vm3, %vm4794_vm14  ;;  %vm4813_vm3 = vsmask.f32 256 }
  0x3e   :  { %vm20093_vm14 = vmand %vm4812_vm11, %vm4813_vm3 }
  0x43   :  { %575 = vmatmul.bf16.gmra.mxu0 %v17040_v28  ;;  %12232 = vmatmul.msk.bf16.gmra.mxu2 %vm510_vm1, %v17042_v29 }
  0x44   :  { %648 = vmatmul.bf16.gmra.mxu1 %v17044_v30 }
  0x53   :  { %580 = vmatmul.bf16.gmra.mxu0 %v17074_v41  ;;  %12233 = vmatmul.msk.bf16.gmra.mxu2 %vm510_vm1, %v17076_v42 }
  0x54   :  { %653 = vmatmul.bf16.gmra.mxu1 %v17078_v43 }
  0x63   :  { %585 = vmatmul.bf16.gmra.mxu0 %v17102_v50  ;;  %12234 = vmatmul.msk.bf16.gmra.mxu2 %vm510_vm1, %v17104_v51 }
  0x64   :  { %658 = vmatmul.bf16.gmra.mxu1 %v17106_v52 }
  0x73   :  { %590 = vmatmul.bf16.gmra.mxu0 %v17136_v62  ;;  %12235 = vmatmul.msk.bf16.gmra.mxu2 %vm510_vm1, %v17138_v63 }
  0x74   :  { %663 = vmatmul.bf16.gmra.mxu1 %v17140_v0 }
  0x83   :  { %595 = vmatmul.bf16.gmra.mxu0 %v17164_v10  ;;  %12236 = vmatmul.msk.bf16.gmra.mxu2 %vm510_vm1, %v17166_v11 }
  0x84   :  { %668 = vmatmul.bf16.gmra.mxu1 %v17168_v15 }
  0x93   :  { %600 = vmatmul.bf16.gmra.mxu0 %v17204_v31  ;;  %12237 = vmatmul.msk.bf16.gmra.mxu2 %vm510_vm1, %v17206_v32 }
  0x94   :  { %673 = vmatmul.bf16.gmra.mxu1 %v17208_v33 }
  0x96   :  { %v712_v34 = vpop.f32.mrf.mxu2 }
  0x9e   :  { %v714_v48 = vpop.f32.mrf.mxu2 }
  0xa0   :  { %v566_v54 = vpop.f32.mrf.mxu0 }
  0xa1   :  { %v639_v56 = vpop.f32.mrf.mxu1 }
  0xa2   :  { %v640_v57 = vadd.f32 %v639_v56, %v566_v54 }
  0xa3   :  { %605 = vmatmul.bf16.gmra.mxu0 %v17238_v49  ;;  %12238 = vmatmul.msk.bf16.gmra.mxu2 %vm510_vm1, %v17240_v53 }
  0xa4   :  { %678 = vmatmul.bf16.gmra.mxu1 %v17242_v55  ;;  %v17254_v60 = vadd.f32 %v712_v34, %v640_v57  ;;  %v15675_v34 = vld [vmem:[%s22707_s1 + $0x44] sm:$0xf] }
  0xa5   :  { %v12116_v38 = vor.u32 %v15675_v34, %v12113_v35  ;;  %v12156_v34 = vor.u32 %v15685_v18, %v12153_v22  ;;  %v15661_v35 = vld [vmem:[%s22706_s0 + $0xf4] sm:$0xf] }
  0xa6   :  { %1020 = vrot.lane.b32.xlu0 %v17254_v60, %s16765_s28  ;;  %v717_v1 = vpop.f32.mrf.mxu2 }
  0xa7   :  { %779 = vmatpush.bf16.msra.mxu3 %v12116_v38  ;;  %855 = vmatpush.bf16.msrb.mxu2 %v12156_v34  ;;  %v12069_v34 = vld [vmem:[%s22706_s0 + $0x114] sm:$0xf0] }
  0xa8   :  { %v568_v8 = vpop.f32.mrf.mxu0 }
  0xa9   :  { %v641_v9 = vpop.f32.mrf.mxu1 }
  0xaa   :  { %v642_v16 = vadd.f32 %v641_v9, %v568_v8 }
  0xac   :  { %v17273_v21 = vadd.f32 %v714_v48, %v642_v16  ;;  %v12105_v48 = vld [vmem:[%s22707_s1 + $0x38] sm:$0xf0]  ;;  %v15669_v16 = vld [vmem:[%s22707_s1 + $0x14] sm:$0xf] }
  0xad   :  { %v12108_v54 = vor.u32 %v15673_v47, %v12105_v48  ;;  %v12092_v20 = vor.u32 %v15669_v16, %v12089_v17  ;;  %v17373_v47 = vor.u32 %v15662_v24, %v12055_v19  ;;  %v17375_v48 = vor.u32 %v15666_v26, %v12075_v25  ;;  %v12209_v16 = vld [vmem:[%s22707_s1 + $0x108] sm:$0xf0]  ;;  %v12067_v24 = vld [vmem:[%s22706_s0 + $0x108] sm:$0xf]  ;;  %v15665_v25 = vld [vmem:[%s22706_s0 + $0x110] sm:$0xf0] }
  0xae   :  { %1022 = vrot.lane.b32.xlu0 %v17273_v21, %s16765_s28  ;;  %v719_v27 = vpop.f32.mrf.mxu2  ;;  %v15664_v26 = vld [vmem:[%s22706_s0 + $0x10c] sm:$0xf] }
  0xaf   :  { %780 = vmatpush.bf16.msra.mxu3 %v12108_v54 }
  0xb0   :  { %v571_v39 = vpop.f32.mrf.mxu0 }
  0xb1   :  { %v644_v45 = vpop.f32.mrf.mxu1 }
  0xb2   :  { %v645_v46 = vadd.f32 %v644_v45, %v571_v39  ;;  %v15667_v39 = vld [vmem:[%s22707_s1 + $0x4] sm:$0xf]  ;;  %v12081_v45 = vld [vmem:[%s22707_s1 + $0x8] sm:$0xf0] }
  0xb3   :  { %610 = vmatmul.bf16.gmra.mxu0 %v17298_v36  ;;  %12239 = vmatmul.msk.bf16.gmra.mxu2 %vm510_vm1, %v17300_v37  ;;  %v12084_v54 = vor.u32 %v15667_v39, %v12081_v45  ;;  %v17416_v45 = vor.u32 %v15664_v26, %v12069_v34 }
  0xb4   :  { %683 = vmatmul.bf16.gmra.mxu1 %v17302_v44  ;;  %v17314_v56 = vadd.f32 %v717_v1, %v645_v46  ;;  %v12097_v1 = vld [vmem:[%s22707_s1 + $0x28] sm:$0xf0]  ;;  %v15683_v46 = vld [vmem:[%s22707_s1 + $0x84] sm:$0xf] }
  0xb5   :  { %v12100_v7 = vor.u32 %v15671_v61, %v12097_v1  ;;  %v12148_v2 = vor.u32 %v15683_v46, %v12145_v58 }
  0xb6   :  { %1024 = vrot.lane.b32.xlu2 %v17314_v56, %s16765_s28  ;;  %v722_v57 = vpop.f32.mrf.mxu2 }
  0xb7   :  { %781 = vmatpush.bf16.msra.mxu3 %v12100_v7  ;;  %856 = vmatpush.bf16.msrb.mxu2 %v12148_v2 }
  0xb8   :  { %v573_v6 = vpop.f32.mrf.mxu0 }
  0xb9   :  { %v646_v8 = vpop.f32.mrf.mxu1 }
  0xba   :  { %v647_v9 = vadd.f32 %v646_v8, %v573_v6 }
  0xbb   :  { %782 = vmatpush.bf16.msra.mxu3 %v12092_v20 }
  0xbc   :  { %v17345_v23 = vadd.f32 %v719_v27, %v647_v9  ;;  %v12057_v27 = vld [vmem:[%s22706_s0 + $0xfc] sm:$0xf0]  ;;  %v15699_v9 = vld [vmem:[%s22707_s1 + $0x104] sm:$0xf] }
  0xbd   :  { %v17380_v61 = vor.u32 %v15661_v35, %v12057_v27  ;;  %v12212_v17 = vor.u32 %v15699_v9, %v12209_v16  ;;  %v17412_v27 = vor.u32 %v15665_v25, %v12067_v24 }
  0xbe   :  { %1026 = vrot.lane.b32.xlu0 %v17345_v23, %s16765_s28  ;;  %v724_v38 = vpop.f32.mrf.mxu2 }
  0xbf   :  { %783 = vmatpush.bf16.msra.mxu3 %v12084_v54  ;;  %929 = vmatpush.bf16.msrb.mxu0 %v12212_v17 }
  0xc0   :  { %v576_v59 = vpop.f32.mrf.mxu0 }
  0xc1   :  { %v649_v1 = vpop.f32.mrf.mxu1 }
  0xc2   :  { %v650_v6 = vadd.f32 %v649_v1, %v576_v59  ;;  %784 = vmatmul.bf16.vlgmr.msra.gmra.mxu3 %v16971_v3  ;;  %v92_v1 = vld [vmem:[%s22706_s0 + $0x120] sm:$0x33] }
  0xc3   :  { %615 = vmatmul.bf16.gmra.mxu0 %v17373_v47  ;;  %12240 = vmatmul.msk.bf16.gmra.mxu2 %vm510_vm1, %v17375_v48  ;;  %v254_v16 = vunpack.c.l.b16 %v92_v1 }
  0xc4   :  { %v17385_v7 = vadd.f32 %v722_v57, %v650_v6  ;;  %688 = vmatmul.bf16.gmra.mxu1 %v17380_v61  ;;  %v93_v57 = vld [vmem:[%s22706_s0 + $0x128] sm:$0x3] }
  0xc5   :  { %v256_v22 = vunpack.c.l.b16 %v93_v57 }
  0xc6   :  { %v727_v8 = vpop.f32.mrf.mxu2 }
  0xc8   :  { %v578_v18 = vpop.f32.mrf.mxu0 }
  0xc9   :  { %v651_v19 = vpop.f32.mrf.mxu1 }
  0xca   :  { %v652_v20 = vadd.f32 %v651_v19, %v578_v18  ;;  %v255_v18 = vunpack.c.h.b16 %v92_v1  ;;  %v17430_v19 = vpack.c.b16 %v254_v16, %v254_v16 }
  0xcc   :  { %v17398_v3 = vadd.f32 %v724_v38, %v652_v20  ;;  %v17414_v38 = vpack.c.b16 %v256_v22, %v256_v22  ;;  %v17432_v20 = vpack.c.b16 %v255_v18, %v255_v18 }
  0xce   :  { %v729_v35 = vpop.f32.mrf.mxu2 }
  0xd0   :  { %v581_v39 = vpop.f32.mrf.mxu0 }
  0xd1   :  { %v654_v46 = vpop.f32.mrf.mxu1 }
  0xd2   :  { %v655_v54 = vadd.f32 %v654_v46, %v581_v39  ;;  %789 = vmatmul.bf16.gmra.mxu3 %v16999_v12 }
  0xd3   :  { %620 = vmatmul.bf16.gmra.mxu0 %v17412_v27  ;;  %12241 = vmatmul.msk.bf16.gmra.mxu2 %vm510_vm1, %v17414_v38 }
  0xd4   :  { %v17421_v58 = vadd.f32 %v727_v8, %v655_v54  ;;  %693 = vmatmul.bf16.gmra.mxu1 %v17416_v45 }
  0xd6   :  { %v732_v59 = vpop.f32.mrf.mxu2 }
  0xd8   :  { %v583_v2 = vpop.f32.mrf.mxu0 }
  0xd9   :  { %v656_v6 = vpop.f32.mrf.mxu1 }
  0xda   :  { %v657_v9 = vadd.f32 %v656_v6, %v583_v2 }
  0xdc   :  { %v17428_v17 = vadd.f32 %v729_v35, %v657_v9 }
  0xde   :  { %v734_v57 = vpop.f32.mrf.mxu2 }
  0xe0   :  { %v586_v8 = vpop.f32.mrf.mxu0 }
  0xe1   :  { %v659_v22 = vpop.f32.mrf.mxu1 }
  0xe2   :  { %v660_v12 = vadd.f32 %v659_v22, %v586_v8  ;;  %794 = vmatmul.bf16.gmra.mxu3 %v17040_v28 }
  0xe3   :  { %625 = vmatmul.bf16.gmra.mxu0 %v17430_v19  ;;  %857 = vmatmul.bf16.vlgmr.msrb.gmra.mxu2 %v16975_v5 }
  0xe4   :  { %v17436_v24 = vadd.f32 %v732_v59, %v660_v12  ;;  %698 = vmatmul.bf16.gmra.mxu1 %v17432_v20 }
  0xe6   :  { %v737_v25 = vpop.f32.mrf.mxu2 }
  0xe8   :  { %v588_v26 = vpop.f32.mrf.mxu0 }
  0xe9   :  { %v661_v34 = vpop.f32.mrf.mxu1 }
  0xea   :  { %v662_v35 = vadd.f32 %v661_v34, %v588_v26 }
  0xec   :  { %v17440_v39 = vadd.f32 %v734_v57, %v662_v35 }
  0xee   :  { %v739_v46 = vpop.f32.mrf.mxu2 }
  0xf0   :  { %v591_v54 = vpop.f32.mrf.mxu0 }
  0xf1   :  { %v664_v2 = vpop.f32.mrf.mxu1 }
  0xf2   :  { %v665_v1 = vadd.f32 %v664_v2, %v591_v54  ;;  %799 = vmatmul.bf16.gmra.mxu3 %v17074_v41 }
  0xf3   :  { %862 = vmatmul.bf16.gmra.mxu2 %v17003_v14  ;;  %12242 = vmatmul.msk.bf16.vlgmr.msrb.gmra.mxu0 %vm510_vm1, %v16913_v40 }
  0xf4   :  { %v17445_v5 = vadd.f32 %v737_v25, %v665_v1 }
  0xf6   :  { %v742_v28 = vpop.f32.mrf.mxu2 }
  0xf8   :  { %v593_v59 = vpop.f32.mrf.mxu0 }
  0xf9   :  { %v666_v6 = vpop.f32.mrf.mxu1 }
  0xfa   :  { %v667_v9 = vadd.f32 %v666_v6, %v593_v59 }
  0xfc   :  { %v17448_v16 = vadd.f32 %v739_v46, %v667_v9 }
  0xfe   :  { %v744_v18 = vpop.f32.mrf.mxu2 }
 0x100   :  { %v596_v57 = vpop.f32.mrf.mxu0 }
 0x101   :  { %v669_v8 = vpop.f32.mrf.mxu1 }
 0x102   :  { %v670_v22 = vadd.f32 %v669_v8, %v596_v57  ;;  %804 = vmatmul.bf16.gmra.mxu3 %v17102_v50 }
 0x103   :  { %867 = vmatmul.bf16.gmra.mxu2 %v17044_v30  ;;  %12243 = vmatmul.msk.bf16.gmra.mxu0 %vm510_vm1, %v16973_v4 }
 0x104   :  { %v17453_v40 = vadd.f32 %v742_v28, %v670_v22 }
 0x106   :  { %v747_v14 = vpop.f32.mrf.mxu2 }
 0x108   :  { %v598_v41 = vpop.f32.mrf.mxu0 }
 0x109   :  { %v671_v12 = vpop.f32.mrf.mxu1 }
 0x10a   :  { %v672_v25 = vadd.f32 %v671_v12, %v598_v41 }
 0x10c   :  { %v17456_v26 = vadd.f32 %v744_v18, %v672_v25 }
 0x10e   :  { %v749_v34 = vpop.f32.mrf.mxu2 }
 0x110   :  { %v601_v35 = vpop.f32.mrf.mxu0 }
 0x111   :  { %v674_v46 = vpop.f32.mrf.mxu1 }
 0x112   :  { %v675_v54 = vadd.f32 %v674_v46, %v601_v35  ;;  %809 = vmatmul.bf16.gmra.mxu3 %v17136_v62 }
 0x113   :  { %872 = vmatmul.bf16.gmra.mxu2 %v17078_v43  ;;  %12244 = vmatmul.msk.bf16.gmra.mxu0 %vm510_vm1, %v17001_v13 }
 0x114   :  { %v17461_v4 = vadd.f32 %v747_v14, %v675_v54 }
 0x116   :  { %v752_v30 = vpop.f32.mrf.mxu2 }
 0x118   :  { %v603_v50 = vpop.f32.mrf.mxu0 }
 0x119   :  { %v676_v2 = vpop.f32.mrf.mxu1 }
 0x11a   :  { %v677_v1 = vadd.f32 %v676_v2, %v603_v50 }
 0x11c   :  { %v17464_v28 = vadd.f32 %v749_v34, %v677_v1 }
 0x11e   :  { %v754_v59 = vpop.f32.mrf.mxu2 }
 0x120   :  { %v606_v6 = vpop.f32.mrf.mxu0 }
 0x121   :  { %v679_v9 = vpop.f32.mrf.mxu1 }
 0x122   :  { %v680_v18 = vadd.f32 %v679_v9, %v606_v6  ;;  %814 = vmatmul.bf16.gmra.mxu3 %v17164_v10 }
 0x123   :  { %12245 = vmatmul.msk.bf16.gmra.mxu0 %vm510_vm1, %v17042_v29  ;;  %877 = vmatmul.bf16.gmra.mxu2 %v17106_v52 }
 0x124   :  { %v17469_v13 = vadd.f32 %v752_v30, %v680_v18 }
 0x126   :  { %v757_v43 = vpop.f32.mrf.mxu2 }
 0x128   :  { %v608_v62 = vpop.f32.mrf.mxu0 }
 0x129   :  { %v681_v57 = vpop.f32.mrf.mxu1 }
 0x12a   :  { %v682_v8 = vadd.f32 %v681_v57, %v608_v62 }
 0x12c   :  { %v17472_v22 = vadd.f32 %v754_v59, %v682_v8 }
 0x12e   :  { %v759_v14 = vpop.f32.mrf.mxu2 }
 0x130   :  { %v611_v41 = vpop.f32.mrf.mxu0 }
 0x131   :  { %v684_v12 = vpop.f32.mrf.mxu1 }
 0x132   :  { %v685_v25 = vadd.f32 %v684_v12, %v611_v41  ;;  %819 = vmatmul.bf16.gmra.mxu3 %v17204_v31 }
 0x133   :  { %12246 = vmatmul.msk.bf16.gmra.mxu0 %vm510_vm1, %v17076_v42  ;;  %882 = vmatmul.bf16.gmra.mxu2 %v17140_v0 }
 0x134   :  { %v17477_v29 = vadd.f32 %v757_v43, %v685_v25 }
 0x136   :  { %v762_v52 = vpop.f32.mrf.mxu2 }
 0x138   :  { %v613_v10 = vpop.f32.mrf.mxu0 }
 0x139   :  { %v686_v34 = vpop.f32.mrf.mxu1 }
 0x13a   :  { %v687_v35 = vadd.f32 %v686_v34, %v613_v10 }
 0x13c   :  { %v17480_v46 = vadd.f32 %v759_v14, %v687_v35 }
 0x13e   :  { %v764_v54 = vpop.f32.mrf.mxu2 }
 0x140   :  { %v616_v30 = vpop.f32.mrf.mxu0 }
 0x141   :  { %v689_v50 = vpop.f32.mrf.mxu1 }
 0x142   :  { %v690_v2 = vadd.f32 %v689_v50, %v616_v30  ;;  %824 = vmatmul.bf16.gmra.mxu3 %v17238_v49 }
 0x143   :  { %12247 = vmatmul.msk.bf16.gmra.mxu0 %vm510_vm1, %v17104_v51  ;;  %887 = vmatmul.bf16.gmra.mxu2 %v17168_v15 }
 0x144   :  { %v17485_v42 = vadd.f32 %v762_v52, %v690_v2 }
 0x145   :  { %v785_v49 = vpop.f32.mrf.mxu3 }
 0x146   :  { %v767_v0 = vpop.f32.mrf.mxu2 }
 0x148   :  { %v618_v31 = vpop.f32.mrf.mxu0 }
 0x149   :  { %v691_v1 = vpop.f32.mrf.mxu1 }
 0x14a   :  { %v692_v59 = vadd.f32 %v691_v1, %v618_v31 }
 0x14c   :  { %v17488_v6 = vadd.f32 %v764_v54, %v692_v59 }
 0x14d   :  { %v787_v10 = vpop.f32.mrf.mxu3 }
 0x14e   :  { %v769_v9 = vpop.f32.mrf.mxu2 }
 0x150   :  { %v621_v18 = vpop.f32.mrf.mxu0 }
 0x151   :  { %v694_v43 = vpop.f32.mrf.mxu1 }
 0x152   :  { %v695_v62 = vadd.f32 %v694_v43, %v621_v18  ;;  %829 = vmatmul.bf16.gmra.mxu3 %v17298_v36 }
 0x153   :  { %12248 = vmatmul.msk.bf16.gmra.mxu0 %vm510_vm1, %v17138_v63  ;;  %892 = vmatmul.bf16.gmra.mxu2 %v17208_v33 }
 0x154   :  { %v17493_v51 = vadd.f32 %v767_v0, %v695_v62 }
 0x155   :  { %v790_v54 = vpop.f32.mrf.mxu3 }
 0x156   :  { %v772_v15 = vpop.f32.mrf.mxu2 }
 0x158   :  { %v623_v57 = vpop.f32.mrf.mxu0 }
 0x159   :  { %v696_v8 = vpop.f32.mrf.mxu1 }
 0x15a   :  { %v697_v14 = vadd.f32 %v696_v8, %v623_v57 }
 0x15c   :  { %v17496_v41 = vadd.f32 %v769_v9, %v697_v14 }
 0x15e   :  { %v774_v12 = vpop.f32.mrf.mxu2 }
 0x160   :  { %v626_v25 = vpop.f32.mrf.mxu0 }
 0x161   :  { %v699_v52 = vpop.f32.mrf.mxu1 }
 0x162   :  { %v700_v34 = vadd.f32 %v699_v52, %v626_v25  ;;  %834 = vmatmul.bf16.gmra.mxu3 %v17373_v47 }
 0x163   :  { %12249 = vmatmul.msk.bf16.gmra.mxu0 %vm510_vm1, %v17166_v11  ;;  %897 = vmatmul.bf16.gmra.mxu2 %v17242_v55  ;;  %v792_v11 = vpop.f32.mrf.mxu3 }
 0x164   :  { %v17501_v63 = vadd.f32 %v772_v15, %v700_v34 }
 0x166   :  { %v858_v33 = vpop.f32.mrf.mxu2 }
 0x167   :  { %v859_v30 = vadd.f32 %v858_v33, %v785_v49 }
 0x168   :  { %v628_v36 = vpop.f32.mrf.mxu0 }
 0x169   :  { %v701_v35 = vpop.f32.mrf.mxu1 }
 0x16b   :  { %v795_v18 = vpop.f32.mrf.mxu3 }
 0x16e   :  { %v860_v50 = vpop.f32.mrf.mxu2 }
 0x16f   :  { %v861_v47 = vadd.f32 %v860_v50, %v787_v10 }
 0x170   :  { %v931_v2 = vpop.f32.mrf.mxu0 }
 0x171   :  { %v17504_v0 = vadd.f32 %v931_v2, %v859_v30 }
 0x172   :  { %839 = vmatmul.bf16.gmra.mxu3 %v17412_v27 }
 0x173   :  { %1145 = vrot.lane.b32.xlu1 %v17504_v0, %s16765_s28  ;;  %12250 = vmatmul.msk.bf16.gmra.mxu0 %vm510_vm1, %v17206_v32  ;;  %v797_v49 = vpop.f32.mrf.mxu3 }
 0x174   :  { %902 = vmatmul.bf16.gmra.mxu2 %v17302_v44 }
 0x176   :  { %v863_v55 = vpop.f32.mrf.mxu2 }
 0x177   :  { %v864_v59 = vadd.f32 %v863_v55, %v790_v54 }
 0x178   :  { %v933_v31 = vpop.f32.mrf.mxu0 }
 0x179   :  { %v17512_v1 = vadd.f32 %v933_v31, %v861_v47 }
 0x17b   :  { %1147 = vrot.lane.b32.xlu1 %v17512_v1, %s16765_s28 }
 0x17e   :  { %v865_v9 = vpop.f32.mrf.mxu2 }
 0x17f   :  { %v866_v44 = vadd.f32 %v865_v9, %v792_v11 }
 0x180   :  { %v936_v43 = vpop.f32.mrf.mxu0 }
 0x181   :  { %v17516_v62 = vadd.f32 %v936_v43, %v864_v59 }
 0x182   :  { %844 = vmatmul.bf16.gmra.mxu3 %v17430_v19 }
 0x183   :  { %1149 = vrot.lane.b32.xlu2 %v17516_v62, %s16765_s28  ;;  %12251 = vmatmul.msk.bf16.gmra.mxu0 %vm510_vm1, %v17240_v53 }
 0x184   :  { %907 = vmatmul.bf16.gmra.mxu2 %v17380_v61  ;;  %v800_v61 = vpop.f32.mrf.mxu3 }
 0x186   :  { %v868_v32 = vpop.f32.mrf.mxu2 }
 0x187   :  { %v869_v57 = vadd.f32 %v868_v32, %v795_v18 }
 0x188   :  { %v938_v27 = vpop.f32.mrf.mxu0 }
 0x189   :  { %v17524_v15 = vadd.f32 %v938_v27, %v866_v44 }
 0x18b   :  { %1151 = vrot.lane.b32.xlu1 %v17524_v15, %s16765_s28  ;;  %1028 = vrot.lane.b32.xlu2 %v17385_v7, %s16765_s28 }
 0x18c   :  { %v802_v34 = vpop.f32.mrf.mxu3 }
 0x18e   :  { %v870_v8 = vpop.f32.mrf.mxu2 }
 0x18f   :  { %v871_v12 = vadd.f32 %v870_v8, %v797_v49  ;;  %v17585_v8 = vld [vmem:[%s22708_s2] ss:$0 sm:$0xff] }
 0x190   :  { %v941_v14 = vpop.f32.mrf.mxu0 }
 0x191   :  { %v17530_v53 = vadd.f32 %v941_v14, %v869_v57 }
 0x193   :  { %1030 = vrot.lane.b32.xlu1 %v17398_v3, %s16765_s28  ;;  %1153 = vrot.lane.b32.xlu0 %v17530_v53, %s16765_s28 }
 0x194   :  { %12252 = vmatmul.msk.bf16.gmra.mxu0 %vm510_vm1, %v17300_v37  ;;  %912 = vmatmul.bf16.gmra.mxu2 %v17416_v45  ;;  %v805_v37 = vpop.f32.mrf.mxu3 }
 0x196   :  { %v873_v19 = vpop.f32.mrf.mxu2 }
 0x197   :  { %v874_v10 = vadd.f32 %v873_v19, %v800_v61  ;;  %v1021_v61 = vpop.permute.xlu0 %1020 }
 0x198   :  { %v943_v25 = vpop.f32.mrf.mxu0 }
 0x199   :  { %v17539_v52 = vadd.f32 %v943_v25, %v871_v12 }
 0x19b   :  { %1155 = vrot.lane.b32.xlu2 %v17539_v52, %s16765_s28  ;;  %1032 = vrot.lane.b32.xlu0 %v17421_v58, %s16765_s28 }
 0x19c   :  { %v807_v11 = vpop.f32.mrf.mxu3 }
 0x19e   :  { %v875_v33 = vpop.f32.mrf.mxu2 }
 0x19f   :  { %v876_v54 = vadd.f32 %v875_v33, %v802_v34 }
 0x1a0   :  { %v946_v36 = vpop.f32.mrf.mxu0 }
 0x1a1   :  { %v17545_v35 = vadd.f32 %v946_v36, %v874_v10  ;;  %v1095_v10 = vmax.f32 %v17254_v60, %v1021_v61  ;;  %v1023_v36 = vpop.permute.xlu0 %1022 }
 0x1a3   :  { %1157 = vrot.lane.b32.xlu1 %v17545_v35, %s16765_s28  ;;  %1034 = vrot.lane.b32.xlu2 %v17428_v17, %s16765_s28 }
 0x1a4   :  { %12253 = vmatmul.msk.bf16.gmra.mxu0 %vm510_vm1, %v17375_v48  ;;  %917 = vmatmul.bf16.gmra.mxu2 %v17432_v20  ;;  %v810_v9 = vpop.f32.mrf.mxu3 }
 0x1a6   :  { %v878_v45 = vpop.f32.mrf.mxu2 }
 0x1a7   :  { %v879_v2 = vadd.f32 %v878_v45, %v805_v37 }
 0x1a8   :  { %v948_v30 = vpop.f32.mrf.mxu0 }
 0x1a9   :  { %v17554_v50 = vadd.f32 %v948_v30, %v876_v54  ;;  %v1096_v54 = vmax.f32 %v17273_v21, %v1023_v36 }
 0x1ab   :  { %1036 = vrot.lane.b32.xlu1 %v17436_v24, %s16765_s28  ;;  %1159 = vrot.lane.b32.xlu0 %v17554_v50, %s16765_s28 }
 0x1ae   :  { %v880_v47 = vpop.f32.mrf.mxu2 }
 0x1af   :  { %v881_v48 = vadd.f32 %v880_v47, %v807_v11  ;;  %v812_v47 = vpop.f32.mrf.mxu3 }
 0x1b0   :  { %v951_v55 = vpop.f32.mrf.mxu0 }
 0x1b1   :  { %v17560_v31 = vadd.f32 %v951_v55, %v879_v2 }
 0x1b3   :  { %1161 = vrot.lane.b32.xlu2 %v17560_v31, %s16765_s28  ;;  %1038 = vrot.lane.b32.xlu0 %v17440_v39, %s16765_s28 }
 0x1b4   :  { %12254 = vmatmul.msk.bf16.gmra.mxu0 %vm510_vm1, %v17414_v38  ;;  %v1025_v38 = vpop.permute.xlu2 %1024 }
 0x1b5   :  { %v1097_v49 = vmax.f32 %v17314_v56, %v1025_v38 }
 0x1b6   :  { %v883_v18 = vpop.f32.mrf.mxu2 }
 0x1b7   :  { %v884_v43 = vadd.f32 %v883_v18, %v810_v9 }
 0x1b8   :  { %v953_v20 = vpop.f32.mrf.mxu0 }
 0x1b9   :  { %v17568_v59 = vadd.f32 %v953_v20, %v881_v48 }
 0x1bb   :  { %1163 = vrot.lane.b32.xlu1 %v17568_v59, %s16765_s28  ;;  %1040 = vrot.lane.b32.xlu2 %v17445_v5, %s16765_s28 }
 0x1be   :  { %v885_v48 = vpop.f32.mrf.mxu2 }
 0x1c0   :  { %v956_v32 = vpop.f32.mrf.mxu0 }
 0x1c1   :  { %v17574_v44 = vadd.f32 %v956_v32, %v884_v43  ;;  %v1027_v43 = vpop.permute.xlu0 %1026 }
 0x1c3   :  { %1165 = vrot.lane.b32.xlu0 %v17574_v44, %s16765_s28 }
 0x1cb   :  { %1042 = vrot.lane.b32.xlu0 %v17448_v16, %s16765_s28 }
 0x1dd   :  { %v1150_v27 = vpop.permute.xlu2 %1149 }
 0x1de   :  { %v1222_v57 = vmax.f32 %v17516_v62, %v1150_v27  ;;  %v958_v27 = vpop.f32.mrf.mxu0 }
 0x1e0   :  { %v1247_v14 = vmax.f32 %v1097_v49, %v1222_v57 }
 0x1e2   :  { %v1275_v19 = vadd.f32 %v17585_v8, %v1247_v14 }
 0x1e4   :  { %v1300_v12 = vmax.f32 %v1275_v19, 0.0 }
 0x1e5   :  { %v1146_v25 = vpop.permute.xlu1 %1145  ;;  %v1029_v32 = vpop.permute.xlu2 %1028 }
 0x1e6   :  { %v1325_v34 = vpack.c.bf16 %v1300_v12, %v1300_v12  ;;  %v1220_v33 = vmax.f32 %v17504_v0, %v1146_v25 }
 0x1e8   :  { %1351 = vst.msk [vmem:[#allocation2 + $0x8] sm:$0xf] %vm1348_vm2, %v1325_v34  ;;  %v1245_v56 = vmax.f32 %v1095_v10, %v1220_v33  ;;  %v815_v34 = vpop.f32.mrf.mxu3  ;;  %v888_v33 = vpop.f32.mrf.mxu2 }
 0x1ea   :  { %v1273_v62 = vadd.f32 %v17585_v8, %v1245_v56  ;;  %v22781_v56 = vmov 0 }
 0x1eb   :  { %v22782_v56 = vsel %vm17600_vm5, 4294967295, %v22781_v56 }
 0x1ec   :  { %v1298_v37 = vmax.f32 %v1273_v62, 0.0  ;;  %22783 = vst [vmem:[#allocation9_spill] sm:$0xff] %v22782_v56 }
 0x1ed   :  { %v1148_v45 = vpop.permute.xlu1 %1147 }
 0x1ee   :  { %v1323_v30 = vpack.c.bf16 %v1298_v37, %v1298_v37  ;;  %v1221_v2 = vmax.f32 %v17512_v1, %v1148_v45  ;;  %v1098_v1 = vmax.f32 %v17345_v23, %v1027_v43 }
 0x1ef   :  { %v1377_v61 = vld [vmem:[#allocation2 + $0x8] sm:$0xf] }
 0x1f0   :  { %1349 = vst.msk [vmem:[#allocation2] sm:$0xf] %vm1348_vm2, %v1323_v30  ;;  %v1246_v11 = vmax.f32 %v1096_v54, %v1221_v2  ;;  %v1423_v62 = vshll.u32 %v1377_v61, 16  ;;  %v1099_v54 = vmax.f32 %v17385_v7, %v1029_v32  ;;  %v1427_v43 = vshrl.u32 %v1377_v61, 16  ;;  %v890_v61 = vpop.f32.mrf.mxu2 }
 0x1f2   :  { %v1274_v60 = vadd.f32 %v17585_v8, %v1246_v11 }
 0x1f4   :  { %v1299_v55 = vmax.f32 %v1274_v60, 0.0  ;;  %v961_v60 = vpop.f32.mrf.mxu0 }
 0x1f5   :  { %v1156_v23 = vpop.permute.xlu2 %1155 }
 0x1f6   :  { %v1324_v0 = vpack.c.bf16 %v1299_v55, %v1299_v55  ;;  %v1225_v55 = vmax.f32 %v17539_v52, %v1156_v23 }
 0x1f7   :  { %v1375_v20 = vld [vmem:[#allocation2] sm:$0xf] }
 0x1f8   :  { %1350 = vst.msk [vmem:[#allocation2 + $0x4] sm:$0xf] %vm1348_vm2, %v1324_v0  ;;  %v1404_v9 = vshrl.u32 %v1375_v20, 16  ;;  %v1407_v18 = vshll.u32 %v1375_v20, 16 }
 0x1fa   :  { %v1406_v21 = vrot.slane %v1404_v9, 4  ;;  %v1409_v38 = vrot.slane %v1407_v18, 5  ;;  %v886_v9 = vadd.f32 %v885_v48, %v812_v47  ;;  %v1425_v18 = vrot.slane %v1423_v62, 5 }
 0x1fc   :  { %v1410_v14 = vor.u32 %v1409_v38, %v1406_v21  ;;  %v963_v62 = vpop.f32.mrf.mxu0 }
 0x1fd   :  { %v1152_v49 = vpop.permute.xlu1 %1151 }
 0x1fe   :  { %v1223_v57 = vmax.f32 %v17524_v15, %v1152_v49  ;;  %v1411_v15 = vrot.slane %v1410_v14, 4  ;;  %v1429_v14 = vrot.slane %v1427_v43, 4 }
 0x1ff   :  { %v1376_v19 = vld [vmem:[#allocation2 + $0x4] sm:$0xf] }
 0x200   :  { %v1248_v12 = vmax.f32 %v1098_v1, %v1223_v57  ;;  %v1413_v25 = vshll.u32 %v1376_v19, 16  ;;  %v1417_v10 = vshrl.u32 %v1376_v19, 16  ;;  %v17616_v57 = vadd.f32 %v958_v27, %v886_v9 }
 0x202   :  { %v1276_v36 = vadd.f32 %v17585_v8, %v1248_v12  ;;  %v1415_v37 = vrot.slane %v1413_v25, 5  ;;  %v1419_v45 = vrot.slane %v1417_v10, 4  ;;  %v1430_v10 = vor.u32 %v1429_v14, %v1425_v18 }
 0x204   :  { %v1301_v30 = vmax.f32 %v1276_v36, 0.0  ;;  %v1416_v2 = vsel %vm17600_vm5, %v1411_v15, %v1415_v37  ;;  %v1420_v11 = vor.u32 %v1419_v45, %v1415_v37  ;;  %v1035_v15 = vpop.permute.xlu2 %1034  ;;  %v1431_v37 = vrot.slane %v1430_v10, 4 }
 0x205   :  { %v1031_v0 = vpop.permute.xlu1 %1030  ;;  %v1154_v20 = vpop.permute.xlu0 %1153  ;;  %1652 = vrot.lane.b32.xlu1 %v1416_v2, %s16765_s28 }
 0x206   :  { %v1326_v21 = vpack.c.bf16 %v1301_v30, %v1301_v30  ;;  %v1100_v38 = vmax.f32 %v17398_v3, %v1031_v0  ;;  %v1224_v7 = vmax.f32 %v17530_v53, %v1154_v20  ;;  %v1421_v32 = vrot.slane %v1420_v11, 4  ;;  %v817_v3 = vpop.f32.mrf.mxu3 }
 0x207   :  { %v889_v0 = vadd.f32 %v888_v33, %v815_v34  ;;  %v891_v9 = vadd.f32 %v890_v61, %v817_v3 }
 0x208   :  { %1352 = vst.msk [vmem:[#allocation2 + $0xc] sm:$0xf] %vm1348_vm2, %v1326_v21  ;;  %v1250_v1 = vmax.f32 %v1100_v38, %v1225_v55  ;;  %v1249_v49 = vmax.f32 %v1099_v54, %v1224_v7  ;;  %v1426_v52 = vsel %vm17600_vm5, %v1421_v32, %v1425_v18  ;;  %v893_v55 = vpop.f32.mrf.mxu2  ;;  %v966_v32 = vpop.f32.mrf.mxu0 }
 0x209   :  { %1654 = vrot.lane.b32.xlu2 %v1426_v52, %s16765_s28 }
 0x20a   :  { %v1278_v47 = vadd.f32 %v17585_v8, %v1250_v1  ;;  %v1277_v48 = vadd.f32 %v17585_v8, %v1249_v49  ;;  %v17631_v1 = vadd.f32 %v961_v60, %v889_v0  ;;  %v17633_v49 = vadd.f32 %v963_v62, %v891_v9 }
 0x20c   :  { %v1303_v53 = vmax.f32 %v1278_v47, 0.0  ;;  %v1302_v19 = vmax.f32 %v1277_v48, 0.0 }
 0x20d   :  { %1167 = vrot.lane.b32.xlu1 %v17616_v57, %s16765_s28  ;;  %v1033_v54 = vpop.permute.xlu0 %1032  ;;  %v1162_v52 = vpop.permute.xlu2 %1161 }
 0x20e   :  { %v1328_v12 = vpack.c.bf16 %v1303_v53, %v1303_v53  ;;  %v1327_v25 = vpack.c.bf16 %v1302_v19, %v1302_v19  ;;  %v820_v11 = vpop.f32.mrf.mxu3  ;;  %v1101_v18 = vmax.f32 %v17421_v58, %v1033_v54  ;;  %v1102_v58 = vmax.f32 %v17428_v17, %v1035_v15 }
 0x20f   :  { %v1378_v23 = vld [vmem:[#allocation2 + $0xc] sm:$0xf]  ;;  %v1228_v53 = vmax.f32 %v17560_v31, %v1162_v52 }
 0x210   :  { %1354 = vst.msk [vmem:[#allocation2 + $0x14] sm:$0xf] %vm1348_vm2, %v1328_v12  ;;  %v1433_v27 = vshll.u32 %v1378_v23, 16  ;;  %v1437_v36 = vshrl.u32 %v1378_v23, 16  ;;  %v968_v0 = vpop.f32.mrf.mxu0 }
 0x211   :  { %1353 = vst.msk [vmem:[#allocation2 + $0x10] sm:$0xf] %vm1348_vm2, %v1327_v25 }
 0x212   :  { %v1435_v45 = vrot.slane %v1433_v27, 5  ;;  %v1439_v30 = vrot.slane %v1437_v36, 4  ;;  %v895_v27 = vpop.f32.mrf.mxu2 }
 0x214   :  { %v1436_v2 = vsel %vm17600_vm5, %v1431_v37, %v1435_v45  ;;  %v1440_v21 = vor.u32 %v1439_v30, %v1435_v45 }
 0x215   :  { %v1158_v20 = vpop.permute.xlu1 %1157  ;;  %1656 = vrot.lane.b32.xlu2 %v1436_v2, %s16765_s28  ;;  %1044 = vrot.lane.b32.xlu1 %v17453_v40, %s16765_s28 }
 0x216   :  { %v1226_v43 = vmax.f32 %v17545_v35, %v1158_v20  ;;  %v1441_v14 = vrot.slane %v1440_v21, 4  ;;  %v822_v31 = vpop.f32.mrf.mxu3 }
 0x217   :  { %v1380_v48 = vld [vmem:[#allocation2 + $0x14] sm:$0xf] }
 0x218   :  { %v1251_v38 = vmax.f32 %v1101_v18, %v1226_v43  ;;  %v1379_v7 = vld [vmem:[#allocation2 + $0x10] sm:$0xf]  ;;  %v1453_v10 = vshll.u32 %v1380_v48, 16  ;;  %v1457_v36 = vshrl.u32 %v1380_v48, 16  ;;  %v894_v18 = vadd.f32 %v893_v55, %v820_v11 }
 0x219   :  { %v1443_v34 = vshll.u32 %v1379_v7, 16  ;;  %v1447_v33 = vshrl.u32 %v1379_v7, 16  ;;  %v896_v43 = vadd.f32 %v895_v27, %v822_v31 }
 0x21a   :  { %v1279_v47 = vadd.f32 %v17585_v8, %v1251_v38  ;;  %v1455_v2 = vrot.slane %v1453_v10, 5  ;;  %v1459_v20 = vrot.slane %v1457_v36, 4  ;;  %v17659_v11 = vadd.f32 %v966_v32, %v894_v18 }
 0x21b   :  { %v1445_v3 = vrot.slane %v1443_v34, 5  ;;  %v1449_v61 = vrot.slane %v1447_v33, 4  ;;  %v17661_v55 = vadd.f32 %v968_v0, %v896_v43 }
 0x21c   :  { %v1304_v35 = vmax.f32 %v1279_v47, 0.0  ;;  %v1460_v7 = vor.u32 %v1459_v20, %v1455_v2  ;;  %v898_v47 = vpop.f32.mrf.mxu2 }
 0x21d   :  { %v1037_v19 = vpop.permute.xlu1 %1036  ;;  %v1160_v12 = vpop.permute.xlu0 %1159  ;;  %v1446_v60 = vsel %vm17600_vm5, %v1441_v14, %v1445_v3  ;;  %1169 = vrot.lane.b32.xlu2 %v17631_v1, %s16765_s28  ;;  %1171 = vrot.lane.b32.xlu1 %v17633_v49, %s16765_s28  ;;  %v1450_v25 = vor.u32 %v1449_v61, %v1445_v3 }
 0x21e   :  { %v1329_v62 = vpack.c.bf16 %v1304_v35, %v1304_v35  ;;  %v1103_v23 = vmax.f32 %v17436_v24, %v1037_v19  ;;  %v1227_v17 = vmax.f32 %v17554_v50, %v1160_v12  ;;  %1658 = vrot.lane.b32.xlu0 %v1446_v60, %s16765_s28  ;;  %v825_v52 = vpop.f32.mrf.mxu3  ;;  %v1461_v14 = vrot.slane %v1460_v7, 4  ;;  %v15720_v60 = vld [vmem:[%s22709_s3 + $0x38] sm:$0xff] }
 0x21f   :  { %v1451_v45 = vrot.slane %v1450_v25, 4  ;;  %2046 = vmatpush.bf16.msrb.mxu3 %v15720_v60 }
 0x220   :  { %1355 = vst.msk [vmem:[#allocation2 + $0x18] sm:$0xf] %vm1348_vm2, %v1329_v62  ;;  %v1253_v15 = vmax.f32 %v1103_v23, %v1228_v53  ;;  %v1252_v37 = vmax.f32 %v1102_v58, %v1227_v17  ;;  %v971_v53 = vpop.f32.mrf.mxu0  ;;  %v1041_v23 = vpop.permute.xlu2 %1040 }
 0x221   :  { %v1456_v50 = vsel %vm17600_vm5, %v1451_v45, %v1455_v2  ;;  %v899_v2 = vadd.f32 %v898_v47, %v825_v52 }
 0x222   :  { %v1281_v54 = vadd.f32 %v17585_v8, %v1253_v15  ;;  %v1280_v30 = vadd.f32 %v17585_v8, %v1252_v37 }
 0x224   :  { %v1306_v24 = vmax.f32 %v1281_v54, 0.0  ;;  %v1305_v9 = vmax.f32 %v1280_v30, 0.0  ;;  %v900_v15 = vpop.f32.mrf.mxu2  ;;  %v1105_v54 = vmax.f32 %v17445_v5, %v1041_v23 }
 0x225   :  { %1660 = vrot.lane.b32.xlu2 %v1456_v50, %s16765_s28  ;;  %1048 = vrot.lane.b32.xlu1 %v17461_v4, %s16765_s28  ;;  %v1039_v61 = vpop.permute.xlu0 %1038 }
 0x226   :  { %v1331_v21 = vpack.c.bf16 %v1306_v24, %v1306_v24  ;;  %v1330_v38 = vpack.c.bf16 %v1305_v9, %v1305_v9  ;;  %1046 = vrot.lane.b32.xlu0 %v17456_v26, %s16765_s28  ;;  %v1104_v32 = vmax.f32 %v17440_v39, %v1039_v61  ;;  %v827_v36 = vpop.f32.mrf.mxu3 }
 0x227   :  { %v1381_v34 = vld [vmem:[#allocation2 + $0x18] sm:$0xf]  ;;  %v901_v24 = vadd.f32 %v900_v15, %v827_v36  ;;  %v15718_v36 = vld [vmem:[%s22709_s3 + $0x28] sm:$0xff] }
 0x228   :  { %1357 = vst.msk [vmem:[#allocation2 + $0x20] sm:$0xf] %vm1348_vm2, %v1331_v21  ;;  %v1463_v33 = vshll.u32 %v1381_v34, 16  ;;  %v1467_v48 = vshrl.u32 %v1381_v34, 16  ;;  %v973_v5 = vpop.f32.mrf.mxu0 }
 0x229   :  { %1356 = vst.msk [vmem:[#allocation2 + $0x1c] sm:$0xf] %vm1348_vm2, %v1330_v38  ;;  %v17686_v7 = vadd.f32 %v973_v5, %v901_v24  ;;  %v15728_v24 = vld [vmem:[%s22709_s3 + $0x78] sm:$0xff]  ;;  %v15727_v5 = vld [vmem:[%s22709_s3 + $0x70] sm:$0xff] }
 0x22a   :  { %v1465_v3 = vrot.slane %v1463_v33, 5  ;;  %v1469_v58 = vrot.slane %v1467_v48, 4  ;;  %v17688_v33 = vadd.f32 %v971_v53, %v899_v2  ;;  %v15715_v2 = vld [vmem:[%s22709_s3 + $0x10] sm:$0xff]  ;;  %1932 = vmatpush.bf16.msrb.mxu1 %v15728_v24 }
 0x22c   :  { %v1466_v35 = vsel %vm17600_vm5, %v1461_v14, %v1465_v3  ;;  %v1470_v25 = vor.u32 %v1469_v58, %v1465_v3 }
 0x22d   :  { %v1164_v19 = vpop.permute.xlu1 %1163  ;;  %1173 = vrot.lane.b32.xlu2 %v17659_v11, %s16765_s28  ;;  %1175 = vrot.lane.b32.xlu1 %v17661_v55, %s16765_s28 }
 0x22e   :  { %v1229_v12 = vmax.f32 %v17568_v59, %v1164_v19  ;;  %1662 = vrot.lane.b32.xlu0 %v1466_v35, %s16765_s28  ;;  %v1471_v39 = vrot.slane %v1470_v25, 4  ;;  %v830_v60 = vpop.f32.mrf.mxu3  ;;  %v903_v25 = vpop.f32.mrf.mxu2  ;;  %1933 = vmatpush.bf16.msrb.mxu1 %v15727_v5 }
 0x22f   :  { %v1383_v59 = vld [vmem:[#allocation2 + $0x20] sm:$0xf] }
 0x230   :  { %v1254_v10 = vmax.f32 %v1104_v32, %v1229_v12  ;;  %v1382_v62 = vld [vmem:[#allocation2 + $0x1c] sm:$0xf]  ;;  %v1483_v43 = vshll.u32 %v1383_v59, 16  ;;  %v1487_v21 = vshrl.u32 %v1383_v59, 16 }
 0x231   :  { %v1473_v17 = vshll.u32 %v1382_v62, 16  ;;  %v1477_v31 = vshrl.u32 %v1382_v62, 16  ;;  %v15719_v62 = vld [vmem:[%s22709_s3 + $0x30] sm:$0xff] }
 0x232   :  { %v1282_v27 = vadd.f32 %v17585_v8, %v1254_v10  ;;  %v1485_v47 = vrot.slane %v1483_v43, 5  ;;  %2047 = vmatpush.bf16.msrb.mxu3 %v15719_v62  ;;  %v15765_v62 = vld [vmem:[%s22709_s3 + $0x158] sm:$0xff] }
 0x233   :  { %v1475_v37 = vrot.slane %v1473_v17, 5  ;;  %v1479_v45 = vrot.slane %v1477_v31, 4  ;;  %v904_v17 = vadd.f32 %v903_v25, %v830_v60  ;;  %v15721_v60 = vld [vmem:[%s22709_s3 + $0x40] sm:$0xff] }
 0x234   :  { %v1307_v30 = vmax.f32 %v1282_v27, 0.0  ;;  %v976_v27 = vpop.f32.mrf.mxu0  ;;  %v15766_v25 = vld [vmem:[%s22709_s3 + $0x160] sm:$0xff] }
 0x235   :  { %v1166_v0 = vpop.permute.xlu0 %1165  ;;  %v1476_v20 = vsel %vm17600_vm5, %v1471_v39, %v1475_v37  ;;  %1052 = vrot.lane.b32.xlu1 %v17469_v13, %s16765_s28  ;;  %v1480_v9 = vor.u32 %v1479_v45, %v1475_v37  ;;  %v17717_v59 = vadd.f32 %v976_v27, %v904_v17  ;;  %v15717_v45 = vld [vmem:[%s22709_s3 + $0x20] sm:$0xff] }
 0x236   :  { %v1332_v50 = vpack.c.bf16 %v1307_v30, %v1307_v30  ;;  %v1230_v18 = vmax.f32 %v17574_v44, %v1166_v0  ;;  %1050 = vrot.lane.b32.xlu0 %v17464_v28, %s16765_s28  ;;  %1664 = vrot.lane.b32.xlu2 %v1476_v20, %s16765_s28  ;;  %v1489_v44 = vrot.slane %v1487_v21, 4  ;;  %v15716_v30 = vld [vmem:[%s22709_s3 + $0x18] sm:$0xff]  ;;  %v15714_v0 = vld [vmem:[%s22709_s3 + $0x8] sm:$0xff] }
 0x237   :  { %v1481_v34 = vrot.slane %v1480_v9, 4  ;;  %2048 = vmatpush.bf16.msrb.mxu3 %v15718_v36  ;;  %v15752_v20 = vld [vmem:[%s22709_s3 + $0x138] sm:$0xff]  ;;  %v15751_v9 = vld [vmem:[%s22709_s3 + $0x130] sm:$0xff]  ;;  %v15749_v21 = vld [vmem:[%s22709_s3 + $0x120] sm:$0xff] }
 0x238   :  { %1358 = vst.msk [vmem:[#allocation2 + $0x24] sm:$0xf] %vm1348_vm2, %v1332_v50  ;;  %v1255_v38 = vmax.f32 %v1105_v54, %v1230_v18  ;;  %v1490_v61 = vor.u32 %v1489_v44, %v1485_v47  ;;  %2593 = vmatpush.bf16.msra.mxu2 %v15752_v20  ;;  %v15713_v50 = vld [vmem:[%s22709_s3] sm:$0xff]  ;;  %v15750_v18 = vld [vmem:[%s22709_s3 + $0x128] sm:$0xff]  ;;  %v15724_v44 = vld [vmem:[%s22709_s3 + $0x58] sm:$0xff] }
 0x239   :  { %v1486_v14 = vsel %vm17600_vm5, %v1481_v34, %v1485_v47  ;;  %v15748_v34 = vld [vmem:[%s22709_s3 + $0x118] sm:$0xff]  ;;  %v15747_v47 = vld [vmem:[%s22709_s3 + $0x110] sm:$0xff] }
 0x23a   :  { %v1283_v52 = vadd.f32 %v17585_v8, %v1255_v38  ;;  %v1491_v19 = vrot.slane %v1490_v61, 4  ;;  %v15726_v38 = vld [vmem:[%s22709_s3 + $0x68] sm:$0xff]  ;;  %v15723_v61 = vld [vmem:[%s22709_s3 + $0x50] sm:$0xff] }
 0x23b   :  { %2049 = vmatpush.bf16.msrb.mxu3 %v15717_v45  ;;  %1934 = vmatpush.bf16.msrb.mxu1 %v15726_v38  ;;  %v15764_v45 = vld [vmem:[%s22709_s3 + $0x150] sm:$0xff] }
 0x23c   :  { %v1308_v48 = vmax.f32 %v1283_v52, 0.0  ;;  %2594 = vmatpush.bf16.msra.mxu2 %v15751_v9  ;;  %v15725_v52 = vld [vmem:[%s22709_s3 + $0x60] sm:$0xff] }
 0x23d   :  { %1179 = vrot.lane.b32.xlu1 %v17686_v7, %s16765_s28 }
 0x23e   :  { %v1333_v3 = vpack.c.bf16 %v1308_v48, %v1308_v48  ;;  %1666 = vrot.lane.b32.xlu0 %v1486_v14, %s16765_s28  ;;  %1177 = vrot.lane.b32.xlu2 %v17688_v33, %s16765_s28  ;;  %v15769_v48 = vld [vmem:[%s22709_s3 + $0x178] sm:$0xff] }
 0x23f   :  { %v1384_v58 = vld [vmem:[#allocation2 + $0x24] sm:$0xf]  ;;  %2050 = vmatpush.bf16.msrb.mxu3 %v15716_v30  ;;  %1935 = vmatpush.bf16.msrb.mxu1 %v15725_v52  ;;  %v15763_v30 = vld [vmem:[%s22709_s3 + $0x148] sm:$0xff] }
 0x240   :  { %1359 = vst.msk [vmem:[#allocation2 + $0x28] sm:$0xf] %vm1348_vm2, %v1333_v3  ;;  %v1493_v35 = vshll.u32 %v1384_v58, 16  ;;  %v1497_v53 = vshrl.u32 %v1384_v58, 16  ;;  %2595 = vmatpush.bf16.msra.mxu2 %v15750_v18  ;;  %2825 = vmatpush.bf16.msra.mxu0 %v15769_v48  ;;  %v15746_v3 = vld [vmem:[%s22709_s3 + $0x108] sm:$0xff]  ;;  %v15768_v58 = vld [vmem:[%s22709_s3 + $0x170] sm:$0xff] }
 0x241   :  { %v15762_v18 = vld [vmem:[%s22709_s3 + $0x140] sm:$0xff] }
 0x242   :  { %v1495_v32 = vrot.slane %v1493_v35, 5  ;;  %v1499_v12 = vrot.slane %v1497_v53, 4  ;;  %v15745_v35 = vld [vmem:[%s22709_s3 + $0x100] sm:$0xff]  ;;  %v15722_v53 = vld [vmem:[%s22709_s3 + $0x48] sm:$0xff] }
 0x243   :  { %2051 = vmatpush.bf16.msrb.mxu3 %v15715_v2  ;;  %1936 = vmatpush.bf16.msrb.mxu1 %v15724_v44 }
 0x244   :  { %v1496_v10 = vsel %vm17600_vm5, %v1491_v19, %v1495_v32  ;;  %v1500_v23 = vor.u32 %v1499_v12, %v1495_v32  ;;  %2596 = vmatpush.bf16.msra.mxu2 %v15749_v21  ;;  %2826 = vmatpush.bf16.msra.mxu0 %v15768_v58  ;;  %v15767_v19 = vld [vmem:[%s22709_s3 + $0x168] sm:$0xff] }
 0x245   :  { %1056 = vrot.lane.b32.xlu1 %v17477_v29, %s16765_s28 }
 0x246   :  { %1054 = vrot.lane.b32.xlu0 %v17472_v22, %s16765_s28  ;;  %1668 = vrot.lane.b32.xlu2 %v1496_v10, %s16765_s28  ;;  %v1501_v39 = vrot.slane %v1500_v23, 4  ;;  %v1043_v10 = vpop.permute.xlu0 %1042 }
 0x247   :  { %v17709_v31 = vld [vmem:[#allocation2 + $0x28] sm:$0xf]  ;;  %2052 = vmatpush.bf16.msrb.mxu3 %v15714_v0  ;;  %1937 = vmatpush.bf16.msrb.mxu1 %v15723_v61  ;;  %v1106_v36 = vmax.f32 %v17448_v16, %v1043_v10 }
 0x248   :  { %v1503_v15 = vshll.u32 %v17709_v31, 16  ;;  %2597 = vmatpush.bf16.msra.mxu2 %v15748_v34  ;;  %2827 = vmatpush.bf16.msra.mxu0 %v15767_v19  ;;  %v1507_v9 = vshrl.u32 %v17709_v31, 16 }
 0x24a   :  { %v17715_v37 = vrot.slane %v1503_v15, 5 }
 0x24b   :  { %2053 = vmatpush.bf16.msrb.mxu3 %v15713_v50  ;;  %1938 = vmatpush.bf16.msrb.mxu1 %v15722_v53 }
 0x24c   :  { %v1506_v54 = vsel %vm17600_vm5, %v1501_v39, %v17715_v37  ;;  %2598 = vmatpush.bf16.msra.mxu2 %v15747_v47  ;;  %2828 = vmatpush.bf16.msra.mxu0 %v15766_v25 }
 0x24e   :  { %1670 = vrot.lane.b32.xlu0 %v1506_v54, %s16765_s28  ;;  %1181 = vrot.lane.b32.xlu2 %v17717_v59, %s16765_s28 }
 0x24f   :  { %1939 = vmatpush.bf16.msrb.mxu1 %v15721_v60 }
 0x250   :  { %2599 = vmatpush.bf16.msra.mxu2 %v15746_v3  ;;  %2829 = vmatpush.bf16.msra.mxu0 %v15765_v62 }
 0x254   :  { %2600 = vmatpush.bf16.msra.mxu2 %v15745_v35  ;;  %2830 = vmatpush.bf16.msra.mxu0 %v15764_v45 }
 0x258   :  { %2831 = vmatpush.bf16.msra.mxu0 %v15763_v30 }
 0x25c   :  { %2832 = vmatpush.bf16.msra.mxu0 %v15762_v18 }
 0x263   :  { %v1655_v43 = vpop.permute.xlu2 %1654 }
 0x264   :  { %1729 = vst.msk [vmem:[#allocation2 + $0x4] sm:$0xf] %vm1727_vm6, %v1655_v43  ;;  %v1509_v43 = vrot.slane %v1507_v9, 4 }
 0x266   :  { %v1510_v31 = vor.u32 %v1509_v43, %v17715_v37 }
 0x268   :  { %v1511_v61 = vrot.slane %v1510_v31, 4 }
 0x26f   :  { %v1657_v14 = vpop.permute.xlu2 %1656 }
 0x270   :  { %1730 = vst.msk [vmem:[#allocation2 + $0x8] sm:$0xf] %vm1727_vm6, %v1657_v14 }
 0x277   :  { %v1170_v32 = vpop.permute.xlu2 %1169  ;;  %v1653_v12 = vpop.permute.xlu1 %1652 }
 0x278   :  { %1728 = vst.msk [vmem:[#allocation2] sm:$0xf] %vm1727_vm6, %v1653_v12 }
 0x27f   :  { %v1661_v23 = vpop.permute.xlu2 %1660  ;;  %v1168_v17 = vpop.permute.xlu1 %1167  ;;  %v17806_v27 = vld [vmem:[#allocation2] sm:$0xff]  }
 0x280   :  { %1732 = vst.msk [vmem:[#allocation2 + $0x10] sm:$0xf] %vm1727_vm6, %v1661_v23  ;;  %v1231_v15 = vmax.f32 %v17616_v57, %v1168_v17  ;;  %2054 = vmatmul.bf16.vlgmr.msrb.gmra.mxu3 %v17806_v27  ;;  %v1232_v57 = vmax.f32 %v17631_v1, %v1170_v32  ;;  %v1788_v1 = vld [vmem:[#allocation2] sm:$0xe]  ;;  %v22718_v48 = vunpack.c.h.b16 %v17806_v27 }
 0x281   :  { %v1826_v14 = vunpack.c.l.b16 %v1788_v1 }
 0x282   :  { %v1256_v39 = vmax.f32 %v1106_v36, %v1231_v15 }
 0x283   :  { %v1845_v37 = vpack.c.b16 %v22718_v48, %v1826_v14 }
 0x284   :  { %v1284_v54 = vadd.f32 %v17585_v8, %v1256_v39 }
 0x285   :  { %v1856_v45 = vrot.slane %v1845_v37, 1 }
 0x286   :  { %v1309_v16 = vmax.f32 %v1284_v54, 0.0 }
 0x287   :  { %v1174_v2 = vpop.permute.xlu2 %1173  ;;  %v1045_v0 = vpop.permute.xlu1 %1044 }
 0x288   :  { %v1334_v20 = vpack.c.bf16 %v1309_v16, %v1309_v16  ;;  %v1107_v24 = vmax.f32 %v17453_v40, %v1045_v0  ;;  %v1234_v32 = vmax.f32 %v17659_v11, %v1174_v2 }
 0x28a   :  { %1360 = vst.msk [vmem:[#allocation2 + $0x2c] sm:$0xf] %vm1348_vm2, %v1334_v20  ;;  %v1257_v50 = vmax.f32 %v1107_v24, %v1232_v57 }
 0x28c   :  { %v1285_v5 = vadd.f32 %v17585_v8, %v1257_v50 }
 0x28e   :  { %v1310_v21 = vmax.f32 %v1285_v5, 0.0 }
 0x28f   :  { %v1172_v38 = vpop.permute.xlu1 %1171 }
 0x290   :  { %v1335_v34 = vpack.c.bf16 %v1310_v21, %v1310_v21  ;;  %v1659_v52 = vpop.permute.xlu0 %1658  ;;  %v1665_v40 = vpop.permute.xlu2 %1664  ;;  %v1233_v17 = vmax.f32 %v17633_v49, %v1172_v38  ;;  %v12529_v38 = vld [vmem:[#allocation2 + $0x8] sm:$0xe] }
 0x291   :  { %1731 = vst.msk [vmem:[#allocation2 + $0xc] sm:$0xf] %vm1727_vm6, %v1659_v52  ;;  %v1386_v47 = vld [vmem:[#allocation2 + $0x2c] sm:$0xf] }
 0x292   :  { %1361 = vst.msk [vmem:[#allocation2 + $0x30] sm:$0xf] %vm1348_vm2, %v1335_v34  ;;  %v1513_v44 = vshll.u32 %v1386_v47, 16  ;;  %v1517_v3 = vshrl.u32 %v1386_v47, 16  ;;  %v17855_v34 = vpop.f32.mrf.mxu3 }
 0x293   :  { %1734 = vst.msk [vmem:[#allocation2 + $0x18] sm:$0xf] %vm1727_vm6, %v1665_v40 }
 0x294   :  { %v1515_v58 = vrot.slane %v1513_v44, 5  ;;  %v1519_v35 = vrot.slane %v1517_v3, 4 }
 0x296   :  { %v1516_v53 = vsel %vm17600_vm5, %v1511_v61, %v1515_v58  ;;  %v1520_v23 = vor.u32 %v1519_v35, %v1515_v58 }
 0x297   :  { %1672 = vrot.lane.b32.xlu0 %v1516_v53, %s16765_s28  ;;  %v1049_v19 = vpop.permute.xlu1 %1048 }
 0x298   :  { %v1047_v12 = vpop.permute.xlu0 %1046  ;;  %v1178_v60 = vpop.permute.xlu2 %1177  ;;  %v1109_v25 = vmax.f32 %v17461_v4, %v1049_v19  ;;  %v16451_v10 = vld [vmem:[#allocation2 + $0x8] sm:$0xff]   ;;  %v1521_v2 = vrot.slane %v1520_v23, 4 }
 0x299   :  { %v17839_v62 = vld [vmem:[#allocation2 + $0x8] sm:$0xff]  ;;  %v1108_v36 = vmax.f32 %v17456_v26, %v1047_v12  ;;  %2601 = vmatmul.bf16.vlgmr.msra.gmra.mxu2 %v16451_v10  ;;  %v1387_v15 = vld [vmem:[#allocation2 + $0x30] sm:$0xf]  ;;  %v1236_v31 = vmax.f32 %v17688_v33, %v1178_v60 }
 0x29a   :  { %v1259_v39 = vmax.f32 %v1109_v25, %v1234_v32  ;;  %2059 = vmatmul.bf16.gmra.mxu3 %v17839_v62  ;;  %v1857_v11 = vrot.slane %v17839_v62, 1  ;;  %v1523_v54 = vshll.u32 %v1387_v15, 16  ;;  %v1527_v18 = vshrl.u32 %v1387_v15, 16  ;;  %v15753_v21 = vld [vmem:[#allocation2 + $0x8] sm:$0xf0] }
 0x29b   :  { %v1258_v30 = vmax.f32 %v1108_v36, %v1233_v17  ;;  %v12530_v52 = vor.u32 %v15753_v21, %v12529_v38 }
 0x29c   :  { %v1287_v4 = vadd.f32 %v17585_v8, %v1259_v39  ;;  %v1858_v16 = vsel %vm1855_vm7, %v1856_v45, %v1857_v11  ;;  %v1525_v0 = vrot.slane %v1523_v54, 5  ;;  %v1529_v1 = vrot.slane %v1527_v18, 4  ;;  %v17872_v45 = vpop.f32.mrf.mxu3 }
 0x29d   :  { %v1286_v49 = vadd.f32 %v17585_v8, %v1258_v30  ;;  %1940 = vmatmul.bf16.vlgmr.msrb.gmra.mxu1 %v1858_v16  ;;  %v2749_v37 = vrot.slane %v12530_v52, 1 }
 0x29e   :  { %v1312_v26 = vmax.f32 %v1287_v4, 0.0  ;;  %v1526_v57 = vsel %vm17600_vm5, %v1521_v2, %v1525_v0  ;;  %v1530_v58 = vor.u32 %v1529_v1, %v1525_v0 }
 0x29f   :  { %v1311_v20 = vmax.f32 %v1286_v49, 0.0  ;;  %1674 = vrot.lane.b32.xlu1 %v1526_v57, %s16765_s28  ;;  %v1176_v24 = vpop.permute.xlu1 %1175 }
 0x2a0   :  { %v1337_v9 = vpack.c.bf16 %v1312_v26, %v1312_v26  ;;  %v1663_v50 = vpop.permute.xlu0 %1662  ;;  %v1669_v43 = vpop.permute.xlu2 %1668  ;;  %v1235_v35 = vmax.f32 %v17661_v55, %v1176_v24  ;;  %v1531_v23 = vrot.slane %v1530_v58, 4 }
 0x2a1   :  { %v1336_v5 = vpack.c.bf16 %v1311_v20, %v1311_v20  ;;  %1733 = vst.msk [vmem:[#allocation2 + $0x14] sm:$0xf] %vm1727_vm6, %v1663_v50 }
 0x2a2   :  { %1363 = vst.msk [vmem:[#allocation2 + $0x38] sm:$0xf] %vm1348_vm2, %v1337_v9 }
 0x2a3   :  { %1362 = vst.msk [vmem:[#allocation2 + $0x34] sm:$0xf] %vm1348_vm2, %v1336_v5 }
 0x2a4   :  { %1736 = vst.msk [vmem:[#allocation2 + $0x20] sm:$0xf] %vm1727_vm6, %v1669_v43  ;;  %v17883_v18 = vpop.f32.mrf.mxu3 }
 0x2a7   :  { %v1053_v40 = vpop.permute.xlu1 %1052 }
 0x2a8   :  { %v1051_v47 = vpop.permute.xlu0 %1050  ;;  %v1111_v44 = vmax.f32 %v17469_v13, %v1053_v40  ;;  %v16452_v14 = vld [vmem:[#allocation2 + $0x10] sm:$0xff]   ;;  %v1182_v50 = vpop.permute.xlu2 %1181 }
 0x2a9   :  { %v17859_v3 = vld [vmem:[#allocation2 + $0x10] sm:$0xff]  ;;  %v1110_v53 = vmax.f32 %v17464_v28, %v1051_v47  ;;  %2606 = vmatmul.bf16.gmra.mxu2 %v16452_v14  ;;  %v1389_v12 = vld [vmem:[#allocation2 + $0x38] sm:$0xf]  ;;  %v1238_v43 = vmax.f32 %v17717_v59, %v1182_v50 }
 0x2aa   :  { %v17861_v61 = vld [vmem:[#allocation2 + $0x10] sm:$0xff]  ;;  %v1261_v19 = vmax.f32 %v1111_v44, %v1236_v31  ;;  %2064 = vmatmul.bf16.gmra.mxu3 %v17859_v3  ;;  %v1859_v32 = vrot.slane %v17859_v3, 1  ;;  %v1543_v39 = vshll.u32 %v1389_v12, 16 }
 0x2ab   :  { %v2750_v33 = vrot.slane %v17861_v61, 1  ;;  %v1388_v13 = vld [vmem:[#allocation2 + $0x34] sm:$0xf]  ;;  %v1260_v60 = vmax.f32 %v1110_v53, %v1235_v35 }
 0x2ac   :  { %v1533_v25 = vshll.u32 %v1388_v13, 16  ;;  %v1537_v10 = vshrl.u32 %v1388_v13, 16  ;;  %v1289_v62 = vadd.f32 %v17585_v8, %v1261_v19  ;;  %v1860_v28 = vsel %vm1855_vm7, %v1857_v11, %v1859_v32  ;;  %v905_v13 = vpop.f32.mrf.mxu2 }
 0x2ad   :  { %v2751_v55 = vsel %vm1855_vm7, %v2749_v37, %v2750_v33  ;;  %v1288_v17 = vadd.f32 %v17585_v8, %v1260_v60  ;;  %1945 = vmatmul.bf16.gmra.mxu1 %v1860_v28  ;;  %v1547_v11 = vshrl.u32 %v1389_v12, 16  ;;  %v1545_v20 = vrot.slane %v1543_v39, 5 }
 0x2ae   :  { %2833 = vmatmul.bf16.vlgmr.msra.gmra.mxu0 %v2751_v55  ;;  %v1535_v36 = vrot.slane %v1533_v25, 5  ;;  %v1539_v15 = vrot.slane %v1537_v10, 4  ;;  %v1314_v54 = vmax.f32 %v1289_v62, 0.0 }
 0x2af   :  { %v1313_v30 = vmax.f32 %v1288_v17, 0.0  ;;  %v1180_v16 = vpop.permute.xlu1 %1179  ;;  %v1549_v9 = vrot.slane %v1547_v11, 4 }
 0x2b0   :  { %v1536_v4 = vsel %vm17600_vm5, %v1531_v23, %v1535_v36  ;;  %v1540_v2 = vor.u32 %v1539_v15, %v1535_v36  ;;  %v1339_v0 = vpack.c.bf16 %v1314_v54, %v1314_v54  ;;  %v1667_v49 = vpop.permute.xlu0 %1666  ;;  %v1237_v47 = vmax.f32 %v17686_v7, %v1180_v16 }
 0x2b1   :  { %1676 = vrot.lane.b32.xlu2 %v1536_v4, %s16765_s28  ;;  %v1338_v26 = vpack.c.bf16 %v1313_v30, %v1313_v30  ;;  %1735 = vst.msk [vmem:[#allocation2 + $0x1c] sm:$0xf] %vm1727_vm6, %v1667_v49  ;;  %v1550_v31 = vor.u32 %v1549_v9, %v1545_v20 }
 0x2b2   :  { %v1541_v57 = vrot.slane %v1540_v2, 4  ;;  %1365 = vst.msk [vmem:[#allocation2 + $0x40] sm:$0xf] %vm1348_vm2, %v1339_v0 }
 0x2b3   :  { %1364 = vst.msk [vmem:[#allocation2 + $0x3c] sm:$0xf] %vm1348_vm2, %v1338_v26 }
 0x2b4   :  { %v1546_v24 = vsel %vm17600_vm5, %v1541_v57, %v1545_v20  ;;  %v908_v4 = vpop.f32.mrf.mxu2 }
 0x2b5   :  { %1678 = vrot.lane.b32.xlu0 %v1546_v24, %s16765_s28 }
 0x2b7   :  { %v1057_v5 = vpop.permute.xlu1 %1056 }
 0x2b8   :  { %v1055_v21 = vpop.permute.xlu0 %1054  ;;  %v1113_v38 = vmax.f32 %v17477_v29, %v1057_v5  ;;  %v16453_v1 = vld [vmem:[#allocation2 + $0x18] sm:$0xff]  }
 0x2b9   :  { %v17887_v52 = vld [vmem:[#allocation2 + $0x18] sm:$0xff]  ;;  %v1112_v44 = vmax.f32 %v17472_v22, %v1055_v21  ;;  %2611 = vmatmul.bf16.gmra.mxu2 %v16453_v1  ;;  %v1391_v29 = vld [vmem:[#allocation2 + $0x40] sm:$0xf]  ;;  %v1551_v22 = vrot.slane %v1550_v31, 4 }
 0x2ba   :  { %v17889_v40 = vld [vmem:[#allocation2 + $0x18] sm:$0xff]  ;;  %v1263_v14 = vmax.f32 %v1113_v38, %v1238_v43  ;;  %2069 = vmatmul.bf16.gmra.mxu3 %v17887_v52  ;;  %v1861_v3 = vrot.slane %v17887_v52, 1  ;;  %v1563_v10 = vshll.u32 %v1391_v29, 16  ;;  %v1567_v54 = vshrl.u32 %v1391_v29, 16 }
 0x2bb   :  { %v2752_v59 = vrot.slane %v17889_v40, 1  ;;  %v1390_v61 = vld [vmem:[#allocation2 + $0x3c] sm:$0xf]  ;;  %v1262_v58 = vmax.f32 %v1112_v44, %v1237_v47 }
 0x2bc   :  { %v1553_v35 = vshll.u32 %v1390_v61, 16  ;;  %v1557_v53 = vshrl.u32 %v1390_v61, 16  ;;  %v1291_v37 = vadd.f32 %v17585_v8, %v1263_v14  ;;  %v1862_v19 = vsel %vm1855_vm7, %v1859_v32, %v1861_v3  ;;  %v978_v32 = vpop.f32.mrf.mxu0  ;;  %v910_v61 = vpop.f32.mrf.mxu2 }
 0x2bd   :  { %v2753_v7 = vsel %vm1855_vm7, %v2750_v33, %v2752_v59  ;;  %v1290_v12 = vadd.f32 %v17585_v8, %v1262_v58  ;;  %1950 = vmatmul.bf16.gmra.mxu1 %v1862_v19  ;;  %v840_v33 = vpop.f32.mrf.mxu3  ;;  %v1565_v39 = vrot.slane %v1563_v10, 5  ;;  %v1569_v16 = vrot.slane %v1567_v54, 4 }
 0x2be   :  { %2838 = vmatmul.bf16.gmra.mxu0 %v2753_v7  ;;  %v1555_v60 = vrot.slane %v1553_v35, 5  ;;  %v1559_v25 = vrot.slane %v1557_v53, 4  ;;  %v1316_v62 = vmax.f32 %v1291_v37, 0.0  ;;  %v909_v19 = vadd.f32 %v908_v4, %v17872_v45 }
 0x2bf   :  { %v1315_v55 = vmax.f32 %v1290_v12, 0.0  ;;  %v1570_v26 = vor.u32 %v1569_v16, %v1565_v39 }
 0x2c0   :  { %v1556_v28 = vsel %vm17600_vm5, %v1551_v22, %v1555_v60  ;;  %v1560_v23 = vor.u32 %v1559_v25, %v1555_v60  ;;  %v1341_v17 = vpack.c.bf16 %v1316_v62, %v1316_v62  ;;  %v1671_v36 = vpop.permute.xlu0 %1670  ;;  %v911_v60 = vadd.f32 %v910_v61, %v17883_v18 }
 0x2c1   :  { %1680 = vrot.lane.b32.xlu1 %v1556_v28, %s16765_s28  ;;  %v1340_v15 = vpack.c.bf16 %v1315_v55, %v1315_v55  ;;  %1737 = vst.msk [vmem:[#allocation2 + $0x24] sm:$0xf] %vm1727_vm6, %v1671_v36  ;;  %v1571_v1 = vrot.slane %v1570_v26, 4 }
 0x2c2   :  { %v1561_v8 = vrot.slane %v1560_v23, 4  ;;  %1367 = vst.msk [vmem:[#allocation2 + $0x48] sm:$0xf] %vm1348_vm2, %v1341_v17 }
 0x2c3   :  { %1366 = vst.msk [vmem:[#allocation2 + $0x44] sm:$0xf] %vm1348_vm2, %v1340_v15 }
 0x2c4   :  { %v1566_v30 = vsel %vm17600_vm5, %v1561_v8, %v1565_v39  ;;  %v981_v57 = vpop.f32.mrf.mxu0  ;;  %v913_v22 = vpop.f32.mrf.mxu2 }
 0x2c5   :  { %1682 = vrot.lane.b32.xlu2 %v1566_v30, %s16765_s28  ;;  %v17913_v11 = vpop.f32.mrf.mxu3 }
 0x2c8   :  { %v16454_v2 = vld [vmem:[#allocation2 + $0x20] sm:$0xff]  }
 0x2c9   :  { %v17909_v0 = vld [vmem:[#allocation2 + $0x20] sm:$0xff]  ;;  %2616 = vmatmul.bf16.gmra.mxu2 %v16454_v2  ;;  %v17918_v50 = vld [vmem:[#allocation2 + $0x48] sm:$0xf] }
 0x2ca   :  { %v17911_v49 = vld [vmem:[#allocation2 + $0x20] sm:$0xff]  ;;  %2074 = vmatmul.bf16.gmra.mxu3 %v17909_v0  ;;  %v1863_v20 = vrot.slane %v17909_v0, 1  ;;  %v1583_v47 = vshll.u32 %v17918_v50, 16 }
 0x2cb   :  { %v2754_v24 = vrot.slane %v17911_v49, 1  ;;  %v1392_v9 = vld [vmem:[#allocation2 + $0x44] sm:$0xf] }
 0x2cc   :  { %v1573_v5 = vshll.u32 %v1392_v9, 16  ;;  %v1577_v43 = vshrl.u32 %v1392_v9, 16  ;;  %v1864_v21 = vsel %vm1855_vm7, %v1861_v3, %v1863_v20  ;;  %v17932_v58 = vrot.slane %v1583_v47, 5  ;;  %v983_v53 = vpop.f32.mrf.mxu0  ;;  %v17955_v45 = vpop.f32.mrf.mxu2 }
 0x2cd   :  { %1058 = vrot.lane.b32.xlu2 %v17480_v46, %s16765_s28  ;;  %v2755_v38 = vsel %vm1855_vm7, %v2752_v59, %v2754_v24  ;;  %1955 = vmatmul.bf16.gmra.mxu1 %v1864_v21  ;;  %v845_v29 = vpop.f32.mrf.mxu3  ;;  %v906_v59 = vadd.f32 %v905_v13, %v17855_v34  ;;  %v17946_v34 = vadd.f32 %v981_v57, %v909_v19  ;;  %v15744_v21 = vld [vmem:[%s22709_s3 + $0xf8] sm:$0xff] }
 0x2ce   :  { %2843 = vmatmul.bf16.gmra.mxu0 %v2755_v38  ;;  %v1575_v40 = vrot.slane %v1573_v5, 5  ;;  %v1579_v31 = vrot.slane %v1577_v43, 4  ;;  %v914_v13 = vadd.f32 %v913_v22, %v840_v33  ;;  %v17957_v10 = vadd.f32 %v983_v53, %v911_v60  ;;  %2435 = vmatpush.bf16.msra.mxu3 %v15744_v21  ;;  %v15740_v22 = vld [vmem:[%s22709_s3 + $0xd8] sm:$0xff] }
 0x2cf   :  { %v17941_v37 = vadd.f32 %v978_v32, %v906_v59 }
 0x2d0   :  { %v1576_v44 = vsel %vm17600_vm5, %v1571_v1, %v1575_v40  ;;  %v1580_v14 = vor.u32 %v1579_v31, %v1575_v40 }
 0x2d1   :  { %1684 = vrot.lane.b32.xlu0 %v1576_v44, %s16765_s28 }
 0x2d2   :  { %v1581_v3 = vrot.slane %v1580_v14, 4 }
 0x2d4   :  { %v1586_v35 = vsel %vm17600_vm5, %v1581_v3, %v17932_v58  ;;  %v986_v12 = vpop.f32.mrf.mxu0  ;;  %v918_v62 = vpop.f32.mrf.mxu2 }
 0x2d5   :  { %1060 = vrot.lane.b32.xlu2 %v17485_v42, %s16765_s28  ;;  %1686 = vrot.lane.b32.xlu1 %v1586_v35, %s16765_s28  ;;  %v847_v7 = vpop.f32.mrf.mxu3  ;;  %v17953_v25 = vadd.f32 %v986_v12, %v914_v13  ;;  %v919_v28 = vadd.f32 %v918_v62, %v845_v29  ;;  %v15741_v29 = vld [vmem:[%s22709_s3 + $0xe0] sm:$0xff]  ;;  %v15739_v12 = vld [vmem:[%s22709_s3 + $0xd0] sm:$0xff] }
 0x2d9   :  { %1183 = vrot.lane.b32.xlu0 %v17941_v37, %s16765_s28 }
 0x2dc   :  { %v17965_v18 = vpop.f32.mrf.mxu0  ;;  %v920_v55 = vpop.f32.mrf.mxu2 }
 0x2dd   :  { %1062 = vrot.lane.b32.xlu2 %v17488_v6, %s16765_s28 }
 0x2e1   :  { %1185 = vrot.lane.b32.xlu0 %v17946_v34, %s16765_s28 }
 0x2e4   :  { %v991_v23 = vpop.f32.mrf.mxu0 }
 0x2e5   :  { %1189 = vrot.lane.b32.xlu2 %v17953_v25, %s16765_s28  ;;  %v17967_v17 = vadd.f32 %v991_v23, %v919_v28  ;;  %v15738_v23 = vld [vmem:[%s22709_s3 + $0xc8] sm:$0xff] }
 0x2e9   :  { %1187 = vrot.lane.b32.xlu0 %v17957_v10, %s16765_s28 }
 0x2ec   :  { %v993_v36 = vpop.f32.mrf.mxu0 }
 0x2ed   :  { %1066 = vrot.lane.b32.xlu2 %v17496_v41, %s16765_s28 }
 0x2f5   :  { %1193 = vrot.lane.b32.xlu2 %v17967_v17, %s16765_s28 }
 0x303   :  { %v2055_v15 = vpop.f32.mrf.mxu3 }
 0x309   :  { %v1673_v33 = vpop.permute.xlu0 %1672 }
 0x30a   :  { %1738 = vst.msk [vmem:[#allocation2 + $0x28] sm:$0xf] %vm1727_vm6, %v1673_v33 }
 0x30b   :  { %v1677_v32 = vpop.permute.xlu2 %1676  ;;  %v17974_v39 = vpop.f32.mrf.mxu3 }
 0x30c   :  { %1740 = vst.msk [vmem:[#allocation2 + $0x30] sm:$0xf] %vm1727_vm6, %v1677_v32 }
 0x311   :  { %v1675_v8 = vpop.permute.xlu1 %1674 }
 0x312   :  { %1739 = vst.msk [vmem:[#allocation2 + $0x2c] sm:$0xf] %vm1727_vm6, %v1675_v8 }
 0x319   :  { %v16455_v54 = vld [vmem:[#allocation2 + $0x28] sm:$0xff]  }
 0x31a   :  { %v17976_v30 = vld [vmem:[#allocation2 + $0x28] sm:$0xff]  ;;  %v1941_v16 = vpop.f32.mrf.mxu1  ;;  %2621 = vmatmul.bf16.gmra.mxu2 %v16455_v54 }
 0x31b   :  { %v15757_v4 = vld [vmem:[#allocation2 + $0x28] sm:$0xff]  ;;  %v17978_v2 = vadd.f32 %v2055_v15, %v1941_v16  ;;  %2079 = vmatmul.bf16.gmra.mxu3 %v17976_v30  ;;  %v1865_v26 = vrot.slane %v17976_v30, 1  ;;  %v15737_v15 = vld [vmem:[%s22709_s3 + $0xc0] sm:$0xff] }
 0x31c   :  { %v2756_v57 = vrot.slane %v15757_v4, 1  ;;  %v15828_v56 = vld [vmem:[#allocation2 + $0x2c] sm:$0xff] }
 0x31d   :  { %v1866_v9 = vsel %vm1855_vm7, %v1863_v20, %v1865_v26  ;;  %v2060_v38 = vpop.f32.mrf.mxu3  ;;  %v15743_v20 = vld [vmem:[%s22709_s3 + $0xf0] sm:$0xff] }
 0x31e   :  { %v2757_v5 = vsel %vm1855_vm7, %v2754_v24, %v2756_v57  ;;  %1960 = vmatmul.bf16.gmra.mxu1 %v1866_v9  ;;  %2436 = vmatpush.bf16.msra.mxu3 %v15743_v20  ;;  %v15742_v24 = vld [vmem:[%s22709_s3 + $0xe8] sm:$0xff] }
 0x31f   :  { %v1683_v43 = vpop.permute.xlu2 %1682  ;;  %2848 = vmatmul.bf16.gmra.mxu0 %v2757_v5 }
 0x320   :  { %1743 = vst.msk [vmem:[#allocation2 + $0x3c] sm:$0xf] %vm1727_vm6, %v1683_v43 }
 0x322   :  { %v17992_v1 = vpop.f32.mrf.mxu1  ;;  %2437 = vmatpush.bf16.msra.mxu3 %v15742_v24 }
 0x325   :  { %v18001_v31 = vpop.f32.mrf.mxu3 }
 0x326   :  { %2438 = vmatpush.bf16.msra.mxu3 %v15741_v29 }
 0x327   :  { %v1679_v49 = vpop.permute.xlu0 %1678 }
 0x328   :  { %1741 = vst.msk [vmem:[#allocation2 + $0x34] sm:$0xf] %vm1727_vm6, %v1679_v49 }
 0x32a   :  { %v1946_v40 = vpop.f32.mrf.mxu1  ;;  %2439 = vmatpush.bf16.msra.mxu3 %v15740_v22 }
 0x32b   :  { %v18003_v47 = vadd.f32 %v2060_v38, %v1946_v40 }
 0x32d   :  { %v2065_v13 = vpop.f32.mrf.mxu3 }
 0x32e   :  { %2440 = vmatpush.bf16.msra.mxu3 %v15739_v12 }
 0x32f   :  { %v16456_v44 = vld [vmem:[#allocation2 + $0x30] sm:$0xff]  }
 0x330   :  { %v18005_v14 = vld [vmem:[#allocation2 + $0x30] sm:$0xff]  ;;  %2626 = vmatmul.bf16.gmra.mxu2 %v16456_v44 }
 0x331   :  { %v15758_v61 = vld [vmem:[#allocation2 + $0x30] sm:$0xff]  ;;  %2084 = vmatmul.bf16.gmra.mxu3 %v18005_v14  ;;  %v1867_v3 = vrot.slane %v18005_v14, 1 }
 0x332   :  { %v2758_v59 = vrot.slane %v15758_v61, 1  ;;  %v18012_v53 = vpop.f32.mrf.mxu1  ;;  %2441 = vmatpush.bf16.msra.mxu3 %v15738_v23  ;;  %v1587_v23 = vshrl.u32 %v17918_v50, 16 }
 0x333   :  { %v1681_v35 = vpop.permute.xlu1 %1680  ;;  %v1868_v19 = vsel %vm1855_vm7, %v1865_v26, %v1867_v3 }
 0x334   :  { %v2759_v7 = vsel %vm1855_vm7, %v2756_v57, %v2758_v59  ;;  %1742 = vst.msk [vmem:[#allocation2 + $0x38] sm:$0xf] %vm1727_vm6, %v1681_v35  ;;  %1965 = vmatmul.bf16.gmra.mxu1 %v1868_v19  ;;  %v1059_v57 = vpop.permute.xlu2 %1058 }
 0x335   :  { %2853 = vmatmul.bf16.gmra.mxu0 %v2759_v7  ;;  %v18034_v8 = vpop.f32.mrf.mxu3  ;;  %v1114_v38 = vmax.f32 %v17480_v46, %v1059_v57 }
 0x336   :  { %22784 = vst [vmem:[#allocation10_spill] sm:$0xff] %v18034_v8  ;;  %2442 = vmatpush.bf16.msra.mxu3 %v15737_v15  ;;  %v16632_v15 = vld [vmem:[#allocation2 + $0x4] sm:$0xf0]  }
 0x33a   :  { %v1951_v60 = vpop.f32.mrf.mxu1 }
 0x33b   :  { %v18023_v62 = vld [vmem:[#allocation2 + $0x38] sm:$0xff]  ;;  %v18025_v28 = vadd.f32 %v2065_v13, %v1951_v60 }
 0x33c   :  { %v15759_v55 = vld [vmem:[#allocation2 + $0x38] sm:$0xff]  ;;  %v1869_v33 = vrot.slane %v18023_v62, 1  ;;  %v1061_v40 = vpop.permute.xlu2 %1060 }
 0x33d   :  { %v16457_v36 = vld [vmem:[#allocation2 + $0x38] sm:$0xff]   ;;  %v2760_v32 = vrot.slane %v15759_v55, 1  ;;  %v2070_v5 = vpop.f32.mrf.mxu3  ;;  %v1115_v12 = vmax.f32 %v17485_v42, %v1061_v40 }
 0x33e   :  { %v1870_v16 = vsel %vm1855_vm7, %v1867_v3, %v1869_v33 }
 0x33f   :  { %v2761_v26 = vsel %vm1855_vm7, %v2758_v59, %v2760_v32  ;;  %v18058_v59 = vld [vmem:[%s22708_s2] ss:$0 sm:$0xff] }
 0x340   :  { %2631 = vmatmul.bf16.gmra.mxu2 %v16457_v36 }
 0x341   :  { %2089 = vmatmul.bf16.gmra.mxu3 %v18023_v62 }
 0x342   :  { %v18037_v4 = vpop.f32.mrf.mxu1 }
 0x343   :  { %v1685_v54 = vpop.permute.xlu0 %1684  ;;  %22785 = vst [vmem:[#allocation11_spill] sm:$0xff] %v18037_v4 }
 0x344   :  { %1744 = vst.msk [vmem:[#allocation2 + $0x40] sm:$0xf] %vm1727_vm6, %v1685_v54  ;;  %1970 = vmatmul.bf16.gmra.mxu1 %v1870_v16  ;;  %v16634_v54 = vld [vmem:[#allocation2 + $0xc] sm:$0xff]   ;;  %v16485_v16 = vld [vmem:[#allocation2 + $0x4] sm:$0x8]  ;;  %v1063_v57 = vpop.permute.xlu2 %1062 }
 0x345   :  { %2858 = vmatmul.bf16.gmra.mxu0 %v2761_v26  ;;  %v1589_v26 = vrot.slane %v1587_v23, 4 }
 0x347   :  { %v1687_v9 = vpop.permute.xlu1 %1686 }
 0x348   :  { %1745 = vst.msk [vmem:[#allocation2 + $0x44] sm:$0xf] %vm1727_vm6, %v1687_v9 }
 0x34a   :  { %v1956_v21 = vpop.f32.mrf.mxu1 }
 0x34b   :  { %v1184_v43 = vpop.permute.xlu0 %1183  ;;  %v18045_v49 = vadd.f32 %v2070_v5, %v1956_v21  ;;  %v2360_v5 = vrot.slane %v16634_v54, 3  ;;  %v1590_v21 = vor.u32 %v1589_v26, %v17932_v58 }
 0x34c   :  { %v1239_v20 = vmax.f32 %v17941_v37, %v1184_v43 }
 0x34e   :  { %v1264_v24 = vmax.f32 %v1114_v38, %v1239_v20 }
 0x34f   :  { %v18047_v44 = vld [vmem:[#allocation2 + $0x40] sm:$0xff]  }
 0x350   :  { %v18049_v61 = vld [vmem:[#allocation2 + $0x44] sm:$0xf]  ;;  %v1292_v46 = vadd.f32 %v18058_v59, %v1264_v24  ;;  %2636 = vmatmul.bf16.gmra.mxu2 %v18047_v44 }
 0x351   :  { %v18051_v29 = vld [vmem:[#allocation2 + $0x40] sm:$0xff] }
 0x352   :  { %v18053_v3 = vld [vmem:[#allocation2 + $0x40] sm:$0xff]  ;;  %2094 = vmatmul.bf16.gmra.mxu3 %v18051_v29  ;;  %v1871_v37 = vrot.slane %v18051_v29, 1  ;;  %v1317_v19 = vmax.f32 %v1292_v46, 0.0 }
 0x353   :  { %v22720_v35 = vrot.slane %v18053_v3, 1  ;;  %v1186_v7 = vpop.permute.xlu0 %1185 }
 0x354   :  { %v1872_v22 = vsel %vm1855_vm7, %v1869_v33, %v1871_v37  ;;  %v1342_v60 = vpack.c.bf16 %v1317_v19, %v1317_v19  ;;  %v1240_v55 = vmax.f32 %v17946_v34, %v1186_v7  ;;  %v1116_v34 = vmax.f32 %v17488_v6, %v1063_v57 }
 0x355   :  { %v2763_v13 = vsel %vm1855_vm7, %v2760_v32, %v22720_v35  ;;  %1975 = vmatmul.bf16.gmra.mxu1 %v1872_v22  ;;  %v16486_v32 = vor.u32 %v16632_v15, %v16485_v16  ;;  %v1591_v22 = vrot.slane %v1590_v21, 4 }
 0x356   :  { %2863 = vmatmul.bf16.gmra.mxu0 %v2763_v13  ;;  %1368 = vst.msk [vmem:[#allocation2 + $0x4c] sm:$0xf] %vm1348_vm2, %v1342_v60  ;;  %v1265_v36 = vmax.f32 %v1115_v12, %v1240_v55 }
 0x357   :  { %v2359_v38 = vrot.slane %v16486_v32, 3 }
 0x358   :  { %v1293_v33 = vadd.f32 %v18058_v59, %v1265_v36 }
 0x359   :  { %v2361_v19 = vsel %vm2358_vm8, %v2359_v38, %v2360_v5  ;;  %v916_v38 = vadd.f32 %v17955_v45, %v17913_v11  ;;  %v18112_v45 = vpop.f32.mrf.mxu3 }
 0x35a   :  { %v1318_v9 = vmax.f32 %v1293_v33, 0.0  ;;  %v16636_v33 = vld [vmem:[#allocation2 + $0x14] sm:$0xff]   ;;  %22786 = vst [vmem:[#allocation12_spill] sm:$0xff] %v18112_v45  ;;  %v2135_v45 = vrot.slane %v17976_v30, 2 }
 0x35b   :  { %v1188_v42 = vpop.permute.xlu0 %1187  ;;  %v2362_v57 = vrot.slane %v16636_v33, 3 }
 0x35c   :  { %v1343_v43 = vpack.c.bf16 %v1318_v9, %v1318_v9  ;;  %v1241_v50 = vmax.f32 %v17957_v10, %v1188_v42 }
 0x35d   :  { %v1394_v20 = vld [vmem:[#allocation2 + $0x4c] sm:$0xf] }
 0x35e   :  { %1369 = vst.msk [vmem:[#allocation2 + $0x50] sm:$0xf] %vm1348_vm2, %v1343_v43  ;;  %v1266_v24 = vmax.f32 %v1116_v34, %v1241_v50  ;;  %v1593_v40 = vshll.u32 %v1394_v20, 16  ;;  %v1597_v46 = vshrl.u32 %v1394_v20, 16  ;;  %v2363_v34 = vsel %vm2358_vm8, %v2360_v5, %v2362_v57  ;;  %v16638_v5 = vld [vmem:[#allocation2 + $0x1c] sm:$0xff]  }
 0x35f   :  { %v18104_v20 = vadd.f32 %v17965_v18, %v916_v38  ;;  %v15735_v18 = vld [vmem:[%s22709_s3 + $0xb0] sm:$0xff] }
 0x360   :  { %v1294_v7 = vadd.f32 %v18058_v59, %v1266_v24  ;;  %v1595_v13 = vrot.slane %v1593_v40, 5  ;;  %v1599_v12 = vrot.slane %v1597_v46, 4  ;;  %v2364_v24 = vrot.slane %v16638_v5, 3  ;;  %v15736_v40 = vld [vmem:[%s22709_s3 + $0xb8] sm:$0xff]  ;;  %v16640_v46 = vld [vmem:[#allocation2 + $0x24] sm:$0xff]  }
 0x361   :  { %2202 = vmatpush.bf16.msra.mxu1 %v15736_v40 }
 0x362   :  { %2443 = vmatmul.bf16.vlgmr.msra.gmra.mxu3 %v2361_v19  ;;  %v1319_v6 = vmax.f32 %v1294_v7, 0.0  ;;  %v1596_v10 = vsel %vm17600_vm5, %v1591_v22, %v1595_v13  ;;  %v1600_v60 = vor.u32 %v1599_v12, %v1595_v13  ;;  %v2365_v11 = vsel %vm2358_vm8, %v2362_v57, %v2364_v24  ;;  %v18117_v7 = vpop.f32.mrf.mxu3  ;;  %v18120_v13 = vpop.f32.mrf.mxu1  ;;  %v16642_v12 = vld [vmem:[#allocation2 + $0x2c] sm:$0xff]  }
 0x363   :  { %1688 = vrot.lane.b32.xlu1 %v1596_v10, %s16765_s28  ;;  %v2366_v19 = vrot.slane %v16640_v46, 3  ;;  %22787 = vst [vmem:[#allocation13_spill] sm:$0xff] %v18120_v13  ;;  %v2368_v10 = vrot.slane %v16642_v12, 3  ;;  %v18376_v13 = vld [vmem:[#allocation2 + $0x34] sm:$0xff] }
 0x364   :  { %v1344_v58 = vpack.c.bf16 %v1319_v6, %v1319_v6  ;;  %v1601_v15 = vrot.slane %v1600_v60, 4 }
 0x365   :  { %v1395_v55 = vld [vmem:[#allocation2 + $0x50] sm:$0xf]  ;;  %2203 = vmatpush.bf16.msra.mxu1 %v15735_v18  ;;  %v2367_v22 = vsel %vm2358_vm8, %v2364_v24, %v2366_v19  ;;  %v2369_v60 = vsel %vm2358_vm8, %v2366_v19, %v2368_v10  ;;  %v15791_v18 = vld [vmem:[%s22709_s3 + $0x228] sm:$0xff] }
 0x366   :  { %1370 = vst.msk [vmem:[#allocation2 + $0x54] sm:$0xf] %vm1348_vm2, %v1344_v58  ;;  %v1603_v23 = vshll.u32 %v1395_v55, 16  ;;  %v1607_v36 = vshrl.u32 %v1395_v55, 16  ;;  %v15792_v24 = vld [vmem:[%s22709_s3 + $0x230] sm:$0xff] }
 0x368   :  { %v1605_v54 = vrot.slane %v1603_v23, 5  ;;  %v1609_v16 = vrot.slane %v1607_v36, 4  ;;  %v15734_v23 = vld [vmem:[%s22709_s3 + $0xa8] sm:$0xff]  ;;  %v16644_v36 = vld [vmem:[#allocation2 + $0x34] sm:$0xff]  }
 0x369   :  { %2204 = vmatpush.bf16.msra.mxu1 %v15734_v23  ;;  %v2370_v33 = vrot.slane %v16644_v36, 3  ;;  %v15789_v23 = vld [vmem:[%s22709_s3 + $0x218] sm:$0xff] }
 0x36a   :  { %v1606_v26 = vsel %vm17600_vm5, %v1601_v15, %v1605_v54  ;;  %v1610_v32 = vor.u32 %v1609_v16, %v1605_v54  ;;  %v18122_v6 = vpop.f32.mrf.mxu3  ;;  %v15809_v36 = vld [vmem:[%s22709_s3 + $0x278] sm:$0xff] }
 0x36b   :  { %1690 = vrot.lane.b32.xlu1 %v1606_v26, %s16765_s28  ;;  %22788 = vst [vmem:[#allocation14_spill] sm:$0xff] %v18122_v6  ;;  %v2371_v16 = vsel %vm2358_vm8, %v2368_v10, %v2370_v33  ;;  %v15790_v10 = vld [vmem:[%s22709_s3 + $0x220] sm:$0xff]  ;;  %3620 = vmatpush.bf16.msrb.mxu0 %v15809_v36  ;;  %v18353_v6 = vld [vmem:[#allocation2 + $0x2c] sm:$0xff] }
 0x36c   :  { %v1611_v43 = vrot.slane %v1610_v32, 4  ;;  %v15733_v32 = vld [vmem:[%s22709_s3 + $0xa0] sm:$0xff] }
 0x36d   :  { %v18089_v9 = vld [vmem:[#allocation2 + $0x54] sm:$0xf]  ;;  %2205 = vmatpush.bf16.msra.mxu1 %v15733_v32  ;;  %v15806_v36 = vld [vmem:[%s22709_s3 + $0x260] sm:$0xff] }
 0x36e   :  { %v1613_v42 = vshll.u32 %v18089_v9, 16  ;;  %v15788_v32 = vld [vmem:[%s22709_s3 + $0x210] sm:$0xff] }
 0x370   :  { %v18093_v50 = vrot.slane %v1613_v42, 5 }
 0x372   :  { %2448 = vmatmul.bf16.gmra.mxu3 %v2363_v34  ;;  %v1616_v21 = vsel %vm17600_vm5, %v1611_v43, %v18093_v50  ;;  %v18140_v34 = vld [vmem:[#allocation2 + $0x3c] sm:$0xff]  }
 0x373   :  { %1692 = vrot.lane.b32.xlu0 %v1616_v21, %s16765_s28  ;;  %1064 = vrot.lane.b32.xlu1 %v17493_v51, %s16765_s28  ;;  %v15793_v21 = vld [vmem:[%s22709_s3 + $0x238] sm:$0xff]  ;;  %v22719_v5 = vrot.slane %v18140_v34, 3 }
 0x374   :  { %3388 = vmatpush.bf16.msrb.mxu2 %v15793_v21 }
 0x375   :  { %v2373_v40 = vsel %vm2358_vm8, %v2370_v33, %v22719_v5  ;;  %v15785_v33 = vld [vmem:[%s22709_s3 + $0x1f8] sm:$0xff] }
 0x376   :  { %3230 = vmatpush.bf16.msrb.mxu3 %v15785_v33  ;;  %v15782_v33 = vld [vmem:[%s22709_s3 + $0x1e0] sm:$0xff] }
 0x378   :  { %3389 = vmatpush.bf16.msrb.mxu2 %v15792_v24  ;;  %v15784_v24 = vld [vmem:[%s22709_s3 + $0x1f0] sm:$0xff] }
 0x37a   :  { %3231 = vmatpush.bf16.msrb.mxu3 %v15784_v24 }
 0x37b   :  { %1191 = vrot.lane.b32.xlu0 %v18104_v20, %s16765_s28 }
 0x37c   :  { %3390 = vmatpush.bf16.msrb.mxu2 %v15791_v18  ;;  %v15729_v18 = vld [vmem:[%s22709_s3 + $0x80] sm:$0xff] }
 0x380   :  { %3391 = vmatpush.bf16.msrb.mxu2 %v15790_v10  ;;  %v15807_v10 = vld [vmem:[%s22709_s3 + $0x268] sm:$0xff] }
 0x382   :  { %2453 = vmatmul.bf16.gmra.mxu3 %v2365_v11 }
 0x384   :  { %3392 = vmatpush.bf16.msrb.mxu2 %v15789_v23  ;;  %v15786_v23 = vld [vmem:[%s22709_s3 + $0x200] sm:$0xff] }
 0x388   :  { %3393 = vmatpush.bf16.msrb.mxu2 %v15788_v32 }
 0x392   :  { %2458 = vmatmul.bf16.gmra.mxu3 %v2367_v22  ;;  %v15732_v22 = vld [vmem:[%s22709_s3 + $0x98] sm:$0xff] }
 0x393   :  { %2206 = vmatpush.bf16.msra.mxu1 %v15732_v22 }
 0x39b   :  { %v18124_v58 = vpop.f32.mrf.mxu1 }
 0x39e   :  { %v2080_v55 = vpop.f32.mrf.mxu3 }
 0x3a2   :  { %2463 = vmatmul.bf16.gmra.mxu3 %v2369_v60 }
 0x3a3   :  { %v18130_v15 = vpop.f32.mrf.mxu1 }
 0x3a4   :  { %22789 = vst [vmem:[#allocation15_spill] sm:$0xff] %v18130_v15 }
 0x3a6   :  { %v18132_v54 = vpop.f32.mrf.mxu3 }
 0x3a7   :  { %22790 = vst [vmem:[#allocation16_spill] sm:$0xff] %v18132_v54  ;;  %v16461_v54 = vld [vmem:[#allocation2 + $0x20] sm:$0xff]  }
 0x3b1   :  { %v1966_v26 = vpop.f32.mrf.mxu1 }
 0x3b2   :  { %2468 = vmatmul.bf16.gmra.mxu3 %v2371_v16  ;;  %v18135_v57 = vadd.f32 %v2080_v55, %v1966_v26  ;;  %v15731_v55 = vld [vmem:[%s22709_s3 + $0x90] sm:$0xff]  ;;  %v15730_v16 = vld [vmem:[%s22709_s3 + $0x88] sm:$0xff] }
 0x3b3   :  { %2207 = vmatpush.bf16.msra.mxu1 %v15731_v55  ;;  %v15783_v55 = vld [vmem:[%s22709_s3 + $0x1e8] sm:$0xff] }
 0x3b4   :  { %v2085_v42 = vpop.f32.mrf.mxu3  ;;  %3232 = vmatpush.bf16.msrb.mxu3 %v15783_v55  ;;  %v15804_v55 = vld [vmem:[%s22709_s3 + $0x250] sm:$0xff] }
 0x3b7   :  { %2208 = vmatpush.bf16.msra.mxu1 %v15730_v16 }
 0x3b8   :  { %3233 = vmatpush.bf16.msrb.mxu3 %v15782_v33 }
 0x3b9   :  { %v18142_v43 = vpop.f32.mrf.mxu1 }
 0x3ba   :  { %22791 = vst [vmem:[#allocation17_spill] sm:$0xff] %v18142_v43 }
 0x3bb   :  { %2209 = vmatpush.bf16.msra.mxu1 %v15729_v18  ;;  %v15781_v18 = vld [vmem:[%s22709_s3 + $0x1d8] sm:$0xff] }
 0x3bc   :  { %v18147_v38 = vpop.f32.mrf.mxu3  ;;  %3234 = vmatpush.bf16.msrb.mxu3 %v15781_v18 }
 0x3bd   :  { %22792 = vst [vmem:[#allocation18_spill] sm:$0xff] %v18147_v38 }
 0x3c1   :  { %v1971_v11 = vpop.f32.mrf.mxu1 }
 0x3c2   :  { %2473 = vmatmul.bf16.gmra.mxu3 %v2373_v40  ;;  %v18159_v46 = vadd.f32 %v2085_v42, %v1971_v11  ;;  %v15808_v42 = vld [vmem:[%s22709_s3 + $0x270] sm:$0xff]  ;;  %v18197_v40 = vpop.f32.mrf.mxu2 }
 0x3c3   :  { %3621 = vmatpush.bf16.msrb.mxu0 %v15808_v42 }
 0x3c4   :  { %v2090_v19 = vpop.f32.mrf.mxu3 }
 0x3c7   :  { %3622 = vmatpush.bf16.msrb.mxu0 %v15807_v10 }
 0x3c9   :  { %v18164_v12 = vpop.f32.mrf.mxu1 }
 0x3ca   :  { %22793 = vst [vmem:[#allocation19_spill] sm:$0xff] %v18164_v12 }
 0x3cb   :  { %3623 = vmatpush.bf16.msrb.mxu0 %v15806_v36  ;;  %v15780_v36 = vld [vmem:[%s22709_s3 + $0x1d0] sm:$0xff] }
 0x3cc   :  { %v18169_v60 = vpop.f32.mrf.mxu3  ;;  %3235 = vmatpush.bf16.msrb.mxu3 %v15780_v36 }
 0x3cd   :  { %22794 = vst [vmem:[#allocation20_spill] sm:$0xff] %v18169_v60  ;;  %v22795_v60 = vrot.slane %v18053_v3, 1 }
 0x3d2   :  { %v1976_v26 = vpop.f32.mrf.mxu1 }
 0x3d3   :  { %v18192_v21 = vadd.f32 %v2090_v19, %v1976_v26  ;;  %v15787_v19 = vld [vmem:[%s22709_s3 + $0x208] sm:$0xff]  ;;  %v18225_v26 = vpop.f32.mrf.mxu2 }
 0x3d4   :  { %3394 = vmatpush.bf16.msrb.mxu2 %v15787_v19  ;;  %v1190_v19 = vpop.permute.xlu2 %1189 }
 0x3d5   :  { %v18199_v11 = vpop.f32.mrf.mxu3  ;;  %v1689_v22 = vpop.permute.xlu1 %1688 }
 0x3d6   :  { %1746 = vst.msk [vmem:[#allocation2 + $0x48] sm:$0xf] %vm1727_vm6, %v1689_v22  ;;  %v15805_v22 = vld [vmem:[%s22709_s3 + $0x258] sm:$0xff] }
 0x3d7   :  { %3624 = vmatpush.bf16.msrb.mxu0 %v15805_v22 }
 0x3d8   :  { %3395 = vmatpush.bf16.msrb.mxu2 %v15786_v23 }
 0x3db   :  { %3625 = vmatpush.bf16.msrb.mxu0 %v15804_v55  ;;  %v18251_v55 = vpop.f32.mrf.mxu2 }
 0x3dc   :  { %v1067_v12 = vpop.permute.xlu2 %1066 }
 0x3dd   :  { %v18223_v16 = vpop.f32.mrf.mxu3  ;;  %v1691_v32 = vpop.permute.xlu1 %1690  ;;  %v1789_v42 = vld [vmem:[#allocation2 + $0x48] sm:$0x1]  ;;  %v1118_v3 = vmax.f32 %v17496_v41, %v1067_v12 }
 0x3de   :  { %1747 = vst.msk [vmem:[#allocation2 + $0x4c] sm:$0xf] %vm1727_vm6, %v1691_v32  ;;  %v1844_v24 = vunpack.c.l.b16 %v1789_v42  ;;  %v15803_v32 = vld [vmem:[%s22709_s3 + $0x248] sm:$0xff]  ;;  %v1242_v42 = vmax.f32 %v17953_v25, %v1190_v19 }
 0x3df   :  { %v15779_v25 = vld [vmem:[%s22709_s3 + $0x1c8] sm:$0xff]  ;;  %3626 = vmatpush.bf16.msrb.mxu0 %v15803_v32 }
 0x3e0   :  { %v1854_v10 = vpack.c.b16 %v1844_v24, %v1844_v24  ;;  %3236 = vmatpush.bf16.msrb.mxu3 %v15779_v25  ;;  %v16698_v41 = vld [vmem:[#allocation2 + $0x8] sm:$0xff] }
 0x3e1   :  { %v2127_v12 = vrot.slane %v16698_v41, 2  ;;  %v18422_v8 = vld [vmem:[#allocation2 + $0x44] sm:$0xff] }
 0x3e2   :  { %v1873_v23 = vrot.slane %v1854_v10, 1  ;;  %v16760_v10 = vld [vmem:[#allocation2 + $0x44] sm:$0xf0]  }
 0x3e3   :  { %v16748_v19 = vor.u32 %v16760_v10, %v18049_v61  ;;  %v22796_v61 = vrot.slane %v18140_v34, 3 }
 0x3e4   :  { %v1874_v33 = vsel %vm1855_vm7, %v1871_v37, %v1873_v23  ;;  %v2100_v37 = vld [vmem:[#allocation2] sm:$0xc] }
 0x3e5   :  { %v1693_v24 = vpop.permute.xlu0 %1692  ;;  %1980 = vmatmul.bf16.gmra.mxu1 %v1874_v33  ;;  %v2291_v22 = vld [vmem:[#allocation2 + $0x48] sm:$0xff]   ;;  %v1065_v18 = vpop.permute.xlu1 %1064  ;;  %v2121_v38 = vunpack.c.l.b16 %v2100_v37  ;;  %v15802_v37 = vld [vmem:[%s22709_s3 + $0x240] sm:$0xff] }
 0x3e6   :  { %v15761_v48 = vld [vmem:[#allocation2 + $0x48] sm:$0xff]  ;;  %1748 = vst.msk [vmem:[#allocation2 + $0x50] sm:$0xf] %vm1727_vm6, %v1693_v24  ;;  %v18248_v5 = vpop.f32.mrf.mxu3  ;;  %v1117_v35 = vmax.f32 %v17493_v51, %v1065_v18  ;;  %v2374_v51 = vrot.slane %v16748_v19, 3  ;;  %2641 = vmatmul.bf16.gmra.mxu2 %v2291_v22  ;;  %3627 = vmatpush.bf16.msrb.mxu0 %v15802_v37 }
 0x3e7   :  { %v2764_v23 = vrot.slane %v15761_v48, 1  ;;  %v15778_v48 = vld [vmem:[%s22709_s3 + $0x1c0] sm:$0xff]  ;;  %v2292_v18 = vld [vmem:[#allocation2 + $0x4c] sm:$0x7] }
 0x3e8   :  { %v1267_v33 = vmax.f32 %v1117_v35, %v1242_v42  ;;  %v2375_v35 = vsel %vm2358_vm8, %v22796_v61, %v2374_v51  ;;  %v22797_v42 = vunpack.c.h.b16 %v17806_v27  ;;  %3237 = vmatpush.bf16.msrb.mxu3 %v15778_v48 }
 0x3e9   :  { %v2765_v24 = vsel %vm1855_vm7, %v22795_v60, %v2764_v23  ;;  %2478 = vmatmul.bf16.gmra.mxu3 %v2375_v35 }
 0x3ea   :  { %v1295_v36 = vadd.f32 %v18058_v59, %v1267_v33  ;;  %2868 = vmatmul.bf16.gmra.mxu0 %v2765_v24  ;;  %v2123_v10 = vpack.c.b16 %v22797_v42, %v2121_v38  ;;  %v1617_v33 = vshrl.u32 %v18089_v9, 16  ;;  %v2347_v24 = vunpack.c.l.b16 %v2292_v18 }
 0x3ec   :  { %v1320_v32 = vmax.f32 %v1295_v36, 0.0  ;;  %v18278_v36 = vpop.f32.mrf.mxu2  ;;  %v2357_v48 = vpack.c.b16 %v2347_v24, %v2347_v24 }
 0x3ed   :  { %v1192_v60 = vpop.permute.xlu0 %1191  ;;  %v2683_v22 = vld [vmem:[#allocation2 + $0x50] sm:$0x1]  ;;  %22798 = vst [vmem:[#allocation21_spill] sm:$0xff] %v18278_v36 }
 0x3ee   :  { %v1345_v25 = vpack.c.bf16 %v1320_v32, %v1320_v32  ;;  %v1243_v19 = vmax.f32 %v18104_v20, %v1192_v60  ;;  %v2738_v34 = vunpack.c.l.b16 %v2683_v22  ;;  %v18276_v38 = vpop.f32.mrf.mxu3  ;;  %v2126_v32 = vrot.slane %v2123_v10, 2 }
 0x3ef   :  { %v1619_v20 = vrot.slane %v1617_v33, 4  ;;  %v2376_v18 = vrot.slane %v2357_v48, 3 }
 0x3f0   :  { %1371 = vst.msk [vmem:[#allocation2 + $0x58] sm:$0xf] %vm1348_vm2, %v1345_v25  ;;  %v1268_v27 = vmax.f32 %v1118_v3, %v1243_v19  ;;  %v2748_v61 = vpack.c.b16 %v2738_v34, %v2738_v34  ;;  %v2128_v9 = vsel %vm550_vm0, %v2126_v32, %v2127_v12  ;;  %v18284_v34 = vld [vmem:[#allocation2 + $0x10] sm:$0xff]  }
 0x3f1   :  { %v1620_v37 = vor.u32 %v1619_v20, %v18093_v50  ;;  %v2377_v50 = vsel %vm2358_vm8, %v2374_v51, %v2376_v18  ;;  %v3460_v32 = vld [vmem:[#allocation2 + $0x14] sm:$0xe]  ;;  %v3461_v20 = vld [vmem:[#allocation2 + $0x18] sm:$0xf]  ;;  %v18300_v51 = vld [vmem:[#allocation2 + $0x1c] sm:$0xff] }
 0x3f2   :  { %v1296_v35 = vadd.f32 %v18058_v59, %v1268_v27  ;;  %v2766_v42 = vrot.slane %v2748_v61, 1  ;;  %v3515_v48 = vunpack.c.l.b16 %v3460_v32  ;;  %v18302_v18 = vunpack.c.l.b16 %v3461_v20  ;;  %v18319_v20 = vld [vmem:[#allocation2 + $0x14] sm:$0xff]  }
 0x3f3   :  { %v1621_v41 = vrot.slane %v1620_v37, 4  ;;  %v22721_v37 = vunpack.c.l.b16 %v18284_v34 }
 0x3f4   :  { %v1321_v60 = vmax.f32 %v1296_v35, 0.0  ;;  %v2767_v10 = vsel %vm1855_vm7, %v2764_v23, %v2766_v42  ;;  %v18290_v61 = vpop.f32.mrf.mxu2  ;;  %v16699_v42 = vld [vmem:[#allocation2 + $0x10] sm:$0xff] }
 0x3f5   :  { %2210 = vmatmul.bf16.vlgmr.msra.gmra.mxu1 %v2128_v9  ;;  %22799 = vst [vmem:[#allocation22_spill] sm:$0xff] %v18290_v61 }
 0x3f6   :  { %v1346_v22 = vpack.c.bf16 %v1321_v60, %v1321_v60  ;;  %v18287_v33 = vpop.f32.mrf.mxu3  ;;  %3396 = vmatmul.bf16.vlgmr.msrb.gmra.mxu2 %v18284_v34  ;;  %v3129_v60 = vld [vmem:[#allocation2 + $0xc] sm:$0x8] }
 0x3f7   :  { %v1397_v3 = vld [vmem:[#allocation2 + $0x58] sm:$0xf] }
 0x3f8   :  { %1372 = vst.msk [vmem:[#allocation2 + $0x5c] sm:$0xf] %vm1348_vm2, %v1346_v22  ;;  %v1623_v25 = vshll.u32 %v1397_v3, 16  ;;  %v1627_v19 = vshrl.u32 %v1397_v3, 16  ;;  %v2129_v22 = vrot.slane %v16699_v42, 2 }
 0x3f9   :  { %2483 = vmatmul.bf16.gmra.mxu3 %v2377_v50 }
 0x3fa   :  { %2873 = vmatmul.bf16.gmra.mxu0 %v2767_v10  ;;  %v1625_v27 = vrot.slane %v1623_v25, 5  ;;  %v1629_v24 = vrot.slane %v1627_v19, 4  ;;  %v3150_v25 = vunpack.c.l.b16 %v3129_v60 }
 0x3fc   :  { %v1626_v35 = vsel %vm17600_vm5, %v1621_v41, %v1625_v27  ;;  %v1630_v23 = vor.u32 %v1629_v24, %v1625_v27  ;;  %v3534_v41 = vpack.c.b16 %v18302_v18, %v3515_v48  ;;  %v2130_v24 = vsel %vm550_vm0, %v2127_v12, %v2129_v22  ;;  %v18315_v32 = vpop.f32.mrf.mxu2  ;;  %v16460_v48 = vld [vmem:[#allocation2 + $0x18] sm:$0xff]  }
 0x3fd   :  { %1694 = vrot.lane.b32.xlu1 %v1626_v35, %s16765_s28  ;;  %v3152_v50 = vpack.c.b16 %v22721_v37, %v3150_v25  ;;  %22800 = vst [vmem:[#allocation23_spill] sm:$0xff] %v18315_v32  ;;  %v18396_v32 = vld [vmem:[#allocation2 + $0x3c] sm:$0xff] }
 0x3fe   :  { %v1631_v19 = vrot.slane %v1630_v23, 4  ;;  %v18307_v27 = vpop.f32.mrf.mxu3  ;;  %v3545_v23 = vrot.slane %v18300_v51, 1  ;;  %v3544_v12 = vrot.slane %v3534_v41, 1  ;;  %v2131_v41 = vrot.slane %v17887_v52, 2 }
 0x3ff   :  { %v18296_v9 = vld [vmem:[#allocation2 + $0x5c] sm:$0xf]  ;;  %v3154_v60 = vrot.slane %v3152_v50, 3  ;;  %v18334_v50 = vld [vmem:[#allocation2 + $0x24] sm:$0xff] }
 0x400   :  { %v1633_v3 = vshll.u32 %v18296_v9, 16  ;;  %v3546_v42 = vsel %vm1855_vm7, %v3544_v12, %v3545_v23  ;;  %v2132_v12 = vsel %vm550_vm0, %v2129_v22, %v2131_v41  ;;  %v15776_v22 = vld [vmem:[%s22709_s3 + $0x1b0] sm:$0xff] }
 0x402   :  { %v18304_v10 = vrot.slane %v1633_v3, 5  ;;  %v3155_v3 = vrot.slane %v18319_v20, 3 }
 0x404   :  { %v1636_v35 = vsel %vm17600_vm5, %v1631_v19, %v18304_v10  ;;  %v3156_v25 = vsel %vm2358_vm8, %v3154_v60, %v3155_v3  ;;  %v15777_v19 = vld [vmem:[%s22709_s3 + $0x1b8] sm:$0xff]  ;;  %v3547_v60 = vrot.slane %v18334_v50, 1 }
 0x405   :  { %2215 = vmatmul.bf16.gmra.mxu1 %v2130_v24  ;;  %1696 = vrot.lane.b32.xlu0 %v1636_v35, %s16765_s28  ;;  %v18331_v35 = vpop.f32.mrf.mxu2 }
 0x406   :  { %1068 = vrot.lane.b32.xlu1 %v17501_v63, %s16765_s28  ;;  %3401 = vmatmul.bf16.gmra.mxu2 %v16460_v48  ;;  %v18329_v24 = vpop.f32.mrf.mxu3  ;;  %22802 = vst [vmem:[#allocation25_spill] sm:$0xff] %v18331_v35  ;;  %v18337_v48 = vld [vmem:[#allocation2 + $0x1c] sm:$0xff]  }
 0x407   :  { %22801 = vst [vmem:[#allocation24_spill] sm:$0xff] %v18329_v24  ;;  %3057 = vmatpush.bf16.msrb.mxu1 %v15777_v19  ;;  %v3548_v19 = vsel %vm1855_vm7, %v3545_v23, %v3547_v60 }
 0x409   :  { %3238 = vmatmul.bf16.vlgmr.msrb.gmra.mxu3 %v3156_v25  ;;  %v3157_v25 = vrot.slane %v18337_v48, 3 }
 0x40a   :  { %3628 = vmatmul.bf16.vlgmr.msrb.gmra.mxu0 %v3546_v42 }
 0x40b   :  { %v3158_v52 = vsel %vm2358_vm8, %v3155_v3, %v3157_v25  ;;  %3058 = vmatpush.bf16.msrb.mxu1 %v15776_v22  ;;  %v3549_v3 = vrot.slane %v18353_v6, 1  ;;  %v16462_v22 = vld [vmem:[#allocation2 + $0x28] sm:$0xff]  }
 0x40d   :  { %v18343_v37 = vpop.f32.mrf.mxu2 }
 0x40e   :  { %v18340_v42 = vpop.f32.mrf.mxu3  ;;  %22804 = vst [vmem:[#allocation27_spill] sm:$0xff] %v18343_v37 }
 0x40f   :  { %22803 = vst [vmem:[#allocation26_spill] sm:$0xff] %v18340_v42 }
 0x415   :  { %2220 = vmatmul.bf16.gmra.mxu1 %v2132_v12  ;;  %v2133_v12 = vrot.slane %v17909_v0, 2  ;;  %v18351_v43 = vpop.f32.mrf.mxu2  ;;  %v3550_v0 = vsel %vm1855_vm7, %v3547_v60, %v3549_v3 }
 0x416   :  { %3406 = vmatmul.bf16.gmra.mxu2 %v16461_v54  ;;  %22805 = vst [vmem:[#allocation28_spill] sm:$0xff] %v18351_v43  ;;  %v18355_v15 = vpop.f32.mrf.mxu3  ;;  %v18358_v54 = vld [vmem:[#allocation2 + $0x24] sm:$0xff]  }
 0x417   :  { %22806 = vst [vmem:[#allocation29_spill] sm:$0xff] %v18355_v15  ;;  %v2134_v23 = vsel %vm550_vm0, %v2131_v41, %v2133_v12 }
 0x419   :  { %3243 = vmatmul.bf16.gmra.mxu3 %v3158_v52  ;;  %v3159_v52 = vrot.slane %v18358_v54, 3 }
 0x41a   :  { %3633 = vmatmul.bf16.gmra.mxu0 %v3548_v19  ;;  %v18361_v19 = vpop.f32.mrf.mxu0 }
 0x41b   :  { %v3160_v41 = vsel %vm2358_vm8, %v3157_v25, %v3159_v52  ;;  %v3551_v25 = vrot.slane %v18376_v13, 1 }
 0x41d   :  { %v18365_v43 = vpop.f32.mrf.mxu2 }
 0x41e   :  { %22807 = vst [vmem:[#allocation30_spill] sm:$0xff] %v18365_v43  ;;  %v18367_v37 = vpop.f32.mrf.mxu3 }
 0x41f   :  { %22808 = vst [vmem:[#allocation31_spill] sm:$0xff] %v18367_v37  ;;  %v3552_v37 = vsel %vm1855_vm7, %v3549_v3, %v3551_v25 }
 0x422   :  { %v18373_v35 = vpop.f32.mrf.mxu0 }
 0x425   :  { %2225 = vmatmul.bf16.gmra.mxu1 %v2134_v23  ;;  %v15775_v23 = vld [vmem:[%s22709_s3 + $0x1a8] sm:$0xff]  ;;  %v18378_v60 = vpop.f32.mrf.mxu2 }
 0x426   :  { %3411 = vmatmul.bf16.gmra.mxu2 %v16462_v22  ;;  %3059 = vmatpush.bf16.msrb.mxu1 %v15775_v23  ;;  %22809 = vst [vmem:[#allocation32_spill] sm:$0xff] %v18378_v60  ;;  %v2136_v22 = vsel %vm550_vm0, %v2133_v12, %v2135_v45  ;;  %v16463_v23 = vld [vmem:[#allocation2 + $0x30] sm:$0xff]  }
 0x429   :  { %3248 = vmatmul.bf16.gmra.mxu3 %v3160_v41  ;;  %v18384_v41 = vpop.f32.mrf.mxu3 }
 0x42a   :  { %3638 = vmatmul.bf16.gmra.mxu0 %v3550_v0  ;;  %v18381_v0 = vld [vmem:[#allocation2 + $0x2c] sm:$0xff]   ;;  %22810 = vst [vmem:[#allocation33_spill] sm:$0xff] %v18384_v41  ;;  %v18388_v15 = vpop.f32.mrf.mxu0  ;;  %v15774_v41 = vld [vmem:[%s22709_s3 + $0x1a0] sm:$0xff] }
 0x42b   :  { %v3161_v43 = vrot.slane %v18381_v0, 3  ;;  %22811 = vst [vmem:[#allocation34_spill] sm:$0xff] %v18388_v15  ;;  %3060 = vmatpush.bf16.msrb.mxu1 %v15774_v41  ;;  %v15842_v41 = vld [vmem:[%s22709_s3 + $0x338] sm:$0xff] }
 0x42c   :  { %4175 = vmatpush.bf16.msra.mxu2 %v15842_v41  ;;  %v18437_v41 = vpop.f32.mrf.mxu1 }
 0x42d   :  { %v3162_v30 = vsel %vm2358_vm8, %v3159_v52, %v3161_v43  ;;  %v18391_v60 = vpop.f32.mrf.mxu2  ;;  %v3553_v52 = vrot.slane %v18396_v32, 1  ;;  %22821 = vst [vmem:[#allocation44_spill] sm:$0xff] %v18437_v41 }
 0x42e   :  { %22812 = vst [vmem:[#allocation35_spill] sm:$0xff] %v18391_v60  ;;  %v16464_v60 = vld [vmem:[#allocation2 + $0x38] sm:$0xff]  }
 0x431   :  { %v18393_v12 = vpop.f32.mrf.mxu3 }
 0x432   :  { %22813 = vst [vmem:[#allocation36_spill] sm:$0xff] %v18393_v12  ;;  %v18401_v3 = vpop.f32.mrf.mxu0  ;;  %v3554_v12 = vsel %vm1855_vm7, %v3551_v25, %v3553_v52 }
 0x433   :  { %22814 = vst [vmem:[#allocation37_spill] sm:$0xff] %v18401_v3  ;;  %v16766_v3 = vmov 0  }
 0x434   :  { %40 = vst [vmem:[#allocation2 + $0x60] sm:$0xc] %v16766_v3 }
 0x435   :  { %2230 = vmatmul.bf16.gmra.mxu1 %v2136_v22  ;;  %v2137_v22 = vrot.slane %v18005_v14, 2  ;;  %41 = vst [vmem:[#allocation2 + $0x64] sm:$0xf] %v16766_v3 }
 0x436   :  { %3416 = vmatmul.bf16.gmra.mxu2 %v16463_v23 }
 0x437   :  { %v2138_v23 = vsel %vm550_vm0, %v2135_v45, %v2137_v22 }
 0x439   :  { %3253 = vmatmul.bf16.gmra.mxu3 %v3162_v30  ;;  %v18407_v30 = vpop.f32.mrf.mxu2  ;;  %v18411_v42 = vpop.f32.mrf.mxu3 }
 0x43a   :  { %3643 = vmatmul.bf16.gmra.mxu0 %v3552_v37  ;;  %v18404_v37 = vld [vmem:[#allocation2 + $0x34] sm:$0xff]   ;;  %22815 = vst [vmem:[#allocation38_spill] sm:$0xff] %v18407_v30  ;;  %v18414_v45 = vpop.f32.mrf.mxu0 }
 0x43b   :  { %v3163_v14 = vrot.slane %v18404_v37, 3  ;;  %22816 = vst [vmem:[#allocation39_spill] sm:$0xff] %v18411_v42 }
 0x43c   :  { %22817 = vst [vmem:[#allocation40_spill] sm:$0xff] %v18414_v45  ;;  %v15823_v45 = vld [vmem:[%s22709_s3 + $0x2e8] sm:$0xff] }
 0x43d   :  { %v3164_v61 = vsel %vm2358_vm8, %v3161_v43, %v3163_v14  ;;  %v3555_v43 = vrot.slane %v18422_v8, 1 }
 0x43f   :  { %v3556_v42 = vsel %vm1855_vm7, %v3553_v52, %v3555_v43 }
 0x441   :  { %v18420_v30 = vpop.f32.mrf.mxu2  ;;  %v18424_v25 = vpop.f32.mrf.mxu3 }
 0x442   :  { %22818 = vst [vmem:[#allocation41_spill] sm:$0xff] %v18420_v30  ;;  %v15841_v30 = vld [vmem:[%s22709_s3 + $0x330] sm:$0xff] }
 0x443   :  { %22819 = vst [vmem:[#allocation42_spill] sm:$0xff] %v18424_v25  ;;  %4176 = vmatpush.bf16.msra.mxu2 %v15841_v30  ;;  %v15840_v25 = vld [vmem:[%s22709_s3 + $0x328] sm:$0xff]  ;;  %v2141_v30 = vrot.slane %v18051_v29, 2  ;;  %v15838_v29 = vld [vmem:[%s22709_s3 + $0x318] sm:$0xff] }
 0x445   :  { %2235 = vmatmul.bf16.gmra.mxu1 %v2138_v23  ;;  %v2139_v23 = vrot.slane %v18023_v62, 2 }
 0x446   :  { %3421 = vmatmul.bf16.gmra.mxu2 %v16464_v60 }
 0x447   :  { %v2140_v60 = vsel %vm550_vm0, %v2137_v22, %v2139_v23  ;;  %4177 = vmatpush.bf16.msra.mxu2 %v15840_v25  ;;  %v15772_v25 = vld [vmem:[%s22709_s3 + $0x190] sm:$0xff]  ;;  %v2142_v41 = vsel %vm550_vm0, %v2139_v23, %v2141_v30 }
 0x449   :  { %3258 = vmatmul.bf16.gmra.mxu3 %v3164_v61  ;;  %v18430_v61 = vpop.f32.mrf.mxu0  ;;  %v18440_v22 = vpop.f32.mrf.mxu2 }
 0x44a   :  { %3648 = vmatmul.bf16.gmra.mxu0 %v3554_v12  ;;  %v18427_v12 = vld [vmem:[#allocation2 + $0x3c] sm:$0xff]   ;;  %22820 = vst [vmem:[#allocation43_spill] sm:$0xff] %v18430_v61  ;;  %v18449_v52 = vpop.f32.mrf.mxu3 }
 0x44b   :  { %v3165_v62 = vrot.slane %v18427_v12, 3  ;;  %22822 = vst [vmem:[#allocation45_spill] sm:$0xff] %v18440_v22  ;;  %v15773_v61 = vld [vmem:[%s22709_s3 + $0x198] sm:$0xff]  ;;  %v15824_v22 = vld [vmem:[%s22709_s3 + $0x2f0] sm:$0xff] }
 0x44c   :  { %22823 = vst [vmem:[#allocation46_spill] sm:$0xff] %v18449_v52  ;;  %3061 = vmatpush.bf16.msrb.mxu1 %v15773_v61  ;;  %v18477_v52 = vld [vmem:[#allocation2 + $0x44] sm:$0xff]  }
 0x44d   :  { %v22829_v36 = vrot.slane %v18477_v52, 3 }
 0x44f   :  { %v3168_v15 = vsel %vm2358_vm8, %v3165_v62, %v22829_v36 }
 0x450   :  { %3062 = vmatpush.bf16.msrb.mxu1 %v15772_v25  ;;  %v2101_v25 = vld [vmem:[#allocation2 + $0x48] sm:$0x3] }
 0x451   :  { %v2122_v23 = vunpack.c.l.b16 %v2101_v25  ;;  %v15822_v25 = vld [vmem:[%s22709_s3 + $0x2e0] sm:$0xff] }
 0x452   :  { %v18485_v4 = vpop.f32.mrf.mxu3 }
 0x453   :  { %22826 = vst [vmem:[#allocation49_spill] sm:$0xff] %v18485_v4 }
 0x455   :  { %2240 = vmatmul.bf16.gmra.mxu1 %v2140_v60  ;;  %v3166_v60 = vsel %vm2358_vm8, %v3163_v14, %v3165_v62  ;;  %v15839_v14 = vld [vmem:[%s22709_s3 + $0x320] sm:$0xff] }
 0x456   :  { %3426 = vmatmul.bf16.gmra.mxu2 %v18047_v44  ;;  %v15825_v44 = vld [vmem:[%s22709_s3 + $0x2f8] sm:$0xff]  ;;  %v15835_v62 = vld [vmem:[%s22709_s3 + $0x300] sm:$0xff] }
 0x457   :  { %3966 = vmatpush.bf16.msra.mxu3 %v15825_v44  ;;  %4178 = vmatpush.bf16.msra.mxu2 %v15839_v14  ;;  %v15771_v44 = vld [vmem:[%s22709_s3 + $0x188] sm:$0xff] }
 0x458   :  { %3063 = vmatpush.bf16.msrb.mxu1 %v15771_v44  ;;  %v16761_v14 = vld [vmem:[#allocation2 + $0x4c] sm:$0xf] }
 0x459   :  { %3263 = vmatmul.bf16.gmra.mxu3 %v3166_v60  ;;  %v18460_v60 = vld [vmem:[#allocation2 + $0x4c] sm:$0xff] }
 0x45a   :  { %3653 = vmatmul.bf16.gmra.mxu0 %v3556_v42  ;;  %v18454_v42 = vpop.f32.mrf.mxu0  ;;  %v22827_v24 = vrot.slane %v18460_v60, 1 }
 0x45b   :  { %22824 = vst [vmem:[#allocation47_spill] sm:$0xff] %v18454_v42  ;;  %v18479_v42 = vpop.f32.mrf.mxu2  ;;  %3967 = vmatpush.bf16.msra.mxu3 %v15824_v22  ;;  %4179 = vmatpush.bf16.msra.mxu2 %v15838_v29  ;;  %v16466_v22 = vld [vmem:[#allocation2 + $0x48] sm:$0xff]  }
 0x45c   :  { %22825 = vst [vmem:[#allocation48_spill] sm:$0xff] %v18479_v42  ;;  %v15837_v42 = vld [vmem:[%s22709_s3 + $0x310] sm:$0xff]  ;;  %v3558_v29 = vsel %vm1855_vm7, %v3555_v43, %v22827_v24  ;;  %v2124_v24 = vpack.c.b16 %v2122_v23, %v2122_v23 }
 0x45e   :  { %v2143_v36 = vrot.slane %v2124_v24, 2  ;;  %v1194_v24 = vpop.permute.xlu2 %1193 }
 0x45f   :  { %3968 = vmatpush.bf16.msra.mxu3 %v15823_v45  ;;  %4180 = vmatpush.bf16.msra.mxu2 %v15837_v42  ;;  %v15836_v45 = vld [vmem:[%s22709_s3 + $0x308] sm:$0xff]  ;;  %v15821_v42 = vld [vmem:[%s22709_s3 + $0x2d8] sm:$0xff] }
 0x462   :  { %v18465_v61 = vpop.f32.mrf.mxu1  ;;  %v18497_v44 = vpop.f32.mrf.mxu0 }
 0x463   :  { %22828 = vst [vmem:[#allocation50_spill] sm:$0xff] %v18497_v44  ;;  %3969 = vmatpush.bf16.msra.mxu3 %v15822_v25  ;;  %4181 = vmatpush.bf16.msra.mxu2 %v15836_v45  ;;  %v15819_v45 = vld [vmem:[%s22709_s3 + $0x2c8] sm:$0xff] }
 0x465   :  { %2245 = vmatmul.bf16.gmra.mxu1 %v2142_v41  ;;  %v15770_v41 = vld [vmem:[%s22709_s3 + $0x180] sm:$0xff] }
 0x466   :  { %3431 = vmatmul.bf16.gmra.mxu2 %v16466_v22  ;;  %3064 = vmatpush.bf16.msrb.mxu1 %v15770_v41 }
 0x467   :  { %3970 = vmatpush.bf16.msra.mxu3 %v15821_v42  ;;  %4182 = vmatpush.bf16.msra.mxu2 %v15835_v62  ;;  %v16762_v42 = vld [vmem:[#allocation2 + $0x4c] sm:$0xf0]  }
 0x469   :  { %3268 = vmatmul.bf16.gmra.mxu3 %v3168_v15  ;;  %v18510_v43 = vpop.f32.mrf.mxu2  ;;  %v15820_v15 = vld [vmem:[%s22709_s3 + $0x2d0] sm:$0xff] }
 0x46a   :  { %v18499_v4 = vpop.f32.mrf.mxu1  ;;  %3658 = vmatmul.bf16.gmra.mxu0 %v3558_v29  ;;  %22830 = vst [vmem:[#allocation51_spill] sm:$0xff] %v18510_v43  ;;  %v2144_v29 = vsel %vm550_vm0, %v2141_v30, %v2143_v36  ;;  %v1244_v30 = vmax.f32 %v17967_v17, %v1194_v24  ;;  %v18538_v62 = vpop.f32.mrf.mxu0  ;;  %v22835_v17 = vunpack.c.l.b16 %v18284_v34 }
 0x46b   :  { %3971 = vmatpush.bf16.msra.mxu3 %v15820_v15  ;;  %22834 = vst [vmem:[#allocation55_spill] sm:$0xff] %v18538_v62 }
 0x46c   :  { %v18515_v41 = vpop.f32.mrf.mxu3 }
 0x46d   :  { %22831 = vst [vmem:[#allocation52_spill] sm:$0xff] %v18515_v41  ;;  %v2897_v41 = vld [vmem:[#allocation2 + $0xc] sm:$0xc] }
 0x46f   :  { %v1695_v22 = vpop.permute.xlu1 %1694  ;;  %3972 = vmatpush.bf16.msra.mxu3 %v15819_v45 }
 0x470   :  { %1749 = vst.msk [vmem:[#allocation2 + $0x54] sm:$0xf] %vm1727_vm6, %v1695_v22 }
 0x471   :  { %v18528_v25 = vpop.f32.mrf.mxu2 }
 0x472   :  { %v2211_v3 = vpop.f32.mrf.mxu1  ;;  %22832 = vst [vmem:[#allocation53_spill] sm:$0xff] %v18528_v25  ;;  %v15818_v25 = vld [vmem:[%s22709_s3 + $0x2c0] sm:$0xff] }
 0x473   :  { %v18525_v23 = vadd.f32 %v2211_v3, %v17978_v2  ;;  %v18540_v3 = vor.u32 %v16762_v42, %v16761_v14  ;;  %v22837_v14 = vrot.slane %v18477_v52, 3  ;;  %3973 = vmatpush.bf16.msra.mxu3 %v15818_v25 }
 0x474   :  { %v18533_v44 = vpop.f32.mrf.mxu3 }
 0x475   :  { %2250 = vmatmul.bf16.gmra.mxu1 %v2144_v29  ;;  %22833 = vst [vmem:[#allocation54_spill] sm:$0xff] %v18533_v44  ;;  %v2952_v29 = vunpack.c.l.b16 %v2897_v41 }
 0x477   :  { %v2914_v22 = vld [vmem:[#allocation2 + $0x50] sm:$0xff]   ;;  %v1697_v43 = vpop.permute.xlu0 %1696  ;;  %v2971_v24 = vpack.c.b16 %v22835_v17, %v2952_v29  ;;  %v2982_v29 = vrot.slane %v18319_v20, 2 }
 0x478   :  { %1750 = vst.msk [vmem:[#allocation2 + $0x58] sm:$0xf] %vm1727_vm6, %v1697_v43  ;;  %v1069_v2 = vpop.permute.xlu1 %1068  ;;  %v3169_v43 = vrot.slane %v18540_v3, 3  ;;  %3436 = vmatmul.bf16.gmra.mxu2 %v2914_v22  ;;  %v3130_v42 = vld [vmem:[#allocation2 + $0x54] sm:$0x7] }
 0x479   :  { %v1119_v36 = vmax.f32 %v17501_v63, %v1069_v2  ;;  %v18551_v2 = vpop.f32.mrf.mxu2  ;;  %v2981_v22 = vrot.slane %v2971_v24, 2  ;;  %v3151_v17 = vunpack.c.l.b16 %v3130_v42 }
 0x47a   :  { %v18542_v15 = vpop.f32.mrf.mxu1  ;;  %22836 = vst [vmem:[#allocation56_spill] sm:$0xff] %v18551_v2  ;;  %v3170_v41 = vsel %vm2358_vm8, %v22837_v14, %v3169_v43  ;;  %v18572_v14 = vpop.f32.mrf.mxu0  ;;  %v15826_v2 = vld [vmem:[#allocation2 + $0x1c] sm:$0xff] }
 0x47b   :  { %v1269_v44 = vmax.f32 %v1119_v36, %v1244_v30  ;;  %3273 = vmatmul.bf16.gmra.mxu3 %v3170_v41  ;;  %22840 = vst [vmem:[#allocation58_spill] sm:$0xff] %v18572_v14  ;;  %v2983_v41 = vsel %vm550_vm0, %v2981_v22, %v2982_v29 }
 0x47c   :  { %v18558_v30 = vpop.f32.mrf.mxu3 }
 0x47d   :  { %v1297_v63 = vadd.f32 %v18058_v59, %v1269_v44  ;;  %22838 = vst [vmem:[#allocation57_spill] sm:$0xff] %v18558_v30  ;;  %v1637_v59 = vshrl.u32 %v18296_v9, 16 }
 0x47f   :  { %v1322_v45 = vmax.f32 %v1297_v63, 0.0  ;;  %v18556_v62 = vld [vmem:[#allocation2 + $0x54] sm:$0xff]  ;;  %v22839_v63 = vrot.slane %v18460_v60, 1  ;;  %v1639_v20 = vrot.slane %v1637_v59, 4 }
 0x480   :  { %v22722_v36 = vrot.slane %v18556_v62, 1 }
 0x481   :  { %v1347_v34 = vpack.c.bf16 %v1322_v45, %v1322_v45  ;;  %v18575_v9 = vpop.f32.mrf.mxu2  ;;  %v3153_v45 = vpack.c.b16 %v3151_v17, %v3151_v17 }
 0x482   :  { %v2216_v44 = vpop.f32.mrf.mxu1  ;;  %v3560_v24 = vsel %vm1855_vm7, %v22839_v63, %v22722_v36  ;;  %22841 = vst [vmem:[#allocation59_spill] sm:$0xff] %v18575_v9 }
 0x483   :  { %1374 = vst.msk [vmem:[#allocation2 + $0x60] sm:$0x3] %vm1373_vm9, %v1347_v34  ;;  %v18565_v25 = vadd.f32 %v2216_v44, %v18003_v47  ;;  %3663 = vmatmul.bf16.gmra.mxu0 %v3560_v24  ;;  %v1640_v47 = vor.u32 %v1639_v20, %v18304_v10  ;;  %v3171_v34 = vrot.slane %v3153_v45, 3  ;;  %v2984_v45 = vrot.slane %v18337_v48, 2 }
 0x484   :  { %v18577_v42 = vpop.f32.mrf.mxu3  ;;  %v3891_v48 = vrot.slane %v18300_v51, 3 }
 0x485   :  { %3065 = vmatmul.bf16.vlgmr.msrb.gmra.mxu1 %v2983_v41  ;;  %v1641_v22 = vrot.slane %v1640_v47, 4  ;;  %v3172_v59 = vsel %vm2358_vm8, %v3169_v43, %v3171_v34  ;;  %v2985_v43 = vsel %vm550_vm0, %v2982_v29, %v2984_v45 }
 0x488   :  { %4183 = vmatmul.bf16.vlgmr.msra.gmra.mxu2 %v15826_v2  ;;  %v3865_v2 = vld [vmem:[#allocation2 + $0x14] sm:$0x8] }
 0x489   :  { %v18582_v14 = vpop.f32.mrf.mxu2 }
 0x48a   :  { %v18580_v44 = vpop.f32.mrf.mxu1  ;;  %v1399_v30 = vld [vmem:[#allocation2 + $0x60] sm:$0x7]  ;;  %22842 = vst [vmem:[#allocation60_spill] sm:$0xff] %v18582_v14 }
 0x48b   :  { %v1643_v63 = vshll.u32 %v1399_v30, 16  ;;  %v1647_v36 = vshrl.u32 %v1399_v30, 16  ;;  %3278 = vmatmul.bf16.gmra.mxu3 %v3172_v59 }
 0x48c   :  { %v18587_v20 = vpop.f32.mrf.mxu3 }
 0x48d   :  { %v1645_v24 = vrot.slane %v1643_v63, 5  ;;  %v1649_v41 = vrot.slane %v1647_v36, 4  ;;  %v3886_v36 = vunpack.c.l.b16 %v3865_v2 }
 0x48f   :  { %v1646_v17 = vsel %vm17600_vm5, %v1641_v22, %v1645_v24  ;;  %v1650_v10 = vor.u32 %v1649_v41, %v1645_v24  ;;  %v3888_v22 = vpack.c.b16 %v18302_v18, %v3886_v36  ;;  %v15827_v41 = vld [vmem:[#allocation2 + $0x24] sm:$0xff] }
 0x490   :  { %1698 = vrot.lane.b32.xlu1 %v1646_v17, %s16765_s28 }
 0x491   :  { %v1651_v30 = vrot.slane %v1650_v10, 4  ;;  %v18596_v34 = vpop.f32.mrf.mxu2  ;;  %v3890_v59 = vrot.slane %v3888_v22, 3  ;;  %v2986_v10 = vrot.slane %v18358_v54, 2  ;;  %v3893_v54 = vrot.slane %v18334_v50, 3 }
 0x492   :  { %v2221_v9 = vpop.f32.mrf.mxu1  ;;  %22843 = vst [vmem:[#allocation61_spill] sm:$0xff] %v18596_v34 }
 0x493   :  { %v18592_v47 = vadd.f32 %v2221_v9, %v18025_v28  ;;  %1700 = vrot.lane.b32.xlu2 %v1651_v30, %s16765_s28  ;;  %v18606_v9 = vpop.f32.mrf.mxu0  ;;  %v3892_v29 = vsel %vm2358_vm8, %v3890_v59, %v3891_v48  ;;  %v15817_v30 = vld [vmem:[%s22709_s3 + $0x2b8] sm:$0xff]  ;;  %v2987_v36 = vsel %vm550_vm0, %v2984_v45, %v2986_v10  ;;  %v2988_v45 = vrot.slane %v18381_v0, 2 }
 0x494   :  { %v18598_v63 = vpop.f32.mrf.mxu3  ;;  %3793 = vmatpush.bf16.msra.mxu1 %v15817_v30  ;;  %v3895_v0 = vrot.slane %v18353_v6, 3 }
 0x495   :  { %3070 = vmatmul.bf16.gmra.mxu1 %v2985_v43  ;;  %22844 = vst [vmem:[#allocation62_spill] sm:$0xff] %v18598_v63 }
 0x498   :  { %4188 = vmatmul.bf16.gmra.mxu2 %v15827_v41 }
 0x499   :  { %v18604_v28 = vpop.f32.mrf.mxu2 }
 0x49a   :  { %v18602_v24 = vpop.f32.mrf.mxu1  ;;  %22845 = vst [vmem:[#allocation63_spill] sm:$0xff] %v18604_v28 }
 0x49b   :  { %3974 = vmatmul.bf16.vlgmr.msra.gmra.mxu3 %v3892_v29  ;;  %v18621_v41 = vpop.f32.mrf.mxu0 }
 0x49c   :  { %v18609_v17 = vpop.f32.mrf.mxu3 }
 0x49d   :  { %22846 = vst [vmem:[#allocation64_spill] sm:$0xff] %v18609_v17 }
 0x4a1   :  { %v18619_v22 = vpop.f32.mrf.mxu2 }
 0x4a2   :  { %v2226_v2 = vpop.f32.mrf.mxu1  ;;  %22847 = vst [vmem:[#allocation65_spill] sm:$0xff] %v18619_v22 }
 0x4a3   :  { %v18616_v43 = vadd.f32 %v2226_v2, %v18045_v49  ;;  %v3894_v49 = vsel %vm2358_vm8, %v3891_v48, %v3893_v54  ;;  %v2076_v2 = vadd.f32 %v18117_v7, %v18124_v58  ;;  %v15816_v48 = vld [vmem:[%s22709_s3 + $0x2b0] sm:$0xff] }
 0x4a4   :  { %v18623_v59 = vpop.f32.mrf.mxu3  ;;  %v15829_v7 = vld [vmem:[#allocation2 + $0x34] sm:$0xff]  ;;  %3794 = vmatpush.bf16.msra.mxu1 %v15816_v48 }
 0x4a5   :  { %3075 = vmatmul.bf16.gmra.mxu1 %v2987_v36  ;;  %22848 = vst [vmem:[#allocation66_spill] sm:$0xff] %v18623_v59  ;;  %v18636_v36 = vpop.f32.mrf.mxu0  ;;  %v2989_v59 = vsel %vm550_vm0, %v2986_v10, %v2988_v45  ;;  %v3896_v10 = vsel %vm2358_vm8, %v3893_v54, %v3895_v0  ;;  %v15815_v54 = vld [vmem:[%s22709_s3 + $0x2a8] sm:$0xff] }
 0x4a8   :  { %4193 = vmatmul.bf16.gmra.mxu2 %v15828_v56  ;;  %3795 = vmatpush.bf16.msra.mxu1 %v15815_v54 }
 0x4a9   :  { %v18628_v28 = vpop.f32.mrf.mxu2 }
 0x4aa   :  { %v18626_v29 = vpop.f32.mrf.mxu1  ;;  %22849 = vst [vmem:[#allocation67_spill] sm:$0xff] %v18628_v28 }
 0x4ab   :  { %3979 = vmatmul.bf16.gmra.mxu3 %v3894_v49 }
 0x4ac   :  { %v18631_v30 = vpop.f32.mrf.mxu3 }
 0x4ad   :  { %22850 = vst [vmem:[#allocation68_spill] sm:$0xff] %v18631_v30  ;;  %v18651_v58 = vpop.f32.mrf.mxu0 }
 0x4b1   :  { %v18641_v56 = vpop.f32.mrf.mxu2 }
 0x4b2   :  { %v2231_v22 = vpop.f32.mrf.mxu1  ;;  %22851 = vst [vmem:[#allocation69_spill] sm:$0xff] %v18641_v56 }
 0x4b3   :  { %v18638_v34 = vadd.f32 %v2231_v22, %v2076_v2  ;;  %v2990_v2 = vrot.slane %v18404_v37, 2 }
 0x4b4   :  { %v18643_v28 = vpop.f32.mrf.mxu3 }
 0x4b5   :  { %3080 = vmatmul.bf16.gmra.mxu1 %v2989_v59  ;;  %22852 = vst [vmem:[#allocation70_spill] sm:$0xff] %v18643_v28  ;;  %v18662_v30 = vpop.f32.mrf.mxu0  ;;  %v2991_v48 = vsel %vm550_vm0, %v2988_v45, %v2990_v2 }
 0x4b8   :  { %4198 = vmatmul.bf16.gmra.mxu2 %v15829_v7 }
 0x4b9   :  { %v18653_v22 = vpop.f32.mrf.mxu2 }
 0x4ba   :  { %v18649_v49 = vpop.f32.mrf.mxu1  ;;  %22853 = vst [vmem:[#allocation71_spill] sm:$0xff] %v18653_v22  ;;  %v15830_v22 = vld [vmem:[#allocation2 + $0x3c] sm:$0xff] }
 0x4bb   :  { %3984 = vmatmul.bf16.gmra.mxu3 %v3896_v10  ;;  %v3897_v10 = vrot.slane %v18376_v13, 3 }
 0x4bc   :  { %v18656_v59 = vpop.f32.mrf.mxu3 }
 0x4bd   :  { %22854 = vst [vmem:[#allocation72_spill] sm:$0xff] %v18656_v59  ;;  %v3898_v45 = vsel %vm2358_vm8, %v3895_v0, %v3897_v10  ;;  %v15814_v0 = vld [vmem:[%s22709_s3 + $0x2a0] sm:$0xff] }
 0x4be   :  { %3796 = vmatpush.bf16.msra.mxu1 %v15814_v0 }
 0x4c1   :  { %v18665_v14 = vpop.f32.mrf.mxu2 }
 0x4c2   :  { %v2236_v56 = vpop.f32.mrf.mxu1  ;;  %22855 = vst [vmem:[#allocation73_spill] sm:$0xff] %v18665_v14  ;;  %v2992_v14 = vrot.slane %v18427_v12, 2 }
 0x4c3   :  { %v18660_v28 = vadd.f32 %v2236_v56, %v18135_v57  ;;  %v18677_v56 = vpop.f32.mrf.mxu0 }
 0x4c4   :  { %v18667_v7 = vpop.f32.mrf.mxu3  ;;  %v2993_v13 = vsel %vm550_vm0, %v2990_v2, %v2992_v14 }
 0x4c5   :  { %3085 = vmatmul.bf16.gmra.mxu1 %v2991_v48  ;;  %22856 = vst [vmem:[#allocation74_spill] sm:$0xff] %v18667_v7 }
 0x4c8   :  { %4203 = vmatmul.bf16.gmra.mxu2 %v15830_v22 }
 0x4c9   :  { %v18675_v57 = vpop.f32.mrf.mxu2 }
 0x4ca   :  { %v18673_v37 = vpop.f32.mrf.mxu1  ;;  %22857 = vst [vmem:[#allocation75_spill] sm:$0xff] %v18675_v57 }
 0x4cb   :  { %3989 = vmatmul.bf16.gmra.mxu3 %v3898_v45  ;;  %v18689_v22 = vpop.f32.mrf.mxu0  ;;  %v3899_v45 = vrot.slane %v18396_v32, 3 }
 0x4cc   :  { %v18680_v48 = vpop.f32.mrf.mxu3 }
 0x4cd   :  { %22858 = vst [vmem:[#allocation76_spill] sm:$0xff] %v18680_v48  ;;  %v15831_v48 = vld [vmem:[#allocation2 + $0x44] sm:$0xff]  ;;  %v3900_v2 = vsel %vm2358_vm8, %v3897_v10, %v3899_v45  ;;  %v3901_v10 = vrot.slane %v18422_v8, 3  ;;  %v15813_v8 = vld [vmem:[%s22709_s3 + $0x298] sm:$0xff] }
 0x4ce   :  { %3797 = vmatpush.bf16.msra.mxu1 %v15813_v8 }
 0x4d1   :  { %v18687_v54 = vpop.f32.mrf.mxu2 }
 0x4d2   :  { %v2241_v7 = vpop.f32.mrf.mxu1  ;;  %22859 = vst [vmem:[#allocation77_spill] sm:$0xff] %v18687_v54 }
 0x4d3   :  { %v18684_v59 = vadd.f32 %v2241_v7, %v18159_v46  ;;  %v18705_v54 = vpop.f32.mrf.mxu0 }
 0x4d4   :  { %v18691_v57 = vpop.f32.mrf.mxu3 }
 0x4d5   :  { %3090 = vmatmul.bf16.gmra.mxu1 %v2993_v13  ;;  %22860 = vst [vmem:[#allocation78_spill] sm:$0xff] %v18691_v57  ;;  %v2994_v13 = vrot.slane %v18477_v52, 2  ;;  %v15858_v52 = vld [vmem:[%s22709_s3 + $0x378] sm:$0xff] }
 0x4d6   :  { %4407 = vmatpush.bf16.msra.mxu0 %v15858_v52 }
 0x4d7   :  { %v2995_v32 = vsel %vm550_vm0, %v2992_v14, %v2994_v13 }
 0x4d8   :  { %4208 = vmatmul.bf16.gmra.mxu2 %v15831_v48 }
 0x4d9   :  { %v18699_v46 = vpop.f32.mrf.mxu2 }
 0x4da   :  { %v18697_v12 = vpop.f32.mrf.mxu1  ;;  %22861 = vst [vmem:[#allocation79_spill] sm:$0xff] %v18699_v46  ;;  %v15832_v46 = vld [vmem:[#allocation2 + $0x4c] sm:$0xff] }
 0x4db   :  { %3994 = vmatmul.bf16.gmra.mxu3 %v3900_v2 }
 0x4dc   :  { %v18702_v7 = vpop.f32.mrf.mxu3 }
 0x4dd   :  { %22862 = vst [vmem:[#allocation80_spill] sm:$0xff] %v18702_v7  ;;  %v18721_v7 = vpop.f32.mrf.mxu0 }
 0x4de   :  { %22865 = vst [vmem:[#allocation83_spill] sm:$0xff] %v18721_v7 }
 0x4e1   :  { %v18711_v0 = vpop.f32.mrf.mxu2 }
 0x4e2   :  { %v2246_v57 = vpop.f32.mrf.mxu1  ;;  %22863 = vst [vmem:[#allocation81_spill] sm:$0xff] %v18711_v0 }
 0x4e3   :  { %v18708_v17 = vadd.f32 %v2246_v57, %v18192_v21  ;;  %v3902_v57 = vsel %vm2358_vm8, %v3899_v45, %v3901_v10  ;;  %v2096_v45 = vadd.f32 %v18199_v11, %v18465_v61  ;;  %v15856_v11 = vld [vmem:[%s22709_s3 + $0x368] sm:$0xff]  ;;  %v13443_v61 = vld [vmem:[%s22707_s1 + $0xf0] sm:$0xf] }
 0x4e4   :  { %v18713_v48 = vpop.f32.mrf.mxu3 }
 0x4e5   :  { %3095 = vmatmul.bf16.gmra.mxu1 %v2995_v32  ;;  %22864 = vst [vmem:[#allocation82_spill] sm:$0xff] %v18713_v48  ;;  %v15857_v32 = vld [vmem:[%s22709_s3 + $0x370] sm:$0xff]  ;;  %v18767_v7 = vpop.f32.mrf.mxu0 }
 0x4e6   :  { %4408 = vmatpush.bf16.msra.mxu0 %v15857_v32  ;;  %v15934_v32 = vld [vmem:[%s22707_s1 + $0xf4] sm:$0xf0] }
 0x4e8   :  { %4213 = vmatmul.bf16.gmra.mxu2 %v15832_v46  ;;  %v22725_v46 = vrot.slane %v18540_v3, 2 }
 0x4e9   :  { %v18723_v14 = vpop.f32.mrf.mxu2 }
 0x4ea   :  { %v18716_v2 = vpop.f32.mrf.mxu1  ;;  %22866 = vst [vmem:[#allocation84_spill] sm:$0xff] %v18723_v14  ;;  %v15918_v14 = vld [vmem:[%s22707_s1 + $0x74] sm:$0xf0]  ;;  %v2997_v48 = vsel %vm550_vm0, %v2994_v13, %v22725_v46  ;;  %4409 = vmatpush.bf16.msra.mxu0 %v15856_v11 }
 0x4eb   :  { %3999 = vmatmul.bf16.gmra.mxu3 %v3902_v57  ;;  %v15812_v57 = vld [vmem:[%s22709_s3 + $0x290] sm:$0xff] }
 0x4ec   :  { %v18733_v0 = vpop.f32.mrf.mxu3  ;;  %3798 = vmatpush.bf16.msra.mxu1 %v15812_v57  ;;  %v2098_v57 = vadd.f32 %v18223_v16, %v18499_v4  ;;  %v2058_v4 = vadd.f32 %v17974_v39, %v17992_v1 }
 0x4ed   :  { %v1701_v21 = vpop.permute.xlu2 %1700  ;;  %22867 = vst [vmem:[#allocation85_spill] sm:$0xff] %v18733_v0  ;;  %v18796_v46 = vpop.f32.mrf.mxu0 }
 0x4ee   :  { %1753 = vst.msk [vmem:[#allocation2 + $0x60] sm:$0x3] %vm1752_vm10, %v1701_v21  ;;  %v13379_v21 = vld [vmem:[%s22707_s1 + $0x70] sm:$0xf]  ;;  %v2257_v16 = vadd.f32 %v18542_v15, %v2058_v4  ;;  %v22870_v4 = vrot.slane %v18540_v3, 2  ;;  %v2491_v3 = vadd.f32 %v18287_v33, %v18565_v25 }
 0x4ef   :  { %v13380_v8 = vor.u32 %v15918_v14, %v13379_v21  ;;  %v15811_v14 = vld [vmem:[%s22709_s3 + $0x288] sm:$0xff]  ;;  %v15855_v21 = vld [vmem:[%s22709_s3 + $0x360] sm:$0xff] }
 0x4f0   :  { %3799 = vmatpush.bf16.msra.mxu1 %v15811_v14  ;;  %4410 = vmatpush.bf16.msra.mxu0 %v15855_v21  ;;  %v15854_v14 = vld [vmem:[%s22709_s3 + $0x358] sm:$0xff]  ;;  %v15853_v21 = vld [vmem:[%s22709_s3 + $0x350] sm:$0xff]  ;;  %v2490_v39 = vadd.f32 %v18276_v38, %v2257_v16 }
 0x4f1   :  { %5330 = vmatpush.bf16.msrb.mxu3 %v13380_v8  ;;  %v18769_v63 = vpop.f32.mrf.mxu2  ;;  %v3903_v8 = vrot.slane %v18460_v60, 3 }
 0x4f2   :  { %v2251_v52 = vpop.f32.mrf.mxu1 }
 0x4f3   :  { %v18747_v0 = vadd.f32 %v2251_v52, %v2096_v45  ;;  %v13444_v45 = vor.u32 %v15934_v32, %v13443_v61  ;;  %v2915_v52 = vld [vmem:[#allocation2 + $0x54] sm:$0x3]  ;;  %v3904_v60 = vsel %vm2358_vm8, %v3901_v10, %v3903_v8 }
 0x4f4   :  { %v2970_v13 = vunpack.c.l.b16 %v2915_v52  ;;  %v18775_v61 = vpop.f32.mrf.mxu3  ;;  %v15833_v32 = vld [vmem:[#allocation2 + $0x54] sm:$0xff]  ;;  %4411 = vmatpush.bf16.msra.mxu0 %v15854_v14 }
 0x4f5   :  { %3100 = vmatmul.bf16.gmra.mxu1 %v2997_v48  ;;  %5403 = vmatpush.bf16.msrb.mxu2 %v13444_v45  ;;  %v2489_v48 = vadd.f32 %v18248_v5, %v18525_v23  ;;  %22868 = vst [vmem:[#allocation86_spill] sm:$0xff] %v18775_v61  ;;  %v15810_v45 = vld [vmem:[%s22709_s3 + $0x280] sm:$0xff]  ;;  %v13347_v61 = vld [vmem:[%s22707_s1 + $0x30] sm:$0xf] }
 0x4f6   :  { %v2980_v5 = vpack.c.b16 %v2970_v13, %v2970_v13  ;;  %3800 = vmatpush.bf16.msra.mxu1 %v15810_v45  ;;  %v13371_v13 = vld [vmem:[%s22707_s1 + $0x60] sm:$0xf]  ;;  %v15932_v45 = vld [vmem:[%s22707_s1 + $0xe4] sm:$0xf0] }
 0x4f7   :  { %v2647_v23 = vadd.f32 %v18197_v40, %v2489_v48  ;;  %v15852_v40 = vld [vmem:[%s22709_s3 + $0x348] sm:$0xff] }
 0x4f8   :  { %4218 = vmatmul.bf16.gmra.mxu2 %v15833_v32  ;;  %4412 = vmatpush.bf16.msra.mxu0 %v15853_v21  ;;  %v15916_v48 = vld [vmem:[%s22707_s1 + $0x64] sm:$0xf0]  ;;  %v15851_v21 = vld [vmem:[%s22709_s3 + $0x340] sm:$0xff] }
 0x4f9   :  { %v2879_v10 = vadd.f32 %v18361_v19, %v2647_v23  ;;  %v13372_v32 = vor.u32 %v15916_v48, %v13371_v13  ;;  %v13435_v19 = vld [vmem:[%s22707_s1 + $0xe0] sm:$0xf]  ;;  %v3692_v23 = vld [vmem:[#allocation2 + $0x14] sm:$0xc] }
 0x4fa   :  { %v2253_v11 = vpop.f32.mrf.mxu1  ;;  %v13436_v16 = vor.u32 %v15932_v45, %v13435_v19  ;;  %v2063_v19 = vadd.f32 %v18001_v31, %v18012_v53 }
 0x4fb   :  { %v18784_v52 = vadd.f32 %v2253_v11, %v2098_v57  ;;  %4004 = vmatmul.bf16.gmra.mxu3 %v3904_v60  ;;  %v18794_v57 = vpop.f32.mrf.mxu2  ;;  %v2998_v11 = vrot.slane %v2980_v5, 2  ;;  %v2648_v60 = vadd.f32 %v18225_v26, %v2490_v39 }
 0x4fc   :  { %5331 = vmatpush.bf16.msrb.mxu3 %v13372_v32  ;;  %4413 = vmatpush.bf16.msra.mxu0 %v15852_v40  ;;  %v18835_v40 = vpop.f32.mrf.mxu0 }
 0x4fd   :  { %v2999_v5 = vsel %vm550_vm0, %v22870_v4, %v2998_v11  ;;  %5404 = vmatpush.bf16.msrb.mxu2 %v13436_v16  ;;  %v3905_v11 = vrot.slane %v18556_v62, 3  ;;  %v2880_v48 = vadd.f32 %v18373_v35, %v2648_v60  ;;  %v2259_v4 = vadd.f32 %v18580_v44, %v2063_v19  ;;  %v4247_v19 = vld [vmem:[#allocation2 + $0x1c] sm:$0xe] }
 0x4fe   :  { %v18799_v1 = vpop.f32.mrf.mxu3 }
 0x4ff   :  { %22869 = vst [vmem:[#allocation87_spill] sm:$0xff] %v18799_v1  ;;  %v3906_v35 = vsel %vm2358_vm8, %v3903_v8, %v3905_v11 }
 0x500   :  { %4414 = vmatpush.bf16.msra.mxu0 %v15851_v21  ;;  %v22871_v21 = vrot.slane %v18556_v62, 1  ;;  %v13427_v62 = vld [vmem:[%s22707_s1 + $0xd0] sm:$0xf] }
 0x502   :  { %v1699_v15 = vpop.permute.xlu1 %1698  ;;  %v3066_v38 = vpop.f32.mrf.mxu1 }
 0x503   :  { %1751 = vst.msk [vmem:[#allocation2 + $0x5c] sm:$0xf] %vm1727_vm6, %v1699_v15  ;;  %v18818_v14 = vadd.f32 %v3066_v38, %v2879_v10  ;;  %v18827_v15 = vpop.f32.mrf.mxu2  ;;  %v3713_v10 = vunpack.c.l.b16 %v3692_v23  ;;  %v3718_v23 = vrot.slane %v18300_v51, 2  ;;  %v15914_v51 = vld [vmem:[%s22707_s1 + $0x54] sm:$0xf0] }
 0x505   :  { %3105 = vmatmul.bf16.gmra.mxu1 %v2999_v5  ;;  %v3715_v25 = vpack.c.b16 %v18302_v18, %v3713_v10  ;;  %v2649_v5 = vadd.f32 %v18251_v55, %v2491_v3  ;;  %v22872_v18 = vld [vmem:[#allocation34_spill] sm:$0xff] }
 0x506   :  { %v18831_v13 = vpop.f32.mrf.mxu3  ;;  %v13363_v55 = vld [vmem:[%s22707_s1 + $0x50] sm:$0xf] }
 0x507   :  { %v3717_v53 = vrot.slane %v3715_v25, 2  ;;  %v2881_v44 = vadd.f32 %v22872_v18, %v2649_v5  ;;  %v13364_v3 = vor.u32 %v15914_v51, %v13363_v55  ;;  %v18870_v25 = vpop.f32.mrf.mxu0  ;;  %v22875_v18 = vld [vmem:[#allocation24_spill] sm:$0xff]  ;;  %v22876_v51 = vld [vmem:[#allocation37_spill] sm:$0xff] }
 0x508   :  { %22873 = vst [vmem:[#allocation34_spill] sm:$0xff] %v18870_v25 }
 0x509   :  { %5332 = vmatpush.bf16.msrb.mxu3 %v13364_v3  ;;  %v22878_v3 = vld [vmem:[#allocation10_spill] sm:$0xff] }
 0x50a   :  { %v15834_v26 = vld [vmem:[#allocation2 + $0x5c] sm:$0xff]  ;;  %v3068_v38 = vpop.f32.mrf.mxu1 }
 0x50b   :  { %v3478_v39 = vld [vmem:[#allocation2 + $0x5c] sm:$0x1]  ;;  %v18839_v45 = vadd.f32 %v3068_v38, %v2880_v48  ;;  %4223 = vmatmul.bf16.gmra.mxu2 %v15834_v26  ;;  %4009 = vmatmul.bf16.gmra.mxu3 %v3906_v35  ;;  %v2492_v48 = vadd.f32 %v18307_v27, %v2259_v4  ;;  %v18862_v10 = vpop.f32.mrf.mxu2  ;;  %v22874_v35 = vld [vmem:[#allocation21_spill] sm:$0xff] }
 0x50c   :  { %v3533_v32 = vunpack.c.l.b16 %v3478_v39  ;;  %v3866_v60 = vld [vmem:[#allocation2 + $0x5c] sm:$0x7]  ;;  %v15930_v39 = vld [vmem:[%s22707_s1 + $0xd4] sm:$0xf0] }
 0x50d   :  { %v3887_v8 = vunpack.c.l.b16 %v3866_v60  ;;  %v2650_v5 = vadd.f32 %v22874_v35, %v2492_v48  ;;  %v4302_v60 = vunpack.c.l.b16 %v4247_v19 }
 0x50e   :  { %v3543_v33 = vpack.c.b16 %v3533_v32, %v3533_v32  ;;  %v18850_v26 = vpop.f32.mrf.mxu3  ;;  %v3719_v32 = vsel %vm550_vm0, %v3717_v53, %v3718_v23  ;;  %v2493_v53 = vadd.f32 %v22875_v18, %v18592_v47 }
 0x50f   :  { %v3889_v4 = vpack.c.b16 %v3887_v8, %v3887_v8  ;;  %v22877_v8 = vld [vmem:[#allocation11_spill] sm:$0xff] }
 0x510   :  { %v3561_v16 = vrot.slane %v3543_v33, 1  ;;  %v13428_v33 = vor.u32 %v15930_v39, %v13427_v62  ;;  %v2882_v62 = vadd.f32 %v22876_v51, %v2650_v5  ;;  %v2068_v39 = vadd.f32 %v22878_v3, %v22877_v8  ;;  %v18895_v5 = vpop.f32.mrf.mxu0 }
 0x511   :  { %v3907_v55 = vrot.slane %v3889_v4, 3  ;;  %v22879_v4 = vld [vmem:[#allocation22_spill] sm:$0xff]  ;;  %22880 = vst [vmem:[#allocation21_spill] sm:$0xff] %v18895_v5 }
 0x512   :  { %v3562_v31 = vsel %vm1855_vm7, %v22871_v21, %v3561_v16  ;;  %v3071_v27 = vpop.f32.mrf.mxu1  ;;  %v18873_v16 = vld [vmem:[#allocation2 + $0x20] sm:$0xf]  ;;  %5405 = vmatpush.bf16.msrb.mxu2 %v13428_v33  ;;  %v18875_v21 = vld [vmem:[#allocation2 + $0x24] sm:$0xff]  ;;  %v2261_v47 = vadd.f32 %v18602_v24, %v2068_v39  ;;  %v2651_v18 = vadd.f32 %v22879_v4, %v2493_v53  ;;  %v22883_v39 = vld [vmem:[#allocation23_spill] sm:$0xff] }
 0x513   :  { %3668 = vmatmul.bf16.gmra.mxu0 %v3562_v31  ;;  %v18867_v38 = vadd.f32 %v3071_v27, %v2881_v44  ;;  %v22726_v31 = vunpack.c.l.b16 %v18873_v16  ;;  %v18889_v19 = vpop.f32.mrf.mxu2  ;;  %v4332_v33 = vrot.slane %v18875_v21, 1  ;;  %v3908_v35 = vsel %vm2358_vm8, %v3905_v11, %v3907_v55  ;;  %v13355_v24 = vld [vmem:[%s22707_s1 + $0x40] sm:$0xf]  ;;  %v15912_v11 = vld [vmem:[%s22707_s1 + $0x44] sm:$0xf0]  ;;  %v18917_v4 = vld [vmem:[#allocation2 + $0x2c] sm:$0xff] }
 0x514   :  { %v13356_v55 = vor.u32 %v15912_v11, %v13355_v24  ;;  %22885 = vst [vmem:[#allocation37_spill] sm:$0xff] %v18917_v4 }
 0x515   :  { %3801 = vmatmul.bf16.vlgmr.msra.gmra.mxu1 %v3719_v32  ;;  %v4321_v48 = vpack.c.b16 %v22726_v31, %v4302_v60  ;;  %v3720_v60 = vrot.slane %v18334_v50, 2  ;;  %v22882_v31 = vld [vmem:[#allocation40_spill] sm:$0xff] }
 0x516   :  { %v18880_v44 = vpop.f32.mrf.mxu3  ;;  %v2883_v1 = vadd.f32 %v22882_v31, %v2651_v18  ;;  %5333 = vmatpush.bf16.msrb.mxu3 %v13356_v55  ;;  %v22886_v18 = vld [vmem:[#allocation29_spill] sm:$0xff]  ;;  %v22889_v55 = vld [vmem:[#allocation12_spill] sm:$0xff] }
 0x517   :  { %v4331_v51 = vrot.slane %v4321_v48, 1  ;;  %v3721_v48 = vsel %vm550_vm0, %v3718_v23, %v3720_v60  ;;  %v13419_v23 = vld [vmem:[%s22707_s1 + $0xc0] sm:$0xf] }
 0x518   :  { %v18915_v31 = vpop.f32.mrf.mxu0 }
 0x519   :  { %v4333_v8 = vsel %vm1855_vm7, %v4331_v51, %v4332_v33  ;;  %22884 = vst [vmem:[#allocation24_spill] sm:$0xff] %v18915_v31  ;;  %v2495_v51 = vadd.f32 %v22886_v18, %v18616_v43  ;;  %v22727_v43 = vrot.slane %v18917_v4, 1  ;;  %v22891_v18 = vld [vmem:[#allocation25_spill] sm:$0xff]  ;;  %v22894_v31 = vld [vmem:[#allocation47_spill] sm:$0xff] }
 0x51a   :  { %v3073_v27 = vpop.f32.mrf.mxu1 }
 0x51b   :  { %v18887_v32 = vadd.f32 %v3073_v27, %v2882_v62  ;;  %4014 = vmatmul.bf16.gmra.mxu3 %v3908_v35  ;;  %v22881_v62 = vld [vmem:[#allocation26_spill] sm:$0xff]  ;;  %v18913_v35 = vpop.f32.mrf.mxu2 }
 0x51c   :  { %v2494_v27 = vadd.f32 %v22881_v62, %v2261_v47  ;;  %v22887_v62 = vld [vmem:[#allocation43_spill] sm:$0xff] }
 0x51e   :  { %v18900_v3 = vpop.f32.mrf.mxu3  ;;  %v2652_v47 = vadd.f32 %v22883_v39, %v2494_v27  ;;  %v15928_v27 = vld [vmem:[%s22707_s1 + $0xc4] sm:$0xf0] }
 0x51f   :  { %v13420_v11 = vor.u32 %v15928_v27, %v13419_v23  ;;  %v15910_v23 = vld [vmem:[%s22707_s1 + $0x34] sm:$0xf0]  ;;  %v22728_v27 = vrot.slane %v18353_v6, 2 }
 0x521   :  { %5406 = vmatpush.bf16.msrb.mxu2 %v13420_v11  ;;  %v4335_v11 = vsel %vm1855_vm7, %v4332_v33, %v22727_v43  ;;  %v13403_v33 = vld [vmem:[%s22707_s1 + $0xa0] sm:$0xf]  ;;  %v22897_v43 = vld [vmem:[#allocation27_spill] sm:$0xff] }
 0x522   :  { %v3076_v53 = vpop.f32.mrf.mxu1 }
 0x523   :  { %4415 = vmatmul.bf16.vlgmr.msra.gmra.mxu0 %v4333_v8  ;;  %v18909_v50 = vadd.f32 %v3076_v53, %v2883_v1  ;;  %v2884_v1 = vadd.f32 %v22887_v62, %v2652_v47  ;;  %v22888_v53 = vld [vmem:[#allocation13_spill] sm:$0xff]  ;;  %v2653_v62 = vadd.f32 %v22891_v18, %v2495_v51  ;;  %v18950_v51 = vpop.f32.mrf.mxu2 }
 0x524   :  { %22892 = vst [vmem:[#allocation10_spill] sm:$0xff] %v18950_v51 }
 0x525   :  { %3806 = vmatmul.bf16.gmra.mxu1 %v3721_v48  ;;  %v2073_v48 = vadd.f32 %v22889_v55, %v22888_v53  ;;  %v22893_v55 = vld [vmem:[#allocation31_spill] sm:$0xff]  ;;  %v2885_v5 = vadd.f32 %v22894_v31, %v2653_v62  ;;  %v15924_v31 = vld [vmem:[%s22707_s1 + $0xa4] sm:$0xf0] }
 0x526   :  { %v18921_v8 = vpop.f32.mrf.mxu3  ;;  %v15866_v62 = vld [vmem:[%s22709_s3 + $0x3b8] sm:$0xff] }
 0x527   :  { %v2263_v47 = vadd.f32 %v18626_v29, %v2073_v48  ;;  %v15926_v29 = vld [vmem:[%s22707_s1 + $0xb4] sm:$0xf0]  ;;  %4580 = vmatpush.bf16.msrb.mxu1 %v15866_v62 }
 0x529   :  { %v2496_v48 = vadd.f32 %v22893_v55, %v2263_v47  ;;  %v13404_v55 = vor.u32 %v15924_v31, %v13403_v33  ;;  %v22899_v33 = vld [vmem:[#allocation33_spill] sm:$0xff]  ;;  %v22901_v31 = vld [vmem:[#allocation50_spill] sm:$0xff] }
 0x52a   :  { %v3078_v24 = vpop.f32.mrf.mxu1 }
 0x52b   :  { %v18932_v39 = vadd.f32 %v3078_v24, %v2884_v1  ;;  %v13411_v1 = vld [vmem:[%s22707_s1 + $0xb0] sm:$0xf]  ;;  %v13348_v24 = vor.u32 %v15910_v23, %v13347_v61  ;;  %v13339_v61 = vld [vmem:[%s22707_s1 + $0x20] sm:$0xf]  ;;  %v15908_v23 = vld [vmem:[%s22707_s1 + $0x24] sm:$0xf0] }
 0x52c   :  { %v13412_v53 = vor.u32 %v15926_v29, %v13411_v1  ;;  %v18968_v1 = vpop.f32.mrf.mxu0  ;;  %v13340_v29 = vor.u32 %v15908_v23, %v13339_v61  ;;  %v13395_v61 = vld [vmem:[%s22707_s1 + $0x90] sm:$0xf] }
 0x52d   :  { %22890 = vst [vmem:[#allocation11_spill] sm:$0xff] %v18932_v39  ;;  %5334 = vmatpush.bf16.msrb.mxu3 %v13348_v24 }
 0x52e   :  { %v18956_v18 = vpop.f32.mrf.mxu3  ;;  %22895 = vst [vmem:[#allocation22_spill] sm:$0xff] %v18968_v1  ;;  %5407 = vmatpush.bf16.msrb.mxu2 %v13412_v53  ;;  %v2654_v1 = vadd.f32 %v22897_v43, %v2496_v48  ;;  %v13331_v53 = vld [vmem:[%s22707_s1 + $0x10] sm:$0xf]  ;;  %v15922_v43 = vld [vmem:[%s22707_s1 + $0x94] sm:$0xf0] }
 0x52f   :  { %v18994_v48 = vld [vmem:[#allocation2 + $0x34] sm:$0xff]  ;;  %v13396_v23 = vor.u32 %v15922_v43, %v13395_v61 }
 0x530   :  { %22898 = vst [vmem:[#allocation40_spill] sm:$0xff] %v18994_v48  ;;  %v2886_v62 = vadd.f32 %v22901_v31, %v2654_v1  ;;  %v15920_v1 = vld [vmem:[%s22707_s1 + $0x84] sm:$0xf0]  ;;  %v15868_v43 = vld [vmem:[%s22706_s0 + $0x134] sm:$0xf0]  ;;  %v4336_v51 = vrot.slane %v18994_v48, 1 }
 0x531   :  { %5335 = vmatpush.bf16.msrb.mxu3 %v13340_v29  ;;  %v22904_v31 = vld [vmem:[#allocation14_spill] sm:$0xff] }
 0x532   :  { %v3081_v47 = vpop.f32.mrf.mxu1  ;;  %5408 = vmatpush.bf16.msrb.mxu2 %v13404_v55  ;;  %v15904_v55 = vld [vmem:[%s22707_s1 + $0x4] sm:$0xf0] }
 0x533   :  { %4420 = vmatmul.bf16.gmra.mxu0 %v4335_v11  ;;  %v18976_v24 = vadd.f32 %v3081_v47, %v2885_v5  ;;  %v3723_v11 = vsel %vm550_vm0, %v3720_v60, %v22728_v27  ;;  %v15906_v5 = vld [vmem:[%s22707_s1 + $0x14] sm:$0xf0]  ;;  %v2497_v47 = vadd.f32 %v22899_v33, %v18638_v34 }
 0x534   :  { %v13332_v60 = vor.u32 %v15906_v5, %v13331_v53  ;;  %v13387_v53 = vld [vmem:[%s22707_s1 + $0x80] sm:$0xf]  ;;  %v19010_v5 = vpop.f32.mrf.mxu2  ;;  %v22903_v33 = vld [vmem:[#allocation15_spill] sm:$0xff] }
 0x535   :  { %22896 = vst [vmem:[#allocation26_spill] sm:$0xff] %v18976_v24  ;;  %3811 = vmatmul.bf16.gmra.mxu1 %v3723_v11  ;;  %v13323_v11 = vld [vmem:[%s22707_s1] sm:$0xf]  ;;  %v2078_v27 = vadd.f32 %v22904_v31, %v22903_v33  ;;  %v22910_v31 = vrot.slane %v18917_v4, 1 }
 0x536   :  { %v18998_v29 = vpop.f32.mrf.mxu3  ;;  %5336 = vmatpush.bf16.msrb.mxu3 %v13332_v60  ;;  %22902 = vst [vmem:[#allocation29_spill] sm:$0xff] %v19010_v5  ;;  %5409 = vmatpush.bf16.msrb.mxu2 %v13396_v23  ;;  %v13324_v61 = vor.u32 %v15904_v55, %v13323_v11  ;;  %v13179_v60 = vld [vmem:[%s22706_s0 + $0x12c] sm:$0xf]  ;;  %v13388_v5 = vor.u32 %v15920_v1, %v13387_v53  ;;  %v15867_v23 = vld [vmem:[%s22706_s0 + $0x130] sm:$0xf]  ;;  %v19031_v55 = vpop.f32.mrf.mxu0  ;;  %v22908_v33 = vld [vmem:[#allocation28_spill] sm:$0xff] }
 0x537   :  { %22900 = vst [vmem:[#allocation23_spill] sm:$0xff] %v18998_v29  ;;  %v13181_v11 = vld [vmem:[%s22706_s0 + $0x138] sm:$0xf0]  ;;  %v19034_v25 = vor.u32 %v15868_v43, %v13179_v60  ;;  %v2265_v29 = vadd.f32 %v18649_v49, %v2078_v27  ;;  %v22913_v49 = vld [vmem:[#allocation55_spill] sm:$0xff] }
 0x538   :  { %22906 = vst [vmem:[#allocation13_spill] sm:$0xff] %v19031_v55  ;;  %v19038_v53 = vor.u32 %v15867_v23, %v13181_v11  ;;  %v22911_v55 = vld [vmem:[#allocation36_spill] sm:$0xff]  ;;  %v22917_v11 = vld [vmem:[#allocation30_spill] sm:$0xff] }
 0x539   :  { %22907 = vst [vmem:[#allocation12_spill] sm:$0xff] %v19034_v25  ;;  %v2498_v48 = vadd.f32 %v22911_v55, %v2265_v29  ;;  %v19059_v55 = vld [vmem:[#allocation2 + $0x3c] sm:$0xff] }
 0x53a   :  { %v3083_v34 = vpop.f32.mrf.mxu1  ;;  %5337 = vmatpush.bf16.msrb.mxu3 %v13324_v61  ;;  %22909 = vst [vmem:[#allocation25_spill] sm:$0xff] %v19038_v53  ;;  %5410 = vmatpush.bf16.msrb.mxu2 %v13388_v5  ;;  %v22915_v5 = vrot.slane %v18353_v6, 2  ;;  %v15865_v6 = vld [vmem:[%s22709_s3 + $0x3b0] sm:$0xff] }
 0x53b   :  { %v19023_v24 = vadd.f32 %v3083_v34, %v2886_v62  ;;  %v2655_v62 = vadd.f32 %v22908_v33, %v2497_v47  ;;  %v16700_v34 = vld [vmem:[#allocation2 + $0x34] sm:$0xff]  ;;  %v2656_v33 = vadd.f32 %v22917_v11, %v2498_v48  ;;  %v15871_v48 = vld [vmem:[%s22706_s0 + $0x14c] sm:$0xf0]  ;;  %4581 = vmatpush.bf16.msrb.mxu1 %v15865_v6 }
 0x53c   :  { %v3724_v1 = vrot.slane %v16700_v34, 2  ;;  %v19054_v23 = vpop.f32.mrf.mxu2  ;;  %v22923_v11 = vld [vmem:[#allocation16_spill] sm:$0xff]  ;;  %v22928_v6 = vld [vmem:[#allocation42_spill] sm:$0xff] }
 0x53d   :  { %22905 = vst [vmem:[#allocation43_spill] sm:$0xff] %v19023_v24  ;;  %v4337_v24 = vsel %vm1855_vm7, %v22910_v31, %v4336_v51  ;;  %5338 = vmatmul.bf16.vlgmr.msrb.gmra.mxu3 %v19034_v25  ;;  %v2887_v27 = vadd.f32 %v22913_v49, %v2655_v62  ;;  %5411 = vmatmul.bf16.vlgmr.msrb.gmra.mxu2 %v19038_v53  ;;  %v22921_v31 = vld [vmem:[#allocation58_spill] sm:$0xff] }
 0x53e   :  { %v19045_v60 = vpop.f32.mrf.mxu3  ;;  %v3725_v43 = vsel %vm550_vm0, %v22915_v5, %v3724_v1  ;;  %22916 = vst [vmem:[#allocation27_spill] sm:$0xff] %v19054_v23  ;;  %v19057_v29 = vpop.f32.mrf.mxu0  ;;  %v2888_v49 = vadd.f32 %v22921_v31, %v2656_v33  ;;  %v13193_v5 = vld [vmem:[%s22706_s0 + $0x150] sm:$0xf0]  ;;  %v4338_v31 = vrot.slane %v19059_v55, 1 }
 0x53f   :  { %22912 = vst [vmem:[#allocation31_spill] sm:$0xff] %v19045_v60  ;;  %v16701_v60 = vld [vmem:[#allocation2 + $0x3c] sm:$0xff] }
 0x540   :  { %22918 = vst [vmem:[#allocation33_spill] sm:$0xff] %v19057_v29  ;;  %v22925_v29 = vld [vmem:[#allocation32_spill] sm:$0xff]  ;;  %v3726_v39 = vrot.slane %v16701_v60, 2 }
 0x542   :  { %v3086_v47 = vpop.f32.mrf.mxu1  ;;  %v3727_v60 = vsel %vm550_vm0, %v3724_v1, %v3726_v39  ;;  %v13203_v1 = vld [vmem:[%s22706_s0 + $0x15c] sm:$0xf] }
 0x543   :  { %4425 = vmatmul.bf16.gmra.mxu0 %v4337_v24  ;;  %v19049_v61 = vadd.f32 %v3086_v47, %v2887_v27  ;;  %v22919_v24 = vld [vmem:[#allocation39_spill] sm:$0xff]  ;;  %v13191_v27 = vld [vmem:[%s22706_s0 + $0x144] sm:$0xf] }
 0x544   :  { %v2499_v62 = vadd.f32 %v22919_v24, %v18660_v28  ;;  %v15870_v28 = vld [vmem:[%s22706_s0 + $0x148] sm:$0xf]  ;;  %v19086_v25 = vor.u32 %v15871_v48, %v13191_v27  ;;  %v22930_v48 = vld [vmem:[#allocation35_spill] sm:$0xff] }
 0x545   :  { %22914 = vst [vmem:[#allocation47_spill] sm:$0xff] %v19049_v61  ;;  %3816 = vmatmul.bf16.gmra.mxu1 %v3725_v43  ;;  %v22922_v43 = vld [vmem:[#allocation17_spill] sm:$0xff]  ;;  %v19090_v23 = vor.u32 %v15870_v28, %v13193_v5 }
 0x546   :  { %v19063_v34 = vpop.f32.mrf.mxu3  ;;  %v2083_v33 = vadd.f32 %v22923_v11, %v22922_v43  ;;  %22924 = vst [vmem:[#allocation15_spill] sm:$0xff] %v19086_v25  ;;  %v2657_v61 = vadd.f32 %v22925_v29, %v2499_v62  ;;  %v19094_v4 = vpop.f32.mrf.mxu0  ;;  %v19109_v5 = vld [vmem:[#allocation2 + $0x44] sm:$0xff] }
 0x547   :  { %22920 = vst [vmem:[#allocation50_spill] sm:$0xff] %v19063_v34  ;;  %v19092_v34 = vpop.f32.mrf.mxu2 }
 0x548   :  { %v2267_v53 = vadd.f32 %v18673_v37, %v2083_v33  ;;  %22926 = vst [vmem:[#allocation14_spill] sm:$0xff] %v19090_v23  ;;  %v2889_v37 = vadd.f32 %v18606_v9, %v2657_v61  ;;  %v15864_v61 = vld [vmem:[%s22709_s3 + $0x3a8] sm:$0xff] }
 0x549   :  { %22927 = vst [vmem:[#allocation28_spill] sm:$0xff] %v19094_v4  ;;  %v15874_v33 = vld [vmem:[%s22706_s0 + $0x164] sm:$0xf0]  ;;  %4582 = vmatpush.bf16.msrb.mxu1 %v15864_v61 }
 0x54a   :  { %v3088_v47 = vpop.f32.mrf.mxu1  ;;  %v16702_v4 = vld [vmem:[#allocation2 + $0x44] sm:$0xff] }
 0x54b   :  { %v19083_v24 = vadd.f32 %v3088_v47, %v2888_v49  ;;  %v4339_v49 = vsel %vm1855_vm7, %v4336_v51, %v4338_v31  ;;  %v2500_v47 = vadd.f32 %v22928_v6, %v2267_v53  ;;  %v22932_v53 = vld [vmem:[#allocation46_spill] sm:$0xff] }
 0x54c   :  { %v2501_v43 = vadd.f32 %v22932_v53, %v18684_v59  ;;  %v15873_v59 = vld [vmem:[%s22706_s0 + $0x160] sm:$0xf] }
 0x54d   :  { %5343 = vmatmul.bf16.gmra.mxu3 %v19086_v25  ;;  %5416 = vmatmul.bf16.gmra.mxu2 %v19090_v23  ;;  %v2658_v28 = vadd.f32 %v22930_v48, %v2500_v47  ;;  %v22934_v47 = vld [vmem:[#allocation19_spill] sm:$0xff]  ;;  %v4340_v48 = vrot.slane %v19109_v5, 1  ;;  %v22937_v25 = vld [vmem:[#allocation38_spill] sm:$0xff] }
 0x54e   :  { %v19099_v27 = vpop.f32.mrf.mxu3  ;;  %v2659_v23 = vadd.f32 %v22937_v25, %v2501_v43 }
 0x54f   :  { %v19107_v51 = vpop.f32.mrf.mxu2  ;;  %v2890_v9 = vadd.f32 %v18621_v41, %v2658_v28  ;;  %v13205_v41 = vld [vmem:[%s22706_s0 + $0x168] sm:$0xf0]  ;;  %v19138_v28 = vor.u32 %v15874_v33, %v13203_v1 }
 0x550   :  { %22931 = vst [vmem:[#allocation55_spill] sm:$0xff] %v19107_v51  ;;  %v4341_v51 = vsel %vm1855_vm7, %v4338_v31, %v4340_v48  ;;  %v2891_v61 = vadd.f32 %v18636_v36, %v2659_v23  ;;  %v22942_v31 = vld [vmem:[#allocation41_spill] sm:$0xff] }
 0x551   :  { %22936 = vst [vmem:[#allocation39_spill] sm:$0xff] %v19138_v28  ;;  %v15863_v23 = vld [vmem:[%s22709_s3 + $0x3a0] sm:$0xff] }
 0x552   :  { %v3091_v29 = vpop.f32.mrf.mxu1  ;;  %4583 = vmatpush.bf16.msrb.mxu1 %v15863_v23  ;;  %v22950_v23 = vld [vmem:[#allocation54_spill] sm:$0xff] }
 0x553   :  { %4430 = vmatmul.bf16.gmra.mxu0 %v4339_v49  ;;  %v19103_v62 = vadd.f32 %v3091_v29, %v2889_v37  ;;  %v19125_v49 = vpop.f32.mrf.mxu0  ;;  %v22935_v37 = vld [vmem:[#allocation18_spill] sm:$0xff] }
 0x554   :  { %22933 = vst [vmem:[#allocation30_spill] sm:$0xff] %v19125_v49  ;;  %v2088_v29 = vadd.f32 %v22935_v37, %v22934_v47  ;;  %v19142_v49 = vor.u32 %v15873_v59, %v13205_v41  ;;  %v22939_v47 = vld [vmem:[#allocation49_spill] sm:$0xff]  ;;  %v19159_v59 = vld [vmem:[#allocation2 + $0x4c] sm:$0xff] }
 0x555   :  { %22929 = vst [vmem:[#allocation36_spill] sm:$0xff] %v19103_v62  ;;  %3821 = vmatmul.bf16.gmra.mxu1 %v3727_v60  ;;  %v3728_v62 = vrot.slane %v16702_v4, 2  ;;  %v15877_v37 = vld [vmem:[%s22706_s0 + $0x17c] sm:$0xf0] }
 0x556   :  { %v19113_v11 = vpop.f32.mrf.mxu3  ;;  %v2269_v53 = vadd.f32 %v18697_v12, %v2088_v29  ;;  %22938 = vst [vmem:[#allocation58_spill] sm:$0xff] %v19142_v49 }
 0x557   :  { %v19151_v12 = vpop.f32.mrf.mxu2  ;;  %v3729_v4 = vsel %vm550_vm0, %v3726_v39, %v3728_v62  ;;  %v13215_v39 = vld [vmem:[%s22706_s0 + $0x174] sm:$0xf] }
 0x55a   :  { %v3093_v6 = vpop.f32.mrf.mxu1 }
 0x55b   :  { %v19135_v60 = vadd.f32 %v3093_v6, %v2890_v9  ;;  %v2502_v9 = vadd.f32 %v22939_v47, %v2269_v53  ;;  %v19156_v1 = vpop.f32.mrf.mxu0  ;;  %v15876_v53 = vld [vmem:[%s22706_s0 + $0x178] sm:$0xf] }
 0x55c   :  { %22941 = vst [vmem:[#allocation16_spill] sm:$0xff] %v19156_v1  ;;  %v22945_v47 = vld [vmem:[#allocation20_spill] sm:$0xff] }
 0x55d   :  { %5348 = vmatmul.bf16.gmra.mxu3 %v19138_v28  ;;  %5421 = vmatmul.bf16.gmra.mxu2 %v19142_v49  ;;  %v2660_v33 = vadd.f32 %v22942_v31, %v2502_v9  ;;  %v4342_v31 = vrot.slane %v19159_v59, 1  ;;  %v22947_v28 = vld [vmem:[#allocation45_spill] sm:$0xff] }
 0x55e   :  { %v19147_v6 = vpop.f32.mrf.mxu3 }
 0x55f   :  { %v2892_v36 = vadd.f32 %v18651_v58, %v2660_v33  ;;  %v22944_v58 = vld [vmem:[#allocation44_spill] sm:$0xff]  ;;  %v19188_v33 = vor.u32 %v15877_v37, %v13215_v39 }
 0x560   :  { %v2093_v9 = vadd.f32 %v22945_v47, %v22944_v58  ;;  %v16703_v58 = vld [vmem:[#allocation2 + $0x4c] sm:$0xff] }
 0x561   :  { %22946 = vst [vmem:[#allocation32_spill] sm:$0xff] %v19188_v33  ;;  %v3730_v47 = vrot.slane %v16703_v58, 2 }
 0x562   :  { %v3096_v25 = vpop.f32.mrf.mxu1 }
 0x563   :  { %4435 = vmatmul.bf16.gmra.mxu0 %v4341_v51  ;;  %v19153_v43 = vadd.f32 %v3096_v25, %v2891_v61  ;;  %v22943_v51 = vld [vmem:[#allocation52_spill] sm:$0xff] }
 0x564   :  { %v2503_v41 = vadd.f32 %v22943_v51, %v18708_v17  ;;  %v13217_v17 = vld [vmem:[%s22706_s0 + $0x180] sm:$0xf0]  ;;  %v2271_v51 = vadd.f32 %v18716_v2, %v2093_v9 }
 0x565   :  { %22940 = vst [vmem:[#allocation17_spill] sm:$0xff] %v19153_v43  ;;  %3826 = vmatmul.bf16.gmra.mxu1 %v3729_v4  ;;  %v19185_v4 = vpop.f32.mrf.mxu2  ;;  %v19192_v1 = vor.u32 %v15876_v53, %v13217_v17  ;;  %v19194_v43 = vpop.f32.mrf.mxu0  ;;  %v22952_v53 = vld [vmem:[#allocation48_spill] sm:$0xff] }
 0x566   :  { %v19181_v61 = vpop.f32.mrf.mxu3  ;;  %v2661_v49 = vadd.f32 %v22947_v28, %v2503_v41  ;;  %22949 = vst [vmem:[#allocation35_spill] sm:$0xff] %v19194_v43  ;;  %v3731_v28 = vsel %vm550_vm0, %v3728_v62, %v3730_v47  ;;  %v15862_v62 = vld [vmem:[%s22709_s3 + $0x398] sm:$0xff] }
 0x567   :  { %22948 = vst [vmem:[#allocation42_spill] sm:$0xff] %v19192_v1  ;;  %4584 = vmatpush.bf16.msrb.mxu1 %v15862_v62 }
 0x568   :  { %v2893_v39 = vadd.f32 %v18662_v30, %v2661_v49  ;;  %v22954_v30 = vld [vmem:[#allocation57_spill] sm:$0xff] }
 0x569   :  { %v2505_v49 = vadd.f32 %v22954_v30, %v18747_v0 }
 0x56a   :  { %v3098_v29 = vpop.f32.mrf.mxu1 }
 0x56b   :  { %v19183_v25 = vadd.f32 %v3098_v29, %v2892_v36  ;;  %v4343_v36 = vsel %vm1855_vm7, %v4340_v48, %v4342_v31  ;;  %v2504_v29 = vadd.f32 %v22950_v23, %v2271_v51  ;;  %v19211_v51 = vld [vmem:[#allocation2 + $0x54] sm:$0xff] }
 0x56c   :  { %v15880_v23 = vld [vmem:[%s22706_s0 + $0x194] sm:$0xf0] }
 0x56d   :  { %5353 = vmatmul.bf16.gmra.mxu3 %v19188_v33  ;;  %5426 = vmatmul.bf16.gmra.mxu2 %v19192_v1  ;;  %v2662_v17 = vadd.f32 %v22952_v53, %v2504_v29  ;;  %v19207_v48 = vpop.f32.mrf.mxu0  ;;  %v19209_v9 = vpop.f32.mrf.mxu2 }
 0x56e   :  { %v19204_v41 = vpop.f32.mrf.mxu3  ;;  %22953 = vst [vmem:[#allocation19_spill] sm:$0xff] %v19207_v48  ;;  %v19240_v48 = vld [vmem:[#allocation2 + $0x54] sm:$0xff] }
 0x56f   :  { %v2894_v58 = vadd.f32 %v18677_v56, %v2662_v17  ;;  %v13229_v56 = vld [vmem:[%s22706_s0 + $0x198] sm:$0xf0]  ;;  %v22956_v17 = vld [vmem:[#allocation51_spill] sm:$0xff]  ;;  %v22740_v43 = vrot.slane %v19240_v48, 2 }
 0x570   :  { %v2663_v30 = vadd.f32 %v22956_v17, %v2505_v49  ;;  %v3693_v17 = vld [vmem:[#allocation2 + $0x5c] sm:$0x3] }
 0x572   :  { %v3101_v2 = vpop.f32.mrf.mxu1  ;;  %v2895_v49 = vadd.f32 %v18689_v22, %v2663_v30  ;;  %v15939_v22 = vld [vmem:[%s22707_s1 + $0x124] sm:$0xf] }
 0x573   :  { %4440 = vmatmul.bf16.gmra.mxu0 %v4343_v36  ;;  %v19201_v37 = vadd.f32 %v3101_v2, %v2893_v39  ;;  %v13227_v36 = vld [vmem:[%s22706_s0 + $0x18c] sm:$0xf]  ;;  %v15879_v39 = vld [vmem:[%s22706_s0 + $0x190] sm:$0xf]  ;;  %v4344_v2 = vrot.slane %v19211_v51, 1  ;;  %v22958_v30 = vld [vmem:[#allocation53_spill] sm:$0xff] }
 0x574   :  { %v19236_v33 = vor.u32 %v15879_v39, %v13229_v56  ;;  %v13469_v39 = vld [vmem:[%s22707_s1 + $0x128] sm:$0x30] }
 0x575   :  { %22951 = vst [vmem:[#allocation46_spill] sm:$0xff] %v19201_v37  ;;  %3831 = vmatmul.bf16.gmra.mxu1 %v3731_v28  ;;  %v19232_v28 = vor.u32 %v15880_v23, %v13227_v36  ;;  %v19244_v62 = vpop.f32.mrf.mxu2  ;;  %v4345_v36 = vsel %vm1855_vm7, %v4342_v31, %v4344_v2  ;;  %v13445_v23 = vld [vmem:[%s22707_s1 + $0xf8] sm:$0xf0]  ;;  %v15861_v31 = vld [vmem:[%s22709_s3 + $0x390] sm:$0xff] }
 0x576   :  { %22957 = vst [vmem:[#allocation38_spill] sm:$0xff] %v19236_v33  ;;  %v19238_v1 = vpop.f32.mrf.mxu3  ;;  %4585 = vmatpush.bf16.msrb.mxu1 %v15861_v31 }
 0x577   :  { %22955 = vst [vmem:[#allocation18_spill] sm:$0xff] %v19232_v28 }
 0x57a   :  { %v3103_v29 = vpop.f32.mrf.mxu1 }
 0x57b   :  { %v3126_v0 = vadd.f32 %v3103_v29, %v2894_v58  ;;  %v3666_v58 = vpop.f32.mrf.mxu0 }
 0x57d   :  { %v3299_v53 = vadd.f32 %v18831_v13, %v3126_v0  ;;  %5358 = vmatmul.bf16.gmra.mxu3 %v19232_v28  ;;  %v2506_v13 = vadd.f32 %v18577_v42, %v18784_v52  ;;  %5431 = vmatmul.bf16.gmra.mxu2 %v19236_v33  ;;  %v3733_v0 = vsel %vm550_vm0, %v3730_v47, %v22740_v43 }
 0x57e   :  { %v3284_v47 = vadd.f32 %v18587_v20, %v18818_v14 }
 0x57f   :  { %v3457_v37 = vadd.f32 %v18769_v63, %v3299_v53  ;;  %v15933_v63 = vld [vmem:[%s22707_s1 + $0xf4] sm:$0xf]  ;;  %v13472_v53 = vor.u32 %v15939_v22, %v13469_v39  ;;  %v15940_v22 = vld [vmem:[%s22707_s1 + $0x124] sm:$0x30]  ;;  %v19296_v39 = vpop.f32.mrf.mxu2 }
 0x580   :  { %v13448_v52 = vor.u32 %v15933_v63, %v13445_v23  ;;  %v3714_v63 = vunpack.c.l.b16 %v3693_v17  ;;  %v19283_v23 = vpop.f32.mrf.mxu3 }
 0x581   :  { %v19263_v29 = vadd.f32 %v3666_v58, %v3457_v37  ;;  %v15860_v37 = vld [vmem:[%s22709_s3 + $0x388] sm:$0xff]  ;;  %v2664_v58 = vadd.f32 %v22958_v30, %v2506_v13  ;;  %v15859_v13 = vld [vmem:[%s22709_s3 + $0x380] sm:$0xff] }
 0x582   :  { %v3106_v42 = vpop.f32.mrf.mxu1  ;;  %5622 = vmatpush.bf16.msra.mxu3 %v13448_v52  ;;  %4586 = vmatpush.bf16.msrb.mxu1 %v15860_v37  ;;  %v13467_v52 = vld [vmem:[%s22707_s1 + $0x120] sm:$0xf]  ;;  %v13241_v37 = vld [vmem:[%s22706_s0 + $0x1b0] sm:$0xf0] }
 0x583   :  { %4445 = vmatmul.bf16.gmra.mxu0 %v4345_v36  ;;  %v3127_v56 = vadd.f32 %v3106_v42, %v2895_v49  ;;  %v5328_v36 = vsel %vm550_vm0, %v13472_v53, 0  ;;  %v19279_v49 = vld [vmem:[#allocation2 + $0x5c] sm:$0xff]  ;;  %v2896_v42 = vadd.f32 %v18705_v54, %v2664_v58  ;;  %v13468_v14 = vor.u32 %v15940_v22, %v13467_v52  ;;  %v13239_v54 = vld [vmem:[%s22706_s0 + $0x1a4] sm:$0xf] }
 0x584   :  { %5700 = vmatpush.bf16.msra.mxu2 %v5328_v36  ;;  %v3716_v53 = vpack.c.b16 %v3714_v63, %v3714_v63  ;;  %v22741_v17 = vrot.slane %v19279_v49, 1  ;;  %v22960_v52 = vld [vmem:[#allocation56_spill] sm:$0xff]  ;;  %v13459_v63 = vld [vmem:[%s22707_s1 + $0x110] sm:$0xf] }
 0x585   :  { %3836 = vmatmul.bf16.gmra.mxu1 %v3733_v0  ;;  %v3300_v31 = vadd.f32 %v18850_v26, %v3127_v56  ;;  %v15883_v26 = vld [vmem:[%s22706_s0 + $0x1ac] sm:$0xf0]  ;;  %v15882_v56 = vld [vmem:[%s22706_s0 + $0x1a8] sm:$0xf]  ;;  %v5325_v30 = vsel %vm550_vm0, %v13468_v14, 0  ;;  %v3442_v22 = vadd.f32 %v22960_v52, %v3284_v47 }
 0x586   :  { %4587 = vmatpush.bf16.msrb.mxu1 %v15859_v13  ;;  %v19312_v58 = vor.u32 %v15883_v26, %v13239_v54  ;;  %5481 = vmatpush.bf16.msrb.mxu0 %v5325_v30  ;;  %v19316_v43 = vor.u32 %v15882_v56, %v13241_v37  ;;  %v3734_v54 = vrot.slane %v3716_v53, 2  ;;  %v15936_v47 = vld [vmem:[%s22707_s1 + $0x104] sm:$0xf0]  ;;  %v22963_v37 = vld [vmem:[#allocation83_spill] sm:$0xff] }
 0x587   :  { %v3458_v36 = vadd.f32 %v18794_v57, %v3300_v31  ;;  %v13451_v57 = vld [vmem:[%s22707_s1 + $0x100] sm:$0xf]  ;;  %v4347_v31 = vsel %vm1855_vm7, %v4344_v2, %v22741_v17  ;;  %v22962_v26 = vld [vmem:[#allocation62_spill] sm:$0xff]  ;;  %v3674_v30 = vadd.f32 %v22963_v37, %v3442_v22  ;;  %v22964_v2 = vrot.slane %v19240_v48, 2  ;;  %v4479_v48 = vld [vmem:[#allocation2 + $0x1c] sm:$0xc] }
 0x588   :  { %22959 = vst [vmem:[#allocation49_spill] sm:$0xff] %v19312_v58  ;;  %v3285_v56 = vadd.f32 %v22962_v26, %v18839_v45  ;;  %v4500_v37 = vunpack.c.l.b16 %v4479_v48 }
 0x589   :  { %22961 = vst [vmem:[#allocation41_spill] sm:$0xff] %v19316_v43  ;;  %v3735_v17 = vsel %vm550_vm0, %v22964_v2, %v3734_v54 }
 0x58a   :  { %v3108_v20 = vpop.f32.mrf.mxu1 }
 0x58b   :  { %v3128_v0 = vadd.f32 %v3108_v20, %v2896_v42  ;;  %v15938_v42 = vld [vmem:[%s22707_s1 + $0x114] sm:$0xf0] }
 0x58c   :  { %v13460_v20 = vor.u32 %v15938_v42, %v13459_v63  ;;  %v13452_v63 = vor.u32 %v15936_v47, %v13451_v57  ;;  %v19343_v42 = vpop.f32.mrf.mxu3  ;;  %v13437_v57 = vld [vmem:[%s22707_s1 + $0xe8] sm:$0xf0] }
 0x58d   :  { %5363 = vmatmul.bf16.gmra.mxu3 %v19312_v58  ;;  %v3301_v53 = vadd.f32 %v18880_v44, %v3128_v0  ;;  %5436 = vmatmul.bf16.gmra.mxu2 %v19316_v43  ;;  %v19348_v58 = vpop.f32.mrf.mxu2  ;;  %v22965_v0 = vld [vmem:[#allocation59_spill] sm:$0xff] }
 0x58e   :  { %5482 = vmatpush.bf16.msrb.mxu0 %v13460_v20  ;;  %v3443_v22 = vadd.f32 %v22965_v0, %v3285_v56  ;;  %v15931_v20 = vld [vmem:[%s22707_s1 + $0xe4] sm:$0xf] }
 0x58f   :  { %v3459_v44 = vadd.f32 %v18827_v15, %v3301_v53  ;;  %v13440_v54 = vor.u32 %v15931_v20, %v13437_v57  ;;  %v22966_v15 = vld [vmem:[#allocation64_spill] sm:$0xff] }
 0x590   :  { %v3669_v13 = vpop.f32.mrf.mxu0  ;;  %v3286_v26 = vadd.f32 %v22966_v15, %v18867_v38  ;;  %v3675_v53 = vadd.f32 %v18767_v7, %v3443_v22  ;;  %v13253_v38 = vld [vmem:[%s22706_s0 + $0x1c8] sm:$0xf0]  ;;  %v22969_v22 = vunpack.c.l.b16 %v18873_v16  ;;  %v22971_v15 = vrot.slane %v19279_v49, 1 }
 0x591   :  { %v19324_v14 = vadd.f32 %v3669_v13, %v3458_v36  ;;  %v4265_v36 = vld [vmem:[#allocation2 + $0x64] sm:$0x1]  ;;  %5623 = vmatpush.bf16.msra.mxu3 %v13440_v54 }
 0x592   :  { %v3802_v52 = vpop.f32.mrf.mxu1  ;;  %v4320_v45 = vunpack.c.l.b16 %v4265_v36  ;;  %5483 = vmatpush.bf16.msrb.mxu0 %v13452_v63  ;;  %v15886_v36 = vld [vmem:[%s22706_s0 + $0x1c4] sm:$0xf0]  ;;  %v15885_v63 = vld [vmem:[%s22706_s0 + $0x1c0] sm:$0xf]  ;;  %v4502_v20 = vpack.c.b16 %v22969_v22, %v4500_v37  ;;  %v13263_v22 = vld [vmem:[%s22706_s0 + $0x1d4] sm:$0xf] }
 0x593   :  { %4450 = vmatmul.bf16.gmra.mxu0 %v4347_v31  ;;  %v3847_v13 = vadd.f32 %v3802_v52, %v3674_v30  ;;  %v13251_v30 = vld [vmem:[%s22706_s0 + $0x1bc] sm:$0xf]  ;;  %v19384_v57 = vor.u32 %v15885_v63, %v13253_v38  ;;  %v22973_v63 = vld [vmem:[#allocation61_spill] sm:$0xff] }
 0x594   :  { %v19378_v2 = vpop.f32.mrf.mxu3  ;;  %v4504_v37 = vrot.slane %v4502_v20, 2  ;;  %v15889_v20 = vld [vmem:[%s22706_s0 + $0x1dc] sm:$0xf0] }
 0x595   :  { %3841 = vmatmul.bf16.gmra.mxu1 %v3735_v17  ;;  %v4330_v17 = vpack.c.b16 %v4320_v45, %v4320_v45  ;;  %v4020_v56 = vadd.f32 %v18900_v3, %v3847_v13  ;;  %v19376_v13 = vor.u32 %v15886_v36, %v13251_v30  ;;  %22970 = vst [vmem:[#allocation44_spill] sm:$0xff] %v19384_v57 }
 0x597   :  { %v4348_v7 = vrot.slane %v4330_v17, 1  ;;  %22967 = vst [vmem:[#allocation52_spill] sm:$0xff] %v19376_v13  ;;  %v4229_v45 = vadd.f32 %v18862_v10, %v4020_v56  ;;  %v4505_v17 = vrot.slane %v18875_v21, 2  ;;  %v22972_v10 = vld [vmem:[#allocation66_spill] sm:$0xff] }
 0x598   :  { %v3671_v47 = vpop.f32.mrf.mxu0 }
 0x599   :  { %v19358_v31 = vadd.f32 %v3671_v47, %v3459_v44  ;;  %v22968_v44 = vld [vmem:[#allocation60_spill] sm:$0xff]  ;;  %v19386_v47 = vpop.f32.mrf.mxu2  ;;  %v4506_v21 = vsel %vm550_vm0, %v4504_v37, %v4505_v17 }
 0x59a   :  { %v3804_v52 = vpop.f32.mrf.mxu1  ;;  %v3444_v0 = vadd.f32 %v22968_v44, %v3286_v26  ;;  %v3287_v26 = vadd.f32 %v22972_v10, %v18887_v32 }
 0x59b   :  { %v3848_v3 = vadd.f32 %v3804_v52, %v3675_v53  ;;  %v4349_v53 = vsel %vm1855_vm7, %v22971_v15, %v4348_v7 }
 0x59c   :  { %v3676_v56 = vadd.f32 %v18796_v46, %v3444_v0  ;;  %v3445_v38 = vadd.f32 %v22973_v63, %v3287_v26  ;;  %v22974_v46 = vld [vmem:[#allocation68_spill] sm:$0xff] }
 0x59d   :  { %5368 = vmatmul.bf16.gmra.mxu3 %v19376_v13  ;;  %v4021_v16 = vadd.f32 %v18921_v8, %v3848_v3  ;;  %5441 = vmatmul.bf16.gmra.mxu2 %v19384_v57  ;;  %v3288_v3 = vadd.f32 %v22974_v46, %v18909_v50  ;;  %v15869_v50 = vld [vmem:[%s22706_s0 + $0x13c] sm:$0xf0]  ;;  %v22980_v46 = vld [vmem:[#allocation70_spill] sm:$0xff] }
 0x59e   :  { %v3677_v0 = vadd.f32 %v18835_v40, %v3445_v38  ;;  %v15888_v40 = vld [vmem:[%s22706_s0 + $0x1d8] sm:$0xf]  ;;  %v22978_v38 = vld [vmem:[#allocation37_spill] sm:$0xff] }
 0x59f   :  { %v4230_v52 = vadd.f32 %v18889_v19, %v4021_v16  ;;  %v13187_v19 = vld [vmem:[%s22706_s0 + $0x134] sm:$0xf] }
 0x5a0   :  { %v4416_v48 = vpop.f32.mrf.mxu0  ;;  %v19434_v26 = vor.u32 %v15869_v50, %v13187_v19  ;;  %v22976_v16 = vld [vmem:[#allocation63_spill] sm:$0xff] }
 0x5a1   :  { %v19388_v54 = vadd.f32 %v4416_v48, %v4229_v45  ;;  %v19403_v45 = vpop.f32.mrf.mxu3  ;;  %v19407_v8 = vpop.f32.mrf.mxu2 }
 0x5a2   :  { %v3807_v30 = vpop.f32.mrf.mxu1 }
 0x5a3   :  { %4455 = vmatmul.bf16.gmra.mxu0 %v4349_v53  ;;  %v3849_v36 = vadd.f32 %v3807_v30, %v3676_v56  ;;  %v19431_v53 = vor.u32 %v15889_v20, %v13263_v22  ;;  %v3446_v56 = vadd.f32 %v22976_v16, %v3288_v3  ;;  %v15929_v30 = vld [vmem:[%s22707_s1 + $0xd4] sm:$0xf]  ;;  %v22982_v22 = vld [vmem:[#allocation34_spill] sm:$0xff] }
 0x5a5   :  { %4588 = vmatmul.bf16.vlgmr.msrb.gmra.mxu1 %v4506_v21  ;;  %v4022_v44 = vadd.f32 %v18956_v18, %v3849_v36  ;;  %v13265_v18 = vld [vmem:[%s22706_s0 + $0x1e0] sm:$0xf0]  ;;  %22975 = vst [vmem:[#allocation20_spill] sm:$0xff] %v19431_v53  ;;  %v13429_v36 = vld [vmem:[%s22707_s1 + $0xd8] sm:$0xf0]  ;;  %v3678_v20 = vadd.f32 %v22982_v22, %v3446_v56 }
 0x5a6   :  { %v19437_v37 = vor.u32 %v15888_v40, %v13265_v18  ;;  %v22988_v22 = vld [vmem:[#allocation21_spill] sm:$0xff] }
 0x5a7   :  { %v4231_v10 = vadd.f32 %v18913_v35, %v4022_v44  ;;  %v4507_v35 = vrot.slane %v22978_v38, 2  ;;  %v22985_v38 = vld [vmem:[#allocation26_spill] sm:$0xff] }
 0x5a8   :  { %v4418_v7 = vpop.f32.mrf.mxu0  ;;  %22977 = vst [vmem:[#allocation45_spill] sm:$0xff] %v19437_v37 }
 0x5a9   :  { %v19405_v32 = vadd.f32 %v4418_v7, %v4230_v52  ;;  %v13432_v52 = vor.u32 %v15929_v30, %v13429_v36  ;;  %v22979_v7 = vld [vmem:[#allocation11_spill] sm:$0xff]  ;;  %v19451_v44 = vpop.f32.mrf.mxu3  ;;  %v4508_v18 = vsel %vm550_vm0, %v4505_v17, %v4507_v35  ;;  %v22984_v30 = vld [vmem:[#allocation65_spill] sm:$0xff]  ;;  %v13275_v17 = vld [vmem:[%s22706_s0 + $0x1ec] sm:$0xf] }
 0x5aa   :  { %v3809_v48 = vpop.f32.mrf.mxu1  ;;  %v3289_v3 = vadd.f32 %v22980_v46, %v22979_v7  ;;  %v22986_v7 = vld [vmem:[#allocation72_spill] sm:$0xff]  ;;  %v22987_v46 = vld [vmem:[#allocation31_spill] sm:$0xff] }
 0x5ab   :  { %v3850_v15 = vadd.f32 %v3809_v48, %v3677_v0  ;;  %v22981_v0 = vld [vmem:[#allocation23_spill] sm:$0xff]  ;;  %v19458_v48 = vpop.f32.mrf.mxu2  ;;  %5624 = vmatpush.bf16.msra.mxu3 %v13432_v52  ;;  %v3290_v56 = vadd.f32 %v22986_v7, %v22985_v38  ;;  %v13199_v52 = vld [vmem:[%s22706_s0 + $0x14c] sm:$0xf]  ;;  %v22991_v38 = vld [vmem:[#allocation29_spill] sm:$0xff] }
 0x5ac   :  { %v3447_v36 = vadd.f32 %v22984_v30, %v3289_v3  ;;  %v15892_v3 = vld [vmem:[%s22706_s0 + $0x1f4] sm:$0xf0] }
 0x5ad   :  { %5373 = vmatmul.bf16.gmra.mxu3 %v19431_v53  ;;  %v4023_v19 = vadd.f32 %v22981_v0, %v3850_v15  ;;  %5446 = vmatmul.bf16.gmra.mxu2 %v19437_v37  ;;  %v22989_v30 = vld [vmem:[#allocation67_spill] sm:$0xff]  ;;  %v22993_v37 = vld [vmem:[#allocation40_spill] sm:$0xff] }
 0x5ae   :  { %v3679_v53 = vadd.f32 %v22988_v22, %v3447_v36  ;;  %v3448_v36 = vadd.f32 %v22989_v30, %v3290_v56  ;;  %v22751_v28 = vrot.slane %v22993_v37, 2  ;;  %v13381_v56 = vld [vmem:[%s22707_s1 + $0x78] sm:$0xf0] }
 0x5b0   :  { %v4421_v21 = vpop.f32.mrf.mxu0 }
 0x5b1   :  { %v19445_v63 = vadd.f32 %v4421_v21, %v4231_v10  ;;  %v22983_v10 = vld [vmem:[#allocation10_spill] sm:$0xff] }
 0x5b2   :  { %v3812_v50 = vpop.f32.mrf.mxu1  ;;  %v4232_v16 = vadd.f32 %v22983_v10, %v4023_v19 }
 0x5b3   :  { %13473 = vmatmul.msk.bf16.vlgmr.msrb.gmra.mxu0 %vm510_vm1, %v19434_v26  ;;  %v3851_v40 = vadd.f32 %v3812_v50, %v3678_v20  ;;  %v15872_v20 = vld [vmem:[%s22706_s0 + $0x154] sm:$0xf0]  ;;  %v15891_v50 = vld [vmem:[%s22706_s0 + $0x1f0] sm:$0xf] }
 0x5b5   :  { %4593 = vmatmul.bf16.gmra.mxu1 %v4508_v18  ;;  %v4024_v0 = vadd.f32 %v22987_v46, %v3851_v40  ;;  %v13277_v40 = vld [vmem:[%s22706_s0 + $0x1f8] sm:$0xf0]  ;;  %v19487_v18 = vpop.f32.mrf.mxu3  ;;  %v19495_v46 = vor.u32 %v15872_v20, %v13199_v52  ;;  %v22997_v20 = vld [vmem:[#allocation74_spill] sm:$0xff] }
 0x5b6   :  { %v19497_v22 = vor.u32 %v15891_v50, %v13277_v40  ;;  %v22995_v52 = vld [vmem:[#allocation24_spill] sm:$0xff]  ;;  %v22998_v40 = vld [vmem:[#allocation50_spill] sm:$0xff] }
 0x5b7   :  { %v4233_v7 = vadd.f32 %v22991_v38, %v4024_v0  ;;  %v15937_v0 = vld [vmem:[%s22707_s1 + $0x114] sm:$0xf] }
 0x5b8   :  { %v4423_v15 = vpop.f32.mrf.mxu0  ;;  %22992 = vst [vmem:[#allocation48_spill] sm:$0xff] %v19497_v22 }
 0x5b9   :  { %v19463_v21 = vadd.f32 %v4423_v15, %v4232_v16  ;;  %v19489_v16 = vpop.f32.mrf.mxu2  ;;  %v19492_v15 = vor.u32 %v15892_v3, %v13275_v17  ;;  %v3680_v17 = vadd.f32 %v22995_v52, %v3448_v36 }
 0x5ba   :  { %v3814_v19 = vpop.f32.mrf.mxu1 }
 0x5bb   :  { %v3852_v10 = vadd.f32 %v3814_v19, %v3679_v53  ;;  %22990 = vst [vmem:[#allocation54_spill] sm:$0xff] %v19492_v15  ;;  %v15917_v53 = vld [vmem:[%s22707_s1 + $0x74] sm:$0xf] }
 0x5bc   :  { %v13384_v3 = vor.u32 %v15917_v53, %v13381_v56  ;;  %v22996_v19 = vld [vmem:[#allocation43_spill] sm:$0xff]  ;;  %v4510_v53 = vsel %vm550_vm0, %v4507_v35, %v22751_v28  ;;  %v13421_v35 = vld [vmem:[%s22707_s1 + $0xc8] sm:$0xf0] }
 0x5bd   :  { %5378 = vmatmul.bf16.gmra.mxu3 %v19492_v15  ;;  %v3291_v50 = vadd.f32 %v22997_v20, %v22996_v19  ;;  %v4025_v30 = vadd.f32 %v22998_v40, %v3852_v10  ;;  %5451 = vmatmul.bf16.gmra.mxu2 %v19497_v22  ;;  %v22999_v19 = vld [vmem:[#allocation27_spill] sm:$0xff]  ;;  %v23000_v10 = vld [vmem:[#allocation69_spill] sm:$0xff] }
 0x5be   :  { %5549 = vmatpush.bf16.msra.mxu1 %v13384_v3  ;;  %v23003_v3 = vld [vmem:[#allocation76_spill] sm:$0xff] }
 0x5bf   :  { %v4234_v20 = vadd.f32 %v22999_v19, %v4025_v30  ;;  %v3449_v40 = vadd.f32 %v23000_v10, %v3291_v50  ;;  %v23004_v50 = vld [vmem:[#allocation22_spill] sm:$0xff] }
 0x5c0   :  { %v4426_v13 = vpop.f32.mrf.mxu0  ;;  %v5339_v56 = vpop.f32.mrf.mxu3  ;;  %v15875_v19 = vld [vmem:[%s22706_s0 + $0x16c] sm:$0xf0] }
 0x5c1   :  { %v19500_v57 = vadd.f32 %v4426_v13, %v4233_v7  ;;  %v13461_v13 = vld [vmem:[%s22707_s1 + $0x118] sm:$0xf0]  ;;  %v5412_v52 = vpop.f32.mrf.mxu2 }
 0x5c2   :  { %v13464_v38 = vor.u32 %v15937_v0, %v13461_v13  ;;  %v3817_v7 = vpop.f32.mrf.mxu1  ;;  %v19527_v15 = vadd.f32 %v5412_v52, %v5339_v56  ;;  %v15927_v0 = vld [vmem:[%s22707_s1 + $0xc4] sm:$0xf]  ;;  %v15895_v56 = vld [vmem:[%s22706_s0 + $0x20c] sm:$0xf0] }
 0x5c3   :  { %22994 = vst [vmem:[#allocation57_spill] sm:$0xff] %v19500_v57  ;;  %13474 = vmatmul.msk.bf16.gmra.mxu0 %vm510_vm1, %v19495_v46  ;;  %v3853_v36 = vadd.f32 %v3817_v7, %v3680_v17  ;;  %v23002_v17 = vld [vmem:[#allocation47_spill] sm:$0xff]  ;;  %v3681_v7 = vadd.f32 %v23004_v50, %v3449_v40  ;;  %v4511_v57 = vrot.slane %v19059_v55, 2  ;;  %v23009_v55 = vld [vmem:[#allocation13_spill] sm:$0xff] }
 0x5c4   :  { %5701 = vmatpush.bf16.msra.mxu2 %v13464_v38  ;;  %v3292_v13 = vadd.f32 %v23003_v3, %v23002_v17  ;;  %v13424_v38 = vor.u32 %v15927_v0, %v13421_v35  ;;  %v23005_v40 = vld [vmem:[#allocation71_spill] sm:$0xff] }
 0x5c5   :  { %4598 = vmatmul.bf16.gmra.mxu1 %v4510_v53  ;;  %v4026_v30 = vadd.f32 %v19099_v27, %v3853_v36  ;;  %v13287_v53 = vld [vmem:[%s22706_s0 + $0x204] sm:$0xf]  ;;  %v15894_v27 = vld [vmem:[%s22706_s0 + $0x208] sm:$0xf]  ;;  %v13289_v36 = vld [vmem:[%s22706_s0 + $0x210] sm:$0xf0] }
 0x5c6   :  { %5625 = vmatpush.bf16.msra.mxu3 %v13424_v38  ;;  %v3450_v0 = vadd.f32 %v23005_v40, %v3292_v13  ;;  %v19560_v17 = vor.u32 %v15895_v56, %v13287_v53  ;;  %v19567_v28 = vor.u32 %v15894_v27, %v13289_v36  ;;  %v15915_v13 = vld [vmem:[%s22707_s1 + $0x64] sm:$0xf] }
 0x5c7   :  { %v4235_v3 = vadd.f32 %v19092_v34, %v4026_v30  ;;  %v23008_v30 = vld [vmem:[#allocation78_spill] sm:$0xff] }
 0x5c8   :  { %v4428_v43 = vpop.f32.mrf.mxu0  ;;  %v5341_v10 = vpop.f32.mrf.mxu3  ;;  %23006 = vst [vmem:[#allocation53_spill] sm:$0xff] %v19560_v17 }
 0x5c9   :  { %v19529_v22 = vadd.f32 %v4428_v43, %v4234_v20  ;;  %v13211_v43 = vld [vmem:[%s22706_s0 + $0x164] sm:$0xf]  ;;  %v5414_v35 = vpop.f32.mrf.mxu2  ;;  %23007 = vst [vmem:[#allocation56_spill] sm:$0xff] %v19567_v28 }
 0x5ca   :  { %v3819_v52 = vpop.f32.mrf.mxu1  ;;  %v19563_v50 = vor.u32 %v15875_v19, %v13211_v43  ;;  %v19565_v38 = vadd.f32 %v5414_v35, %v5341_v10  ;;  %v3293_v43 = vadd.f32 %v23008_v30, %v19083_v24  ;;  %v23010_v19 = vrot.slane %v22993_v37, 2  ;;  %v23011_v24 = vld [vmem:[#allocation55_spill] sm:$0xff]  ;;  %v23015_v37 = vld [vmem:[#allocation33_spill] sm:$0xff] }
 0x5cb   :  { %23001 = vst [vmem:[#allocation51_spill] sm:$0xff] %v19529_v22  ;;  %v3854_v20 = vadd.f32 %v3819_v52, %v3681_v7  ;;  %v13373_v7 = vld [vmem:[%s22707_s1 + $0x68] sm:$0xf0] }
 0x5cc   :  { %v13376_v34 = vor.u32 %v15915_v13, %v13373_v7  ;;  %v4512_v27 = vsel %vm550_vm0, %v23010_v19, %v4511_v57  ;;  %v23013_v13 = vld [vmem:[#allocation36_spill] sm:$0xff]  ;;  %v15878_v19 = vld [vmem:[%s22706_s0 + $0x184] sm:$0xf0] }
 0x5cd   :  { %5383 = vmatmul.bf16.gmra.mxu3 %v19560_v17  ;;  %v4027_v53 = vadd.f32 %v19113_v11, %v3854_v20  ;;  %5456 = vmatmul.bf16.gmra.mxu2 %v19567_v28  ;;  %v23012_v11 = vld [vmem:[#allocation73_spill] sm:$0xff]  ;;  %v23014_v7 = vld [vmem:[#allocation80_spill] sm:$0xff]  ;;  %v4513_v28 = vrot.slane %v19109_v5, 2 }
 0x5ce   :  { %5550 = vmatpush.bf16.msra.mxu1 %v13376_v34  ;;  %v3451_v20 = vadd.f32 %v23012_v11, %v3293_v43  ;;  %v3294_v34 = vadd.f32 %v23014_v7, %v23013_v13  ;;  %v13299_v43 = vld [vmem:[%s22706_s0 + $0x21c] sm:$0xf] }
 0x5cf   :  { %v4236_v40 = vadd.f32 %v23011_v24, %v4027_v53  ;;  %v15898_v53 = vld [vmem:[%s22706_s0 + $0x224] sm:$0xf0]  ;;  %v23019_v5 = vld [vmem:[#allocation28_spill] sm:$0xff] }
 0x5d0   :  { %v4431_v33 = vpop.f32.mrf.mxu0  ;;  %v5344_v36 = vpop.f32.mrf.mxu3  ;;  %v19618_v11 = vor.u32 %v15898_v53, %v13299_v43 }
 0x5d1   :  { %v19569_v22 = vadd.f32 %v4431_v33, %v4235_v3  ;;  %v3682_v33 = vadd.f32 %v23009_v55, %v3450_v0  ;;  %v5417_v10 = vpop.f32.mrf.mxu2  ;;  %v3683_v55 = vadd.f32 %v23015_v37, %v3451_v20 }
 0x5d2   :  { %v3822_v56 = vpop.f32.mrf.mxu1  ;;  %v19591_v35 = vadd.f32 %v5417_v10, %v5344_v36  ;;  %v23016_v10 = vld [vmem:[#allocation75_spill] sm:$0xff]  ;;  %23017 = vst [vmem:[#allocation62_spill] sm:$0xff] %v19618_v11 }
 0x5d3   :  { %13475 = vmatmul.msk.bf16.gmra.mxu0 %vm510_vm1, %v19563_v50  ;;  %v3855_v52 = vadd.f32 %v3822_v56, %v3682_v33  ;;  %v13223_v33 = vld [vmem:[%s22706_s0 + $0x17c] sm:$0xf]  ;;  %v3452_v24 = vadd.f32 %v23016_v10, %v3294_v34  ;;  %v15925_v34 = vld [vmem:[%s22707_s1 + $0xb4] sm:$0xf] }
 0x5d5   :  { %4603 = vmatmul.bf16.gmra.mxu1 %v4512_v27  ;;  %v4028_v30 = vadd.f32 %v19147_v6, %v3855_v52  ;;  %v15897_v6 = vld [vmem:[%s22706_s0 + $0x220] sm:$0xf]  ;;  %v13301_v52 = vld [vmem:[%s22706_s0 + $0x228] sm:$0xf0]  ;;  %v3684_v53 = vadd.f32 %v23019_v5, %v3452_v24  ;;  %v13365_v24 = vld [vmem:[%s22707_s1 + $0x58] sm:$0xf0] }
 0x5d6   :  { %v19625_v7 = vor.u32 %v15897_v6, %v13301_v52  ;;  %v4514_v6 = vsel %vm550_vm0, %v4511_v57, %v4513_v28  ;;  %v13311_v5 = vld [vmem:[%s22706_s0 + $0x234] sm:$0xf] }
 0x5d7   :  { %v4237_v20 = vadd.f32 %v19151_v12, %v4028_v30  ;;  %v23018_v30 = vld [vmem:[#allocation82_spill] sm:$0xff] }
 0x5d8   :  { %v4433_v3 = vpop.f32.mrf.mxu0  ;;  %v5346_v36 = vpop.f32.mrf.mxu3 }
 0x5d9   :  { %v19593_v0 = vadd.f32 %v4433_v3, %v4236_v40  ;;  %v5419_v40 = vpop.f32.mrf.mxu2  ;;  %v19621_v3 = vor.u32 %v15878_v19, %v13223_v33  ;;  %v3295_v33 = vadd.f32 %v23018_v30, %v19135_v60  ;;  %v23020_v60 = vld [vmem:[#allocation77_spill] sm:$0xff]  ;;  %v23023_v30 = vld [vmem:[#allocation30_spill] sm:$0xff] }
 0x5da   :  { %v3824_v56 = vpop.f32.mrf.mxu1  ;;  %v19623_v13 = vadd.f32 %v5419_v40, %v5346_v36 }
 0x5db   :  { %v3856_v27 = vadd.f32 %v3824_v56, %v3683_v55  ;;  %v13413_v55 = vld [vmem:[%s22707_s1 + $0xb8] sm:$0xf0]  ;;  %v3453_v40 = vadd.f32 %v23020_v60, %v3295_v33 }
 0x5dc   :  { %v13416_v12 = vor.u32 %v15925_v34, %v13413_v55  ;;  %v23021_v34 = vld [vmem:[#allocation17_spill] sm:$0xff] }
 0x5dd   :  { %5388 = vmatmul.bf16.gmra.mxu3 %v19618_v11  ;;  %v4029_v43 = vadd.f32 %v19181_v61, %v3856_v27  ;;  %5461 = vmatmul.bf16.gmra.mxu2 %v19625_v7  ;;  %v15913_v27 = vld [vmem:[%s22707_s1 + $0x54] sm:$0xf]  ;;  %v23022_v55 = vld [vmem:[#allocation85_spill] sm:$0xff]  ;;  %v3685_v33 = vadd.f32 %v23023_v30, %v3453_v40  ;;  %v4515_v11 = vrot.slane %v19159_v59, 2 }
 0x5de   :  { %5626 = vmatpush.bf16.msra.mxu3 %v13416_v12  ;;  %v3296_v12 = vadd.f32 %v23022_v55, %v23021_v34 }
 0x5df   :  { %v4238_v10 = vadd.f32 %v19185_v4, %v4029_v43  ;;  %v13235_v43 = vld [vmem:[%s22706_s0 + $0x194] sm:$0xf] }
 0x5e0   :  { %v4436_v37 = vpop.f32.mrf.mxu0  ;;  %v5349_v52 = vpop.f32.mrf.mxu3 }
 0x5e1   :  { %v19627_v17 = vadd.f32 %v4436_v37, %v4237_v20  ;;  %v5422_v36 = vpop.f32.mrf.mxu2  ;;  %v13368_v37 = vor.u32 %v15913_v27, %v13365_v24 }
 0x5e2   :  { %v3827_v56 = vpop.f32.mrf.mxu1  ;;  %v19647_v61 = vadd.f32 %v5422_v36, %v5349_v52 }
 0x5e3   :  { %13476 = vmatmul.msk.bf16.gmra.mxu0 %vm510_vm1, %v19621_v3  ;;  %v3857_v19 = vadd.f32 %v3827_v56, %v3684_v53  ;;  %5551 = vmatpush.bf16.msra.mxu1 %v13368_v37  ;;  %v15901_v53 = vld [vmem:[%s22706_s0 + $0x23c] sm:$0xf0] }
 0x5e4   :  { %v19680_v27 = vor.u32 %v15901_v53, %v13311_v5 }
 0x5e5   :  { %4608 = vmatmul.bf16.gmra.mxu1 %v4514_v6  ;;  %v4030_v4 = vadd.f32 %v19204_v41, %v3857_v19  ;;  %v15881_v6 = vld [vmem:[%s22706_s0 + $0x19c] sm:$0xf0]  ;;  %v15900_v41 = vld [vmem:[%s22706_s0 + $0x238] sm:$0xf]  ;;  %v13313_v19 = vld [vmem:[%s22706_s0 + $0x240] sm:$0xf0] }
 0x5e6   :  { %v19687_v34 = vor.u32 %v15900_v41, %v13313_v19  ;;  %v23027_v19 = vld [vmem:[#allocation81_spill] sm:$0xff] }
 0x5e7   :  { %v4239_v24 = vadd.f32 %v19209_v9, %v4030_v4  ;;  %v23026_v9 = vld [vmem:[#allocation16_spill] sm:$0xff] }
 0x5e8   :  { %v4438_v20 = vpop.f32.mrf.mxu0  ;;  %v5351_v36 = vpop.f32.mrf.mxu3 }
 0x5e9   :  { %v19655_v57 = vadd.f32 %v4438_v20, %v4238_v10  ;;  %v23024_v10 = vld [vmem:[#allocation79_spill] sm:$0xff]  ;;  %v5424_v40 = vpop.f32.mrf.mxu2  ;;  %v19683_v20 = vor.u32 %v15881_v6, %v13235_v43 }
 0x5ea   :  { %v3829_v56 = vpop.f32.mrf.mxu1  ;;  %v3454_v60 = vadd.f32 %v23024_v10, %v3296_v12  ;;  %v19685_v37 = vadd.f32 %v5424_v40, %v5351_v36  ;;  %v23025_v12 = vld [vmem:[#allocation86_spill] sm:$0xff] }
 0x5eb   :  { %v3858_v52 = vadd.f32 %v3829_v56, %v3685_v33  ;;  %v3297_v33 = vadd.f32 %v23025_v12, %v19183_v25  ;;  %v4516_v56 = vsel %vm550_vm0, %v4513_v28, %v4515_v11  ;;  %v23028_v40 = vld [vmem:[#allocation46_spill] sm:$0xff] }
 0x5ec   :  { %v3686_v4 = vadd.f32 %v23026_v9, %v3454_v60 }
 0x5ed   :  { %5393 = vmatmul.bf16.gmra.mxu3 %v19680_v27  ;;  %v4031_v5 = vadd.f32 %v19238_v1, %v3858_v52  ;;  %5466 = vmatmul.bf16.gmra.mxu2 %v19687_v34  ;;  %v3455_v25 = vadd.f32 %v23027_v19, %v3297_v33  ;;  %v15911_v1 = vld [vmem:[%s22707_s1 + $0x44] sm:$0xf]  ;;  %v13357_v52 = vld [vmem:[%s22707_s1 + $0x48] sm:$0xf0]  ;;  %v23031_v19 = vld [vmem:[#allocation84_spill] sm:$0xff] }
 0x5ee   :  { %v13360_v60 = vor.u32 %v15911_v1, %v13357_v52 }
 0x5ef   :  { %v4240_v41 = vadd.f32 %v19244_v62, %v4031_v5  ;;  %v13175_v62 = vld [vmem:[%s22706_s0 + $0x24c] sm:$0x33]  ;;  %v23030_v5 = vld [vmem:[#allocation35_spill] sm:$0xff] }
 0x5f0   :  { %v4441_v55 = vpop.f32.mrf.mxu0  ;;  %v5354_v6 = vpop.f32.mrf.mxu3  ;;  %5552 = vmatpush.bf16.msra.mxu1 %v13360_v60  ;;  %v5029_v12 = vunpack.c.l.b16 %v13175_v62  ;;  %v3687_v9 = vadd.f32 %v23030_v5, %v3455_v25  ;;  %v13397_v5 = vld [vmem:[%s22707_s1 + $0x98] sm:$0xf0] }
 0x5f1   :  { %v19689_v30 = vadd.f32 %v4441_v55, %v4239_v24  ;;  %v5427_v59 = vpop.f32.mrf.mxu2  ;;  %v23029_v24 = vld [vmem:[#allocation87_spill] sm:$0xff] }
 0x5f2   :  { %v3832_v43 = vpop.f32.mrf.mxu1  ;;  %v19703_v36 = vadd.f32 %v5427_v59, %v5354_v6  ;;  %v3298_v55 = vadd.f32 %v23029_v24, %v23028_v40  ;;  %v15884_v6 = vld [vmem:[%s22706_s0 + $0x1b4] sm:$0xf0]  ;;  %v13405_v40 = vld [vmem:[%s22707_s1 + $0xa8] sm:$0xf0] }
 0x5f3   :  { %13477 = vmatmul.msk.bf16.gmra.mxu0 %vm510_vm1, %v19683_v20  ;;  %v3859_v53 = vadd.f32 %v3832_v43, %v3686_v4  ;;  %v5030_v4 = vunpack.c.h.b16 %v13175_v62  ;;  %v15923_v62 = vld [vmem:[%s22707_s1 + $0xa4] sm:$0xf] }
 0x5f4   :  { %v3456_v1 = vadd.f32 %v23031_v19, %v3298_v55  ;;  %v13408_v55 = vor.u32 %v15923_v62, %v13405_v40 }
 0x5f5   :  { %4613 = vmatmul.bf16.gmra.mxu1 %v4516_v56  ;;  %v4032_v33 = vadd.f32 %v19283_v23, %v3859_v53  ;;  %v13247_v56 = vld [vmem:[%s22706_s0 + $0x1ac] sm:$0xf]  ;;  %v19734_v60 = vpack.c.b16 %v5030_v4, %v5030_v4  ;;  %v23032_v4 = vld [vmem:[#allocation19_spill] sm:$0xff] }
 0x5f6   :  { %v19730_v53 = vor.u32 %v15884_v6, %v13247_v56  ;;  %5627 = vmatpush.bf16.msra.mxu3 %v13408_v55 }
 0x5f7   :  { %v4241_v23 = vadd.f32 %v19296_v39, %v4032_v33  ;;  %v4517_v39 = vrot.slane %v19211_v51, 2  ;;  %v15921_v33 = vld [vmem:[%s22707_s1 + $0x94] sm:$0xf] }
 0x5f8   :  { %v4443_v10 = vpop.f32.mrf.mxu0  ;;  %v13400_v56 = vor.u32 %v15921_v33, %v13397_v5  ;;  %v15909_v33 = vld [vmem:[%s22707_s1 + $0x34] sm:$0xf]  ;;  %v13349_v5 = vld [vmem:[%s22707_s1 + $0x38] sm:$0xf0] }
 0x5f9   :  { %v19711_v28 = vadd.f32 %v4443_v10, %v4240_v41  ;;  %v5356_v41 = vpop.f32.mrf.mxu3  ;;  %v5429_v52 = vpop.f32.mrf.mxu2  ;;  %v19727_v10 = vpack.c.b16 %v5029_v12, %v5029_v12 }
 0x5fa   :  { %v3834_v43 = vpop.f32.mrf.mxu1  ;;  %v19732_v25 = vadd.f32 %v5429_v52, %v5356_v41  ;;  %v4518_v41 = vsel %vm550_vm0, %v4515_v11, %v4517_v39  ;;  %5628 = vmatpush.bf16.msra.mxu3 %v13400_v56  ;;  %v15887_v56 = vld [vmem:[%s22706_s0 + $0x1cc] sm:$0xf0] }
 0x5fb   :  { %v3860_v59 = vadd.f32 %v3834_v43, %v3687_v9  ;;  %v3688_v43 = vadd.f32 %v23032_v4, %v3456_v1  ;;  %v15935_v1 = vld [vmem:[%s22707_s1 + $0x104] sm:$0xf] }
 0x5fd   :  { %5398 = vmatmul.bf16.gmra.mxu3 %v19727_v10  ;;  %v4033_v9 = vadd.f32 %v19343_v42, %v3860_v59  ;;  %5471 = vmatmul.bf16.gmra.mxu2 %v19734_v60  ;;  %v15919_v42 = vld [vmem:[%s22707_s1 + $0x84] sm:$0xf]  ;;  %v13389_v59 = vld [vmem:[%s22707_s1 + $0x88] sm:$0xf0] }
 0x5fe   :  { %v13392_v40 = vor.u32 %v15919_v42, %v13389_v59  ;;  %v13341_v59 = vld [vmem:[%s22707_s1 + $0x28] sm:$0xf0] }
 0x600   :  { %v4446_v24 = vpop.f32.mrf.mxu0  ;;  %5629 = vmatpush.bf16.msra.mxu3 %v13392_v40 }
 0x601   :  { %v19742_v12 = vadd.f32 %v4446_v24, %v4241_v23  ;;  %v5359_v19 = vpop.f32.mrf.mxu3  ;;  %v5432_v52 = vpop.f32.mrf.mxu2  ;;  %v4242_v23 = vadd.f32 %v19348_v58, %v4033_v9  ;;  %v13453_v58 = vld [vmem:[%s22707_s1 + $0x108] sm:$0xf0]  ;;  %v13352_v9 = vor.u32 %v15909_v33, %v13349_v5 }
 0x602   :  { %v3837_v51 = vpop.f32.mrf.mxu1  ;;  %v19759_v62 = vadd.f32 %v5432_v52, %v5359_v19  ;;  %v13456_v55 = vor.u32 %v15935_v1, %v13453_v58  ;;  %v13333_v58 = vld [vmem:[%s22707_s1 + $0x18] sm:$0xf0] }
 0x603   :  { %13478 = vmatmul.msk.bf16.gmra.mxu0 %vm510_vm1, %v19730_v53  ;;  %v3861_v6 = vadd.f32 %v3837_v51, %v3688_v43  ;;  %v13259_v51 = vld [vmem:[%s22706_s0 + $0x1c4] sm:$0xf]  ;;  %5553 = vmatpush.bf16.msra.mxu1 %v13352_v9 }
 0x604   :  { %5702 = vmatpush.bf16.msra.mxu2 %v13456_v55  ;;  %v19790_v42 = vor.u32 %v15887_v56, %v13259_v51  ;;  %v23033_v55 = vld [vmem:[#allocation25_spill] sm:$0xff] }
 0x605   :  { %4618 = vmatmul.bf16.gmra.mxu1 %v4518_v41  ;;  %v4034_v4 = vadd.f32 %v19378_v2, %v3861_v6  ;;  %v15907_v6 = vld [vmem:[%s22707_s1 + $0x24] sm:$0xf] }
 0x606   :  { %v4480_v51 = vld [vmem:[#allocation2 + $0x64] sm:$0x3] }
 0x608   :  { %v4448_v11 = vpop.f32.mrf.mxu0 }
 0x609   :  { %v19773_v24 = vadd.f32 %v4448_v11, %v4242_v23  ;;  %v5361_v19 = vpop.f32.mrf.mxu3  ;;  %v5434_v52 = vpop.f32.mrf.mxu2  ;;  %v4243_v23 = vadd.f32 %v19386_v47, %v4034_v4  ;;  %v13344_v11 = vor.u32 %v15907_v6, %v13341_v59  ;;  %v15905_v47 = vld [vmem:[%s22707_s1 + $0x14] sm:$0xf]  ;;  %v13271_v59 = vld [vmem:[%s22706_s0 + $0x1dc] sm:$0xf] }
 0x60a   :  { %v3839_v43 = vpop.f32.mrf.mxu1  ;;  %v19792_v2 = vadd.f32 %v5434_v52, %v5361_v19 }
 0x60b   :  { %v3862_v41 = vadd.f32 %v3839_v43, %v19263_v29  ;;  %v4519_v29 = vrot.slane %v19279_v49, 2  ;;  %5554 = vmatpush.bf16.msra.mxu1 %v13344_v11  ;;  %v13336_v49 = vor.u32 %v15905_v47, %v13333_v58 }
 0x60d   :  { %5630 = vmatmul.bf16.vlgmr.msra.gmra.mxu3 %v23033_v55  ;;  %v4035_v33 = vadd.f32 %v19403_v45, %v3862_v41  ;;  %13486 = vmatmul.msk.bf16.vlgmr.msra.gmra.mxu2 %vm510_vm1, %v19434_v26  ;;  %v4520_v4 = vsel %vm550_vm0, %v4517_v39, %v4519_v29  ;;  %v15903_v45 = vld [vmem:[%s22707_s1 + $0x4] sm:$0xf]  ;;  %v13325_v26 = vld [vmem:[%s22707_s1 + $0x8] sm:$0xf0] }
 0x60e   :  { %v13328_v41 = vor.u32 %v15903_v45, %v13325_v26 }
 0x60f   :  { %v4244_v19 = vadd.f32 %v19407_v8, %v4035_v33  ;;  %5555 = vmatpush.bf16.msra.mxu1 %v13336_v49 }
 0x610   :  { %v4451_v1 = vpop.f32.mrf.mxu0 }
 0x611   :  { %v19800_v40 = vadd.f32 %v4451_v1, %v4243_v23  ;;  %v5364_v43 = vpop.f32.mrf.mxu3  ;;  %v5437_v56 = vpop.f32.mrf.mxu2  ;;  %v4501_v23 = vunpack.c.l.b16 %v4480_v51  ;;  %v15890_v1 = vld [vmem:[%s22706_s0 + $0x1e4] sm:$0xf0] }
 0x612   :  { %v3842_v5 = vpop.f32.mrf.mxu1  ;;  %v19818_v52 = vadd.f32 %v5437_v56, %v5364_v43  ;;  %v19837_v49 = vor.u32 %v15890_v1, %v13271_v59  ;;  %v23034_v43 = vld [vmem:[#allocation14_spill] sm:$0xff] }
 0x613   :  { %13479 = vmatmul.msk.bf16.gmra.mxu0 %vm510_vm1, %v19790_v42  ;;  %v3863_v9 = vadd.f32 %v3842_v5, %v19324_v14  ;;  %5556 = vmatpush.bf16.msra.mxu1 %v13328_v41  ;;  %v4503_v47 = vpack.c.b16 %v4501_v23, %v4501_v23 }
 0x615   :  { %4623 = vmatmul.bf16.gmra.mxu1 %v4520_v4  ;;  %v4036_v6 = vadd.f32 %v19451_v44, %v3863_v9  ;;  %v4521_v4 = vrot.slane %v4503_v47, 2  ;;  %v23035_v47 = vld [vmem:[#allocation58_spill] sm:$0xff] }
 0x617   :  { %v4245_v33 = vadd.f32 %v19458_v48, %v4036_v6  ;;  %v4522_v56 = vsel %vm550_vm0, %v4519_v29, %v4521_v4 }
 0x618   :  { %v4453_v14 = vpop.f32.mrf.mxu0 }
 0x619   :  { %v19826_v39 = vadd.f32 %v4453_v14, %v4244_v19  ;;  %v5366_v58 = vpop.f32.mrf.mxu3  ;;  %v5439_v55 = vpop.f32.mrf.mxu2 }
 0x61a   :  { %v3844_v8 = vpop.f32.mrf.mxu1  ;;  %v19839_v44 = vadd.f32 %v5439_v55, %v5366_v58 }
 0x61b   :  { %v3864_v11 = vadd.f32 %v3844_v8, %v19358_v31 }
 0x61d   :  { %5635 = vmatmul.bf16.gmra.mxu3 %v23034_v43  ;;  %v4037_v51 = vadd.f32 %v19487_v18, %v3864_v11  ;;  %13487 = vmatmul.msk.bf16.gmra.mxu2 %vm510_vm1, %v19495_v46  ;;  %v13283_v46 = vld [vmem:[%s22706_s0 + $0x1f4] sm:$0xf] }
 0x61f   :  { %v4246_v26 = vadd.f32 %v19489_v16, %v4037_v51 }
 0x620   :  { %v4456_v5 = vpop.f32.mrf.mxu0 }
 0x621   :  { %v19841_v9 = vadd.f32 %v4456_v5, %v4245_v33  ;;  %v5369_v19 = vpop.f32.mrf.mxu3  ;;  %v5442_v45 = vpop.f32.mrf.mxu2  ;;  %v23036_v33 = vld [vmem:[#allocation12_spill] sm:$0xff] }
 0x622   :  { %v4589_v31 = vpop.f32.mrf.mxu1  ;;  %v19852_v14 = vadd.f32 %v5442_v45, %v5369_v19 }
 0x623   :  { %13480 = vmatmul.msk.bf16.gmra.mxu0 %vm510_vm1, %v19837_v49  ;;  %v4634_v48 = vadd.f32 %v4589_v31, %v19388_v54  ;;  %v15893_v54 = vld [vmem:[%s22706_s0 + $0x1fc] sm:$0xf0] }
 0x624   :  { %v19863_v16 = vor.u32 %v15893_v54, %v13283_v46  ;;  %v23037_v54 = vld [vmem:[#allocation42_spill] sm:$0xff] }
 0x625   :  { %4628 = vmatmul.bf16.gmra.mxu1 %v4522_v56  ;;  %4652 = vst [vmem:[#allocation3] sm:$0xff] %v4634_v48  ;;  %v15896_v56 = vld [vmem:[%s22706_s0 + $0x214] sm:$0xf0] }
 0x628   :  { %v4458_v18 = vpop.f32.mrf.mxu0 }
 0x629   :  { %v19854_v41 = vadd.f32 %v4458_v18, %v4246_v26  ;;  %v5371_v6 = vpop.f32.mrf.mxu3  ;;  %v5444_v8 = vpop.f32.mrf.mxu2 }
 0x62a   :  { %v4591_v23 = vpop.f32.mrf.mxu1  ;;  %v19865_v59 = vadd.f32 %v5444_v8, %v5371_v6 }
 0x62b   :  { %v4635_v29 = vadd.f32 %v4591_v23, %v19405_v32 }
 0x62d   :  { %4653 = vst [vmem:[#allocation3 + $0x8] sm:$0xff] %v4635_v29  ;;  %5640 = vmatmul.bf16.gmra.mxu3 %v23035_v47  ;;  %13488 = vmatmul.msk.bf16.gmra.mxu2 %vm510_vm1, %v19563_v50  ;;  %v23038_v29 = vld [vmem:[#allocation57_spill] sm:$0xff] }
 0x630   :  { %v5485_v1 = vpop.f32.mrf.mxu0 }
 0x631   :  { %v19868_v11 = vadd.f32 %v5485_v1, %v19527_v15  ;;  %v5374_v55 = vpop.f32.mrf.mxu3  ;;  %v5447_v5 = vpop.f32.mrf.mxu2  ;;  %v23039_v1 = vld [vmem:[#allocation15_spill] sm:$0xff] }
 0x632   :  { %v4594_v32 = vpop.f32.mrf.mxu1  ;;  %v19879_v43 = vadd.f32 %v5447_v5, %v5374_v55 }
 0x633   :  { %13481 = vmatmul.msk.bf16.gmra.mxu0 %vm510_vm1, %v19863_v16  ;;  %5793 = vrot.lane.b32.xlu0 %v19868_v11, %s16765_s28  ;;  %v4636_v58 = vadd.f32 %v4594_v32, %v19445_v63  ;;  %v13295_v63 = vld [vmem:[%s22706_s0 + $0x20c] sm:$0xf] }
 0x634   :  { %v4670_v15 = vld [vmem:[#allocation3] ss:$2 sm:$0xff]  ;;  %v4688_v4 = vld [vmem:[#allocation3 + $0x1] ss:$2 sm:$0xff] }
 0x635   :  { %5557 = vmatmul.bf16.vlgmr.msra.gmra.mxu1 %v23036_v33  ;;  %4654 = vst [vmem:[#allocation3 + $0x10] sm:$0xff] %v4636_v58  ;;  %v4705_v51 = vmax.f32 %v4670_v15, %v4688_v4  ;;  %v13307_v15 = vld [vmem:[%s22706_s0 + $0x224] sm:$0xf]  ;;  %v15899_v4 = vld [vmem:[%s22706_s0 + $0x22c] sm:$0xf0] }
 0x637   :  { %4714 = vst [vmem:[#allocation4] sm:$0xff] %v4705_v51  ;;  %v23040_v51 = vld [vmem:[#allocation51_spill] sm:$0xff] }
 0x638   :  { %v5487_v31 = vpop.f32.mrf.mxu0 }
 0x639   :  { %v19882_v48 = vadd.f32 %v5487_v31, %v19565_v38  ;;  %v5376_v45 = vpop.f32.mrf.mxu3  ;;  %v5449_v26 = vpop.f32.mrf.mxu2  ;;  %v19893_v38 = vor.u32 %v15896_v56, %v13295_v63 }
 0x63a   :  { %v4596_v50 = vpop.f32.mrf.mxu1  ;;  %v19895_v18 = vadd.f32 %v5449_v26, %v5376_v45 }
 0x63b   :  { %5795 = vrot.lane.b32.xlu1 %v19882_v48, %s16765_s28  ;;  %v4637_v19 = vadd.f32 %v4596_v50, %v19463_v21 }
 0x63d   :  { %4655 = vst [vmem:[#allocation3 + $0x18] sm:$0xff] %v4637_v19  ;;  %5645 = vmatmul.bf16.gmra.mxu3 %v23037_v54  ;;  %13489 = vmatmul.msk.bf16.gmra.mxu2 %vm510_vm1, %v19621_v3  ;;  %v19930_v19 = vld [vmem:[%s22710_s4] ss:$0 sm:$0xff] }
 0x63e   :  { %v4723_v26 = vld [vmem:[#allocation4] sm:$0x1f] }
 0x640   :  { %v5490_v23 = vpop.f32.mrf.mxu0 }
 0x641   :  { %v19898_v46 = vadd.f32 %v5490_v23, %v19591_v35  ;;  %v5379_v8 = vpop.f32.mrf.mxu3  ;;  %v5452_v47 = vpop.f32.mrf.mxu2 }
 0x642   :  { %v4599_v21 = vpop.f32.mrf.mxu1  ;;  %v19909_v58 = vadd.f32 %v5452_v47, %v5379_v8 }
 0x643   :  { %13482 = vmatmul.msk.bf16.gmra.mxu0 %vm510_vm1, %v19893_v38  ;;  %5797 = vrot.lane.b32.xlu1 %v19898_v46, %s16765_s28  ;;  %v4638_v6 = vadd.f32 %v4599_v21, %v23038_v29  ;;  %v23041_v29 = vld [vmem:[#allocation38_spill] sm:$0xff] }
 0x644   :  { %v4672_v35 = vld [vmem:[#allocation3 + $0x10] ss:$2 sm:$0xff]  ;;  %v4690_v32 = vld [vmem:[#allocation3 + $0x11] ss:$2 sm:$0xff] }
 0x645   :  { %5562 = vmatmul.bf16.gmra.mxu1 %v23039_v1  ;;  %4656 = vst [vmem:[#allocation3 + $0x20] sm:$0xff] %v4638_v6  ;;  %v4706_v55 = vmax.f32 %v4672_v35, %v4690_v32  ;;  %v23045_v32 = vld [vmem:[#allocation39_spill] sm:$0xff] }
 0x647   :  { %4715 = vst [vmem:[#allocation4 + $0x8] sm:$0xff] %v4706_v55 }
 0x648   :  { %v5492_v33 = vpop.f32.mrf.mxu0 }
 0x649   :  { %v19912_v5 = vadd.f32 %v5492_v33, %v19623_v13  ;;  %v5381_v50 = vpop.f32.mrf.mxu3  ;;  %v5454_v63 = vpop.f32.mrf.mxu2  ;;  %v19923_v13 = vor.u32 %v15899_v4, %v13307_v15  ;;  %v4735_v15 = vld [vmem:[#allocation5] sm:$0x7] }
 0x64a   :  { %v4601_v3 = vpop.f32.mrf.mxu1  ;;  %v19925_v56 = vadd.f32 %v5454_v63, %v5381_v50  ;;  %v13319_v63 = vld [vmem:[%s22706_s0 + $0x23c] sm:$0xf] }
 0x64b   :  { %5799 = vrot.lane.b32.xlu2 %v19912_v5, %s16765_s28  ;;  %v4639_v31 = vadd.f32 %v4601_v3, %v23040_v51 }
 0x64d   :  { %4657 = vst [vmem:[#allocation3 + $0x28] sm:$0xff] %v4639_v31  ;;  %5650 = vmatmul.bf16.gmra.mxu3 %v23041_v29  ;;  %13490 = vmatmul.msk.bf16.gmra.mxu2 %vm510_vm1, %v19683_v20 }
 0x64e   :  { %v4724_v23 = vld [vmem:[#allocation4 + $0x7] sm:$0x1f] }
 0x64f   :  { %v4725_v21 = vmax.f32 %v4723_v26, %v4724_v23 }
 0x650   :  { %v5495_v45 = vpop.f32.mrf.mxu0 }
 0x651   :  { %v19933_v54 = vadd.f32 %v5495_v45, %v19647_v61  ;;  %v4729_v6 = vadd.f32 %v19930_v19, %v4725_v21  ;;  %v5384_v47 = vpop.f32.mrf.mxu3  ;;  %v23042_v61 = vmov 0  ;;  %v5457_v55 = vpop.f32.mrf.mxu2  ;;  %v15902_v45 = vld [vmem:[%s22706_s0 + $0x244] sm:$0xf0] }
 0x652   :  { %v4604_v8 = vpop.f32.mrf.mxu1  ;;  %v23043_v61 = vsel %vm19942_vm13, 4294967295, %v23042_v61  ;;  %v19947_v4 = vadd.f32 %v5457_v55, %v5384_v47  ;;  %v19960_v29 = vor.u32 %v15902_v45, %v13319_v63  ;;  %v23046_v47 = vld [vmem:[#allocation41_spill] sm:$0xff]  ;;  %v23047_v55 = vld [vmem:[#allocation32_spill] sm:$0xff] }
 0x653   :  { %13483 = vmatmul.msk.bf16.gmra.mxu0 %vm510_vm1, %v19923_v13  ;;  %v4640_v1 = vadd.f32 %v4604_v8, %v19569_v22  ;;  %v4730_v35 = vmax.f32 %v4729_v6, 0.0  ;;  %23044 = vst [vmem:[#allocation83_spill] sm:$0xff] %v23043_v61 }
 0x654   :  { %v4674_v33 = vld [vmem:[#allocation3 + $0x20] ss:$2 sm:$0xff]  ;;  %v4692_v3 = vld [vmem:[#allocation3 + $0x21] ss:$2 sm:$0xff] }
 0x655   :  { %5567 = vmatmul.bf16.gmra.mxu1 %v23045_v32  ;;  %4658 = vst [vmem:[#allocation3 + $0x30] sm:$0xff] %v4640_v1  ;;  %v4731_v51 = vpack.c.bf16 %v4730_v35, %v4730_v35  ;;  %v4707_v31 = vmax.f32 %v4674_v33, %v4692_v3 }
 0x657   :  { %4716 = vst [vmem:[#allocation4 + $0x10] sm:$0xff] %v4707_v31  ;;  %v4736_v22 = vsel %vm19942_vm13, %v4731_v51, %v4735_v15 }
 0x658   :  { %v19949_v20 = vpop.f32.mrf.mxu0  ;;  %4737 = vst [vmem:[#allocation5] sm:$0x7] %v4736_v22  ;;  %v13176_v22 = vld [vmem:[%s22706_s0 + $0x254] sm:$0x3]  ;;  %s16767_s0 = smov [#allocation6]  }
 0x659   :  { %v5386_v23 = vpop.f32.mrf.mxu3  ;;  %v5459_v21 = vpop.f32.mrf.mxu2  ;;  %s11922_s22 = sshll.u32 %s16767_s0, 4  ;;  %s11923_s22 = int_to_ptr.vmem [resolvable:$true] %s11922_s22 }
 0x65a   :  { %v4606_v50 = vpop.f32.mrf.mxu1  ;;  %v19962_v6 = vadd.f32 %v5459_v21, %v5386_v23 }
 0x65b   :  { %v4641_v26 = vadd.f32 %v4606_v50, %v19593_v0 }
 0x65d   :  { %4659 = vst [vmem:[#allocation3 + $0x38] sm:$0xff] %v4641_v26  ;;  %5655 = vmatmul.bf16.gmra.mxu3 %v23046_v47  ;;  %13491 = vmatmul.msk.bf16.gmra.mxu2 %vm510_vm1, %v19730_v53  ;;  %v5031_v53 = vunpack.c.l.b16 %v13176_v22 }
 0x65f   :  { %v19982_v26 = vpack.c.b16 %v5031_v53, %v5031_v53 }
 0x660   :  { %v5500_v8 = vpop.f32.mrf.mxu0 }
 0x661   :  { %v19965_v1 = vadd.f32 %v5500_v8, %v19703_v36  ;;  %v5389_v32 = vpop.f32.mrf.mxu3  ;;  %v5462_v33 = vpop.f32.mrf.mxu2  ;;  %v4738_v8 = vld [vmem:[#allocation4 + $0xe] sm:$0x1f] }
 0x662   :  { %v4609_v35 = vpop.f32.mrf.mxu1  ;;  %v19974_v36 = vadd.f32 %v5462_v33, %v5389_v32  ;;  %v23048_v32 = vld [vmem:[#allocation44_spill] sm:$0xff] }
 0x663   :  { %13484 = vmatmul.msk.bf16.gmra.mxu0 %vm510_vm1, %v19960_v29  ;;  %v4642_v0 = vadd.f32 %v4609_v35, %v19627_v17 }
 0x664   :  { %v4676_v3 = vld [vmem:[#allocation3 + $0x30] ss:$2 sm:$0xff]  ;;  %v4694_v15 = vld [vmem:[#allocation3 + $0x31] ss:$2 sm:$0xff] }
 0x665   :  { %5572 = vmatmul.bf16.gmra.mxu1 %v23047_v55  ;;  %4660 = vst [vmem:[#allocation3 + $0x40] sm:$0xff] %v4642_v0  ;;  %v4708_v51 = vmax.f32 %v4676_v3, %v4694_v15 }
 0x667   :  { %4717 = vst [vmem:[#allocation4 + $0x18] sm:$0xff] %v4708_v51  ;;  %v23049_v51 = vld [vmem:[#allocation18_spill] sm:$0xff] }
 0x668   :  { %v19976_v31 = vpop.f32.mrf.mxu0 }
 0x669   :  { %v5391_v63 = vpop.f32.mrf.mxu3  ;;  %v5464_v45 = vpop.f32.mrf.mxu2 }
 0x66a   :  { %v4611_v50 = vpop.f32.mrf.mxu1  ;;  %v19984_v23 = vadd.f32 %v5464_v45, %v5391_v63 }
 0x66b   :  { %v4643_v17 = vadd.f32 %v4611_v50, %v19655_v57 }
 0x66d   :  { %4661 = vst [vmem:[#allocation3 + $0x48] sm:$0xff] %v4643_v17  ;;  %5660 = vmatmul.bf16.gmra.mxu3 %v23048_v32  ;;  %13492 = vmatmul.msk.bf16.gmra.mxu2 %vm510_vm1, %v19790_v42 }
 0x66e   :  { %v4739_v47 = vld [vmem:[#allocation4 + $0x15] sm:$0x1f] }
 0x66f   :  { %v4740_v0 = vmax.f32 %v4738_v8, %v4739_v47 }
 0x670   :  { %v5505_v21 = vpop.f32.mrf.mxu0 }
 0x671   :  { %v19987_v35 = vadd.f32 %v5505_v21, %v19759_v62  ;;  %v4741_v57 = vadd.f32 %v19930_v19, %v4740_v0  ;;  %v5394_v3 = vpop.f32.mrf.mxu3  ;;  %v5467_v62 = vpop.f32.mrf.mxu2  ;;  %v23050_v0 = vmov 0 }
 0x672   :  { %v4614_v55 = vpop.f32.mrf.mxu1  ;;  %v19997_v50 = vadd.f32 %v5467_v62, %v5394_v3  ;;  %v23051_v0 = vsel %vm20001_vm4, 4294967295, %v23050_v0  ;;  %v4758_v3 = vld [vmem:[#allocation5] sm:$0xc] }
 0x673   :  { %13485 = vmatmul.msk.bf16.gmra.mxu0 %vm510_vm1, %v19982_v26  ;;  %v4644_v33 = vadd.f32 %v4614_v55, %v19689_v30  ;;  %v4742_v15 = vmax.f32 %v4741_v57, 0.0  ;;  %23052 = vst [vmem:[#allocation59_spill] sm:$0xff] %v23051_v0 }
 0x674   :  { %v4678_v22 = vld [vmem:[#allocation3 + $0x40] ss:$2 sm:$0xff]  ;;  %v4696_v53 = vld [vmem:[#allocation3 + $0x41] ss:$2 sm:$0xff] }
 0x675   :  { %5577 = vmatmul.bf16.gmra.mxu1 %v23049_v51  ;;  %4662 = vst [vmem:[#allocation3 + $0x50] sm:$0xff] %v4644_v33  ;;  %v4743_v17 = vpack.c.bf16 %v4742_v15, %v4742_v15  ;;  %v4709_v63 = vmax.f32 %v4678_v22, %v4696_v53 }
 0x677   :  { %v4745_v21 = vshrl.u32 %v4743_v17, 16  ;;  %v4748_v8 = vshll.u32 %v4743_v17, 16  ;;  %4718 = vst [vmem:[#allocation4 + $0x20] sm:$0xff] %v4709_v63 }
 0x678   :  { %v19999_v45 = vpop.f32.mrf.mxu0 }
 0x679   :  { %v4747_v30 = vrot.slane %v4745_v21, 5  ;;  %v4750_v42 = vrot.slane %v4748_v8, 6  ;;  %v5396_v57 = vpop.f32.mrf.mxu3  ;;  %v5469_v33 = vpop.f32.mrf.mxu2 }
 0x67a   :  { %v4616_v47 = vpop.f32.mrf.mxu1  ;;  %v20006_v15 = vadd.f32 %v5469_v33, %v5396_v57  ;;  %v23054_v57 = vld [vmem:[#allocation49_spill] sm:$0xff] }
 0x67b   :  { %v4645_v32 = vadd.f32 %v4616_v47, %v19711_v28  ;;  %v4751_v55 = vor.u32 %v4750_v42, %v4747_v30  ;;  %v23053_v28 = vld [vmem:[#allocation45_spill] sm:$0xff] }
 0x67d   :  { %4663 = vst [vmem:[#allocation3 + $0x58] sm:$0xff] %v4645_v32  ;;  %v4759_v51 = vsel %vm20001_vm4, %v4751_v55, %v4758_v3  ;;  %v4752_v62 = vrot.slane %v4751_v55, 4  ;;  %5665 = vmatmul.bf16.gmra.mxu3 %v23053_v28  ;;  %13493 = vmatmul.msk.bf16.gmra.mxu2 %vm510_vm1, %v19837_v49  ;;  %v23055_v49 = vmov 0 }
 0x67e   :  { %v4762_v53 = vld [vmem:[#allocation4 + $0x1c] sm:$0x1f]  ;;  %v4763_v17 = vld [vmem:[#allocation4 + $0x23] sm:$0x1f]  ;;  %4760 = vst [vmem:[#allocation5] sm:$0xc] %v4759_v51 }
 0x67f   :  { %v4764_v21 = vmax.f32 %v4762_v53, %v4763_v17  ;;  %4761 = vst [vmem:[#allocation5 + $0x4] sm:$0x1] %v4752_v62  ;;  %v23056_v49 = vsel %vm20024_vm12, 4294967295, %v23055_v49 }
 0x680   :  { %v5510_v22 = vpop.f32.mrf.mxu0  ;;  %23057 = vst [vmem:[#allocation64_spill] sm:$0xff] %v23056_v49 }
 0x681   :  { %v20011_v63 = vadd.f32 %v5510_v22, %v19818_v52  ;;  %v4765_v8 = vadd.f32 %v19930_v19, %v4764_v21  ;;  %v5399_v47 = vpop.f32.mrf.mxu3  ;;  %v5472_v55 = vpop.f32.mrf.mxu2 }
 0x682   :  { %v4619_v30 = vpop.f32.mrf.mxu1  ;;  %v20019_v3 = vadd.f32 %v5472_v55, %v5399_v47 }
 0x683   :  { %v4646_v42 = vadd.f32 %v4619_v30, %v19742_v12  ;;  %v4766_v32 = vmax.f32 %v4765_v8, 0.0  ;;  %v4773_v12 = vld [vmem:[#allocation5 + $0x4] sm:$0xe] }
 0x684   :  { %v4680_v52 = vld [vmem:[#allocation3 + $0x50] ss:$2 sm:$0xff]  ;;  %v4698_v33 = vld [vmem:[#allocation3 + $0x51] ss:$2 sm:$0xff] }
 0x685   :  { %5582 = vmatmul.bf16.gmra.mxu1 %v23054_v57  ;;  %4664 = vst [vmem:[#allocation3 + $0x60] sm:$0xff] %v4646_v42  ;;  %v4767_v51 = vpack.c.bf16 %v4766_v32, %v4766_v32  ;;  %v4710_v62 = vmax.f32 %v4680_v52, %v4698_v33  ;;  %v23058_v32 = vld [vmem:[#allocation48_spill] sm:$0xff] }
 0x686   :  { %v23059_v52 = vld [vmem:[#allocation52_spill] sm:$0xff] }
 0x687   :  { %v4769_v53 = vrot.slane %v4767_v51, 7  ;;  %4719 = vst [vmem:[#allocation4 + $0x28] sm:$0xff] %v4710_v62 }
 0x688   :  { %v20021_v22 = vpop.f32.mrf.mxu0 }
 0x689   :  { %v4774_v17 = vsel %vm20024_vm12, %v4769_v53, %v4773_v12  ;;  %v5401_v8 = vpop.f32.mrf.mxu3  ;;  %v5474_v30 = vpop.f32.mrf.mxu2 }
 0x68a   :  { %v4621_v21 = vpop.f32.mrf.mxu1  ;;  %4775 = vst [vmem:[#allocation5 + $0x4] sm:$0xe] %v4774_v17  ;;  %v23060_v30 = vld [vmem:[#allocation56_spill] sm:$0xff] }
 0x68b   :  { %v4647_v28 = vadd.f32 %v4621_v21, %v19773_v24 }
 0x68d   :  { %4665 = vst [vmem:[#allocation3 + $0x68] sm:$0xff] %v4647_v28  ;;  %5670 = vmatmul.bf16.gmra.mxu3 %v23058_v32  ;;  %13494 = vmatmul.msk.bf16.gmra.mxu2 %vm510_vm1, %v19863_v16 }
 0x68e   :  { %v4776_v28 = vld [vmem:[#allocation4 + $0x2a] sm:$0x1f] }
 0x690   :  { %v5515_v42 = vpop.f32.mrf.mxu0 }
 0x691   :  { %v20032_v47 = vadd.f32 %v5515_v42, %v19852_v14  ;;  %v5631_v53 = vpop.f32.mrf.mxu3  ;;  %v5704_v21 = vpop.f32.mrf.mxu2 }
 0x692   :  { %v4624_v57 = vpop.f32.mrf.mxu1 }
 0x693   :  { %v4648_v55 = vadd.f32 %v4624_v57, %v19800_v40 }
 0x694   :  { %v4682_v33 = vld [vmem:[#allocation3 + $0x60] ss:$2 sm:$0xff]  ;;  %v4700_v51 = vld [vmem:[#allocation3 + $0x61] ss:$2 sm:$0xff] }
 0x695   :  { %5587 = vmatmul.bf16.gmra.mxu1 %v23059_v52  ;;  %4666 = vst [vmem:[#allocation3 + $0x70] sm:$0xff] %v4648_v55  ;;  %v4711_v24 = vmax.f32 %v4682_v33, %v4700_v51  ;;  %v23061_v55 = vld [vmem:[#allocation20_spill] sm:$0xff] }
 0x697   :  { %4720 = vst [vmem:[#allocation4 + $0x30] sm:$0xff] %v4711_v24 }
 0x698   :  { %v20039_v62 = vpop.f32.mrf.mxu0 }
 0x69a   :  { %v4626_v12 = vpop.f32.mrf.mxu1 }
 0x69b   :  { %v4649_v14 = vadd.f32 %v4626_v12, %v19826_v39  ;;  %v5633_v12 = vpop.f32.mrf.mxu3 }
 0x69d   :  { %4667 = vst [vmem:[#allocation3 + $0x78] sm:$0xff] %v4649_v14  ;;  %5675 = vmatmul.bf16.gmra.mxu3 %v23060_v30  ;;  %13495 = vmatmul.msk.bf16.gmra.mxu2 %vm510_vm1, %v19893_v38  ;;  %v23062_v38 = vmov 0  ;;  %v4796_v30 = vld [vmem:[#allocation5 + $0x4] sm:$0x8] }
 0x69e   :  { %v4777_v16 = vld [vmem:[#allocation4 + $0x31] sm:$0x1f]  ;;  %v23063_v38 = vsel %vm20053_vm15, 4294967295, %v23062_v38 }
 0x69f   :  { %v4778_v8 = vmax.f32 %v4776_v28, %v4777_v16  ;;  %v5706_v28 = vpop.f32.mrf.mxu2  ;;  %23064 = vst [vmem:[#allocation60_spill] sm:$0xff] %v23063_v38 }
 0x6a0   :  { %v5520_v17 = vpop.f32.mrf.mxu0 }
 0x6a1   :  { %v20043_v40 = vadd.f32 %v5520_v17, %v19879_v43  ;;  %v4779_v42 = vadd.f32 %v19930_v19, %v4778_v8 }
 0x6a2   :  { %v4629_v32 = vpop.f32.mrf.mxu1 }
 0x6a3   :  { %v4650_v39 = vadd.f32 %v4629_v32, %v19841_v9  ;;  %v4780_v57 = vmax.f32 %v4779_v42, 0.0 }
 0x6a4   :  { %v4684_v52 = vld [vmem:[#allocation3 + $0x70] ss:$2 sm:$0xff]  ;;  %v4702_v33 = vld [vmem:[#allocation3 + $0x71] ss:$2 sm:$0xff] }
 0x6a5   :  { %5592 = vmatmul.bf16.gmra.mxu1 %v23061_v55  ;;  %4668 = vst [vmem:[#allocation3 + $0x80] sm:$0xff] %v4650_v39  ;;  %v4781_v51 = vpack.c.bf16 %v4780_v57, %v4780_v57  ;;  %v4712_v43 = vmax.f32 %v4684_v52, %v4702_v33  ;;  %v5636_v33 = vpop.f32.mrf.mxu3 }
 0x6a7   :  { %v4783_v14 = vshll.u32 %v4781_v51, 16  ;;  %4721 = vst [vmem:[#allocation4 + $0x38] sm:$0xff] %v4712_v43  ;;  %v4786_v17 = vshrl.u32 %v4781_v51, 16  ;;  %v5709_v43 = vpop.f32.mrf.mxu2 }
 0x6a8   :  { %v20051_v24 = vpop.f32.mrf.mxu0 }
 0x6a9   :  { %v4785_v9 = vrot.slane %v4783_v14, 5  ;;  %v4788_v16 = vrot.slane %v4786_v17, 4  ;;  %v23065_v14 = vld [vmem:[#allocation54_spill] sm:$0xff] }
 0x6aa   :  { %v4631_v8 = vpop.f32.mrf.mxu1 }
 0x6ab   :  { %v4651_v42 = vadd.f32 %v4631_v8, %v19854_v41  ;;  %v4797_v32 = vsel %vm20053_vm15, %v4785_v9, %v4796_v30  ;;  %v4789_v39 = vor.u32 %v4788_v16, %v4785_v9 }
 0x6ac   :  { %4798 = vst [vmem:[#allocation5 + $0x4] sm:$0x8] %v4797_v32 }
 0x6ad   :  { %4669 = vst [vmem:[#allocation3 + $0x88] sm:$0xff] %v4651_v42  ;;  %v4790_v57 = vrot.slane %v4789_v39, 4  ;;  %5680 = vmatmul.bf16.gmra.mxu3 %v19625_v7  ;;  %13496 = vmatmul.msk.bf16.gmra.mxu2 %vm510_vm1, %v19923_v13 }
 0x6af   :  { %4799 = vst [vmem:[#allocation5 + $0x8] sm:$0x3] %v4790_v57  ;;  %v5711_v32 = vpop.f32.mrf.mxu2 }
 0x6b0   :  { %v5525_v55 = vpop.f32.mrf.mxu0 }
 0x6b1   :  { %v20061_v52 = vadd.f32 %v5525_v55, %v19909_v58  ;;  %v5638_v58 = vpop.f32.mrf.mxu3 }
 0x6b2   :  { %v5558_v51 = vpop.f32.mrf.mxu1 }
 0x6b3   :  { %v5632_v41 = vadd.f32 %v5631_v53, %v5558_v51  ;;  %v4800_v53 = vld [vmem:[#allocation4 + $0x38] sm:$0x1f] }
 0x6b4   :  { %v4686_v17 = vld [vmem:[#allocation3 + $0x80] ss:$2 sm:$0x3f]  ;;  %v4704_v9 = vld [vmem:[#allocation3 + $0x81] ss:$2 sm:$0x3f] }
 0x6b5   :  { %5597 = vmatmul.bf16.gmra.mxu1 %v23065_v14  ;;  %v20067_v16 = vadd.f32 %v5704_v21, %v5632_v41  ;;  %v4713_v8 = vmax.f32 %v4686_v17, %v4704_v9 }
 0x6b7   :  { %5918 = vrot.lane.b32.xlu2 %v20067_v16, %s16765_s28  ;;  %4722 = vst [vmem:[#allocation4 + $0x40] sm:$0x3f] %v4713_v8 }
 0x6b8   :  { %v20069_v30 = vpop.f32.mrf.mxu0 }
 0x6b9   :  { %v5641_v14 = vpop.f32.mrf.mxu3 }
 0x6ba   :  { %v5560_v7 = vpop.f32.mrf.mxu1 }
 0x6bb   :  { %v5634_v42 = vadd.f32 %v5633_v12, %v5560_v7  ;;  %v5714_v7 = vpop.f32.mrf.mxu2 }
 0x6bd   :  { %v20073_v39 = vadd.f32 %v5706_v28, %v5634_v42  ;;  %5685 = vmatmul.bf16.gmra.mxu3 %v19687_v34  ;;  %13497 = vmatmul.msk.bf16.gmra.mxu2 %vm510_vm1, %v19960_v29  ;;  %v4815_v29 = vld [vmem:[#allocation5 + $0xc] sm:$0x1] }
 0x6be   :  { %v4801_v57 = vld [vmem:[#allocation4 + $0x3f] sm:$0x1f] }
 0x6bf   :  { %5801 = vrot.lane.b32.xlu2 %v19933_v54, %s16765_s28  ;;  %5920 = vrot.lane.b32.xlu0 %v20073_v39, %s16765_s28  ;;  %v4802_v21 = vmax.f32 %v4800_v53, %v4801_v57 }
 0x6c0   :  { %v5530_v13 = vpop.f32.mrf.mxu0 }
 0x6c1   :  { %v20076_v55 = vadd.f32 %v5530_v13, %v19947_v4  ;;  %v4803_v12 = vadd.f32 %v19930_v19, %v4802_v21  ;;  %v23066_v4 = vld [vmem:[#allocation53_spill] sm:$0xff]  ;;  %v23067_v19 = vmov 0  ;;  %v5643_v21 = vpop.f32.mrf.mxu3 }
 0x6c2   :  { %v5563_v51 = vpop.f32.mrf.mxu1  ;;  %v23068_v19 = vsel %vm20093_vm14, 4294967295, %v23067_v19 }
 0x6c3   :  { %v5637_v28 = vadd.f32 %v5636_v33, %v5563_v51  ;;  %v4804_v41 = vmax.f32 %v4803_v12, 0.0  ;;  %23069 = vst [vmem:[#allocation66_spill] sm:$0xff] %v23068_v19  ;;  %v5716_v51 = vpop.f32.mrf.mxu2 }
 0x6c5   :  { %5602 = vmatmul.bf16.gmra.mxu1 %v23066_v4  ;;  %v20087_v17 = vadd.f32 %v5709_v43, %v5637_v28  ;;  %v4805_v9 = vpack.c.bf16 %v4804_v41, %v4804_v41  ;;  %v23070_v41 = vld [vmem:[#allocation62_spill] sm:$0xff] }
 0x6c7   :  { %5922 = vrot.lane.b32.xlu0 %v20087_v17, %s16765_s28  ;;  %v4807_v34 = vrot.slane %v4805_v9, 6 }
 0x6c8   :  { %v20089_v8 = vpop.f32.mrf.mxu0 }
 0x6c9   :  { %4811 = vst [vmem:[#allocation5 + $0x8] sm:$0xc] %v4807_v34  ;;  %v4808_v33 = vrot.slane %v4807_v34, 4 }
 0x6ca   :  { %v5565_v42 = vpop.f32.mrf.mxu1 }
 0x6cb   :  { %v5639_v43 = vadd.f32 %v5638_v58, %v5565_v42  ;;  %v4816_v13 = vsel %vm20093_vm14, %v4808_v33, %v4815_v29 }
 0x6cc   :  { %4817 = vst [vmem:[#allocation5 + $0xc] sm:$0x1] %v4816_v13 }
 0x6cd   :  { %v20099_v53 = vadd.f32 %v5711_v32, %v5639_v43  ;;  %5690 = vmatmul.bf16.gmra.mxu3 %v19734_v60  ;;  %13498 = vmatmul.msk.bf16.gmra.mxu2 %vm510_vm1, %v19982_v26  ;;  %v20112_v32 = vadd.f32 %v19949_v20, %v19685_v37  ;;  %v5646_v60 = vpop.f32.mrf.mxu3  ;;  %v5719_v26 = vpop.f32.mrf.mxu2  ;;  %v20134_v43 = vadd.f32 %v19976_v31, %v19732_v25  ;;  %vm11827_vm1 = vcmask 1043456  }
 0x6cf   :  { %5924 = vrot.lane.b32.xlu1 %v20099_v53, %s16765_s28 }
 0x6d0   :  { %v5535_v57 = vpop.f32.mrf.mxu0 }
 0x6d1   :  { %v20102_v12 = vadd.f32 %v5535_v57, %v19974_v36 }
 0x6d2   :  { %v5568_v28 = vpop.f32.mrf.mxu1 }
 0x6d3   :  { %v5642_v58 = vadd.f32 %v5641_v14, %v5568_v28 }
 0x6d5   :  { %5607 = vmatmul.bf16.gmra.mxu1 %v23070_v41  ;;  %v20114_v4 = vadd.f32 %v5714_v7, %v5642_v58  ;;  %v5648_v7 = vpop.f32.mrf.mxu3  ;;  %v5721_v42 = vpop.f32.mrf.mxu2 }
 0x6d7   :  { %5803 = vrot.lane.b32.xlu1 %v20112_v32, %s16765_s28  ;;  %5926 = vrot.lane.b32.xlu0 %v20114_v4, %s16765_s28 }
 0x6d8   :  { %v20116_v36 = vpop.f32.mrf.mxu0 }
 0x6da   :  { %v5570_v9 = vpop.f32.mrf.mxu1 }
 0x6db   :  { %v5644_v14 = vadd.f32 %v5643_v21, %v5570_v9 }
 0x6dd   :  { %v20122_v34 = vadd.f32 %v5716_v51, %v5644_v14  ;;  %v5651_v51 = vpop.f32.mrf.mxu3  ;;  %v5724_v58 = vpop.f32.mrf.mxu2 }
 0x6df   :  { %5928 = vrot.lane.b32.xlu2 %v20122_v34, %s16765_s28  ;;  %5805 = vrot.lane.b32.xlu0 %v19965_v1, %s16765_s28 }
 0x6e0   :  { %v5540_v29 = vpop.f32.mrf.mxu0 }
 0x6e1   :  { %v20125_v37 = vadd.f32 %v5540_v29, %v19997_v50 }
 0x6e2   :  { %v5573_v20 = vpop.f32.mrf.mxu1 }
 0x6e3   :  { %v5647_v33 = vadd.f32 %v5646_v60, %v5573_v20  ;;  %v20156_v60 = vadd.f32 %v19999_v45, %v19792_v2 }
 0x6e5   :  { %5612 = vmatmul.bf16.gmra.mxu1 %v19680_v27  ;;  %v20136_v13 = vadd.f32 %v5719_v26, %v5647_v33  ;;  %v5653_v26 = vpop.f32.mrf.mxu3 }
 0x6e7   :  { %5807 = vrot.lane.b32.xlu2 %v20134_v43, %s16765_s28  ;;  %5930 = vrot.lane.b32.xlu1 %v20136_v13, %s16765_s28 }
 0x6e8   :  { %v20138_v50 = vpop.f32.mrf.mxu0 }
 0x6ea   :  { %v5575_v57 = vpop.f32.mrf.mxu1 }
 0x6eb   :  { %v5649_v21 = vadd.f32 %v5648_v7, %v5575_v57 }
 0x6ed   :  { %v20144_v28 = vadd.f32 %v5721_v42, %v5649_v21  ;;  %v20172_v42 = vadd.f32 %v20021_v22, %v19839_v44  ;;  %v5800_v21 = vpop.permute.xlu2 %5799 }
 0x6ef   :  { %5809 = vrot.lane.b32.xlu1 %v19987_v35, %s16765_s28  ;;  %5932 = vrot.lane.b32.xlu0 %v20144_v28, %s16765_s28 }
 0x6f0   :  { %v5545_v27 = vpop.f32.mrf.mxu0 }
 0x6f1   :  { %v20147_v25 = vadd.f32 %v5545_v27, %v20019_v3  ;;  %v5726_v3 = vpop.f32.mrf.mxu2 }
 0x6f2   :  { %v5578_v31 = vpop.f32.mrf.mxu1 }
 0x6f3   :  { %v5652_v41 = vadd.f32 %v5651_v51, %v5578_v31 }
 0x6f5   :  { %5617 = vmatmul.bf16.gmra.mxu1 %v19727_v10  ;;  %v20158_v9 = vadd.f32 %v5724_v58, %v5652_v41  ;;  %v5656_v10 = vpop.f32.mrf.mxu3 }
 0x6f7   :  { %5934 = vrot.lane.b32.xlu2 %v20158_v9, %s16765_s28  ;;  %5811 = vrot.lane.b32.xlu0 %v20156_v60, %s16765_s28 }
 0x6f8   :  { %v5547_v14 = vpop.f32.mrf.mxu0 }
 0x6f9   :  { %v5729_v2 = vpop.f32.mrf.mxu2 }
 0x6fa   :  { %v5580_v29 = vpop.f32.mrf.mxu1 }
 0x6fb   :  { %v5654_v20 = vadd.f32 %v5653_v26, %v5580_v29  ;;  %v5794_v26 = vpop.permute.xlu0 %5793  ;;  %v20189_v29 = vld [vmem:[%s22708_s2] ss:$0 sm:$0xff] }
 0x6fc   :  { %v5868_v22 = vmax.f32 %v19868_v11, %v5794_v26 }
 0x6fd   :  { %v20164_v7 = vadd.f32 %v5726_v3, %v5654_v20  ;;  %v5658_v51 = vpop.f32.mrf.mxu3 }
 0x6ff   :  { %5813 = vrot.lane.b32.xlu2 %v20011_v63, %s16765_s28  ;;  %5936 = vrot.lane.b32.xlu1 %v20164_v7, %s16765_s28 }
 0x701   :  { %v5731_v31 = vpop.f32.mrf.mxu2 }
 0x702   :  { %v5583_v45 = vpop.f32.mrf.mxu1 }
 0x703   :  { %v5657_v33 = vadd.f32 %v5656_v10, %v5583_v45  ;;  %v5796_v45 = vpop.permute.xlu1 %5795 }
 0x705   :  { %v20174_v57 = vadd.f32 %v5729_v2, %v5657_v33 }
 0x707   :  { %5815 = vrot.lane.b32.xlu1 %v20172_v42, %s16765_s28  ;;  %5938 = vrot.lane.b32.xlu0 %v20174_v57, %s16765_s28 }
 0x70a   :  { %v5585_v27 = vpop.f32.mrf.mxu1 }
 0x70b   :  { %v5659_v58 = vadd.f32 %v5658_v51, %v5585_v27  ;;  %v5869_v51 = vmax.f32 %v19882_v48, %v5796_v45 }
 0x70d   :  { %v20180_v41 = vadd.f32 %v5731_v31, %v5659_v58 }
 0x70f   :  { %5940 = vrot.lane.b32.xlu2 %v20180_v41, %s16765_s28 }
 0x711   :  { %v5919_v44 = vpop.permute.xlu2 %5918 }
 0x712   :  { %v5993_v14 = vmax.f32 %v20067_v16, %v5919_v44  ;;  %v5798_v16 = vpop.permute.xlu1 %5797 }
 0x713   :  { %v5870_v44 = vmax.f32 %v19898_v46, %v5798_v16 }
 0x714   :  { %v6018_v3 = vmax.f32 %v5868_v22, %v5993_v14 }
 0x716   :  { %v6043_v20 = vadd.f32 %v20189_v29, %v6018_v3 }
 0x718   :  { %v6068_v10 = vmax.f32 %v6043_v20, 0.0 }
 0x71a   :  { %v6093_v2 = vpack.c.bf16 %v6068_v10, %v6068_v10 }
 0x71c   :  { %6118 = vst.msk [vmem:[#allocation2] sm:$0xf] %vm1348_vm2, %v6093_v2 }
 0x723   :  { %v6143_v31 = vld [vmem:[#allocation2] sm:$0xf] }
 0x724   :  { %v6169_v20 = vshrl.u32 %v6143_v31, 16  ;;  %v6172_v10 = vshll.u32 %v6143_v31, 16 }
 0x726   :  { %v6174_v45 = vrot.slane %v6172_v10, 5 }
 0x731   :  { %v5921_v33 = vpop.permute.xlu0 %5920 }
 0x732   :  { %v5994_v11 = vmax.f32 %v20073_v39, %v5921_v33  ;;  %v6171_v39 = vrot.slane %v6169_v20, 4  ;;  %v5802_v33 = vpop.permute.xlu2 %5801 }
 0x734   :  { %v6019_v27 = vmax.f32 %v5869_v51, %v5994_v11  ;;  %v6175_v16 = vor.u32 %v6174_v45, %v6171_v39  ;;  %v5872_v39 = vmax.f32 %v19933_v54, %v5802_v33 }
 0x736   :  { %v6044_v58 = vadd.f32 %v20189_v29, %v6019_v27  ;;  %v5871_v27 = vmax.f32 %v19912_v5, %v5800_v21  ;;  %v6176_v20 = vrot.slane %v6175_v16, 4 }
 0x738   :  { %v6069_v26 = vmax.f32 %v6044_v58, 0.0 }
 0x739   :  { %v5923_v22 = vpop.permute.xlu0 %5922 }
 0x73a   :  { %v6094_v14 = vpack.c.bf16 %v6069_v26, %v6069_v26  ;;  %v5995_v3 = vmax.f32 %v20087_v17, %v5923_v22  ;;  %v5588_v26 = vpop.f32.mrf.mxu1  ;;  %v5661_v17 = vpop.f32.mrf.mxu3 }
 0x73b   :  { %v5929_v19 = vpop.permute.xlu2 %5928 }
 0x73c   :  { %6119 = vst.msk [vmem:[#allocation2 + $0x4] sm:$0xf] %vm1348_vm2, %v6094_v14  ;;  %v6020_v2 = vmax.f32 %v5870_v44, %v5995_v3 }
 0x73e   :  { %v6045_v48 = vadd.f32 %v20189_v29, %v6020_v2 }
 0x740   :  { %v6070_v51 = vmax.f32 %v6045_v48, 0.0  ;;  %v5734_v48 = vpop.f32.mrf.mxu2 }
 0x741   :  { %v5925_v11 = vpop.permute.xlu1 %5924 }
 0x742   :  { %v6095_v58 = vpack.c.bf16 %v6070_v51, %v6070_v51  ;;  %v5996_v46 = vmax.f32 %v20099_v53, %v5925_v11  ;;  %v5663_v54 = vpop.f32.mrf.mxu3 }
 0x743   :  { %v6144_v22 = vld [vmem:[#allocation2 + $0x4] sm:$0xf] }
 0x744   :  { %6120 = vst.msk [vmem:[#allocation2 + $0x8] sm:$0xf] %vm1348_vm2, %v6095_v58  ;;  %v6021_v31 = vmax.f32 %v5871_v27, %v5996_v46  ;;  %v6178_v44 = vshll.u32 %v6144_v22, 16  ;;  %v6182_v14 = vshrl.u32 %v6144_v22, 16  ;;  %v5998_v27 = vmax.f32 %v20122_v34, %v5929_v19 }
 0x746   :  { %v6046_v3 = vadd.f32 %v20189_v29, %v6021_v31  ;;  %v6180_v10 = vrot.slane %v6178_v44, 5  ;;  %v6184_v2 = vrot.slane %v6182_v14, 4 }
 0x748   :  { %v6071_v5 = vmax.f32 %v6046_v3, 0.0  ;;  %v6181_v53 = vsel %vm17600_vm5, %v6176_v20, %v6180_v10  ;;  %v6185_v11 = vor.u32 %v6184_v2, %v6180_v10  ;;  %v5590_v3 = vpop.f32.mrf.mxu1 }
 0x749   :  { %v5804_v45 = vpop.permute.xlu1 %5803  ;;  %6417 = vrot.lane.b32.xlu0 %v6181_v53, %s16765_s28  ;;  %v5927_v51 = vpop.permute.xlu0 %5926 }
 0x74a   :  { %v6096_v58 = vpack.c.bf16 %v6071_v5, %v6071_v5  ;;  %v5873_v46 = vmax.f32 %v20112_v32, %v5804_v45  ;;  %v5997_v16 = vmax.f32 %v20114_v4, %v5927_v51  ;;  %v6186_v20 = vrot.slane %v6185_v11, 4  ;;  %v5736_v5 = vpop.f32.mrf.mxu2 }
 0x74b   :  { %v6145_v22 = vld [vmem:[#allocation2 + $0x8] sm:$0xf] }
 0x74c   :  { %6121 = vst.msk [vmem:[#allocation2 + $0xc] sm:$0xf] %vm1348_vm2, %v6096_v58  ;;  %v6023_v31 = vmax.f32 %v5873_v46, %v5998_v27  ;;  %v6022_v44 = vmax.f32 %v5872_v39, %v5997_v16  ;;  %v6188_v14 = vshll.u32 %v6145_v22, 16  ;;  %v6192_v33 = vshrl.u32 %v6145_v22, 16  ;;  %v5808_v46 = vpop.permute.xlu2 %5807 }
 0x74e   :  { %v6048_v53 = vadd.f32 %v20189_v29, %v6023_v31  ;;  %v6047_v10 = vadd.f32 %v20189_v29, %v6022_v44  ;;  %v6190_v19 = vrot.slane %v6188_v14, 5  ;;  %v6194_v34 = vrot.slane %v6192_v33, 4  ;;  %v20221_v44 = vpop.f32.mrf.mxu3 }
 0x750   :  { %v6073_v2 = vmax.f32 %v6048_v53, 0.0  ;;  %v6072_v32 = vmax.f32 %v6047_v10, 0.0  ;;  %v6191_v4 = vsel %vm17600_vm5, %v6186_v20, %v6190_v19  ;;  %v6195_v51 = vor.u32 %v6194_v34, %v6190_v19  ;;  %v20219_v31 = vpop.f32.mrf.mxu1 }
 0x751   :  { %6419 = vrot.lane.b32.xlu1 %v6191_v4, %s16765_s28  ;;  %v5806_v14 = vpop.permute.xlu0 %5805  ;;  %v5662_v10 = vadd.f32 %v5661_v17, %v5588_v26 }
 0x752   :  { %v6098_v39 = vpack.c.bf16 %v6073_v2, %v6073_v2  ;;  %v6097_v45 = vpack.c.bf16 %v6072_v32, %v6072_v32  ;;  %v6196_v16 = vrot.slane %v6195_v51, 4  ;;  %v5874_v19 = vmax.f32 %v19965_v1, %v5806_v14  ;;  %v20230_v2 = vpop.f32.mrf.mxu2 }
 0x753   :  { %v6146_v27 = vld [vmem:[#allocation2 + $0xc] sm:$0xf]  ;;  %v5664_v32 = vadd.f32 %v5663_v54, %v5590_v3 }
 0x754   :  { %6123 = vst.msk [vmem:[#allocation2 + $0x14] sm:$0xf] %vm1348_vm2, %v6098_v39  ;;  %v6198_v11 = vshll.u32 %v6146_v27, 16  ;;  %v6202_v58 = vshrl.u32 %v6146_v27, 16 }
 0x755   :  { %6122 = vst.msk [vmem:[#allocation2 + $0x10] sm:$0xf] %vm1348_vm2, %v6097_v45  ;;  %v20235_v38 = vadd.f32 %v5736_v5, %v5664_v32 }
 0x756   :  { %v6200_v22 = vrot.slane %v6198_v11, 5  ;;  %v6204_v33 = vrot.slane %v6202_v58, 4  ;;  %v5935_v11 = vpop.permute.xlu2 %5934  ;;  %v20232_v58 = vadd.f32 %v5734_v48, %v5662_v10  ;;  %v5668_v54 = vpop.f32.mrf.mxu3 }
 0x758   :  { %v6201_v20 = vsel %vm17600_vm5, %v6196_v16, %v6200_v22  ;;  %v6205_v4 = vor.u32 %v6204_v33, %v6200_v22  ;;  %v5595_v3 = vpop.f32.mrf.mxu1  ;;  %v6001_v22 = vmax.f32 %v20158_v9, %v5935_v11 }
 0x759   :  { %v5931_v53 = vpop.permute.xlu1 %5930  ;;  %6421 = vrot.lane.b32.xlu2 %v6201_v20, %s16765_s28  ;;  %5817 = vrot.lane.b32.xlu1 %v20032_v47, %s16765_s28 }
 0x75a   :  { %v5999_v34 = vmax.f32 %v20136_v13, %v5931_v53  ;;  %v6206_v26 = vrot.slane %v6205_v4, 4  ;;  %v5875_v13 = vmax.f32 %v20134_v43, %v5808_v46 }
 0x75b   :  { %v6148_v20 = vld [vmem:[#allocation2 + $0x14] sm:$0xf] }
 0x75c   :  { %v6024_v39 = vmax.f32 %v5874_v19, %v5999_v34  ;;  %v6147_v45 = vld [vmem:[#allocation2 + $0x10] sm:$0xf]  ;;  %v6218_v10 = vshll.u32 %v6148_v20, 16  ;;  %v6222_v46 = vshrl.u32 %v6148_v20, 16 }
 0x75d   :  { %v6208_v51 = vshll.u32 %v6147_v45, 16  ;;  %v6212_v27 = vshrl.u32 %v6147_v45, 16 }
 0x75e   :  { %v6049_v16 = vadd.f32 %v20189_v29, %v6024_v39  ;;  %v5741_v39 = vpop.f32.mrf.mxu2  ;;  %v6224_v11 = vrot.slane %v6222_v46, 4 }
 0x75f   :  { %v6210_v1 = vrot.slane %v6208_v51, 5  ;;  %v6214_v17 = vrot.slane %v6212_v27, 4  ;;  %v6220_v27 = vrot.slane %v6218_v10, 5 }
 0x760   :  { %v6074_v14 = vmax.f32 %v6049_v16, 0.0 }
 0x761   :  { %v5810_v33 = vpop.permute.xlu1 %5809  ;;  %5942 = vrot.lane.b32.xlu2 %v20232_v58, %s16765_s28  ;;  %5944 = vrot.lane.b32.xlu1 %v20235_v38, %s16765_s28  ;;  %v6211_v48 = vsel %vm17600_vm5, %v6206_v26, %v6210_v1  ;;  %v5933_v5 = vpop.permute.xlu0 %5932  ;;  %v6215_v53 = vor.u32 %v6214_v17, %v6210_v1 }
 0x762   :  { %v6099_v19 = vpack.c.bf16 %v6074_v14, %v6074_v14  ;;  %v5876_v43 = vmax.f32 %v19987_v35, %v5810_v33  ;;  %6423 = vrot.lane.b32.xlu0 %v6211_v48, %s16765_s28  ;;  %v6000_v9 = vmax.f32 %v20144_v28, %v5933_v5  ;;  %v20253_v35 = vadd.f32 %v20039_v62, %v19865_v59  ;;  %v5598_v17 = vpop.f32.mrf.mxu1  ;;  %v15964_v59 = vld [vmem:[%s22709_s3 + $0x78] sm:$0xff] }
 0x763   :  { %v6216_v4 = vrot.slane %v6215_v53, 4  ;;  %v6225_v14 = vor.u32 %v6224_v11, %v6220_v27  ;;  %v5667_v62 = vadd.f32 %v20221_v44, %v20219_v31  ;;  %6693 = vmatpush.bf16.msra.mxu0 %v15964_v59  ;;  %v5814_v53 = vpop.permute.xlu2 %5813 }
 0x764   :  { %6124 = vst.msk [vmem:[#allocation2 + $0x18] sm:$0xf] %vm1348_vm2, %v6099_v19  ;;  %v6026_v34 = vmax.f32 %v5876_v43, %v6001_v22  ;;  %v6025_v32 = vmax.f32 %v5875_v13, %v6000_v9  ;;  %v5671_v13 = vpop.f32.mrf.mxu3  ;;  %v5669_v22 = vadd.f32 %v5668_v54, %v5595_v3 }
 0x765   :  { %v6221_v28 = vsel %vm17600_vm5, %v6216_v4, %v6220_v27  ;;  %v6226_v10 = vrot.slane %v6225_v14, 4  ;;  %v20270_v9 = vadd.f32 %v20230_v2, %v5667_v62 }
 0x766   :  { %v6051_v45 = vadd.f32 %v20189_v29, %v6026_v34  ;;  %v6050_v51 = vadd.f32 %v20189_v29, %v6025_v32  ;;  %v5744_v43 = vpop.f32.mrf.mxu2  ;;  %v20272_v34 = vadd.f32 %v5741_v39, %v5669_v22 }
 0x768   :  { %v6076_v16 = vmax.f32 %v6051_v45, 0.0  ;;  %v6075_v26 = vmax.f32 %v6050_v51, 0.0 }
 0x769   :  { %5821 = vrot.lane.b32.xlu1 %v20043_v40, %s16765_s28  ;;  %6425 = vrot.lane.b32.xlu2 %v6221_v28, %s16765_s28  ;;  %v5812_v46 = vpop.permute.xlu0 %5811 }
 0x76a   :  { %v6101_v20 = vpack.c.bf16 %v6076_v16, %v6076_v16  ;;  %v6100_v1 = vpack.c.bf16 %v6075_v26, %v6075_v26  ;;  %5819 = vrot.lane.b32.xlu0 %v20253_v35, %s16765_s28  ;;  %v5877_v54 = vmax.f32 %v20156_v60, %v5812_v46  ;;  %v5600_v39 = vpop.f32.mrf.mxu1  ;;  %v20286_v60 = vadd.f32 %v20051_v24, %v19895_v18 }
 0x76b   :  { %v6149_v33 = vld [vmem:[#allocation2 + $0x18] sm:$0xf]  ;;  %v5941_v16 = vpop.permute.xlu2 %5940 }
 0x76c   :  { %6126 = vst.msk [vmem:[#allocation2 + $0x20] sm:$0xf] %vm1348_vm2, %v6101_v20  ;;  %v6228_v48 = vshll.u32 %v6149_v33, 16  ;;  %v6232_v5 = vshrl.u32 %v6149_v33, 16  ;;  %v5673_v45 = vpop.f32.mrf.mxu3  ;;  %v6004_v22 = vmax.f32 %v20180_v41, %v5941_v16  ;;  %v15963_v41 = vld [vmem:[%s22709_s3 + $0x70] sm:$0xff] }
 0x76d   :  { %6125 = vst.msk [vmem:[#allocation2 + $0x1c] sm:$0xf] %vm1348_vm2, %v6100_v1  ;;  %6694 = vmatpush.bf16.msra.mxu0 %v15963_v41 }
 0x76e   :  { %v6230_v19 = vrot.slane %v6228_v48, 5  ;;  %v6234_v31 = vrot.slane %v6232_v5, 4  ;;  %v5746_v62 = vpop.f32.mrf.mxu2 }
 0x770   :  { %v6231_v44 = vsel %vm17600_vm5, %v6226_v10, %v6230_v19  ;;  %v6235_v2 = vor.u32 %v6234_v31, %v6230_v19  ;;  %v5674_v31 = vadd.f32 %v5673_v45, %v5600_v39 }
 0x771   :  { %v5937_v3 = vpop.permute.xlu1 %5936  ;;  %5948 = vrot.lane.b32.xlu1 %v20272_v34, %s16765_s28  ;;  %5946 = vrot.lane.b32.xlu2 %v20270_v9, %s16765_s28 }
 0x772   :  { %v6002_v32 = vmax.f32 %v20164_v7, %v5937_v3  ;;  %6427 = vrot.lane.b32.xlu0 %v6231_v44, %s16765_s28  ;;  %v6236_v20 = vrot.slane %v6235_v2, 4  ;;  %v5878_v7 = vmax.f32 %v20011_v63, %v5814_v53  ;;  %v15956_v53 = vld [vmem:[%s22709_s3 + $0x38] sm:$0xff]  ;;  %v5672_v44 = vadd.f32 %v5671_v13, %v5598_v17 }
 0x773   :  { %v6151_v28 = vld [vmem:[#allocation2 + $0x20] sm:$0xf]  ;;  %6807 = vmatpush.bf16.msrb.mxu1 %v15956_v53  ;;  %v20311_v17 = vadd.f32 %v5746_v62, %v5674_v31 }
 0x774   :  { %v6027_v4 = vmax.f32 %v5877_v54, %v6002_v32  ;;  %v6150_v51 = vld [vmem:[#allocation2 + $0x1c] sm:$0xf]  ;;  %v6248_v19 = vshll.u32 %v6151_v28, 16  ;;  %v6252_v24 = vshrl.u32 %v6151_v28, 16  ;;  %v5603_v54 = vpop.f32.mrf.mxu1  ;;  %v5676_v32 = vpop.f32.mrf.mxu3  ;;  %v20313_v13 = vadd.f32 %v5744_v43, %v5672_v44 }
 0x775   :  { %v6238_v27 = vshll.u32 %v6150_v51, 16  ;;  %v6242_v11 = vshrl.u32 %v6150_v51, 16 }
 0x776   :  { %v6052_v26 = vadd.f32 %v20189_v29, %v6027_v4  ;;  %v6254_v39 = vrot.slane %v6252_v24, 4  ;;  %v5749_v16 = vpop.f32.mrf.mxu2 }
 0x777   :  { %v6240_v1 = vrot.slane %v6238_v27, 5  ;;  %v6244_v14 = vrot.slane %v6242_v11, 4  ;;  %v6250_v27 = vrot.slane %v6248_v19, 5 }
 0x778   :  { %v6077_v59 = vmax.f32 %v6052_v26, 0.0 }
 0x779   :  { %v5816_v33 = vpop.permute.xlu1 %5815  ;;  %5825 = vrot.lane.b32.xlu1 %v20061_v52, %s16765_s28  ;;  %v6241_v48 = vsel %vm17600_vm5, %v6236_v20, %v6240_v1  ;;  %v5939_v5 = vpop.permute.xlu0 %5938  ;;  %v6245_v10 = vor.u32 %v6244_v14, %v6240_v1  ;;  %v6255_v1 = vor.u32 %v6254_v39, %v6250_v27  ;;  %v20359_v39 = vadd.f32 %v20089_v8, %v19962_v6  ;;  %v15980_v6 = vld [vmem:[%s22709_s3 + $0xf8] sm:$0xff]  ;;  %v15987_v8 = vld [vmem:[%s22709_s3 + $0x130] sm:$0xff] }
 0x77a   :  { %v6102_v46 = vpack.c.bf16 %v6077_v59, %v6077_v59  ;;  %v5879_v18 = vmax.f32 %v20172_v42, %v5816_v33  ;;  %5823 = vrot.lane.b32.xlu0 %v20286_v60, %s16765_s28  ;;  %6429 = vrot.lane.b32.xlu2 %v6241_v48, %s16765_s28  ;;  %v6003_v63 = vmax.f32 %v20174_v57, %v5939_v5  ;;  %v15955_v57 = vld [vmem:[%s22709_s3 + $0x30] sm:$0xff] }
 0x77b   :  { %v6246_v2 = vrot.slane %v6245_v10, 4  ;;  %6808 = vmatpush.bf16.msrb.mxu1 %v15955_v57  ;;  %v6256_v59 = vrot.slane %v6255_v1, 4  ;;  %v20326_v5 = vadd.f32 %v20069_v30, %v19925_v56  ;;  %7192 = vmatpush.bf16.msrb.mxu3 %v15980_v6  ;;  %v15986_v1 = vld [vmem:[%s22709_s3 + $0x128] sm:$0xff] }
 0x77c   :  { %6127 = vst.msk [vmem:[#allocation2 + $0x24] sm:$0xf] %vm1348_vm2, %v6102_v46  ;;  %v6029_v42 = vmax.f32 %v5879_v18, %v6004_v22  ;;  %v6028_v3 = vmax.f32 %v5878_v7, %v6003_v63  ;;  %v5605_v22 = vpop.f32.mrf.mxu1  ;;  %v5678_v33 = vpop.f32.mrf.mxu3  ;;  %v5677_v46 = vadd.f32 %v5676_v32, %v5603_v54 }
 0x77d   :  { %v6251_v26 = vsel %vm17600_vm5, %v6246_v2, %v6250_v27  ;;  %v5679_v19 = vadd.f32 %v5678_v33, %v5605_v22  ;;  %v15954_v2 = vld [vmem:[%s22709_s3 + $0x28] sm:$0xff]  ;;  %v15953_v27 = vld [vmem:[%s22709_s3 + $0x20] sm:$0xff]  ;;  %v15984_v22 = vld [vmem:[%s22709_s3 + $0x118] sm:$0xff] }
 0x77e   :  { %v6054_v4 = vadd.f32 %v20189_v29, %v6029_v42  ;;  %v6053_v51 = vadd.f32 %v20189_v29, %v6028_v3  ;;  %v5751_v18 = vpop.f32.mrf.mxu2  ;;  %v20337_v53 = vadd.f32 %v5749_v16, %v5677_v46  ;;  %v15988_v16 = vld [vmem:[%s22709_s3 + $0x138] sm:$0xff]  ;;  %v15961_v33 = vld [vmem:[%s22709_s3 + $0x60] sm:$0xff] }
 0x77f   :  { %v20335_v41 = vadd.f32 %v5751_v18, %v5679_v19  ;;  %6809 = vmatpush.bf16.msrb.mxu1 %v15954_v2  ;;  %7349 = vmatpush.bf16.msrb.mxu2 %v15988_v16  ;;  %v15960_v19 = vld [vmem:[%s22709_s3 + $0x58] sm:$0xff]  ;;  %v15982_v18 = vld [vmem:[%s22709_s3 + $0x108] sm:$0xff]  ;;  %v15973_v2 = vld [vmem:[%s22709_s3 + $0xc0] sm:$0xff] }
 0x780   :  { %v6079_v45 = vmax.f32 %v6054_v4, 0.0  ;;  %v6078_v11 = vmax.f32 %v6053_v51, 0.0  ;;  %v15976_v46 = vld [vmem:[%s22709_s3 + $0xd8] sm:$0xff] }
 0x781   :  { %5952 = vrot.lane.b32.xlu1 %v20311_v17, %s16765_s28 }
 0x782   :  { %v6104_v28 = vpack.c.bf16 %v6079_v45, %v6079_v45  ;;  %v6103_v20 = vpack.c.bf16 %v6078_v11, %v6078_v11  ;;  %6431 = vrot.lane.b32.xlu0 %v6251_v26, %s16765_s28  ;;  %5950 = vrot.lane.b32.xlu2 %v20313_v13, %s16765_s28  ;;  %v15952_v11 = vld [vmem:[%s22709_s3 + $0x18] sm:$0xff]  ;;  %v15951_v26 = vld [vmem:[%s22709_s3 + $0x10] sm:$0xff] }
 0x783   :  { %v6152_v43 = vld [vmem:[#allocation2 + $0x24] sm:$0xf]  ;;  %6810 = vmatpush.bf16.msrb.mxu1 %v15953_v27  ;;  %7350 = vmatpush.bf16.msrb.mxu2 %v15987_v8 }
 0x784   :  { %6129 = vst.msk [vmem:[#allocation2 + $0x2c] sm:$0xf] %vm1348_vm2, %v6104_v28  ;;  %v6258_v14 = vshll.u32 %v6152_v43, 16  ;;  %v6262_v7 = vshrl.u32 %v6152_v43, 16  ;;  %v15962_v28 = vld [vmem:[%s22709_s3 + $0x68] sm:$0xff]  ;;  %v15979_v43 = vld [vmem:[%s22709_s3 + $0xf0] sm:$0xff] }
 0x785   :  { %6128 = vst.msk [vmem:[#allocation2 + $0x28] sm:$0xf] %vm1348_vm2, %v6103_v20  ;;  %v15950_v20 = vld [vmem:[%s22709_s3 + $0x8] sm:$0xff]  ;;  %6695 = vmatpush.bf16.msra.mxu0 %v15962_v28  ;;  %7193 = vmatpush.bf16.msrb.mxu3 %v15979_v43 }
 0x786   :  { %v6260_v62 = vrot.slane %v6258_v14, 5  ;;  %v6264_v48 = vrot.slane %v6262_v7, 4  ;;  %v15949_v14 = vld [vmem:[%s22709_s3] sm:$0xff] }
 0x787   :  { %6811 = vmatpush.bf16.msrb.mxu1 %v15952_v11  ;;  %7351 = vmatpush.bf16.msrb.mxu2 %v15986_v1  ;;  %v15985_v7 = vld [vmem:[%s22709_s3 + $0x120] sm:$0xff] }
 0x788   :  { %v6261_v10 = vsel %vm17600_vm5, %v6256_v59, %v6260_v62  ;;  %v6265_v63 = vor.u32 %v6264_v48, %v6260_v62  ;;  %v15978_v59 = vld [vmem:[%s22709_s3 + $0xe8] sm:$0xff]  ;;  %v15977_v48 = vld [vmem:[%s22709_s3 + $0xe0] sm:$0xff] }
 0x789   :  { %5829 = vrot.lane.b32.xlu1 %v20076_v55, %s16765_s28  ;;  %7194 = vmatpush.bf16.msrb.mxu3 %v15978_v59 }
 0x78a   :  { %5827 = vrot.lane.b32.xlu0 %v20326_v5, %s16765_s28  ;;  %6433 = vrot.lane.b32.xlu2 %v6261_v10, %s16765_s28  ;;  %v6266_v31 = vrot.slane %v6265_v63, 4  ;;  %v15983_v10 = vld [vmem:[%s22709_s3 + $0x110] sm:$0xff] }
 0x78b   :  { %v20339_v3 = vld [vmem:[#allocation2 + $0x2c] sm:$0xf]  ;;  %6812 = vmatpush.bf16.msrb.mxu1 %v15951_v26  ;;  %7352 = vmatpush.bf16.msrb.mxu2 %v15985_v7  ;;  %v15959_v63 = vld [vmem:[%s22709_s3 + $0x50] sm:$0xff] }
 0x78c   :  { %v6153_v24 = vld [vmem:[#allocation2 + $0x28] sm:$0xf]  ;;  %v6278_v57 = vshll.u32 %v20339_v3, 16  ;;  %6696 = vmatpush.bf16.msra.mxu0 %v15961_v33 }
 0x78d   :  { %v6268_v56 = vshll.u32 %v6153_v24, 16  ;;  %v6272_v30 = vshrl.u32 %v6153_v24, 16  ;;  %7195 = vmatpush.bf16.msrb.mxu3 %v15977_v48 }
 0x78e   :  { %v20352_v51 = vrot.slane %v6278_v57, 5  ;;  %v15957_v57 = vld [vmem:[%s22709_s3 + $0x40] sm:$0xff] }
 0x78f   :  { %v6270_v44 = vrot.slane %v6268_v56, 5  ;;  %v6274_v42 = vrot.slane %v6272_v30, 4  ;;  %6813 = vmatpush.bf16.msrb.mxu1 %v15950_v20  ;;  %7353 = vmatpush.bf16.msrb.mxu2 %v15984_v22  ;;  %v15975_v30 = vld [vmem:[%s22709_s3 + $0xd0] sm:$0xff] }
 0x790   :  { %6697 = vmatpush.bf16.msra.mxu0 %v15960_v19 }
 0x791   :  { %5956 = vrot.lane.b32.xlu1 %v20335_v41, %s16765_s28  ;;  %v6271_v54 = vsel %vm17600_vm5, %v6266_v31, %v6270_v44  ;;  %v6275_v32 = vor.u32 %v6274_v42, %v6270_v44  ;;  %7196 = vmatpush.bf16.msrb.mxu3 %v15976_v46  ;;  %v15981_v31 = vld [vmem:[%s22709_s3 + $0x100] sm:$0xff]  ;;  %v15958_v44 = vld [vmem:[%s22709_s3 + $0x48] sm:$0xff] }
 0x792   :  { %5954 = vrot.lane.b32.xlu2 %v20337_v53, %s16765_s28  ;;  %6435 = vrot.lane.b32.xlu0 %v6271_v54, %s16765_s28  ;;  %v15974_v42 = vld [vmem:[%s22709_s3 + $0xc8] sm:$0xff] }
 0x793   :  { %v6276_v4 = vrot.slane %v6275_v32, 4  ;;  %6814 = vmatpush.bf16.msrb.mxu1 %v15949_v14  ;;  %7354 = vmatpush.bf16.msrb.mxu2 %v15983_v10  ;;  %v6282_v14 = vshrl.u32 %v20339_v3, 16 }
 0x794   :  { %6698 = vmatpush.bf16.msra.mxu0 %v15959_v63 }
 0x795   :  { %v6281_v45 = vsel %vm17600_vm5, %v6276_v4, %v20352_v51  ;;  %7197 = vmatpush.bf16.msrb.mxu3 %v15975_v30  ;;  %v6284_v33 = vrot.slane %v6282_v14, 4 }
 0x797   :  { %7355 = vmatpush.bf16.msrb.mxu2 %v15982_v18 }
 0x798   :  { %6699 = vmatpush.bf16.msra.mxu0 %v15958_v44 }
 0x799   :  { %7198 = vmatpush.bf16.msrb.mxu3 %v15974_v42  ;;  %v6285_v42 = vor.u32 %v6284_v33, %v20352_v51 }
 0x79a   :  { %6437 = vrot.lane.b32.xlu2 %v6281_v45, %s16765_s28  ;;  %5831 = vrot.lane.b32.xlu0 %v20359_v39, %s16765_s28 }
 0x79b   :  { %7356 = vmatpush.bf16.msrb.mxu2 %v15981_v31 }
 0x79c   :  { %6700 = vmatpush.bf16.msra.mxu0 %v15957_v57 }
 0x79d   :  { %7199 = vmatpush.bf16.msrb.mxu3 %v15973_v2 }
 0x7b3   :  { %v6422_v62 = vpop.permute.xlu2 %6421 }
 0x7b4   :  { %6494 = vst.msk [vmem:[#allocation2 + $0x8] sm:$0xf] %vm1727_vm6, %v6422_v62 }
 0x7bb   :  { %v5943_v24 = vpop.permute.xlu2 %5942  ;;  %v6418_v56 = vpop.permute.xlu0 %6417  ;;  %v16661_v48 = vld [vmem:[#allocation2 + $0x4] sm:$0xf0]  }
 0x7bc   :  { %6492 = vst.msk [vmem:[#allocation2] sm:$0xf] %vm1727_vm6, %v6418_v56  ;;  %v6005_v11 = vmax.f32 %v20232_v58, %v5943_v24 }
 0x7c3   :  { %v6420_v54 = vpop.permute.xlu1 %6419  ;;  %v6426_v32 = vpop.permute.xlu2 %6425  ;;  %v6551_v7 = vld [vmem:[#allocation2] sm:$0xe] }
 0x7c4   :  { %6493 = vst.msk [vmem:[#allocation2 + $0x4] sm:$0xf] %vm1727_vm6, %v6420_v54  ;;  %v6861_v59 = vld [vmem:[#allocation2] sm:$0xc]  ;;  %v6588_v62 = vunpack.c.l.b16 %v6551_v7 }
 0x7c5   :  { %6496 = vst.msk [vmem:[#allocation2 + $0x10] sm:$0xf] %vm1727_vm6, %v6426_v32  ;;  %v6881_v22 = vunpack.c.l.b16 %v6861_v59 }
 0x7cb   :  { %v5818_v4 = vpop.permute.xlu1 %5817  ;;  %v5947_v27 = vpop.permute.xlu2 %5946  ;;  %v16384_v45 = vld [vmem:[#allocation2] sm:$0xff]  }
 0x7cc   :  { %v5880_v16 = vmax.f32 %v20032_v47, %v5818_v4  ;;  %6815 = vmatmul.bf16.vlgmr.msrb.gmra.mxu1 %v16384_v45  ;;  %v16386_v58 = vunpack.c.h.b16 %v16384_v45  ;;  %v16559_v47 = vld [vmem:[#allocation2 + $0x4] sm:$0x8]  ;;  %v6007_v63 = vmax.f32 %v20270_v9, %v5947_v27 }
 0x7cd   :  { %v16560_v18 = vor.u32 %v16661_v48, %v16559_v47 }
 0x7ce   :  { %v6030_v6 = vmax.f32 %v5880_v16, %v6005_v11  ;;  %v6607_v10 = vpack.c.b16 %v16386_v58, %v6588_v62  ;;  %v6883_v19 = vpack.c.b16 %v16386_v58, %v6881_v22 }
 0x7d0   :  { %v6055_v8 = vadd.f32 %v20189_v29, %v6030_v6  ;;  %v6617_v45 = vrot.slane %v6607_v10, 1  ;;  %v6885_v9 = vrot.slane %v6883_v19, 2  ;;  %v6286_v6 = vrot.slane %v6285_v42, 4 }
 0x7d2   :  { %v6080_v26 = vmax.f32 %v6055_v8, 0.0 }
 0x7d3   :  { %v5945_v28 = vpop.permute.xlu1 %5944 }
 0x7d4   :  { %v6105_v20 = vpack.c.bf16 %v6080_v26, %v6080_v26  ;;  %v6430_v1 = vpop.permute.xlu2 %6429  ;;  %v6424_v43 = vpop.permute.xlu0 %6423  ;;  %v6006_v30 = vmax.f32 %v20235_v38, %v5945_v28 }
 0x7d5   :  { %6498 = vst.msk [vmem:[#allocation2 + $0x18] sm:$0xf] %vm1727_vm6, %v6430_v1 }
 0x7d6   :  { %6130 = vst.msk [vmem:[#allocation2 + $0x30] sm:$0xf] %vm1348_vm2, %v6105_v20 }
 0x7d7   :  { %6495 = vst.msk [vmem:[#allocation2 + $0xc] sm:$0xf] %vm1727_vm6, %v6424_v43 }
 0x7db   :  { %v5822_v46 = vpop.permute.xlu1 %5821 }
 0x7dc   :  { %v5882_v3 = vmax.f32 %v20043_v40, %v5822_v46  ;;  %v5951_v24 = vpop.permute.xlu2 %5950  ;;  %v5820_v56 = vpop.permute.xlu0 %5819  ;;  %v7116_v40 = vrot.slane %v16560_v18, 3 }
 0x7dd   :  { %v5881_v31 = vmax.f32 %v20253_v35, %v5820_v56  ;;  %v6155_v44 = vld [vmem:[#allocation2 + $0x30] sm:$0xf]  ;;  %v6009_v10 = vmax.f32 %v20313_v13, %v5951_v24 }
 0x7de   :  { %v6032_v54 = vmax.f32 %v5882_v3, %v6007_v63  ;;  %v16467_v32 = vld [vmem:[#allocation2 + $0x8] sm:$0xff]   ;;  %v6288_v4 = vshll.u32 %v6155_v44, 16  ;;  %v6292_v62 = vshrl.u32 %v6155_v44, 16 }
 0x7df   :  { %v20461_v57 = vld [vmem:[#allocation2 + $0x8] sm:$0xff]  ;;  %v6031_v27 = vmax.f32 %v5881_v31, %v6006_v30  ;;  %7357 = vmatmul.bf16.vlgmr.msrb.gmra.mxu2 %v16467_v32 }
 0x7e0   :  { %v20463_v2 = vld [vmem:[#allocation2 + $0xc] sm:$0xff]   ;;  %v6057_v11 = vadd.f32 %v20189_v29, %v6032_v54  ;;  %v6618_v38 = vrot.slane %v20461_v57, 1  ;;  %6820 = vmatmul.bf16.gmra.mxu1 %v20461_v57  ;;  %v6886_v35 = vrot.slane %v20461_v57, 2  ;;  %v6290_v8 = vrot.slane %v6288_v4, 5 }
 0x7e1   :  { %v7117_v51 = vrot.slane %v20463_v2, 3  ;;  %v6056_v16 = vadd.f32 %v20189_v29, %v6031_v27  ;;  %v6294_v33 = vrot.slane %v6292_v62, 4 }
 0x7e2   :  { %v6082_v26 = vmax.f32 %v6057_v11, 0.0  ;;  %v6619_v28 = vsel %vm1855_vm7, %v6617_v45, %v6618_v38  ;;  %v20476_v1 = vsel %vm550_vm0, %v6885_v9, %v6886_v35  ;;  %v6291_v7 = vsel %vm17600_vm5, %v6286_v6, %v6290_v8 }
 0x7e3   :  { %v7118_v20 = vsel %vm2358_vm8, %v7116_v40, %v7117_v51  ;;  %v6081_v43 = vmax.f32 %v6056_v16, 0.0  ;;  %6701 = vmatmul.bf16.vlgmr.msra.gmra.mxu0 %v6619_v28  ;;  %v5949_v14 = vpop.permute.xlu1 %5948  ;;  %6439 = vrot.lane.b32.xlu0 %v6291_v7, %s16765_s28  ;;  %v6295_v63 = vor.u32 %v6294_v33, %v6290_v8 }
 0x7e4   :  { %7200 = vmatmul.bf16.vlgmr.msrb.gmra.mxu3 %v7118_v20  ;;  %v6107_v59 = vpack.c.bf16 %v6082_v26, %v6082_v26  ;;  %v6434_v58 = vpop.permute.xlu2 %6433  ;;  %v6428_v47 = vpop.permute.xlu0 %6427  ;;  %v6008_v3 = vmax.f32 %v20272_v34, %v5949_v14 }
 0x7e5   :  { %v6106_v22 = vpack.c.bf16 %v6081_v43, %v6081_v43  ;;  %6500 = vst.msk [vmem:[#allocation2 + $0x20] sm:$0xf] %vm1727_vm6, %v6434_v58  ;;  %v6296_v4 = vrot.slane %v6295_v63, 4 }
 0x7e6   :  { %6132 = vst.msk [vmem:[#allocation2 + $0x38] sm:$0xf] %vm1348_vm2, %v6107_v59 }
 0x7e7   :  { %6131 = vst.msk [vmem:[#allocation2 + $0x34] sm:$0xf] %vm1348_vm2, %v6106_v22 }
 0x7e8   :  { %6497 = vst.msk [vmem:[#allocation2 + $0x14] sm:$0xf] %vm1727_vm6, %v6428_v47 }
 0x7eb   :  { %v5826_v48 = vpop.permute.xlu1 %5825 }
 0x7ec   :  { %v5884_v19 = vmax.f32 %v20061_v52, %v5826_v48  ;;  %v20487_v46 = vpop.permute.xlu2 %5954  ;;  %v5824_v18 = vpop.permute.xlu0 %5823 }
 0x7ed   :  { %v5883_v56 = vmax.f32 %v20286_v60, %v5824_v18  ;;  %v6157_v44 = vld [vmem:[#allocation2 + $0x38] sm:$0xf]  ;;  %v20523_v48 = vpop.f32.mrf.mxu1  ;;  %v6011_v57 = vmax.f32 %v20337_v53, %v20487_v46 }
 0x7ee   :  { %v6034_v30 = vmax.f32 %v5884_v19, %v6009_v10  ;;  %v6156_v31 = vld [vmem:[#allocation2 + $0x34] sm:$0xf]  ;;  %v6308_v11 = vshll.u32 %v6157_v44, 16  ;;  %v6312_v59 = vshrl.u32 %v6157_v44, 16  ;;  %v8213_v18 = vld [vmem:[#allocation2 + $0x18] sm:$0xf] }
 0x7ef   :  { %v6033_v42 = vmax.f32 %v5883_v56, %v6008_v3  ;;  %v16468_v54 = vld [vmem:[#allocation2 + $0x10] sm:$0xff]   ;;  %v6298_v13 = vshll.u32 %v6156_v31, 16  ;;  %v6302_v24 = vshrl.u32 %v6156_v31, 16 }
 0x7f0   :  { %v20491_v32 = vld [vmem:[#allocation2 + $0x10] sm:$0xff]  ;;  %v6059_v52 = vadd.f32 %v20189_v29, %v6034_v30  ;;  %7362 = vmatmul.bf16.gmra.mxu2 %v16468_v54  ;;  %v6310_v47 = vrot.slane %v6308_v11, 5  ;;  %v6314_v33 = vrot.slane %v6312_v59, 4 }
 0x7f1   :  { %v20493_v2 = vld [vmem:[#allocation2 + $0x14] sm:$0xff]   ;;  %v6058_v45 = vadd.f32 %v20189_v29, %v6033_v42  ;;  %6825 = vmatmul.bf16.gmra.mxu1 %v20491_v32  ;;  %v6620_v34 = vrot.slane %v20491_v32, 1  ;;  %v6300_v9 = vrot.slane %v6298_v13, 5  ;;  %v6304_v40 = vrot.slane %v6302_v24, 4 }
 0x7f2   :  { %v7119_v60 = vrot.slane %v20493_v2, 3  ;;  %v6084_v27 = vmax.f32 %v6059_v52, 0.0  ;;  %v8615_v10 = vld [vmem:[#allocation2 + $0x14] sm:$0x8]  ;;  %v6315_v56 = vor.u32 %v6314_v33, %v6310_v47  ;;  %v20531_v24 = vunpack.c.l.b16 %v8213_v18 }
 0x7f3   :  { %v6083_v16 = vmax.f32 %v6058_v45, 0.0  ;;  %v6621_v6 = vsel %vm1855_vm7, %v6618_v38, %v6620_v34  ;;  %v5953_v26 = vpop.permute.xlu1 %5952  ;;  %v6301_v28 = vsel %vm17600_vm5, %v6296_v4, %v6300_v9  ;;  %v6305_v7 = vor.u32 %v6304_v40, %v6300_v9  ;;  %v8443_v63 = vld [vmem:[#allocation2 + $0x14] sm:$0xc] }
 0x7f4   :  { %v7120_v8 = vsel %vm2358_vm8, %v7117_v51, %v7119_v60  ;;  %v6109_v20 = vpack.c.bf16 %v6084_v27, %v6084_v27  ;;  %6706 = vmatmul.bf16.gmra.mxu0 %v6621_v6  ;;  %v6438_v43 = vpop.permute.xlu2 %6437  ;;  %v6432_v14 = vpop.permute.xlu0 %6431  ;;  %6441 = vrot.lane.b32.xlu1 %v6301_v28, %s16765_s28  ;;  %v6888_v38 = vrot.slane %v20491_v32, 2  ;;  %v8635_v30 = vunpack.c.l.b16 %v8615_v10 }
 0x7f5   :  { %7205 = vmatmul.bf16.gmra.mxu3 %v7120_v8  ;;  %v6108_v58 = vpack.c.bf16 %v6083_v16, %v6083_v16  ;;  %6502 = vst.msk [vmem:[#allocation2 + $0x28] sm:$0xf] %vm1727_vm6, %v6438_v43  ;;  %v6306_v51 = vrot.slane %v6305_v7, 4  ;;  %v6010_v31 = vmax.f32 %v20311_v17, %v5953_v26  ;;  %v8463_v52 = vunpack.c.l.b16 %v8443_v63  ;;  %v20538_v40 = vpop.f32.mrf.mxu1 }
 0x7f6   :  { %6134 = vst.msk [vmem:[#allocation2 + $0x40] sm:$0xf] %vm1348_vm2, %v6109_v20  ;;  %v20518_v62 = vsel %vm550_vm0, %v6886_v35, %v6888_v38  ;;  %v6316_v17 = vrot.slane %v6315_v56, 4 }
 0x7f7   :  { %6133 = vst.msk [vmem:[#allocation2 + $0x3c] sm:$0xf] %vm1348_vm2, %v6108_v58  ;;  %v6311_v22 = vsel %vm17600_vm5, %v6306_v51, %v6310_v47  ;;  %v8465_v43 = vpack.c.b16 %v20531_v24, %v8463_v52 }
 0x7f8   :  { %6499 = vst.msk [vmem:[#allocation2 + $0x1c] sm:$0xf] %vm1727_vm6, %v6432_v14  ;;  %6443 = vrot.lane.b32.xlu2 %v6311_v22, %s16765_s28 }
 0x7fb   :  { %v5830_v19 = vpop.permute.xlu1 %5829 }
 0x7fc   :  { %v5886_v35 = vmax.f32 %v20076_v55, %v5830_v19  ;;  %v5828_v3 = vpop.permute.xlu0 %5827 }
 0x7fd   :  { %v5885_v44 = vmax.f32 %v20326_v5, %v5828_v3  ;;  %v6159_v13 = vld [vmem:[#allocation2 + $0x40] sm:$0xf]  ;;  %v8637_v5 = vpack.c.b16 %v20531_v24, %v8635_v30 }
 0x7fe   :  { %v6036_v42 = vmax.f32 %v5886_v35, %v6011_v57  ;;  %v6158_v54 = vld [vmem:[#allocation2 + $0x3c] sm:$0xf]  ;;  %v6328_v20 = vshll.u32 %v6159_v13, 16  ;;  %v6332_v33 = vshrl.u32 %v6159_v13, 16  ;;  %v8467_v35 = vrot.slane %v8465_v43, 2 }
 0x7ff   :  { %v6035_v4 = vmax.f32 %v5885_v44, %v6010_v31  ;;  %v16469_v45 = vld [vmem:[#allocation2 + $0x18] sm:$0xff]   ;;  %v6318_v55 = vshll.u32 %v6158_v54, 16  ;;  %v6322_v46 = vshrl.u32 %v6158_v54, 16  ;;  %v8639_v18 = vrot.slane %v8637_v5, 3  ;;  %v20574_v31 = vpop.f32.mrf.mxu1 }
 0x800   :  { %v20533_v9 = vld [vmem:[#allocation2 + $0x18] sm:$0xff]  ;;  %v6061_v27 = vadd.f32 %v20189_v29, %v6036_v42  ;;  %7367 = vmatmul.bf16.gmra.mxu2 %v16469_v45  ;;  %v6330_v19 = vrot.slane %v6328_v20, 5  ;;  %v6334_v30 = vrot.slane %v6332_v33, 4 }
 0x801   :  { %v20535_v53 = vld [vmem:[#allocation2 + $0x1c] sm:$0xff]   ;;  %v6060_v11 = vadd.f32 %v20189_v29, %v6035_v4  ;;  %6830 = vmatmul.bf16.gmra.mxu1 %v20533_v9  ;;  %v6622_v16 = vrot.slane %v20533_v9, 1  ;;  %v6320_v8 = vrot.slane %v6318_v55, 5  ;;  %v6324_v28 = vrot.slane %v6322_v46, 4 }
 0x802   :  { %v7121_v6 = vrot.slane %v20535_v53, 3  ;;  %v6086_v26 = vmax.f32 %v6061_v27, 0.0  ;;  %v20556_v58 = vld [vmem:[#allocation2 + $0x1c] sm:$0xff]  ;;  %v6890_v2 = vrot.slane %v20533_v9, 2  ;;  %v6335_v52 = vor.u32 %v6334_v30, %v6330_v19 }
 0x803   :  { %v6085_v14 = vmax.f32 %v6060_v11, 0.0  ;;  %v6623_v7 = vsel %vm1855_vm7, %v6620_v34, %v6622_v16  ;;  %v6321_v59 = vsel %vm17600_vm5, %v6316_v17, %v6320_v8  ;;  %v6325_v22 = vor.u32 %v6324_v28, %v6320_v8  ;;  %v20560_v34 = vpop.f32.mrf.mxu2  ;;  %v9226_v4 = vld [vmem:[#allocation2 + $0x1c] sm:$0xc]  ;;  %v20593_v17 = vld [vmem:[#allocation2 + $0x20] sm:$0xf] }
 0x804   :  { %v7122_v29 = vsel %vm2358_vm8, %v7119_v60, %v7121_v6  ;;  %v6111_v51 = vpack.c.bf16 %v6086_v26, %v6086_v26  ;;  %6711 = vmatmul.bf16.gmra.mxu0 %v6623_v7  ;;  %v6436_v47 = vpop.permute.xlu0 %6435  ;;  %6445 = vrot.lane.b32.xlu0 %v6321_v59, %s16765_s28  ;;  %v20568_v63 = vsel %vm550_vm0, %v6888_v38, %v6890_v2  ;;  %v8640_v57 = vrot.slane %v20556_v58, 3  ;;  %v5957_v38 = vpop.permute.xlu1 %5956 }
 0x805   :  { %7210 = vmatmul.bf16.gmra.mxu3 %v7122_v29  ;;  %v6110_v10 = vpack.c.bf16 %v6085_v14, %v6085_v14  ;;  %6501 = vst.msk [vmem:[#allocation2 + $0x24] sm:$0xf] %vm1727_vm6, %v6436_v47  ;;  %v6326_v60 = vrot.slane %v6325_v22, 4  ;;  %v8468_v3 = vrot.slane %v20556_v58, 2  ;;  %v6012_v45 = vmax.f32 %v20335_v41, %v5957_v38  ;;  %v5681_v7 = vpop.f32.mrf.mxu3 }
 0x806   :  { %6136 = vst.msk [vmem:[#allocation2 + $0x48] sm:$0xf] %vm1348_vm2, %v6111_v51  ;;  %v20578_v44 = vsel %vm2358_vm8, %v8639_v18, %v8640_v57  ;;  %v9246_v43 = vunpack.c.l.b16 %v9226_v4  ;;  %v22758_v59 = vunpack.c.l.b16 %v20593_v17  ;;  %v20606_v51 = vld [vmem:[%s22708_s2] ss:$0 sm:$0xff] }
 0x807   :  { %6135 = vst.msk [vmem:[#allocation2 + $0x44] sm:$0xf] %vm1348_vm2, %v6110_v10  ;;  %v6331_v56 = vsel %vm17600_vm5, %v6326_v60, %v6330_v19  ;;  %v20583_v32 = vsel %vm550_vm0, %v8467_v35, %v8468_v3  ;;  %v20600_v29 = vpop.f32.mrf.mxu1 }
 0x808   :  { %6447 = vrot.lane.b32.xlu1 %v6331_v56, %s16765_s28  ;;  %23072 = vst [vmem:[#allocation61_spill] sm:$0xff] %v20583_v32  ;;  %v9248_v30 = vpack.c.b16 %v22758_v59, %v9246_v43 }
 0x809   :  { %23073 = vst [vmem:[#allocation68_spill] sm:$0xff] %v20593_v17 }
 0x80b   :  { %v20591_v27 = vpop.f32.mrf.mxu2 }
 0x80c   :  { %v5832_v42 = vpop.permute.xlu0 %5831  ;;  %v20585_v54 = vld [vmem:[#allocation2 + $0x20] sm:$0xff] }
 0x80d   :  { %v20587_v13 = vld [vmem:[#allocation2 + $0x24] sm:$0xff]   ;;  %v5887_v9 = vmax.f32 %v20359_v39, %v5832_v42  ;;  %v6624_v5 = vrot.slane %v20585_v54, 1  ;;  %v6336_v39 = vrot.slane %v6335_v52, 4  ;;  %v6892_v60 = vrot.slane %v20585_v54, 2 }
 0x80e   :  { %v16470_v55 = vld [vmem:[#allocation2 + $0x20] sm:$0xff]   ;;  %v6161_v46 = vld [vmem:[#allocation2 + $0x48] sm:$0xf]  ;;  %v7123_v11 = vrot.slane %v20587_v13, 3 }
 0x80f   :  { %v6160_v8 = vld [vmem:[#allocation2 + $0x44] sm:$0xf]  ;;  %v6037_v26 = vmax.f32 %v5887_v9, %v6012_v45  ;;  %v6625_v41 = vsel %vm1855_vm7, %v6622_v16, %v6624_v5  ;;  %v6348_v14 = vshll.u32 %v6161_v46, 16  ;;  %v6352_v53 = vshrl.u32 %v6161_v46, 16 }
 0x810   :  { %v6338_v28 = vshll.u32 %v6160_v8, 16  ;;  %v6342_v20 = vshrl.u32 %v6160_v8, 16  ;;  %7372 = vmatmul.bf16.gmra.mxu2 %v16470_v55  ;;  %v7124_v16 = vsel %vm2358_vm8, %v7121_v6, %v7123_v11  ;;  %v20615_v10 = vld [vmem:[#allocation2 + $0x24] sm:$0xff]  ;;  %v20627_v6 = vsel %vm550_vm0, %v6890_v2, %v6892_v60 }
 0x811   :  { %v6062_v47 = vadd.f32 %v20606_v51, %v6037_v26  ;;  %6835 = vmatmul.bf16.gmra.mxu1 %v20585_v54  ;;  %v20620_v56 = vld [vmem:[#allocation2 + $0x24] sm:$0xff]  ;;  %v6350_v52 = vrot.slane %v6348_v14, 5  ;;  %v8642_v4 = vrot.slane %v20615_v10, 3  ;;  %v8470_v45 = vrot.slane %v20615_v10, 2  ;;  %v16004_v54 = vld [vmem:[%s22709_s3 + $0x170] sm:$0xff] }
 0x812   :  { %v6340_v22 = vrot.slane %v6338_v28, 5  ;;  %v6344_v33 = vrot.slane %v6342_v20, 4  ;;  %v9250_v46 = vrot.slane %v9248_v30, 2  ;;  %v9251_v8 = vrot.slane %v20620_v56, 2  ;;  %v5683_v28 = vpop.f32.mrf.mxu3  ;;  %v5618_v20 = vpop.f32.mrf.mxu1  ;;  %v15969_v56 = vld [vmem:[%s22709_s3 + $0xa0] sm:$0xff] }
 0x813   :  { %v6087_v19 = vmax.f32 %v6062_v47, 0.0  ;;  %v5759_v55 = vpop.f32.mrf.mxu2  ;;  %v20638_v2 = vsel %vm2358_vm8, %v8640_v57, %v8642_v4  ;;  %v5682_v26 = vadd.f32 %v5681_v7, %v20523_v48  ;;  %v20648_v43 = vsel %vm550_vm0, %v8468_v3, %v8470_v45 }
 0x814   :  { %v6341_v18 = vsel %vm17600_vm5, %v6336_v39, %v6340_v22  ;;  %v6345_v35 = vor.u32 %v6344_v33, %v6340_v22  ;;  %6716 = vmatmul.bf16.gmra.mxu0 %v6625_v41  ;;  %23074 = vst [vmem:[#allocation63_spill] sm:$0xff] %v20638_v2  ;;  %v6354_v41 = vrot.slane %v6352_v53, 4  ;;  %v20653_v57 = vsel %vm550_vm0, %v9250_v46, %v9251_v8 }
 0x815   :  { %7215 = vmatmul.bf16.gmra.mxu3 %v7124_v16  ;;  %v6112_v38 = vpack.c.bf16 %v6087_v19, %v6087_v19  ;;  %6449 = vrot.lane.b32.xlu2 %v6341_v18, %s16765_s28  ;;  %23075 = vst [vmem:[#allocation37_spill] sm:$0xff] %v20648_v43  ;;  %v20656_v39 = vadd.f32 %v20560_v34, %v5682_v26 }
 0x816   :  { %v6346_v42 = vrot.slane %v6345_v35, 4  ;;  %23076 = vst [vmem:[#allocation11_spill] sm:$0xff] %v20653_v57  ;;  %v6355_v48 = vor.u32 %v6354_v41, %v6350_v52  ;;  %v5684_v14 = vadd.f32 %v5683_v28, %v20538_v40  ;;  %v20683_v18 = vadd.f32 %v20116_v36, %v19984_v23  ;;  %v15972_v23 = vld [vmem:[%s22709_s3 + $0xb8] sm:$0xff] }
 0x817   :  { %6137 = vst.msk [vmem:[#allocation2 + $0x4c] sm:$0xf] %vm1348_vm2, %v6112_v38  ;;  %6961 = vmatpush.bf16.msrb.mxu0 %v15972_v23 }
 0x818   :  { %v6351_v9 = vsel %vm17600_vm5, %v6346_v42, %v6350_v52  ;;  %v6356_v16 = vrot.slane %v6355_v48, 4  ;;  %v20671_v34 = vadd.f32 %v20591_v27, %v5684_v14 }
 0x819   :  { %6451 = vrot.lane.b32.xlu0 %v6351_v9, %s16765_s28 }
 0x81a   :  { %v5620_v47 = vpop.f32.mrf.mxu1  ;;  %v5686_v33 = vpop.f32.mrf.mxu3 }
 0x81b   :  { %v20664_v3 = vpop.f32.mrf.mxu2  ;;  %v5687_v35 = vadd.f32 %v5686_v33, %v20574_v31  ;;  %v15971_v31 = vld [vmem:[%s22709_s3 + $0xb0] sm:$0xff]  ;;  %v15970_v33 = vld [vmem:[%s22709_s3 + $0xa8] sm:$0xff] }
 0x81c   :  { %6962 = vmatpush.bf16.msrb.mxu0 %v15971_v31 }
 0x81d   :  { %5833 = vrot.lane.b32.xlu2 %v20102_v12, %s16765_s28  ;;  %v20690_v30 = vadd.f32 %v5759_v55, %v5687_v35 }
 0x81e   :  { %v20661_v7 = vld [vmem:[#allocation2 + $0x4c] sm:$0xf] }
 0x81f   :  { %v6358_v58 = vshll.u32 %v20661_v7, 16 }
 0x820   :  { %6963 = vmatpush.bf16.msrb.mxu0 %v15970_v33 }
 0x821   :  { %5958 = vrot.lane.b32.xlu0 %v20656_v39, %s16765_s28  ;;  %v20668_v22 = vrot.slane %v6358_v58, 5 }
 0x822   :  { %v20685_v27 = vpop.f32.mrf.mxu3 }
 0x823   :  { %v6361_v40 = vsel %vm17600_vm5, %v6356_v16, %v20668_v22  ;;  %v5764_v19 = vpop.f32.mrf.mxu2 }
 0x824   :  { %6453 = vrot.lane.b32.xlu1 %v6361_v40, %s16765_s28  ;;  %6964 = vmatpush.bf16.msrb.mxu0 %v15969_v56 }
 0x825   :  { %5960 = vrot.lane.b32.xlu2 %v20671_v34, %s16765_s28 }
 0x829   :  { %5837 = vrot.lane.b32.xlu0 %v20125_v37, %s16765_s28 }
 0x82a   :  { %v5691_v38 = vpop.f32.mrf.mxu3 }
 0x82b   :  { %v5766_v53 = vpop.f32.mrf.mxu2  ;;  %v5692_v42 = vadd.f32 %v5691_v38, %v5618_v20 }
 0x82c   :  { %5835 = vrot.lane.b32.xlu1 %v20683_v18, %s16765_s28 }
 0x82d   :  { %v20694_v52 = vadd.f32 %v5764_v19, %v5692_v42  ;;  %v16005_v19 = vld [vmem:[%s22709_s3 + $0x178] sm:$0xff] }
 0x82e   :  { %7580 = vmatpush.bf16.msra.mxu1 %v16005_v19 }
 0x832   :  { %v5693_v9 = vpop.f32.mrf.mxu3  ;;  %7581 = vmatpush.bf16.msra.mxu1 %v16004_v54 }
 0x833   :  { %v16003_v9 = vld [vmem:[%s22709_s3 + $0x168] sm:$0xff] }
 0x834   :  { %5962 = vrot.lane.b32.xlu1 %v20690_v30, %s16765_s28 }
 0x836   :  { %7582 = vmatpush.bf16.msra.mxu1 %v16003_v9 }
 0x849   :  { %v6816_v55 = vpop.f32.mrf.mxu1 }
 0x851   :  { %v20704_v20 = vpop.f32.mrf.mxu1 }
 0x852   :  { %v6444_v36 = vpop.permute.xlu2 %6443  ;;  %23077 = vst [vmem:[#allocation70_spill] sm:$0xff] %v20704_v20 }
 0x853   :  { %6505 = vst.msk [vmem:[#allocation2 + $0x34] sm:$0xf] %vm1727_vm6, %v6444_v36 }
 0x855   :  { %v6440_v46 = vpop.permute.xlu0 %6439 }
 0x856   :  { %6503 = vst.msk [vmem:[#allocation2 + $0x2c] sm:$0xf] %vm1727_vm6, %v6440_v46 }
 0x85d   :  { %v16471_v26 = vld [vmem:[#allocation2 + $0x28] sm:$0xff]  }
 0x85e   :  { %v15945_v28 = vld [vmem:[#allocation2 + $0x28] sm:$0xff]  ;;  %7377 = vmatmul.bf16.gmra.mxu2 %v16471_v26 }
 0x85f   :  { %6840 = vmatmul.bf16.gmra.mxu1 %v15945_v28  ;;  %v6626_v48 = vrot.slane %v15945_v28, 1  ;;  %v6894_v14 = vrot.slane %v15945_v28, 2 }
 0x860   :  { %v6702_v41 = vpop.f32.mrf.mxu0 }
 0x861   :  { %v20706_v58 = vadd.f32 %v6816_v55, %v6702_v41  ;;  %v6627_v47 = vsel %vm1855_vm7, %v6624_v5, %v6626_v48  ;;  %v20714_v16 = vsel %vm550_vm0, %v6892_v60, %v6894_v14  ;;  %v6821_v5 = vpop.f32.mrf.mxu1 }
 0x862   :  { %6721 = vmatmul.bf16.gmra.mxu0 %v6627_v47 }
 0x866   :  { %v6442_v40 = vpop.permute.xlu1 %6441 }
 0x867   :  { %6504 = vst.msk [vmem:[#allocation2 + $0x30] sm:$0xf] %vm1727_vm6, %v6442_v40  ;;  %v16002_v40 = vld [vmem:[%s22709_s3 + $0x160] sm:$0xff] }
 0x868   :  { %v20723_v35 = vpop.f32.mrf.mxu0  ;;  %7583 = vmatpush.bf16.msra.mxu1 %v16002_v40 }
 0x869   :  { %v20743_v41 = vpop.f32.mrf.mxu1 }
 0x86a   :  { %23078 = vst [vmem:[#allocation23_spill] sm:$0xff] %v20743_v41 }
 0x86e   :  { %v16472_v53 = vld [vmem:[#allocation2 + $0x30] sm:$0xff]  }
 0x86f   :  { %v6450_v60 = vpop.permute.xlu2 %6449  ;;  %v20728_v38 = vld [vmem:[#allocation2 + $0x30] sm:$0xff]  ;;  %7382 = vmatmul.bf16.gmra.mxu2 %v16472_v53 }
 0x870   :  { %v16671_v42 = vld [vmem:[#allocation2 + $0x2c] sm:$0xff]   ;;  %6508 = vst.msk [vmem:[#allocation2 + $0x40] sm:$0xf] %vm1727_vm6, %v6450_v60  ;;  %6845 = vmatmul.bf16.gmra.mxu1 %v20728_v38  ;;  %v6628_v36 = vrot.slane %v20728_v38, 1  ;;  %v6896_v55 = vrot.slane %v20728_v38, 2 }
 0x871   :  { %v6707_v23 = vpop.f32.mrf.mxu0  ;;  %v7125_v31 = vrot.slane %v16671_v42, 3  ;;  %v20737_v46 = vld [vmem:[#allocation2 + $0x2c] sm:$0xff]  ;;  %v6826_v10 = vpop.f32.mrf.mxu1 }
 0x872   :  { %v20739_v26 = vadd.f32 %v6821_v5, %v6707_v23  ;;  %v20741_v28 = vld [vmem:[#allocation2 + $0x2c] sm:$0xff]  ;;  %v6629_v47 = vsel %vm1855_vm7, %v6626_v48, %v6628_v36  ;;  %v20753_v19 = vsel %vm550_vm0, %v6894_v14, %v6896_v55  ;;  %v8644_v5 = vrot.slane %v20737_v46, 3 }
 0x873   :  { %v7126_v33 = vsel %vm2358_vm8, %v7123_v11, %v7125_v31  ;;  %6726 = vmatmul.bf16.gmra.mxu0 %v6629_v47  ;;  %v8472_v54 = vrot.slane %v20737_v46, 2  ;;  %v9253_v60 = vrot.slane %v20741_v28, 2  ;;  %v15999_v47 = vld [vmem:[%s22709_s3 + $0x148] sm:$0xff] }
 0x874   :  { %7220 = vmatmul.bf16.gmra.mxu3 %v7126_v33  ;;  %v20761_v13 = vsel %vm2358_vm8, %v8642_v4, %v8644_v5  ;;  %v16001_v4 = vld [vmem:[%s22709_s3 + $0x158] sm:$0xff] }
 0x875   :  { %23079 = vst [vmem:[#allocation34_spill] sm:$0xff] %v20761_v13  ;;  %v20766_v11 = vsel %vm550_vm0, %v8470_v45, %v8472_v54  ;;  %v20771_v48 = vsel %vm550_vm0, %v9251_v8, %v9253_v60  ;;  %7584 = vmatpush.bf16.msra.mxu1 %v16001_v4  ;;  %v16000_v45 = vld [vmem:[%s22709_s3 + $0x150] sm:$0xff] }
 0x876   :  { %23080 = vst [vmem:[#allocation10_spill] sm:$0xff] %v20766_v11  ;;  %v6446_v14 = vpop.permute.xlu0 %6445 }
 0x877   :  { %23081 = vst [vmem:[#allocation65_spill] sm:$0xff] %v20771_v48 }
 0x878   :  { %6506 = vst.msk [vmem:[#allocation2 + $0x38] sm:$0xf] %vm1727_vm6, %v6446_v14 }
 0x879   :  { %v20774_v53 = vpop.f32.mrf.mxu0  ;;  %7585 = vmatpush.bf16.msra.mxu1 %v16000_v45 }
 0x87a   :  { %23082 = vst [vmem:[#allocation26_spill] sm:$0xff] %v20774_v53  ;;  %v6448_v38 = vpop.permute.xlu1 %6447  ;;  %v16476_v53 = vld [vmem:[#allocation2 + $0x18] sm:$0xff]  }
 0x87b   :  { %6507 = vst.msk [vmem:[#allocation2 + $0x3c] sm:$0xf] %vm1727_vm6, %v6448_v38 }
 0x87d   :  { %7586 = vmatpush.bf16.msra.mxu1 %v15999_v47 }
 0x87f   :  { %v16673_v8 = vld [vmem:[#allocation2 + $0x34] sm:$0xff]  }
 0x880   :  { %v20786_v42 = vld [vmem:[#allocation2 + $0x34] sm:$0xff]  ;;  %v7127_v28 = vrot.slane %v16673_v8, 3 }
 0x881   :  { %v6712_v9 = vpop.f32.mrf.mxu0  ;;  %v8646_v14 = vrot.slane %v20786_v42, 3  ;;  %v16081_v8 = vld [vmem:[#allocation2 + $0x34] sm:$0xff] }
 0x882   :  { %v20788_v23 = vadd.f32 %v6826_v10, %v6712_v9  ;;  %v16473_v33 = vld [vmem:[#allocation2 + $0x38] sm:$0xff]   ;;  %v7128_v38 = vsel %vm2358_vm8, %v7125_v31, %v7127_v28  ;;  %v8474_v10 = vrot.slane %v20786_v42, 2  ;;  %v20801_v9 = vpop.f32.mrf.mxu1  ;;  %v15998_v31 = vld [vmem:[%s22709_s3 + $0x140] sm:$0xff] }
 0x883   :  { %v15947_v40 = vld [vmem:[#allocation2 + $0x38] sm:$0xff]  ;;  %7387 = vmatmul.bf16.gmra.mxu2 %v16473_v33  ;;  %v20799_v45 = vsel %vm2358_vm8, %v8644_v5, %v8646_v14  ;;  %23084 = vst [vmem:[#allocation31_spill] sm:$0xff] %v20801_v9  ;;  %7587 = vmatpush.bf16.msra.mxu1 %v15998_v31  ;;  %v5834_v31 = vpop.permute.xlu2 %5833 }
 0x884   :  { %7225 = vmatmul.bf16.gmra.mxu3 %v7128_v38  ;;  %6850 = vmatmul.bf16.gmra.mxu1 %v15947_v40  ;;  %v6630_v4 = vrot.slane %v15947_v40, 1  ;;  %v6898_v56 = vrot.slane %v15947_v40, 2  ;;  %v20795_v59 = vld [vmem:[#allocation2 + $0x3c] sm:$0xff]  ;;  %23083 = vst [vmem:[#allocation72_spill] sm:$0xff] %v20799_v45  ;;  %v20816_v5 = vsel %vm550_vm0, %v8472_v54, %v8474_v10 }
 0x885   :  { %v20810_v40 = vld [vmem:[#allocation2 + $0x3c] sm:$0xff]  ;;  %v22763_v47 = vrot.slane %v20795_v59, 3  ;;  %23086 = vst [vmem:[#allocation67_spill] sm:$0xff] %v20816_v5  ;;  %v22762_v0 = vrot.slane %v20795_v59, 2 }
 0x886   :  { %v6631_v49 = vsel %vm1855_vm7, %v6628_v36, %v6630_v4  ;;  %v20808_v33 = vsel %vm550_vm0, %v6896_v55, %v6898_v56  ;;  %v9255_v55 = vrot.slane %v16081_v8, 2  ;;  %v22764_v54 = vrot.slane %v20810_v40, 2  ;;  %v20831_v48 = vld [vmem:[#allocation2 + $0x3c] sm:$0xff]  }
 0x887   :  { %6731 = vmatmul.bf16.gmra.mxu0 %v6631_v49  ;;  %v20822_v61 = vsel %vm2358_vm8, %v8646_v14, %v22763_v47  ;;  %v20828_v49 = vsel %vm550_vm0, %v8474_v10, %v22762_v0  ;;  %v15968_v8 = vld [vmem:[%s22709_s3 + $0x98] sm:$0xff]  ;;  %v22765_v10 = vrot.slane %v20831_v48, 3 }
 0x888   :  { %23087 = vst [vmem:[#allocation29_spill] sm:$0xff] %v20822_v61  ;;  %v20834_v57 = vsel %vm550_vm0, %v9253_v60, %v9255_v55  ;;  %v20839_v14 = vsel %vm550_vm0, %v9255_v55, %v22764_v54  ;;  %6965 = vmatpush.bf16.msrb.mxu0 %v15968_v8  ;;  %v15967_v60 = vld [vmem:[%s22709_s3 + $0x90] sm:$0xff]  ;;  %v5888_v54 = vmax.f32 %v20102_v12, %v5834_v31  ;;  %v15966_v12 = vld [vmem:[%s22709_s3 + $0x88] sm:$0xff] }
 0x889   :  { %v20813_v38 = vpop.f32.mrf.mxu0  ;;  %23088 = vst [vmem:[#allocation40_spill] sm:$0xff] %v20828_v49  ;;  %v7130_v8 = vsel %vm2358_vm8, %v7127_v28, %v22765_v10  ;;  %v20875_v10 = vld [vmem:[#allocation2 + $0x10] sm:$0xff] }
 0x88a   :  { %23085 = vst [vmem:[#allocation21_spill] sm:$0xff] %v20813_v38 }
 0x88b   :  { %v6452_v36 = vpop.permute.xlu0 %6451  ;;  %23089 = vst [vmem:[#allocation24_spill] sm:$0xff] %v20834_v57 }
 0x88c   :  { %6509 = vst.msk [vmem:[#allocation2 + $0x44] sm:$0xf] %vm1727_vm6, %v6452_v36  ;;  %v6831_v36 = vpop.f32.mrf.mxu1  ;;  %6966 = vmatpush.bf16.msrb.mxu0 %v15967_v60 }
 0x88d   :  { %23090 = vst [vmem:[#allocation43_spill] sm:$0xff] %v20839_v14 }
 0x890   :  { %6967 = vmatpush.bf16.msrb.mxu0 %v15966_v12 }
 0x891   :  { %v6717_v0 = vpop.f32.mrf.mxu0 }
 0x892   :  { %v20848_v47 = vadd.f32 %v6831_v36, %v6717_v0  ;;  %v6362_v36 = vshrl.u32 %v20661_v7, 16 }
 0x893   :  { %v5959_v57 = vpop.permute.xlu0 %5958  ;;  %v16474_v49 = vld [vmem:[#allocation2 + $0x40] sm:$0xff]  }
 0x894   :  { %v20850_v55 = vld [vmem:[#allocation2 + $0x40] sm:$0xff]  ;;  %v6013_v14 = vmax.f32 %v20656_v39, %v5959_v57  ;;  %7392 = vmatmul.bf16.gmra.mxu2 %v16474_v49  ;;  %7230 = vmatmul.bf16.gmra.mxu3 %v7130_v8  ;;  %v15989_v8 = vld [vmem:[#allocation2 + $0x8] sm:$0xf0]  ;;  %v16418_v61 = vunpack.c.h.b16 %v16474_v49 }
 0x895   :  { %v6632_v5 = vrot.slane %v20850_v55, 1  ;;  %v22766_v11 = vrot.slane %v20850_v55, 2  ;;  %6855 = vmatmul.bf16.gmra.mxu1 %v20850_v55 }
 0x896   :  { %v6038_v0 = vmax.f32 %v5888_v54, %v6013_v14  ;;  %v6454_v31 = vpop.permute.xlu1 %6453  ;;  %v15965_v14 = vld [vmem:[%s22709_s3 + $0x80] sm:$0xff] }
 0x897   :  { %v6633_v57 = vsel %vm1855_vm7, %v6630_v4, %v6632_v5  ;;  %v20867_v39 = vsel %vm550_vm0, %v6898_v56, %v22766_v11  ;;  %6510 = vst.msk [vmem:[#allocation2 + $0x48] sm:$0xf] %vm1727_vm6, %v6454_v31  ;;  %v5961_v4 = vpop.permute.xlu2 %5960  ;;  %v13773_v56 = vld [vmem:[#allocation2 + $0x8] sm:$0xe]  ;;  %6968 = vmatpush.bf16.msrb.mxu0 %v15965_v14  ;;  %v6364_v11 = vrot.slane %v6362_v36, 4 }
 0x898   :  { %v6063_v28 = vadd.f32 %v20606_v51, %v6038_v0  ;;  %6736 = vmatmul.bf16.gmra.mxu0 %v6633_v57  ;;  %v6014_v0 = vmax.f32 %v20671_v34, %v5961_v4  ;;  %v13774_v57 = vor.u32 %v15989_v8, %v13773_v56 }
 0x899   :  { %v6365_v8 = vor.u32 %v6364_v11, %v20668_v22 }
 0x89a   :  { %v6088_v54 = vmax.f32 %v6063_v28, 0.0  ;;  %v7504_v4 = vrot.slane %v13774_v57, 1 }
 0x89b   :  { %v5838_v36 = vpop.permute.xlu0 %5837 }
 0x89c   :  { %v6113_v60 = vpack.c.bf16 %v6088_v54, %v6088_v54 }
 0x89e   :  { %6138 = vst.msk [vmem:[#allocation2 + $0x50] sm:$0xf] %vm1348_vm2, %v6113_v60  ;;  %v5836_v31 = vpop.permute.xlu1 %5835  ;;  %v20879_v12 = vld [vmem:[#allocation2 + $0x48] sm:$0xf]  ;;  %v7505_v60 = vrot.slane %v20875_v10, 1 }
 0x89f   :  { %v6552_v28 = vld [vmem:[#allocation2 + $0x48] sm:$0x1]  ;;  %v5889_v7 = vmax.f32 %v20683_v18, %v5836_v31  ;;  %v22768_v54 = vunpack.c.l.b16 %v20879_v12 }
 0x8a0   :  { %v6606_v43 = vunpack.c.l.b16 %v6552_v28  ;;  %v20883_v45 = vld [vmem:[#allocation2 + $0x44] sm:$0xff]  ;;  %v7506_v10 = vsel %vm1855_vm7, %v7504_v4, %v7505_v60 }
 0x8a1   :  { %v6039_v17 = vmax.f32 %v5889_v7, %v6014_v0  ;;  %v20888_v34 = vpack.c.b16 %v22768_v54, %v16418_v61  ;;  %v22769_v49 = vrot.slane %v20883_v45, 3  ;;  %v20894_v28 = vld [vmem:[#allocation2 + $0x44] sm:$0xff]  ;;  %v23091_v61 = vrot.slane %v20795_v59, 3 }
 0x8a2   :  { %v6616_v14 = vpack.c.b16 %v6606_v43, %v6606_v43  ;;  %v6366_v54 = vrot.slane %v6365_v8, 4 }
 0x8a3   :  { %v6064_v18 = vadd.f32 %v20606_v51, %v6039_v17  ;;  %v22772_v56 = vrot.slane %v20888_v34, 3  ;;  %v20902_v43 = vsel %vm2358_vm8, %v23091_v61, %v22769_v49  ;;  %v23093_v17 = vrot.slane %v20831_v48, 3 }
 0x8a4   :  { %v6634_v31 = vrot.slane %v6616_v14, 1  ;;  %23092 = vst [vmem:[#allocation74_spill] sm:$0xff] %v20902_v43  ;;  %v5890_v14 = vmax.f32 %v20125_v37, %v5838_v36  ;;  %v22771_v61 = vrot.slane %v20883_v45, 2  ;;  %v22770_v43 = vrot.slane %v20894_v28, 2 }
 0x8a5   :  { %v6163_v0 = vld [vmem:[#allocation2 + $0x50] sm:$0xf]  ;;  %v6089_v22 = vmax.f32 %v6064_v18, 0.0  ;;  %7588 = vmatmul.bf16.vlgmr.msra.gmra.mxu1 %v7506_v10  ;;  %v7132_v11 = vsel %vm2358_vm8, %v23093_v17, %v22772_v56  ;;  %v23094_v48 = vrot.slane %v20795_v59, 2 }
 0x8a6   :  { %v6635_v57 = vsel %vm1855_vm7, %v6632_v5, %v6634_v31  ;;  %v6368_v7 = vshll.u32 %v6163_v0, 16  ;;  %v5963_v4 = vpop.permute.xlu1 %5962  ;;  %7235 = vmatmul.bf16.gmra.mxu3 %v7132_v11  ;;  %v6372_v9 = vshrl.u32 %v6163_v0, 16  ;;  %v15991_v0 = vld [vmem:[#allocation2 + $0x18] sm:$0xff]  ;;  %v20935_v11 = vadd.f32 %v20138_v50, %v20006_v15 }
 0x8a7   :  { %v6114_v49 = vpack.c.bf16 %v6089_v22, %v6089_v22  ;;  %v6015_v18 = vmax.f32 %v20690_v30, %v5963_v4  ;;  %v20919_v5 = vsel %vm550_vm0, %v23094_v48, %v22771_v61  ;;  %v23096_v30 = vrot.slane %v20810_v40, 2 }
 0x8a8   :  { %v6370_v10 = vrot.slane %v6368_v7, 5  ;;  %6741 = vmatmul.bf16.gmra.mxu0 %v6635_v57  ;;  %23095 = vst [vmem:[#allocation50_spill] sm:$0xff] %v20919_v5  ;;  %v6374_v31 = vrot.slane %v6372_v9, 4  ;;  %v5689_v50 = vadd.f32 %v20685_v27, %v20600_v29  ;;  %v20963_v27 = vpop.f32.mrf.mxu1 }
 0x8a9   :  { %6139 = vst.msk [vmem:[#allocation2 + $0x54] sm:$0xf] %vm1348_vm2, %v6114_v49  ;;  %v6040_v37 = vmax.f32 %v5890_v14, %v6015_v18  ;;  %v20929_v36 = vsel %vm550_vm0, %v23096_v30, %v22770_v43 }
 0x8aa   :  { %v6371_v8 = vsel %vm17600_vm5, %v6366_v54, %v6370_v10  ;;  %23097 = vst [vmem:[#allocation27_spill] sm:$0xff] %v20929_v36  ;;  %v6375_v49 = vor.u32 %v6374_v31, %v6370_v10  ;;  %v7507_v54 = vrot.slane %v15991_v0, 1  ;;  %v20955_v30 = vadd.f32 %v20664_v3, %v5689_v50  ;;  %v15993_v0 = vld [vmem:[#allocation2 + $0x28] sm:$0xff] }
 0x8ab   :  { %6455 = vrot.lane.b32.xlu2 %v6371_v8, %s16765_s28  ;;  %v6065_v59 = vadd.f32 %v20606_v51, %v6040_v37  ;;  %23098 = vst [vmem:[#allocation69_spill] sm:$0xff] %v20963_v27 }
 0x8ac   :  { %v6376_v14 = vrot.slane %v6375_v49, 4  ;;  %v7508_v18 = vsel %vm1855_vm7, %v7505_v60, %v7507_v54 }
 0x8ad   :  { %v6090_v22 = vmax.f32 %v6065_v59, 0.0  ;;  %v15992_v59 = vld [vmem:[#allocation2 + $0x20] sm:$0xff] }
 0x8af   :  { %v6115_v17 = vpack.c.bf16 %v6090_v22, %v6090_v22  ;;  %v7511_v22 = vrot.slane %v15993_v0, 1 }
 0x8b0   :  { %v6164_v57 = vld [vmem:[#allocation2 + $0x54] sm:$0xf]  ;;  %v20969_v3 = vpop.f32.mrf.mxu1 }
 0x8b1   :  { %6140 = vst.msk [vmem:[#allocation2 + $0x58] sm:$0xf] %vm1348_vm2, %v6115_v17  ;;  %v6378_v40 = vshll.u32 %v6164_v57, 16  ;;  %v6382_v7 = vshrl.u32 %v6164_v57, 16  ;;  %v16013_v17 = vld [vmem:[%s22709_s3 + $0x1b8] sm:$0xff] }
 0x8b2   :  { %7811 = vmatpush.bf16.msra.mxu0 %v16013_v17  ;;  %v16018_v17 = vld [vmem:[%s22709_s3 + $0x1e0] sm:$0xff] }
 0x8b3   :  { %5839 = vrot.lane.b32.xlu2 %v20935_v11, %s16765_s28  ;;  %v6380_v4 = vrot.slane %v6378_v40, 5  ;;  %v6384_v9 = vrot.slane %v6382_v7, 4  ;;  %v15994_v40 = vld [vmem:[#allocation2 + $0x30] sm:$0xff] }
 0x8b5   :  { %7593 = vmatmul.bf16.gmra.mxu1 %v7508_v18  ;;  %v6381_v10 = vsel %vm17600_vm5, %v6376_v14, %v6380_v4  ;;  %v6385_v15 = vor.u32 %v6384_v9, %v6380_v4  ;;  %v7513_v14 = vrot.slane %v15994_v40, 1  ;;  %v16029_v4 = vld [vmem:[%s22709_s3 + $0x238] sm:$0xff]  ;;  %v16012_v9 = vld [vmem:[%s22709_s3 + $0x1b0] sm:$0xff] }
 0x8b6   :  { %6457 = vrot.lane.b32.xlu0 %v6381_v10, %s16765_s28  ;;  %8140 = vmatpush.bf16.msra.mxu2 %v16029_v4  ;;  %v16011_v4 = vld [vmem:[%s22709_s3 + $0x1a8] sm:$0xff] }
 0x8b7   :  { %v6386_v60 = vrot.slane %v6385_v15, 4  ;;  %v7514_v18 = vsel %vm1855_vm7, %v7511_v22, %v7513_v14  ;;  %7812 = vmatpush.bf16.msra.mxu0 %v16012_v9  ;;  %v16028_v15 = vld [vmem:[%s22709_s3 + $0x230] sm:$0xff]  ;;  %v16017_v9 = vld [vmem:[%s22709_s3 + $0x1d8] sm:$0xff] }
 0x8b8   :  { %6969 = vmatmul.bf16.vlgmr.msrb.gmra.mxu0 %v20476_v1  ;;  %v20947_v48 = vld [vmem:[#allocation2 + $0x58] sm:$0xf]  ;;  %v7509_v1 = vrot.slane %v15992_v59, 1  ;;  %v6838_v57 = vpop.f32.mrf.mxu1  ;;  %v16027_v59 = vld [vmem:[%s22709_s3 + $0x228] sm:$0xff] }
 0x8b9   :  { %v6388_v37 = vshll.u32 %v20947_v48, 16 }
 0x8ba   :  { %v7510_v31 = vsel %vm1855_vm7, %v7507_v54, %v7509_v1  ;;  %v7512_v49 = vsel %vm1855_vm7, %v7509_v1, %v7511_v22  ;;  %v20975_v54 = vpop.f32.mrf.mxu0  ;;  %8141 = vmatpush.bf16.msra.mxu2 %v16028_v15  ;;  %v16026_v1 = vld [vmem:[%s22709_s3 + $0x220] sm:$0xff]  ;;  %v16023_v15 = vld [vmem:[%s22709_s3 + $0x208] sm:$0xff] }
 0x8bb   :  { %5966 = vrot.lane.b32.xlu2 %v20694_v52, %s16765_s28  ;;  %v20952_v8 = vrot.slane %v6388_v37, 5  ;;  %23099 = vst [vmem:[#allocation47_spill] sm:$0xff] %v20975_v54  ;;  %v16020_v37 = vld [vmem:[%s22709_s3 + $0x1f0] sm:$0xff]  ;;  %7813 = vmatpush.bf16.msra.mxu0 %v16011_v4  ;;  %v16039_v54 = vld [vmem:[%s22709_s3 + $0x248] sm:$0xff] }
 0x8bd   :  { %v6391_v29 = vsel %vm17600_vm5, %v6386_v60, %v20952_v8 }
 0x8be   :  { %5964 = vrot.lane.b32.xlu0 %v20955_v30, %s16765_s28  ;;  %6459 = vrot.lane.b32.xlu1 %v6391_v29, %s16765_s28  ;;  %v15995_v29 = vld [vmem:[#allocation2 + $0x38] sm:$0xff] }
 0x8bf   :  { %8142 = vmatpush.bf16.msra.mxu2 %v16027_v59  ;;  %v7515_v0 = vrot.slane %v15995_v29, 1  ;;  %v16015_v59 = vld [vmem:[%s22709_s3 + $0x1c8] sm:$0xff]  ;;  %v16022_v29 = vld [vmem:[%s22709_s3 + $0x200] sm:$0xff] }
 0x8c1   :  { %v7516_v40 = vsel %vm1855_vm7, %v7513_v14, %v7515_v0  ;;  %v16016_v14 = vld [vmem:[%s22709_s3 + $0x1d0] sm:$0xff] }
 0x8c3   :  { %8143 = vmatpush.bf16.msra.mxu2 %v16026_v1  ;;  %v16014_v1 = vld [vmem:[%s22709_s3 + $0x1c0] sm:$0xff] }
 0x8c5   :  { %7598 = vmatmul.bf16.gmra.mxu1 %v7510_v31 }
 0x8c6   :  { %5841 = vrot.lane.b32.xlu1 %v20147_v25, %s16765_s28 }
 0x8c8   :  { %6974 = vmatmul.bf16.gmra.mxu0 %v20518_v62 }
 0x8d5   :  { %7603 = vmatmul.bf16.gmra.mxu1 %v7512_v49 }
 0x8d8   :  { %6979 = vmatmul.bf16.gmra.mxu0 %v20568_v63  ;;  %v16021_v63 = vld [vmem:[%s22709_s3 + $0x1f8] sm:$0xff] }
 0x8d9   :  { %7983 = vmatpush.bf16.msra.mxu3 %v16021_v63 }
 0x8dc   :  { %v6841_v7 = vpop.f32.mrf.mxu1 }
 0x8dd   :  { %7984 = vmatpush.bf16.msra.mxu3 %v16020_v37  ;;  %v21039_v37 = vpop.f32.mrf.mxu3 }
 0x8df   :  { %v20978_v62 = vpop.f32.mrf.mxu0 }
 0x8e4   :  { %v20987_v10 = vpop.f32.mrf.mxu1 }
 0x8e5   :  { %7608 = vmatmul.bf16.gmra.mxu1 %v7514_v18  ;;  %v21032_v18 = vpop.f32.mrf.mxu2 }
 0x8e7   :  { %v6724_v50 = vpop.f32.mrf.mxu0 }
 0x8e8   :  { %6984 = vmatmul.bf16.gmra.mxu0 %v20627_v6  ;;  %v20999_v60 = vadd.f32 %v6838_v57, %v6724_v50  ;;  %v16019_v6 = vld [vmem:[%s22709_s3 + $0x1e8] sm:$0xff]  ;;  %v16025_v57 = vld [vmem:[%s22709_s3 + $0x218] sm:$0xff]  ;;  %v15996_v50 = vld [vmem:[#allocation2 + $0x40] sm:$0xff] }
 0x8e9   :  { %7985 = vmatpush.bf16.msra.mxu3 %v16019_v6  ;;  %8144 = vmatpush.bf16.msra.mxu2 %v16025_v57  ;;  %v7517_v6 = vrot.slane %v15996_v50, 1 }
 0x8ed   :  { %v6846_v31 = vpop.f32.mrf.mxu1  ;;  %7986 = vmatpush.bf16.msra.mxu3 %v16018_v17  ;;  %v21052_v17 = vpop.f32.mrf.mxu2 }
 0x8ee   :  { %23100 = vst [vmem:[#allocation76_spill] sm:$0xff] %v21052_v17 }
 0x8f0   :  { %v6727_v22 = vpop.f32.mrf.mxu0 }
 0x8f1   :  { %v21013_v49 = vadd.f32 %v6841_v7, %v6727_v22  ;;  %v16024_v7 = vld [vmem:[%s22709_s3 + $0x210] sm:$0xff]  ;;  %7987 = vmatpush.bf16.msra.mxu3 %v16017_v9 }
 0x8f2   :  { %8145 = vmatpush.bf16.msra.mxu2 %v16024_v7  ;;  %v16010_v7 = vld [vmem:[%s22709_s3 + $0x1a0] sm:$0xff] }
 0x8f3   :  { %7814 = vmatpush.bf16.msra.mxu0 %v16010_v7 }
 0x8f5   :  { %7613 = vmatmul.bf16.gmra.mxu1 %v7516_v40  ;;  %v21034_v63 = vpop.f32.mrf.mxu1  ;;  %7988 = vmatpush.bf16.msra.mxu3 %v16016_v14  ;;  %v7518_v40 = vsel %vm1855_vm7, %v7515_v0, %v7517_v6  ;;  %v21061_v14 = vpop.f32.mrf.mxu3  ;;  %v16045_v0 = vld [vmem:[%s22709_s3 + $0x278] sm:$0xff] }
 0x8f6   :  { %8146 = vmatpush.bf16.msra.mxu2 %v16023_v15  ;;  %23101 = vst [vmem:[#allocation22_spill] sm:$0xff] %v21061_v14  ;;  %8371 = vmatpush.bf16.msrb.mxu1 %v16045_v0 }
 0x8f8   :  { %6989 = vmatmul.bf16.gmra.mxu0 %v20714_v16  ;;  %v21041_v16 = vpop.f32.mrf.mxu0 }
 0x8f9   :  { %7989 = vmatpush.bf16.msra.mxu3 %v16015_v59 }
 0x8fa   :  { %8147 = vmatpush.bf16.msra.mxu2 %v16022_v29 }
 0x8fd   :  { %7990 = vmatpush.bf16.msra.mxu3 %v16014_v1  ;;  %v21081_v61 = vpop.f32.mrf.mxu3 }
 0x901   :  { %v6851_v22 = vpop.f32.mrf.mxu1 }
 0x904   :  { %v6732_v4 = vpop.f32.mrf.mxu0 }
 0x905   :  { %v6456_v57 = vpop.permute.xlu2 %6455  ;;  %7618 = vmatmul.bf16.gmra.mxu1 %v7518_v40  ;;  %v21056_v9 = vadd.f32 %v6846_v31, %v6732_v4  ;;  %v21073_v40 = vpop.f32.mrf.mxu2  ;;  %v23102_v4 = vunpack.c.l.b16 %v20879_v12  ;;  %v21089_v12 = vld [vmem:[#allocation2 + $0x10] sm:$0xff]  }
 0x906   :  { %6511 = vst.msk [vmem:[#allocation2 + $0x4c] sm:$0xf] %vm1727_vm6, %v6456_v57 }
 0x908   :  { %6994 = vmatmul.bf16.gmra.mxu0 %v20753_v19  ;;  %v16044_v19 = vld [vmem:[%s22709_s3 + $0x270] sm:$0xff] }
 0x909   :  { %v21067_v15 = vpop.f32.mrf.mxu1  ;;  %8372 = vmatpush.bf16.msrb.mxu1 %v16044_v19  ;;  %v7883_v19 = vld [vmem:[#allocation2 + $0xc] sm:$0x8] }
 0x90c   :  { %v21071_v29 = vpop.f32.mrf.mxu0 }
 0x90d   :  { %v7264_v50 = vld [vmem:[#allocation2 + $0x4c] sm:$0xf] }
 0x90e   :  { %v7051_v59 = vld [vmem:[#allocation2 + $0x4c] sm:$0x7]  ;;  %v7282_v1 = vunpack.c.l.b16 %v7264_v50  ;;  %v23103_v50 = vrot.slane %v20888_v34, 3 }
 0x90f   :  { %v21069_v31 = vld [vmem:[#allocation2 + $0x48] sm:$0xff]  ;;  %v7105_v57 = vunpack.c.l.b16 %v7051_v59 }
 0x910   :  { %v7291_v7 = vpack.c.b16 %v7282_v1, %v23102_v4  ;;  %v22774_v0 = vrot.slane %v21069_v31, 1  ;;  %v22773_v4 = vunpack.c.l.b16 %v21089_v12  ;;  %v16043_v34 = vld [vmem:[%s22709_s3 + $0x268] sm:$0xff] }
 0x911   :  { %v7115_v43 = vpack.c.b16 %v7105_v57, %v7105_v57  ;;  %8373 = vmatpush.bf16.msrb.mxu1 %v16043_v34 }
 0x912   :  { %7397 = vmatmul.bf16.gmra.mxu2 %v7291_v7  ;;  %v6856_v36 = vpop.f32.mrf.mxu1  ;;  %v7520_v5 = vsel %vm1855_vm7, %v7517_v6, %v22774_v0  ;;  %v21102_v7 = vpop.f32.mrf.mxu3  ;;  %v16040_v0 = vld [vmem:[%s22709_s3 + $0x250] sm:$0xff] }
 0x913   :  { %v7133_v56 = vrot.slane %v7115_v43, 3  ;;  %v21097_v43 = vpop.f32.mrf.mxu2  ;;  %23105 = vst [vmem:[#allocation78_spill] sm:$0xff] %v21102_v7 }
 0x914   :  { %23104 = vst [vmem:[#allocation71_spill] sm:$0xff] %v21097_v43  ;;  %v6862_v43 = vld [vmem:[#allocation2 + $0x48] sm:$0x3] }
 0x915   :  { %v7134_v59 = vsel %vm2358_vm8, %v23103_v50, %v7133_v56  ;;  %v6737_v1 = vpop.f32.mrf.mxu0  ;;  %7623 = vmatmul.bf16.gmra.mxu1 %v7520_v5  ;;  %v7903_v56 = vunpack.c.l.b16 %v7883_v19  ;;  %v16041_v19 = vld [vmem:[%s22709_s3 + $0x258] sm:$0xff] }
 0x916   :  { %7240 = vmatmul.bf16.gmra.mxu3 %v7134_v59  ;;  %v21091_v57 = vadd.f32 %v6851_v22, %v6737_v1  ;;  %v16042_v22 = vld [vmem:[%s22709_s3 + $0x260] sm:$0xff]  ;;  %v21111_v59 = vld [vmem:[#allocation2 + $0x14] sm:$0xff]  }
 0x917   :  { %v7905_v5 = vpack.c.b16 %v22773_v4, %v7903_v56  ;;  %8374 = vmatpush.bf16.msrb.mxu1 %v16042_v22  ;;  %v7908_v34 = vrot.slane %v21111_v59, 3  ;;  %v16008_v22 = vld [vmem:[%s22709_s3 + $0x190] sm:$0xff] }
 0x918   :  { %6999 = vmatmul.bf16.gmra.mxu0 %v20808_v33  ;;  %v16009_v33 = vld [vmem:[%s22709_s3 + $0x198] sm:$0xff] }
 0x919   :  { %v7907_v1 = vrot.slane %v7905_v5, 3  ;;  %7815 = vmatpush.bf16.msra.mxu0 %v16009_v33 }
 0x91a   :  { %v21100_v6 = vpop.f32.mrf.mxu1  ;;  %v21132_v33 = vpop.f32.mrf.mxu3 }
 0x91b   :  { %8375 = vmatpush.bf16.msrb.mxu1 %v16041_v19  ;;  %v21121_v56 = vpop.f32.mrf.mxu2  ;;  %v7909_v5 = vsel %vm2358_vm8, %v7907_v1, %v7908_v34  ;;  %v16007_v19 = vld [vmem:[%s22709_s3 + $0x188] sm:$0xff] }
 0x91d   :  { %v21109_v50 = vpop.f32.mrf.mxu0  ;;  %7816 = vmatpush.bf16.msra.mxu0 %v16008_v22  ;;  %v16038_v22 = vld [vmem:[%s22709_s3 + $0x240] sm:$0xff] }
 0x91f   :  { %8376 = vmatpush.bf16.msrb.mxu1 %v16040_v0  ;;  %v16006_v0 = vld [vmem:[%s22709_s3 + $0x180] sm:$0xff] }
 0x921   :  { %7817 = vmatpush.bf16.msra.mxu0 %v16007_v19 }
 0x922   :  { %8148 = vmatmul.bf16.vlgmr.msra.gmra.mxu2 %v21089_v12  ;;  %v21123_v4 = vpop.f32.mrf.mxu1 }
 0x923   :  { %8377 = vmatpush.bf16.msrb.mxu1 %v16039_v54  ;;  %v5840_v54 = vpop.permute.xlu2 %5839 }
 0x925   :  { %v6742_v27 = vpop.f32.mrf.mxu0  ;;  %7818 = vmatpush.bf16.msra.mxu0 %v16006_v0 }
 0x926   :  { %7991 = vmatmul.bf16.vlgmr.msra.gmra.mxu3 %v7909_v5  ;;  %v21140_v38 = vadd.f32 %v6856_v36, %v6742_v27  ;;  %v21152_v36 = vld [vmem:[#allocation2 + $0x1c] sm:$0xff]   ;;  %v6882_v27 = vunpack.c.l.b16 %v6862_v43  ;;  %v5891_v43 = vmax.f32 %v20935_v11, %v5840_v54 }
 0x927   :  { %8378 = vmatpush.bf16.msrb.mxu1 %v16038_v22 }
 0x928   :  { %7004 = vmatmul.bf16.gmra.mxu0 %v20867_v39  ;;  %v6458_v1 = vpop.permute.xlu0 %6457  ;;  %v21154_v39 = vpop.f32.mrf.mxu2  ;;  %v6884_v13 = vpack.c.b16 %v6882_v27, %v6882_v27  ;;  %v23109_v27 = vrot.slane %v21152_v36, 3 }
 0x929   :  { %6512 = vst.msk [vmem:[#allocation2 + $0x50] sm:$0xf] %vm1727_vm6, %v6458_v1  ;;  %v21159_v1 = vpop.f32.mrf.mxu3 }
 0x92a   :  { %v21150_v5 = vpop.f32.mrf.mxu1  ;;  %23107 = vst [vmem:[#allocation55_spill] sm:$0xff] %v21154_v39  ;;  %v6902_v11 = vrot.slane %v6884_v13, 2 }
 0x92b   :  { %23106 = vst [vmem:[#allocation13_spill] sm:$0xff] %v21150_v5 }
 0x92c   :  { %23108 = vst [vmem:[#allocation73_spill] sm:$0xff] %v21159_v1  ;;  %v7911_v1 = vsel %vm2358_vm8, %v7908_v34, %v23109_v27  ;;  %v5967_v27 = vpop.permute.xlu2 %5966 }
 0x92d   :  { %v21156_v32 = vpop.f32.mrf.mxu0 }
 0x930   :  { %v6460_v7 = vpop.permute.xlu1 %6459  ;;  %v5965_v41 = vpop.permute.xlu0 %5964  ;;  %v7439_v17 = vld [vmem:[#allocation2 + $0x50] sm:$0x1] }
 0x931   :  { %v21161_v5 = vld [vmem:[#allocation2 + $0x4c] sm:$0xff]  ;;  %6513 = vst.msk [vmem:[#allocation2 + $0x54] sm:$0xf] %vm1727_vm6, %v6460_v7  ;;  %v6016_v39 = vmax.f32 %v20955_v30, %v5965_v41  ;;  %v7493_v0 = vunpack.c.l.b16 %v7439_v17  ;;  %v23110_v41 = vrot.slane %v20883_v45, 3  ;;  %v23111_v30 = vrot.slane %v20883_v45, 2 }
 0x932   :  { %8153 = vmatmul.bf16.gmra.mxu2 %v16476_v53  ;;  %v21166_v22 = vld [vmem:[#allocation2 + $0x4c] sm:$0xff]  ;;  %v21168_v19 = vpop.f32.mrf.mxu1  ;;  %v22775_v2 = vrot.slane %v21161_v5, 3  ;;  %v22776_v14 = vrot.slane %v21161_v5, 2 }
 0x933   :  { %v6041_v20 = vmax.f32 %v5891_v43, %v6016_v39  ;;  %v7503_v54 = vpack.c.b16 %v7493_v0, %v7493_v0  ;;  %v22777_v7 = vrot.slane %v21166_v22, 2  ;;  %v21198_v0 = vpop.f32.mrf.mxu2 }
 0x934   :  { %v21181_v53 = vsel %vm2358_vm8, %v23110_v41, %v22775_v2  ;;  %v21188_v17 = vsel %vm550_vm0, %v23111_v30, %v22776_v14  ;;  %v23115_v30 = vrot.slane %v20850_v55, 2 }
 0x935   :  { %23112 = vst [vmem:[#allocation36_spill] sm:$0xff] %v21188_v17  ;;  %v6066_v13 = vadd.f32 %v20606_v51, %v6041_v20  ;;  %v6970_v34 = vpop.f32.mrf.mxu0  ;;  %v7521_v39 = vrot.slane %v7503_v54, 1  ;;  %v23116_v51 = vrot.slane %v21069_v31, 1  ;;  %v8212_v31 = vld [vmem:[#allocation2 + $0x14] sm:$0xe] }
 0x936   :  { %7996 = vmatmul.bf16.gmra.mxu3 %v7911_v1  ;;  %v23113_v1 = vrot.slane %v20894_v28, 2  ;;  %v7015_v41 = vadd.f32 %v6970_v34, %v20706_v58  ;;  %v6903_v14 = vsel %vm550_vm0, %v23115_v30, %v6902_v11  ;;  %v6017_v58 = vmax.f32 %v20694_v52, %v5967_v27 }
 0x937   :  { %v6091_v2 = vmax.f32 %v6066_v13, 0.0  ;;  %v7522_v20 = vsel %vm1855_vm7, %v23116_v51, %v7521_v39  ;;  %v8266_v27 = vunpack.c.l.b16 %v8212_v31 }
 0x938   :  { %v21196_v43 = vsel %vm550_vm0, %v23113_v1, %v22777_v7  ;;  %v7246_v54 = vadd.f32 %v21039_v37, %v7015_v41  ;;  %7009 = vmatmul.bf16.gmra.mxu0 %v6903_v14  ;;  %v5842_v28 = vpop.permute.xlu1 %5841  ;;  %7628 = vmatmul.bf16.gmra.mxu1 %v7522_v20  ;;  %v21208_v1 = vpop.f32.mrf.mxu3  ;;  %v6392_v7 = vshrl.u32 %v20947_v48, 16  ;;  %v21217_v14 = vld [vmem:[#allocation2 + $0x24] sm:$0xff]  }
 0x939   :  { %23114 = vst [vmem:[#allocation80_spill] sm:$0xff] %v21196_v43  ;;  %v7652_v43 = vld [vmem:[#allocation2 + $0xc] sm:$0xc]  ;;  %v6116_v13 = vpack.c.bf16 %v6091_v2, %v6091_v2  ;;  %v5892_v55 = vmax.f32 %v20147_v25, %v5842_v28  ;;  %v16707_v2 = vld [vmem:[%s22708_s2] ss:$0 sm:$0xff]  ;;  %v7912_v20 = vrot.slane %v21217_v14, 3  ;;  %v8285_v28 = vpack.c.b16 %v20531_v24, %v8266_v27 }
 0x93a   :  { %v21213_v11 = vpop.f32.mrf.mxu1  ;;  %v7403_v34 = vadd.f32 %v21032_v18, %v7246_v54  ;;  %v7706_v39 = vunpack.c.l.b16 %v7652_v43  ;;  %v6394_v48 = vrot.slane %v6392_v7, 4  ;;  %v23117_v18 = vunpack.c.l.b16 %v21089_v12  ;;  %v16477_v43 = vld [vmem:[#allocation2 + $0x20] sm:$0xff]  }
 0x93b   :  { %6141 = vst.msk [vmem:[#allocation2 + $0x5c] sm:$0xf] %vm1348_vm2, %v6116_v13  ;;  %v6042_v37 = vmax.f32 %v5892_v55, %v6017_v58  ;;  %v21230_v54 = vpop.f32.mrf.mxu2  ;;  %v23118_v12 = vrot.slane %v21152_v36, 3  ;;  %vm11898_vm2 = vcmask 1041408  }
 0x93c   :  { %v21220_v41 = vadd.f32 %v21123_v4, %v7403_v34  ;;  %v7725_v30 = vpack.c.b16 %v23117_v18, %v7706_v39  ;;  %v6395_v4 = vor.u32 %v6394_v48, %v20952_v8  ;;  %v7736_v48 = vrot.slane %v21111_v59, 2 }
 0x93d   :  { %v6067_v25 = vadd.f32 %v16707_v2, %v6042_v37  ;;  %v21225_v52 = vpop.f32.mrf.mxu0  ;;  %v7913_v34 = vsel %vm2358_vm8, %v23118_v12, %v7912_v20  ;;  %v16708_v37 = vld [vmem:[#allocation2 + $0x1c] sm:$0xff] }
 0x93e   :  { %v7735_v58 = vrot.slane %v7725_v30, 2  ;;  %v8296_v39 = vrot.slane %v16708_v37, 1  ;;  %v6396_v27 = vrot.slane %v6395_v4, 4 }
 0x93f   :  { %v6092_v51 = vmax.f32 %v6067_v25, 0.0  ;;  %v8295_v25 = vrot.slane %v8285_v28, 1 }
 0x940   :  { %v21236_v31 = vpop.f32.mrf.mxu3 }
 0x941   :  { %v6117_v7 = vpack.c.bf16 %v6092_v51, %v6092_v51 }
 0x942   :  { %8158 = vmatmul.bf16.gmra.mxu2 %v16477_v43  ;;  %v21234_v13 = vpop.f32.mrf.mxu1  ;;  %v6166_v55 = vld [vmem:[#allocation2 + $0x5c] sm:$0xf]  ;;  %v7737_v43 = vsel %vm550_vm0, %v7735_v58, %v7736_v48 }
 0x943   :  { %6142 = vst.msk [vmem:[#allocation2 + $0x60] sm:$0x3] %vm1373_vm9, %v6117_v7  ;;  %v6398_v2 = vshll.u32 %v6166_v55, 16  ;;  %v6402_v8 = vshrl.u32 %v6166_v55, 16  ;;  %v8297_v7 = vsel %vm1855_vm7, %v8295_v25, %v8296_v39  ;;  %v21248_v37 = vpop.f32.mrf.mxu2 }
 0x945   :  { %v6975_v24 = vpop.f32.mrf.mxu0  ;;  %v6400_v18 = vrot.slane %v6398_v2, 5  ;;  %v6404_v30 = vrot.slane %v6402_v8, 4  ;;  %v21257_v8 = vld [vmem:[#allocation2 + $0x2c] sm:$0xff]  }
 0x946   :  { %8001 = vmatmul.bf16.gmra.mxu3 %v7913_v34  ;;  %v7017_v51 = vadd.f32 %v6975_v24, %v20739_v26 }
 0x947   :  { %v6401_v12 = vsel %vm17600_vm5, %v6396_v27, %v6400_v18  ;;  %v6405_v59 = vor.u32 %v6404_v30, %v6400_v18 }
 0x948   :  { %v7248_v55 = vadd.f32 %v21081_v61, %v7017_v51  ;;  %7819 = vmatmul.bf16.vlgmr.msra.gmra.mxu0 %v7737_v43  ;;  %8379 = vmatmul.bf16.vlgmr.msrb.gmra.mxu1 %v8297_v7  ;;  %v21255_v58 = vpop.f32.mrf.mxu3  ;;  %v16478_v43 = vld [vmem:[#allocation2 + $0x28] sm:$0xff]  }
 0x949   :  { %6461 = vrot.lane.b32.xlu0 %v6401_v12, %s16765_s28  ;;  %v6406_v25 = vrot.slane %v6405_v59, 4  ;;  %v7738_v59 = vrot.slane %v21152_v36, 2 }
 0x94a   :  { %v21252_v4 = vpop.f32.mrf.mxu1  ;;  %v6167_v28 = vld [vmem:[#allocation2 + $0x60] sm:$0x7]  ;;  %v7405_v26 = vadd.f32 %v21073_v40, %v7248_v55  ;;  %v7914_v40 = vrot.slane %v21257_v8, 3 }
 0x94b   :  { %v6408_v34 = vshll.u32 %v6167_v28, 16  ;;  %v6412_v2 = vshrl.u32 %v6167_v28, 16  ;;  %v21268_v12 = vpop.f32.mrf.mxu2  ;;  %v16709_v28 = vld [vmem:[#allocation2 + $0x24] sm:$0xff] }
 0x94c   :  { %v21260_v24 = vadd.f32 %v21168_v19, %v7405_v26  ;;  %v7915_v55 = vsel %vm2358_vm8, %v7912_v20, %v7914_v40  ;;  %v8298_v21 = vrot.slane %v16709_v28, 1  ;;  %v8300_v28 = vrot.slane %v20737_v46, 1 }
 0x94d   :  { %v21262_v61 = vpop.f32.mrf.mxu0  ;;  %v6410_v27 = vrot.slane %v6408_v34, 5  ;;  %v6414_v51 = vrot.slane %v6412_v2, 4 }
 0x94f   :  { %v6411_v18 = vsel %vm17600_vm5, %v6406_v25, %v6410_v27  ;;  %v6415_v30 = vor.u32 %v6414_v51, %v6410_v27  ;;  %v7739_v25 = vsel %vm550_vm0, %v7736_v48, %v7738_v59  ;;  %v8299_v27 = vsel %vm1855_vm7, %v8296_v39, %v8298_v21 }
 0x950   :  { %6463 = vrot.lane.b32.xlu1 %v6411_v18, %s16765_s28  ;;  %v21273_v26 = vpop.f32.mrf.mxu3  ;;  %v21280_v18 = vld [vmem:[#allocation2 + $0x34] sm:$0xff]   ;;  %vm11823_vm5 = vcmask 982016  }
 0x951   :  { %v6416_v7 = vrot.slane %v6415_v30, 4  ;;  %v7916_v39 = vrot.slane %v21280_v18, 3 }
 0x952   :  { %8163 = vmatmul.bf16.gmra.mxu2 %v16478_v43  ;;  %v7604_v19 = vpop.f32.mrf.mxu1 }
 0x953   :  { %6465 = vrot.lane.b32.xlu2 %v6416_v7, %s16765_s28  ;;  %v21282_v36 = vpop.f32.mrf.mxu2  ;;  %v7917_v7 = vsel %vm2358_vm8, %v7914_v40, %v7916_v39 }
 0x955   :  { %v6980_v34 = vpop.f32.mrf.mxu0 }
 0x956   :  { %8006 = vmatmul.bf16.gmra.mxu3 %v7915_v55  ;;  %v7019_v2 = vadd.f32 %v6980_v34, %v20788_v23  ;;  %v7740_v55 = vrot.slane %v21217_v14, 2  ;;  %v21309_v14 = vld [vmem:[#allocation2 + $0x3c] sm:$0xff]  }
 0x958   :  { %v7250_v51 = vadd.f32 %v21132_v33, %v7019_v2  ;;  %7824 = vmatmul.bf16.gmra.mxu0 %v7739_v25  ;;  %8384 = vmatmul.bf16.gmra.mxu1 %v8299_v27  ;;  %v21291_v48 = vpop.f32.mrf.mxu3  ;;  %v16479_v33 = vld [vmem:[#allocation2 + $0x30] sm:$0xff]   ;;  %v7741_v27 = vsel %vm550_vm0, %v7738_v59, %v7740_v55 }
 0x95a   :  { %v7407_v20 = vadd.f32 %v21121_v56, %v7250_v51  ;;  %v21284_v30 = vpop.f32.mrf.mxu1  ;;  %v16053_v56 = vld [vmem:[%s22709_s3 + $0x2b8] sm:$0xff]  ;;  %v8301_v51 = vsel %vm1855_vm7, %v8298_v21, %v8300_v28 }
 0x95b   :  { %8543 = vmatpush.bf16.msrb.mxu0 %v16053_v56  ;;  %v21300_v34 = vpop.f32.mrf.mxu2  ;;  %v16480_v21 = vld [vmem:[#allocation2 + $0x38] sm:$0xff]  }
 0x95c   :  { %v21287_v43 = vadd.f32 %v21234_v13, %v7407_v20  ;;  %23119 = vst [vmem:[#allocation33_spill] sm:$0xff] %v21300_v34 }
 0x95d   :  { %v21289_v23 = vpop.f32.mrf.mxu0 }
 0x960   :  { %v21306_v40 = vpop.f32.mrf.mxu3 }
 0x962   :  { %8168 = vmatmul.bf16.gmra.mxu2 %v16479_v33  ;;  %v7609_v2 = vpop.f32.mrf.mxu1 }
 0x965   :  { %v6985_v13 = vpop.f32.mrf.mxu0 }
 0x966   :  { %8011 = vmatmul.bf16.gmra.mxu3 %v7917_v7  ;;  %v7021_v25 = vadd.f32 %v6985_v13, %v20848_v47  ;;  %v21315_v7 = vpop.f32.mrf.mxu2  ;;  %v7918_v47 = vrot.slane %v21309_v14, 3 }
 0x968   :  { %v7252_v20 = vadd.f32 %v21208_v1, %v7021_v25  ;;  %7829 = vmatmul.bf16.gmra.mxu0 %v7741_v27  ;;  %8389 = vmatmul.bf16.gmra.mxu1 %v8301_v51  ;;  %v16078_v1 = vld [vmem:[%s22709_s3 + $0x338] sm:$0xff]  ;;  %v7919_v13 = vsel %vm2358_vm8, %v7916_v39, %v7918_v47  ;;  %v7742_v25 = vrot.slane %v21257_v8, 2  ;;  %v8302_v27 = vrot.slane %v20786_v42, 1  ;;  %v16060_v8 = vld [vmem:[%s22709_s3 + $0x2f0] sm:$0xff] }
 0x969   :  { %v6837_v51 = vadd.f32 %v20969_v3, %v20978_v62  ;;  %8923 = vmatpush.bf16.msrb.mxu2 %v16078_v1  ;;  %v16061_v42 = vld [vmem:[%s22709_s3 + $0x2f8] sm:$0xff]  ;;  %v16077_v3 = vld [vmem:[%s22709_s3 + $0x330] sm:$0xff] }
 0x96a   :  { %v7409_v46 = vadd.f32 %v21198_v0, %v7252_v20  ;;  %v21318_v59 = vpop.f32.mrf.mxu1  ;;  %v16052_v0 = vld [vmem:[%s22709_s3 + $0x2b0] sm:$0xff]  ;;  %v8303_v17 = vsel %vm1855_vm7, %v8300_v28, %v8302_v27  ;;  %8715 = vmatpush.bf16.msrb.mxu3 %v16061_v42  ;;  %v7744_v42 = vrot.slane %v21280_v18, 2 }
 0x96b   :  { %8544 = vmatpush.bf16.msrb.mxu0 %v16052_v0 }
 0x96c   :  { %v21311_v33 = vadd.f32 %v7604_v19, %v7409_v46  ;;  %v21326_v19 = vpop.f32.mrf.mxu3 }
 0x96d   :  { %v21313_v56 = vpop.f32.mrf.mxu0  ;;  %8924 = vmatpush.bf16.msrb.mxu2 %v16077_v3  ;;  %v16710_v3 = vld [vmem:[#allocation2 + $0x3c] sm:$0xff] }
 0x96e   :  { %v21335_v34 = vpop.f32.mrf.mxu2  ;;  %8716 = vmatpush.bf16.msrb.mxu3 %v16060_v8  ;;  %v8304_v8 = vrot.slane %v16710_v3, 1 }
 0x96f   :  { %23120 = vst [vmem:[#allocation75_spill] sm:$0xff] %v21335_v34  ;;  %v16482_v34 = vld [vmem:[#allocation2 + $0x48] sm:$0xff]  }
 0x970   :  { %v8305_v18 = vsel %vm1855_vm7, %v8302_v27, %v8304_v8 }
 0x972   :  { %8173 = vmatmul.bf16.gmra.mxu2 %v16480_v21  ;;  %v7743_v21 = vsel %vm550_vm0, %v7740_v55, %v7742_v25  ;;  %v7614_v62 = vpop.f32.mrf.mxu1  ;;  %v21351_v55 = vld [vmem:[#allocation2 + $0x44] sm:$0xff]  }
 0x974   :  { %v21355_v1 = vpop.f32.mrf.mxu3 }
 0x975   :  { %v6990_v20 = vpop.f32.mrf.mxu0  ;;  %23121 = vst [vmem:[#allocation82_spill] sm:$0xff] %v21355_v1  ;;  %v16764_v1 = vld [vmem:[#allocation2 + $0x4c] sm:$0xf] }
 0x976   :  { %8016 = vmatmul.bf16.gmra.mxu3 %v7919_v13  ;;  %v7023_v46 = vadd.f32 %v6990_v20, %v6837_v51  ;;  %v7920_v51 = vrot.slane %v21351_v55, 3  ;;  %v16481_v20 = vld [vmem:[#allocation2 + $0x40] sm:$0xff]  }
 0x978   :  { %v7254_v39 = vadd.f32 %v21255_v58, %v7023_v46  ;;  %7834 = vmatmul.bf16.gmra.mxu0 %v7743_v21  ;;  %8394 = vmatmul.bf16.gmra.mxu1 %v8303_v17  ;;  %v16076_v58 = vld [vmem:[%s22709_s3 + $0x328] sm:$0xff]  ;;  %v16074_v21 = vld [vmem:[%s22709_s3 + $0x318] sm:$0xff] }
 0x979   :  { %8925 = vmatpush.bf16.msrb.mxu2 %v16076_v58  ;;  %v16059_v46 = vld [vmem:[%s22709_s3 + $0x2e8] sm:$0xff] }
 0x97a   :  { %v7411_v17 = vadd.f32 %v21248_v37, %v7254_v39  ;;  %v16075_v37 = vld [vmem:[%s22709_s3 + $0x320] sm:$0xff]  ;;  %8717 = vmatpush.bf16.msrb.mxu3 %v16059_v46  ;;  %v7921_v39 = vsel %vm2358_vm8, %v7918_v47, %v7920_v51  ;;  %v21377_v58 = vpop.f32.mrf.mxu1  ;;  %v7745_v47 = vsel %vm550_vm0, %v7742_v25, %v7744_v42 }
 0x97b   :  { %23122 = vst [vmem:[#allocation28_spill] sm:$0xff] %v21377_v58 }
 0x97c   :  { %v21353_v28 = vadd.f32 %v7609_v2, %v7411_v17  ;;  %v21367_v2 = vpop.f32.mrf.mxu2  ;;  %v21379_v17 = vld [vmem:[#allocation2 + $0x50] sm:$0xff]  }
 0x97d   :  { %v6992_v0 = vpop.f32.mrf.mxu0  ;;  %8926 = vmatpush.bf16.msrb.mxu2 %v16075_v37 }
 0x97e   :  { %v21358_v13 = vadd.f32 %v6992_v0, %v20999_v60  ;;  %v16058_v60 = vld [vmem:[%s22709_s3 + $0x2e0] sm:$0xff]  ;;  %v16763_v0 = vld [vmem:[#allocation2 + $0x4c] sm:$0xf0]  }
 0x97f   :  { %8718 = vmatpush.bf16.msrb.mxu3 %v16058_v60  ;;  %v16073_v60 = vld [vmem:[%s22709_s3 + $0x310] sm:$0xff]  ;;  %v21400_v27 = vor.u32 %v16764_v1, %v16763_v0  ;;  %v16055_v0 = vld [vmem:[%s22709_s3 + $0x2c8] sm:$0xff] }
 0x981   :  { %8927 = vmatpush.bf16.msrb.mxu2 %v16074_v21  ;;  %v16072_v21 = vld [vmem:[%s22709_s3 + $0x308] sm:$0xff]  ;;  %v7922_v1 = vrot.slane %v21400_v27, 3 }
 0x982   :  { %8178 = vmatmul.bf16.gmra.mxu2 %v16481_v20  ;;  %v21381_v20 = vpop.f32.mrf.mxu3 }
 0x985   :  { %v6995_v46 = vpop.f32.mrf.mxu0  ;;  %8928 = vmatpush.bf16.msrb.mxu2 %v16073_v60  ;;  %v8306_v60 = vrot.slane %v20883_v45, 1 }
 0x986   :  { %8021 = vmatmul.bf16.gmra.mxu3 %v7921_v39  ;;  %v7025_v37 = vadd.f32 %v6995_v46, %v21013_v49  ;;  %v16051_v39 = vld [vmem:[%s22709_s3 + $0x2a8] sm:$0xff]  ;;  %v16057_v49 = vld [vmem:[%s22709_s3 + $0x2d8] sm:$0xff]  ;;  %v6844_v46 = vadd.f32 %v20987_v10, %v21041_v16  ;;  %v16071_v10 = vld [vmem:[%s22709_s3 + $0x300] sm:$0xff] }
 0x987   :  { %8545 = vmatpush.bf16.msrb.mxu0 %v16051_v39  ;;  %8719 = vmatpush.bf16.msrb.mxu3 %v16057_v49  ;;  %v7619_v39 = vpop.f32.mrf.mxu1  ;;  %v16054_v16 = vld [vmem:[%s22709_s3 + $0x2c0] sm:$0xff] }
 0x988   :  { %v7256_v3 = vadd.f32 %v21291_v48, %v7025_v37  ;;  %7839 = vmatmul.bf16.gmra.mxu0 %v7745_v47  ;;  %8399 = vmatmul.bf16.gmra.mxu1 %v8305_v18  ;;  %v16056_v48 = vld [vmem:[%s22709_s3 + $0x2d0] sm:$0xff]  ;;  %v21407_v37 = vpop.f32.mrf.mxu2 }
 0x989   :  { %8929 = vmatpush.bf16.msrb.mxu2 %v16072_v21 }
 0x98a   :  { %v7413_v25 = vadd.f32 %v21282_v36, %v7256_v3  ;;  %v21413_v36 = vpop.f32.mrf.mxu3  ;;  %v7746_v3 = vrot.slane %v21309_v14, 2 }
 0x98b   :  { %8720 = vmatpush.bf16.msrb.mxu3 %v16056_v48 }
 0x98c   :  { %v21409_v47 = vadd.f32 %v7614_v62, %v7413_v25  ;;  %v7923_v62 = vsel %vm2358_vm8, %v7920_v51, %v7922_v1  ;;  %v7884_v25 = vld [vmem:[#allocation2 + $0x54] sm:$0x7] }
 0x98d   :  { %v6997_v18 = vpop.f32.mrf.mxu0  ;;  %8930 = vmatpush.bf16.msrb.mxu2 %v16071_v10  ;;  %v7904_v51 = vunpack.c.l.b16 %v7884_v25 }
 0x98e   :  { %v21411_v49 = vadd.f32 %v6997_v18, %v6844_v46  ;;  %v7747_v18 = vsel %vm550_vm0, %v7744_v42, %v7746_v3 }
 0x98f   :  { %8721 = vmatpush.bf16.msrb.mxu3 %v16055_v0  ;;  %v8307_v0 = vsel %vm1855_vm7, %v8304_v8, %v8306_v60  ;;  %v21435_v58 = vpop.f32.mrf.mxu1  ;;  %v7906_v10 = vpack.c.b16 %v7904_v51, %v7904_v51 }
 0x992   :  { %8183 = vmatmul.bf16.gmra.mxu2 %v16482_v34 }
 0x993   :  { %8722 = vmatpush.bf16.msrb.mxu3 %v16054_v16  ;;  %v16050_v16 = vld [vmem:[%s22709_s3 + $0x2a0] sm:$0xff] }
 0x994   :  { %8546 = vmatpush.bf16.msrb.mxu0 %v16050_v16 }
 0x995   :  { %v21428_v48 = vpop.f32.mrf.mxu2  ;;  %v7000_v21 = vpop.f32.mrf.mxu0 }
 0x996   :  { %8026 = vmatmul.bf16.gmra.mxu3 %v7923_v62  ;;  %v7027_v46 = vadd.f32 %v7000_v21, %v21056_v9  ;;  %v6849_v9 = vadd.f32 %v21034_v63, %v21071_v29  ;;  %v7924_v21 = vrot.slane %v7906_v10, 3  ;;  %v7748_v29 = vrot.slane %v21351_v55, 2 }
 0x998   :  { %v7258_v45 = vadd.f32 %v21326_v19, %v7027_v46  ;;  %7844 = vmatmul.bf16.gmra.mxu0 %v7747_v18  ;;  %8404 = vmatmul.bf16.gmra.mxu1 %v8307_v0  ;;  %v7925_v63 = vsel %vm2358_vm8, %v7922_v1, %v7924_v21  ;;  %v8308_v46 = vrot.slane %v21161_v5, 1  ;;  %v7749_v51 = vsel %vm550_vm0, %v7746_v3, %v7748_v29  ;;  %v16049_v3 = vld [vmem:[%s22709_s3 + $0x298] sm:$0xff] }
 0x999   :  { %v21431_v34 = vpop.f32.mrf.mxu3  ;;  %8547 = vmatpush.bf16.msrb.mxu0 %v16049_v3 }
 0x99a   :  { %v7415_v14 = vadd.f32 %v21315_v7, %v7258_v45  ;;  %v7624_v7 = vpop.f32.mrf.mxu1  ;;  %v8309_v45 = vsel %vm1855_vm7, %v8306_v60, %v8308_v46  ;;  %v16094_v60 = vld [vmem:[%s22709_s3 + $0x378] sm:$0xff] }
 0x99b   :  { %9154 = vmatpush.bf16.msra.mxu1 %v16094_v60  ;;  %v6859_v60 = vadd.f32 %v21100_v6, %v21156_v32 }
 0x99c   :  { %v21444_v42 = vadd.f32 %v7619_v39, %v7415_v14  ;;  %v6854_v14 = vadd.f32 %v21067_v15, %v21109_v50  ;;  %v16062_v15 = vld [vmem:[#allocation2 + $0x1c] sm:$0xff] }
 0x99d   :  { %v7002_v8 = vpop.f32.mrf.mxu0  ;;  %v21446_v62 = vpop.f32.mrf.mxu2 }
 0x99e   :  { %v21448_v25 = vadd.f32 %v7002_v8, %v6849_v9 }
 0x9a1   :  { %v21450_v19 = vpop.f32.mrf.mxu3 }
 0x9a2   :  { %8188 = vmatmul.bf16.gmra.mxu2 %v21379_v17 }
 0x9a5   :  { %v7005_v39 = vpop.f32.mrf.mxu0  ;;  %v21463_v17 = vpop.f32.mrf.mxu2 }
 0x9a6   :  { %8031 = vmatmul.bf16.gmra.mxu3 %v7925_v63  ;;  %v7029_v18 = vadd.f32 %v7005_v39, %v21091_v57  ;;  %v21469_v57 = vpop.f32.mrf.mxu1  ;;  %v16048_v63 = vld [vmem:[%s22709_s3 + $0x290] sm:$0xff] }
 0x9a7   :  { %8548 = vmatpush.bf16.msrb.mxu0 %v16048_v63  ;;  %v16063_v63 = vld [vmem:[#allocation2 + $0x24] sm:$0xff] }
 0x9a8   :  { %v7260_v1 = vadd.f32 %v21381_v20, %v7029_v18  ;;  %7849 = vmatmul.bf16.gmra.mxu0 %v7749_v51  ;;  %8409 = vmatmul.bf16.gmra.mxu1 %v8309_v45 }
 0x9a9   :  { %v21457_v0 = vpop.f32.mrf.mxu3 }
 0x9aa   :  { %v7417_v55 = vadd.f32 %v21367_v2, %v7260_v1  ;;  %v7670_v1 = vld [vmem:[#allocation2 + $0x54] sm:$0x3] }
 0x9ab   :  { %v7724_v3 = vunpack.c.l.b16 %v7670_v1 }
 0x9ac   :  { %v21477_v10 = vadd.f32 %v7624_v7, %v7417_v55  ;;  %v7750_v7 = vrot.slane %v21400_v27, 2  ;;  %v16047_v27 = vld [vmem:[%s22709_s3 + $0x288] sm:$0xff] }
 0x9ad   :  { %v7007_v20 = vpop.f32.mrf.mxu0  ;;  %v6466_v9 = vpop.permute.xlu2 %6465  ;;  %8549 = vmatpush.bf16.msrb.mxu0 %v16047_v27 }
 0x9ae   :  { %v7030_v16 = vadd.f32 %v7007_v20, %v6854_v14  ;;  %6516 = vst.msk [vmem:[#allocation2 + $0x60] sm:$0x3] %vm1752_vm10, %v6466_v9  ;;  %v21483_v8 = vpop.f32.mrf.mxu2 }
 0x9b0   :  { %v7261_v50 = vadd.f32 %v21413_v36, %v7030_v16  ;;  %v16093_v36 = vld [vmem:[%s22709_s3 + $0x370] sm:$0xff] }
 0x9b1   :  { %v21481_v2 = vpop.f32.mrf.mxu3  ;;  %9155 = vmatpush.bf16.msra.mxu1 %v16093_v36  ;;  %v7734_v36 = vpack.c.b16 %v7724_v3, %v7724_v3 }
 0x9b2   :  { %8931 = vmatmul.bf16.vlgmr.msrb.gmra.mxu2 %v16062_v15  ;;  %v21486_v21 = vadd.f32 %v21407_v37, %v7261_v50  ;;  %v7751_v37 = vsel %vm550_vm0, %v7748_v29, %v7750_v7  ;;  %v23123_v15 = vld [vmem:[#allocation70_spill] sm:$0xff]  ;;  %v16090_v50 = vld [vmem:[%s22709_s3 + $0x358] sm:$0xff] }
 0x9b3   :  { %v6819_v32 = vadd.f32 %v23123_v15, %v20723_v35  ;;  %v7752_v35 = vrot.slane %v7734_v36, 2  ;;  %v16088_v15 = vld [vmem:[%s22709_s3 + $0x348] sm:$0xff] }
 0x9b5   :  { %v7010_v39 = vpop.f32.mrf.mxu0  ;;  %v7629_v18 = vpop.f32.mrf.mxu1 }
 0x9b6   :  { %8723 = vmatmul.bf16.vlgmr.msrb.gmra.mxu3 %v20578_v44  ;;  %v7031_v51 = vadd.f32 %v7010_v39, %v21140_v38  ;;  %v16092_v44 = vld [vmem:[%s22709_s3 + $0x368] sm:$0xff]  ;;  %v21510_v20 = vpop.f32.mrf.mxu2  ;;  %v7016_v39 = vadd.f32 %v21225_v52, %v6819_v32  ;;  %v23125_v52 = vld [vmem:[#allocation63_spill] sm:$0xff] }
 0x9b7   :  { %9156 = vmatpush.bf16.msra.mxu1 %v16092_v44 }
 0x9b8   :  { %v7262_v45 = vadd.f32 %v21431_v34, %v7031_v51  ;;  %7854 = vmatmul.bf16.gmra.mxu0 %v7751_v37  ;;  %v16046_v34 = vld [vmem:[%s22709_s3 + $0x280] sm:$0xff] }
 0x9b9   :  { %v21506_v14 = vpop.f32.mrf.mxu3  ;;  %8550 = vmatpush.bf16.msrb.mxu0 %v16046_v34 }
 0x9ba   :  { %v7419_v55 = vadd.f32 %v21428_v48, %v7262_v45  ;;  %v16091_v48 = vld [vmem:[%s22709_s3 + $0x360] sm:$0xff]  ;;  %v23124_v45 = vld [vmem:[#allocation22_spill] sm:$0xff] }
 0x9bb   :  { %v6462_v38 = vpop.permute.xlu0 %6461  ;;  %9157 = vmatpush.bf16.msra.mxu1 %v16091_v48  ;;  %v7247_v1 = vadd.f32 %v23124_v45, %v7016_v39 }
 0x9bc   :  { %v21512_v9 = vadd.f32 %v7629_v18, %v7419_v55  ;;  %6514 = vst.msk [vmem:[#allocation2 + $0x58] sm:$0xf] %vm1727_vm6, %v6462_v38 }
 0x9bd   :  { %v7012_v29 = vpop.f32.mrf.mxu0  ;;  %v21521_v16 = vpop.f32.mrf.mxu1 }
 0x9be   :  { %v7032_v6 = vadd.f32 %v7012_v29, %v6859_v60  ;;  %v21548_v48 = vpop.f32.mrf.mxu2 }
 0x9bf   :  { %9158 = vmatpush.bf16.msra.mxu1 %v16090_v50 }
 0x9c0   :  { %v7263_v18 = vadd.f32 %v21450_v19, %v7032_v6  ;;  %v7753_v6 = vsel %vm550_vm0, %v7750_v7, %v7752_v35 }
 0x9c1   :  { %v21539_v55 = vpop.f32.mrf.mxu3 }
 0x9c2   :  { %8936 = vmatmul.bf16.gmra.mxu2 %v16063_v63  ;;  %v21531_v51 = vadd.f32 %v21446_v62, %v7263_v18  ;;  %v6464_v27 = vpop.permute.xlu1 %6463  ;;  %v16089_v62 = vld [vmem:[%s22709_s3 + $0x350] sm:$0xff]  ;;  %v23126_v63 = vrot.slane %v21161_v5, 3  ;;  %v23128_v18 = vld [vmem:[#allocation76_spill] sm:$0xff] }
 0x9c3   :  { %6515 = vst.msk [vmem:[#allocation2 + $0x5c] sm:$0xf] %vm1727_vm6, %v6464_v27  ;;  %v21534_v44 = vld [vmem:[#allocation2 + $0x54] sm:$0xff]  ;;  %9159 = vmatpush.bf16.msra.mxu1 %v16089_v62  ;;  %v23129_v27 = vrot.slane %v21166_v22, 2  ;;  %vm11894_vm6 = vcmask 687104  }
 0x9c4   :  { %v21536_v37 = vld [vmem:[#allocation2 + $0x54] sm:$0xff]  ;;  %v8310_v3 = vrot.slane %v21534_v44, 1  ;;  %v22780_v60 = vrot.slane %v21534_v44, 3  ;;  %v22779_v34 = vrot.slane %v21534_v44, 2 }
 0x9c5   :  { %v7820_v19 = vpop.f32.mrf.mxu0  ;;  %v8380_v38 = vpop.f32.mrf.mxu1  ;;  %v9263_v32 = vrot.slane %v21536_v37, 2 }
 0x9c6   :  { %8728 = vmatmul.bf16.gmra.mxu3 %v23125_v52  ;;  %v7865_v29 = vadd.f32 %v7820_v19, %v21220_v41  ;;  %v8311_v50 = vsel %vm1855_vm7, %v8308_v46, %v8310_v3  ;;  %v21564_v36 = vsel %vm2358_vm8, %v23126_v63, %v22780_v60  ;;  %v23127_v41 = vrot.slane %v21161_v5, 2  ;;  %v23130_v63 = vld [vmem:[#allocation13_spill] sm:$0xff] }
 0x9c7   :  { %8414 = vmatmul.bf16.gmra.mxu1 %v8311_v50  ;;  %v7404_v46 = vadd.f32 %v23128_v18, %v7247_v1  ;;  %v21578_v35 = vsel %vm550_vm0, %v23129_v27, %v9263_v32  ;;  %v16087_v1 = vld [vmem:[%s22709_s3 + $0x340] sm:$0xff]  ;;  %v23131_v50 = vld [vmem:[#allocation26_spill] sm:$0xff] }
 0x9c8   :  { %v21571_v39 = vsel %vm550_vm0, %v23127_v41, %v22779_v34  ;;  %v8037_v7 = vadd.f32 %v21457_v0, %v7865_v29  ;;  %7859 = vmatmul.bf16.gmra.mxu0 %v7753_v6  ;;  %9160 = vmatpush.bf16.msra.mxu1 %v16088_v15  ;;  %v16064_v18 = vld [vmem:[#allocation2 + $0x2c] sm:$0xff] }
 0x9c9   :  { %v7635_v0 = vadd.f32 %v23130_v63, %v7404_v46  ;;  %v8002_v15 = vpop.f32.mrf.mxu3  ;;  %v8159_v46 = vpop.f32.mrf.mxu2 }
 0x9ca   :  { %v8194_v45 = vadd.f32 %v21463_v17, %v8037_v7  ;;  %v8230_v52 = vld [vmem:[#allocation2 + $0x5c] sm:$0x1]  ;;  %v23132_v17 = vld [vmem:[#allocation23_spill] sm:$0xff] }
 0x9cb   :  { %v8284_v62 = vunpack.c.l.b16 %v8230_v52  ;;  %v21581_v5 = vld [vmem:[#allocation2 + $0x5c] sm:$0xff]  ;;  %v6824_v41 = vadd.f32 %v23132_v17, %v23131_v50  ;;  %v23133_v17 = vld [vmem:[#allocation78_spill] sm:$0xff] }
 0x9cc   :  { %v21583_v19 = vadd.f32 %v8380_v38, %v8194_v45  ;;  %v22778_v6 = vrot.slane %v21581_v5, 2  ;;  %9161 = vmatpush.bf16.msra.mxu1 %v16087_v1  ;;  %v23134_v1 = vld [vmem:[#allocation34_spill] sm:$0xff] }
 0x9cd   :  { %v7822_v29 = vpop.f32.mrf.mxu0  ;;  %v21589_v22 = vpop.f32.mrf.mxu1  ;;  %v8294_v38 = vpack.c.b16 %v8284_v62, %v8284_v62  ;;  %v7018_v27 = vadd.f32 %v21262_v61, %v6824_v41 }
 0x9ce   :  { %v7866_v7 = vadd.f32 %v7822_v29, %v7635_v0  ;;  %v21599_v52 = vsel %vm550_vm0, %v9263_v32, %v22778_v6  ;;  %v23135_v32 = vld [vmem:[#allocation61_spill] sm:$0xff] }
 0x9cf   :  { %v8312_v50 = vrot.slane %v8294_v38, 1  ;;  %v7249_v0 = vadd.f32 %v23133_v17, %v7018_v27  ;;  %v8995_v27 = vld [vmem:[#allocation2 + $0x1c] sm:$0xe] }
 0x9d0   :  { %v8038_v45 = vadd.f32 %v21481_v2, %v7866_v7 }
 0x9d1   :  { %v8313_v2 = vsel %vm1855_vm7, %v8310_v3, %v8312_v50  ;;  %v8004_v41 = vpop.f32.mrf.mxu3  ;;  %v9049_v3 = vunpack.c.l.b16 %v8995_v27  ;;  %v23137_v50 = vld [vmem:[#allocation21_spill] sm:$0xff] }
 0x9d2   :  { %8941 = vmatmul.bf16.gmra.mxu2 %v16064_v18  ;;  %v21602_v63 = vadd.f32 %v21483_v8, %v8038_v45  ;;  %v23136_v18 = vld [vmem:[#allocation71_spill] sm:$0xff]  ;;  %v8161_v45 = vpop.f32.mrf.mxu2  ;;  %v23141_v27 = vld [vmem:[#allocation73_spill] sm:$0xff] }
 0x9d3   :  { %v7406_v8 = vadd.f32 %v23136_v18, %v7249_v0 }
 0x9d5   :  { %v7825_v62 = vpop.f32.mrf.mxu0  ;;  %v8385_v29 = vpop.f32.mrf.mxu1 }
 0x9d6   :  { %8733 = vmatmul.bf16.gmra.mxu3 %v23134_v1  ;;  %v7867_v61 = vadd.f32 %v7825_v62, %v21260_v24  ;;  %v7637_v1 = vadd.f32 %v21213_v11, %v7406_v8  ;;  %v23138_v62 = vld [vmem:[#allocation31_spill] sm:$0xff]  ;;  %v16711_v8 = vld [vmem:[#allocation2 + $0x24] sm:$0xff] }
 0x9d7   :  { %8419 = vmatmul.bf16.gmra.mxu1 %v8313_v2  ;;  %v16065_v2 = vld [vmem:[#allocation2 + $0x34] sm:$0xff] }
 0x9d8   :  { %v8039_v7 = vadd.f32 %v21506_v14, %v7867_v61  ;;  %8551 = vmatmul.bf16.vlgmr.msrb.gmra.mxu0 %v23135_v32  ;;  %v6829_v14 = vadd.f32 %v23138_v62, %v23137_v50  ;;  %v23142_v50 = vld [vmem:[#allocation72_spill] sm:$0xff] }
 0x9d9   :  { %v8007_v18 = vpop.f32.mrf.mxu3 }
 0x9da   :  { %v8196_v38 = vadd.f32 %v21510_v20, %v8039_v7  ;;  %v7020_v32 = vadd.f32 %v21289_v23, %v6829_v14  ;;  %v23139_v20 = vld [vmem:[#allocation68_spill] sm:$0xff]  ;;  %v8164_v60 = vpop.f32.mrf.mxu2 }
 0x9db   :  { %v23140_v7 = vunpack.c.l.b16 %v23139_v20 }
 0x9dc   :  { %v21612_v17 = vadd.f32 %v8385_v29, %v8196_v38  ;;  %v9079_v38 = vrot.slane %v16711_v8, 1  ;;  %v7251_v34 = vadd.f32 %v23141_v27, %v7020_v32  ;;  %v23146_v27 = vld [vmem:[#allocation69_spill] sm:$0xff] }
 0x9dd   :  { %v7827_v6 = vpop.f32.mrf.mxu0  ;;  %v21615_v24 = vpop.f32.mrf.mxu1  ;;  %v9068_v29 = vpack.c.b16 %v23140_v7, %v9049_v3  ;;  %v23143_v3 = vld [vmem:[#allocation37_spill] sm:$0xff] }
 0x9de   :  { %v7868_v61 = vadd.f32 %v7827_v6, %v7637_v1 }
 0x9df   :  { %v9078_v23 = vrot.slane %v9068_v29, 1  ;;  %v23145_v29 = vld [vmem:[#allocation47_spill] sm:$0xff] }
 0x9e0   :  { %v8040_v0 = vadd.f32 %v21539_v55, %v7868_v61 }
 0x9e1   :  { %v9080_v62 = vsel %vm1855_vm7, %v9078_v23, %v9079_v38 }
 0x9e2   :  { %8946 = vmatmul.bf16.gmra.mxu2 %v16065_v2  ;;  %v21624_v11 = vadd.f32 %v21548_v48, %v8040_v0  ;;  %v23144_v48 = vld [vmem:[#allocation55_spill] sm:$0xff]  ;;  %v8009_v0 = vpop.f32.mrf.mxu3 }
 0x9e3   :  { %v7408_v61 = vadd.f32 %v23144_v48, %v7251_v34 }
 0x9e5   :  { %v7830_v6 = vpop.f32.mrf.mxu0  ;;  %v8390_v1 = vpop.f32.mrf.mxu1  ;;  %v7639_v32 = vadd.f32 %v21252_v4, %v7408_v61  ;;  %v23147_v4 = vld [vmem:[#allocation29_spill] sm:$0xff] }
 0x9e6   :  { %8738 = vmatmul.bf16.gmra.mxu3 %v23142_v50  ;;  %v7869_v55 = vadd.f32 %v7830_v6, %v21287_v43  ;;  %v6834_v43 = vadd.f32 %v23146_v27, %v23145_v29  ;;  %v8166_v50 = vpop.f32.mrf.mxu2 }
 0x9e7   :  { %9162 = vmatmul.bf16.vlgmr.msra.gmra.mxu1 %v9080_v62 }
 0x9e8   :  { %v8041_v14 = vadd.f32 %v8002_v15, %v7869_v55  ;;  %8556 = vmatmul.bf16.gmra.mxu0 %v23143_v3  ;;  %v16066_v15 = vld [vmem:[#allocation2 + $0x3c] sm:$0xff]  ;;  %v7022_v23 = vadd.f32 %v21313_v56, %v6834_v43 }
 0x9ea   :  { %v8198_v2 = vadd.f32 %v8159_v46, %v8041_v14  ;;  %v16712_v46 = vld [vmem:[#allocation2 + $0x2c] sm:$0xff]  ;;  %v7253_v62 = vadd.f32 %v21236_v31, %v7022_v23  ;;  %v16102_v14 = vld [vmem:[%s22709_s3 + $0x3b8] sm:$0xff]  ;;  %v8012_v61 = vpop.f32.mrf.mxu3 }
 0x9eb   :  { %9326 = vmatpush.bf16.msra.mxu0 %v16102_v14 }
 0x9ec   :  { %v21632_v20 = vadd.f32 %v8390_v1, %v8198_v2  ;;  %v9081_v1 = vrot.slane %v16712_v46, 1  ;;  %v7410_v31 = vadd.f32 %v21230_v54, %v7253_v62  ;;  %v16713_v46 = vld [vmem:[#allocation2 + $0x34] sm:$0xff]  ;;  %v7255_v54 = vadd.f32 %v21273_v26, %v21358_v13 }
 0x9ed   :  { %v7832_v7 = vpop.f32.mrf.mxu0  ;;  %v21635_v8 = vpop.f32.mrf.mxu1 }
 0x9ee   :  { %v7870_v6 = vadd.f32 %v7832_v7, %v7639_v32  ;;  %v9082_v56 = vsel %vm1855_vm7, %v9079_v38, %v9081_v1  ;;  %v23148_v32 = vld [vmem:[#allocation10_spill] sm:$0xff]  ;;  %v7641_v27 = vadd.f32 %v21284_v30, %v7410_v31 }
 0x9ef   :  { %v16101_v30 = vld [vmem:[%s22709_s3 + $0x3b0] sm:$0xff] }
 0x9f0   :  { %v8042_v55 = vadd.f32 %v8004_v41, %v7870_v6  ;;  %v8169_v41 = vpop.f32.mrf.mxu2  ;;  %9327 = vmatpush.bf16.msra.mxu0 %v16101_v30 }
 0x9f2   :  { %8951 = vmatmul.bf16.gmra.mxu2 %v16066_v15  ;;  %v21640_v34 = vadd.f32 %v8161_v45, %v8042_v55  ;;  %v8014_v23 = vpop.f32.mrf.mxu3 }
 0x9f5   :  { %v7835_v3 = vpop.f32.mrf.mxu0  ;;  %v8395_v48 = vpop.f32.mrf.mxu1 }
 0x9f6   :  { %8743 = vmatmul.bf16.gmra.mxu3 %v23147_v4  ;;  %v7871_v2 = vadd.f32 %v7835_v3, %v21311_v33  ;;  %v16067_v33 = vld [vmem:[#allocation2 + $0x44] sm:$0xff]  ;;  %v9083_v4 = vrot.slane %v16713_v46, 1 }
 0x9f7   :  { %9167 = vmatmul.bf16.gmra.mxu1 %v9082_v56 }
 0x9f8   :  { %v8043_v45 = vadd.f32 %v8007_v18, %v7871_v2  ;;  %8561 = vmatmul.bf16.gmra.mxu0 %v23148_v32  ;;  %v8171_v38 = vpop.f32.mrf.mxu2  ;;  %v7412_v2 = vadd.f32 %v21268_v12, %v7255_v54  ;;  %v7257_v12 = vadd.f32 %v21306_v40, %v21411_v49  ;;  %v16100_v40 = vld [vmem:[%s22709_s3 + $0x3a8] sm:$0xff] }
 0x9f9   :  { %9328 = vmatpush.bf16.msra.mxu0 %v16100_v40  ;;  %v16070_v40 = vld [vmem:[#allocation2 + $0x5c] sm:$0xff] }
 0x9fa   :  { %v8200_v7 = vadd.f32 %v8164_v60, %v8043_v45  ;;  %v23149_v60 = vld [vmem:[#allocation74_spill] sm:$0xff]  ;;  %v8017_v26 = vpop.f32.mrf.mxu3  ;;  %v7643_v32 = vadd.f32 %v21318_v59, %v7412_v2 }
 0x9fc   :  { %v21651_v29 = vadd.f32 %v8395_v48, %v8200_v7  ;;  %v23150_v48 = vld [vmem:[#allocation67_spill] sm:$0xff] }
 0x9fd   :  { %v7837_v43 = vpop.f32.mrf.mxu0  ;;  %v21654_v6 = vpop.f32.mrf.mxu1 }
 0x9fe   :  { %v7872_v15 = vadd.f32 %v7837_v43, %v7641_v27  ;;  %v16068_v27 = vld [vmem:[#allocation2 + $0x4c] sm:$0xff] }
 0xa00   :  { %v8044_v55 = vadd.f32 %v8009_v0, %v7872_v15  ;;  %v9084_v0 = vsel %vm1855_vm7, %v9081_v1, %v9083_v4  ;;  %v8174_v56 = vpop.f32.mrf.mxu2 }
 0xa02   :  { %8956 = vmatmul.bf16.gmra.mxu2 %v16067_v33  ;;  %v21656_v18 = vadd.f32 %v8166_v50, %v8044_v55 }
 0xa05   :  { %v7840_v62 = vpop.f32.mrf.mxu0  ;;  %v8400_v14 = vpop.f32.mrf.mxu1 }
 0xa06   :  { %8748 = vmatmul.bf16.gmra.mxu3 %v23149_v60  ;;  %v7873_v3 = vadd.f32 %v7840_v62, %v21353_v28  ;;  %v23153_v62 = vld [vmem:[#allocation28_spill] sm:$0xff] }
 0xa07   :  { %9172 = vmatmul.bf16.gmra.mxu1 %v9084_v0 }
 0xa08   :  { %v8045_v50 = vadd.f32 %v8012_v61, %v7873_v3  ;;  %8566 = vmatmul.bf16.gmra.mxu0 %v23150_v48  ;;  %v16714_v61 = vld [vmem:[#allocation2 + $0x3c] sm:$0xff]  ;;  %v8176_v55 = vpop.f32.mrf.mxu2 }
 0xa09   :  { %v9085_v15 = vrot.slane %v16714_v61, 1 }
 0xa0a   :  { %v8202_v13 = vadd.f32 %v8169_v41, %v8045_v50  ;;  %v8019_v41 = vpop.f32.mrf.mxu3 }
 0xa0b   :  { %v9086_v54 = vsel %vm1855_vm7, %v9083_v4, %v9085_v15  ;;  %v16069_v4 = vld [vmem:[#allocation2 + $0x54] sm:$0xff] }
 0xa0c   :  { %v21668_v45 = vadd.f32 %v8400_v14, %v8202_v13  ;;  %v16715_v13 = vld [vmem:[#allocation2 + $0x44] sm:$0xff] }
 0xa0d   :  { %v7842_v31 = vpop.f32.mrf.mxu0  ;;  %v21671_v7 = vpop.f32.mrf.mxu1 }
 0xa0e   :  { %v7874_v28 = vadd.f32 %v7842_v31, %v7643_v32  ;;  %v9087_v32 = vrot.slane %v16715_v13, 1 }
 0xa10   :  { %v8046_v43 = vadd.f32 %v8014_v23, %v7874_v28  ;;  %v23151_v23 = vld [vmem:[#allocation40_spill] sm:$0xff]  ;;  %v8179_v48 = vpop.f32.mrf.mxu2  ;;  %v9088_v61 = vsel %vm1855_vm7, %v9085_v15, %v9087_v32 }
 0xa11   :  { %v8616_v28 = vld [vmem:[#allocation2 + $0x5c] sm:$0x7] }
 0xa12   :  { %8961 = vmatmul.bf16.gmra.mxu2 %v16068_v27  ;;  %v21673_v1 = vadd.f32 %v8171_v38, %v8046_v43  ;;  %v23152_v38 = vld [vmem:[#allocation33_spill] sm:$0xff]  ;;  %v8022_v3 = vpop.f32.mrf.mxu3 }
 0xa13   :  { %v7414_v30 = vadd.f32 %v23152_v38, %v7257_v12  ;;  %v8636_v12 = vunpack.c.l.b16 %v8616_v28 }
 0xa15   :  { %v7845_v33 = vpop.f32.mrf.mxu0  ;;  %v8405_v46 = vpop.f32.mrf.mxu1 }
 0xa16   :  { %8753 = vmatmul.bf16.gmra.mxu3 %v21181_v53  ;;  %v7875_v59 = vadd.f32 %v7845_v33, %v21409_v47  ;;  %v7645_v47 = vadd.f32 %v23153_v62, %v7414_v30 }
 0xa17   :  { %9177 = vmatmul.bf16.gmra.mxu1 %v9086_v54 }
 0xa18   :  { %v8047_v60 = vadd.f32 %v8017_v26, %v7875_v59  ;;  %8571 = vmatmul.bf16.gmra.mxu0 %v23151_v23  ;;  %v23155_v59 = vld [vmem:[#allocation50_spill] sm:$0xff]  ;;  %v21704_v54 = vpop.f32.mrf.mxu2 }
 0xa1a   :  { %v8204_v49 = vadd.f32 %v8174_v56, %v8047_v60  ;;  %v23154_v56 = vld [vmem:[#allocation82_spill] sm:$0xff]  ;;  %v8638_v60 = vpack.c.b16 %v8636_v12, %v8636_v12 }
 0xa1b   :  { %v7259_v31 = vadd.f32 %v23154_v56, %v21448_v25  ;;  %v16099_v25 = vld [vmem:[%s22709_s3 + $0x3a0] sm:$0xff] }
 0xa1c   :  { %v21685_v53 = vadd.f32 %v8405_v46, %v8204_v49  ;;  %9329 = vmatpush.bf16.msra.mxu0 %v16099_v25  ;;  %v8656_v49 = vrot.slane %v8638_v60, 3  ;;  %v23158_v56 = vld [vmem:[#allocation36_spill] sm:$0xff] }
 0xa1d   :  { %v7847_v14 = vpop.f32.mrf.mxu0  ;;  %v21688_v2 = vpop.f32.mrf.mxu1 }
 0xa1e   :  { %v7876_v0 = vadd.f32 %v7847_v14, %v7645_v47  ;;  %v23157_v47 = vrot.slane %v21534_v44, 3 }
 0xa20   :  { %v8048_v50 = vadd.f32 %v8019_v41, %v7876_v0  ;;  %v21697_v41 = vpop.f32.mrf.mxu3  ;;  %v8657_v14 = vsel %vm2358_vm8, %v23157_v47, %v8656_v49 }
 0xa22   :  { %8966 = vmatmul.bf16.gmra.mxu2 %v16069_v4  ;;  %v21690_v26 = vadd.f32 %v8176_v55, %v8048_v50  ;;  %v23156_v55 = vld [vmem:[#allocation75_spill] sm:$0xff]  ;;  %v8184_v4 = vpop.f32.mrf.mxu2 }
 0xa23   :  { %v7416_v46 = vadd.f32 %v23156_v55, %v7259_v31  ;;  %v16098_v31 = vld [vmem:[%s22709_s3 + $0x398] sm:$0xff]  ;;  %v9091_v55 = vrot.slane %v21536_v37, 1 }
 0xa24   :  { %9330 = vmatpush.bf16.msra.mxu0 %v16098_v31 }
 0xa25   :  { %v7850_v27 = vpop.f32.mrf.mxu0  ;;  %v7647_v23 = vadd.f32 %v21435_v58, %v7416_v46 }
 0xa26   :  { %8758 = vmatmul.bf16.gmra.mxu3 %v21564_v36  ;;  %v7877_v43 = vadd.f32 %v7850_v27, %v21444_v42  ;;  %v8410_v42 = vpop.f32.mrf.mxu1 }
 0xa27   :  { %9182 = vmatmul.bf16.gmra.mxu1 %v9088_v61 }
 0xa28   :  { %v8049_v33 = vadd.f32 %v8022_v3, %v7877_v43  ;;  %8576 = vmatmul.bf16.gmra.mxu0 %v23155_v59  ;;  %v8027_v62 = vpop.f32.mrf.mxu3  ;;  %v16716_v3 = vld [vmem:[#allocation2 + $0x4c] sm:$0xff]  ;;  %v7649_v43 = vadd.f32 %v21469_v57, %v21486_v21 }
 0xa29   :  { %v9089_v0 = vrot.slane %v16716_v3, 1  ;;  %v16096_v59 = vld [vmem:[%s22709_s3 + $0x388] sm:$0xff] }
 0xa2a   :  { %v8206_v36 = vadd.f32 %v8179_v48, %v8049_v33  ;;  %v16097_v33 = vld [vmem:[%s22709_s3 + $0x390] sm:$0xff] }
 0xa2b   :  { %v9090_v58 = vsel %vm1855_vm7, %v9087_v32, %v9089_v0  ;;  %v21728_v32 = vpop.f32.mrf.mxu2  ;;  %9331 = vmatpush.bf16.msra.mxu0 %v16097_v33 }
 0xa2c   :  { %v21706_v15 = vadd.f32 %v8410_v42, %v8206_v36  ;;  %v9092_v42 = vsel %vm1855_vm7, %v9089_v0, %v9091_v55  ;;  %v9093_v0 = vrot.slane %v21581_v5, 1 }
 0xa2d   :  { %v7852_v38 = vpop.f32.mrf.mxu0 }
 0xa2e   :  { %v21709_v30 = vadd.f32 %v7852_v38, %v7647_v23  ;;  %v21724_v61 = vpop.f32.mrf.mxu1  ;;  %v8444_v23 = vld [vmem:[#allocation2 + $0x5c] sm:$0x3]  ;;  %v16095_v38 = vld [vmem:[%s22709_s3 + $0x380] sm:$0xff] }
 0xa2f   :  { %9332 = vmatpush.bf16.msra.mxu0 %v16096_v59  ;;  %v8464_v49 = vunpack.c.l.b16 %v8444_v23 }
 0xa30   :  { %v21720_v27 = vpop.f32.mrf.mxu3 }
 0xa31   :  { %v8466_v3 = vpack.c.b16 %v8464_v49, %v8464_v49 }
 0xa32   :  { %8971 = vmatmul.bf16.gmra.mxu2 %v16070_v40 }
 0xa33   :  { %v8189_v37 = vpop.f32.mrf.mxu2  ;;  %9333 = vmatpush.bf16.msra.mxu0 %v16095_v38 }
 0xa35   :  { %v7855_v50 = vpop.f32.mrf.mxu0 }
 0xa36   :  { %8763 = vmatmul.bf16.gmra.mxu3 %v8657_v14  ;;  %v7879_v48 = vadd.f32 %v7855_v50, %v21477_v10 }
 0xa37   :  { %9187 = vmatmul.bf16.gmra.mxu1 %v9090_v58 }
 0xa38   :  { %v8051_v13 = vadd.f32 %v8027_v62, %v7879_v48  ;;  %8581 = vmatmul.bf16.gmra.mxu0 %v23158_v56  ;;  %v8032_v36 = vpop.f32.mrf.mxu3  ;;  %v9013_v56 = vld [vmem:[#allocation2 + $0x64] sm:$0x1] }
 0xa39   :  { %v9067_v31 = vunpack.c.l.b16 %v9013_v56 }
 0xa3a   :  { %v8208_v28 = vadd.f32 %v8184_v4, %v8051_v13  ;;  %v23159_v13 = vrot.slane %v21534_v44, 2 }
 0xa3b   :  { %v9077_v33 = vpack.c.b16 %v9067_v31, %v9067_v31 }
 0xa3d   :  { %v7857_v10 = vpop.f32.mrf.mxu0  ;;  %v9095_v59 = vrot.slane %v9077_v33, 1 }
 0xa3e   :  { %v21726_v12 = vadd.f32 %v7857_v10, %v7649_v43 }
 0xa3f   :  { %v9096_v44 = vsel %vm1855_vm7, %v9093_v0, %v9095_v59  ;;  %v16126_v59 = vld [vmem:[%s22711_s5 + $0xb8] sm:$0xff] }
 0xa40   :  { %9785 = vmatpush.bf16.msra.mxu2 %v16126_v59 }
 0xa44   :  { %v8415_v57 = vpop.f32.mrf.mxu1 }
 0xa45   :  { %v7860_v46 = vpop.f32.mrf.mxu0  ;;  %v21738_v25 = vadd.f32 %v8415_v57, %v8208_v28  ;;  %v8426_v28 = vadd.f32 %v21589_v22, %v21602_v63  ;;  %v8428_v57 = vadd.f32 %v21615_v24, %v21624_v11  ;;  %v23162_v24 = vld [vmem:[#allocation24_spill] sm:$0xff]  ;;  %v8432_v11 = vadd.f32 %v21654_v6, %v21656_v18  ;;  %v23164_v6 = vld [vmem:[#allocation27_spill] sm:$0xff] }
 0xa46   :  { %v7881_v21 = vadd.f32 %v7860_v46, %v21512_v9  ;;  %v7651_v9 = vadd.f32 %v21521_v16, %v21531_v51  ;;  %v9094_v51 = vsel %vm1855_vm7, %v9091_v55, %v9093_v0  ;;  %v23160_v55 = vld [vmem:[#allocation11_spill] sm:$0xff]  ;;  %v8436_v18 = vadd.f32 %v21688_v2, %v21690_v26 }
 0xa47   :  { %9192 = vmatmul.bf16.gmra.mxu1 %v9092_v42  ;;  %v23161_v42 = vld [vmem:[#allocation65_spill] sm:$0xff]  ;;  %vm11915_vm7 = vcmask 74752  }
 0xa48   :  { %v8053_v60 = vadd.f32 %v8032_v36, %v7881_v21  ;;  %8586 = vmatmul.bf16.gmra.mxu0 %v21571_v39  ;;  %v8484_v39 = vrot.slane %v8466_v3, 2 }
 0xa4a   :  { %v8210_v40 = vadd.f32 %v8189_v37, %v8053_v60  ;;  %v8485_v16 = vsel %vm550_vm0, %v23159_v13, %v8484_v39 }
 0xa4c   :  { %v21747_v47 = vpop.f32.mrf.mxu1 }
 0xa4d   :  { %v7862_v62 = vpop.f32.mrf.mxu0 }
 0xa4e   :  { %v21749_v14 = vadd.f32 %v7862_v62, %v7651_v9 }
 0xa54   :  { %v8420_v4 = vpop.f32.mrf.mxu1 }
 0xa55   :  { %v8552_v50 = vpop.f32.mrf.mxu0  ;;  %v21752_v48 = vadd.f32 %v8420_v4, %v8210_v40  ;;  %v21806_v4 = vpop.f32.mrf.mxu3 }
 0xa56   :  { %v21755_v58 = vadd.f32 %v8552_v50, %v21583_v19  ;;  %v21808_v50 = vpop.f32.mrf.mxu2 }
 0xa57   :  { %9197 = vmatmul.bf16.gmra.mxu1 %v9094_v51 }
 0xa58   :  { %8591 = vmatmul.bf16.gmra.mxu0 %v8485_v16  ;;  %v16118_v16 = vld [vmem:[%s22711_s5 + $0x78] sm:$0xff] }
 0xa59   :  { %9627 = vmatpush.bf16.msra.mxu3 %v16118_v16 }
 0xa5d   :  { %v8554_v43 = vpop.f32.mrf.mxu0  ;;  %v8724_v2 = vpop.f32.mrf.mxu3 }
 0xa5e   :  { %v21763_v10 = vadd.f32 %v8554_v43, %v8426_v28  ;;  %v8932_v51 = vpop.f32.mrf.mxu2 }
 0xa65   :  { %v8557_v19 = vpop.f32.mrf.mxu0  ;;  %v8726_v31 = vpop.f32.mrf.mxu3 }
 0xa66   :  { %v21766_v46 = vadd.f32 %v8557_v19, %v21612_v17  ;;  %v8430_v17 = vadd.f32 %v21635_v8, %v21640_v34  ;;  %v23163_v8 = vld [vmem:[#allocation43_spill] sm:$0xff]  ;;  %v8434_v34 = vadd.f32 %v21671_v7, %v21673_v1  ;;  %v21810_v7 = vpop.f32.mrf.mxu1  ;;  %v8934_v33 = vpop.f32.mrf.mxu2 }
 0xa67   :  { %9202 = vmatmul.bf16.gmra.mxu1 %v9096_v44 }
 0xa68   :  { %9334 = vmatmul.bf16.vlgmr.msra.gmra.mxu0 %v23160_v55 }
 0xa6d   :  { %v8559_v21 = vpop.f32.mrf.mxu0  ;;  %v8729_v55 = vpop.f32.mrf.mxu3 }
 0xa6e   :  { %v21772_v36 = vadd.f32 %v8559_v21, %v8428_v57  ;;  %v9163_v56 = vpop.f32.mrf.mxu1  ;;  %v8937_v57 = vpop.f32.mrf.mxu2 }
 0xa75   :  { %v8562_v22 = vpop.f32.mrf.mxu0 }
 0xa76   :  { %v21775_v63 = vadd.f32 %v8562_v22, %v21632_v20  ;;  %v9165_v19 = vpop.f32.mrf.mxu1 }
 0xa78   :  { %9339 = vmatmul.bf16.gmra.mxu0 %v23161_v42  ;;  %v8731_v42 = vpop.f32.mrf.mxu3 }
 0xa7d   :  { %v8564_v60 = vpop.f32.mrf.mxu0 }
 0xa7e   :  { %v21780_v23 = vadd.f32 %v8564_v60, %v8430_v17  ;;  %v16116_v17 = vld [vmem:[%s22711_s5 + $0x68] sm:$0xff] }
 0xa85   :  { %v8567_v38 = vpop.f32.mrf.mxu0 }
 0xa86   :  { %v21783_v37 = vadd.f32 %v8567_v38, %v21651_v29  ;;  %v8939_v38 = vpop.f32.mrf.mxu2 }
 0xa88   :  { %9344 = vmatmul.bf16.gmra.mxu0 %v23162_v24  ;;  %v16115_v24 = vld [vmem:[%s22711_s5 + $0x60] sm:$0xff] }
 0xa8d   :  { %v8569_v40 = vpop.f32.mrf.mxu0 }
 0xa8e   :  { %v21788_v20 = vadd.f32 %v8569_v40, %v8432_v11 }
 0xa95   :  { %v8572_v49 = vpop.f32.mrf.mxu0 }
 0xa96   :  { %v21791_v9 = vadd.f32 %v8572_v49, %v21668_v45 }
 0xa98   :  { %9349 = vmatmul.bf16.gmra.mxu0 %v23163_v8  ;;  %v8734_v8 = vpop.f32.mrf.mxu3 }
 0xa9d   :  { %v8574_v62 = vpop.f32.mrf.mxu0 }
 0xa9e   :  { %v21796_v29 = vadd.f32 %v8574_v62, %v8434_v34 }
 0xaa5   :  { %v8577_v3 = vpop.f32.mrf.mxu0 }
 0xaa6   :  { %v21799_v39 = vadd.f32 %v8577_v3, %v21685_v53  ;;  %v23165_v53 = vld [vmem:[#allocation80_spill] sm:$0xff] }
 0xaa8   :  { %9354 = vmatmul.bf16.gmra.mxu0 %v23164_v6  ;;  %v21848_v6 = vpop.f32.mrf.mxu2 }
 0xaad   :  { %v8579_v0 = vpop.f32.mrf.mxu0 }
 0xaae   :  { %v21804_v45 = vadd.f32 %v8579_v0, %v8436_v18  ;;  %v8770_v18 = vadd.f32 %v8726_v31, %v21763_v10  ;;  %v16124_v10 = vld [vmem:[%s22711_s5 + $0xa8] sm:$0xff] }
 0xab5   :  { %v8582_v1 = vpop.f32.mrf.mxu0 }
 0xab6   :  { %v21813_v13 = vadd.f32 %v8582_v1, %v21706_v15  ;;  %v16117_v15 = vld [vmem:[%s22711_s5 + $0x70] sm:$0xff] }
 0xab7   :  { %9628 = vmatpush.bf16.msra.mxu3 %v16117_v15 }
 0xab8   :  { %9359 = vmatmul.bf16.gmra.mxu0 %v23165_v53  ;;  %v23166_v53 = vrot.slane %v21581_v5, 2  ;;  %v16113_v5 = vld [vmem:[%s22711_s5 + $0x50] sm:$0xff] }
 0xabb   :  { %9629 = vmatpush.bf16.msra.mxu3 %v16116_v17  ;;  %v21878_v17 = vpop.f32.mrf.mxu2 }
 0xabd   :  { %v21819_v26 = vpop.f32.mrf.mxu0 }
 0xabf   :  { %9630 = vmatpush.bf16.msra.mxu3 %v16115_v24 }
 0xac5   :  { %v8587_v28 = vpop.f32.mrf.mxu0 }
 0xac6   :  { %v21822_v43 = vadd.f32 %v8587_v28, %v21738_v25  ;;  %v9168_v25 = vpop.f32.mrf.mxu1  ;;  %v8736_v28 = vpop.f32.mrf.mxu3 }
 0xac8   :  { %9364 = vmatmul.bf16.gmra.mxu0 %v21578_v35  ;;  %v9227_v35 = vld [vmem:[#allocation2 + $0x64] sm:$0x3] }
 0xac9   :  { %v9247_v60 = vunpack.c.l.b16 %v9227_v35  ;;  %v16112_v35 = vld [vmem:[%s22711_s5 + $0x48] sm:$0xff] }
 0xacd   :  { %v21831_v44 = vpop.f32.mrf.mxu0 }
 0xace   :  { %v21843_v11 = vpop.f32.mrf.mxu1 }
 0xad5   :  { %v8592_v21 = vpop.f32.mrf.mxu0 }
 0xad6   :  { %v21834_v22 = vadd.f32 %v8592_v21, %v21752_v48  ;;  %v8769_v48 = vadd.f32 %v8724_v2, %v21755_v58  ;;  %v21851_v1 = vpop.f32.mrf.mxu1  ;;  %v16125_v58 = vld [vmem:[%s22711_s5 + $0xb0] sm:$0xff]  ;;  %v16114_v2 = vld [vmem:[%s22711_s5 + $0x58] sm:$0xff]  ;;  %v16123_v21 = vld [vmem:[%s22711_s5 + $0xa0] sm:$0xff] }
 0xad7   :  { %9786 = vmatpush.bf16.msra.mxu2 %v16125_v58  ;;  %9631 = vmatpush.bf16.msra.mxu3 %v16114_v2  ;;  %v16149_v58 = vld [vmem:[%s22711_s5 + $0x170] sm:$0xff] }
 0xad8   :  { %9369 = vmatmul.bf16.gmra.mxu0 %v21599_v52  ;;  %v9249_v52 = vpack.c.b16 %v9247_v60, %v9247_v60  ;;  %v8977_v49 = vadd.f32 %v8932_v51, %v8769_v48  ;;  %v8978_v51 = vadd.f32 %v8934_v33, %v8770_v18  ;;  %v8771_v33 = vadd.f32 %v8729_v55, %v21766_v46  ;;  %v16122_v46 = vld [vmem:[%s22711_s5 + $0x98] sm:$0xff]  ;;  %v16111_v55 = vld [vmem:[%s22711_s5 + $0x40] sm:$0xff] }
 0xad9   :  { %v16110_v18 = vld [vmem:[%s22711_s5 + $0x38] sm:$0xff] }
 0xada   :  { %v9267_v34 = vrot.slane %v9249_v52, 2  ;;  %v9208_v62 = vadd.f32 %v9163_v56, %v8977_v49  ;;  %v16150_v56 = vld [vmem:[%s22711_s5 + $0x178] sm:$0xff]  ;;  %v9209_v31 = vadd.f32 %v9165_v19, %v8978_v51  ;;  %v8979_v60 = vadd.f32 %v8937_v57, %v8771_v33 }
 0xadb   :  { %10047 = vmatpush.bf16.msrb.mxu1 %v16150_v56  ;;  %9787 = vmatpush.bf16.msra.mxu2 %v16124_v10  ;;  %v8772_v52 = vadd.f32 %v8731_v42, %v21772_v36  ;;  %v16109_v42 = vld [vmem:[%s22711_s5 + $0x30] sm:$0xff]  ;;  %v8773_v51 = vadd.f32 %v8734_v8, %v21775_v63  ;;  %v16119_v56 = vld [vmem:[%s22711_s5 + $0x80] sm:$0xff] }
 0xadc   :  { %v9268_v16 = vsel %vm550_vm0, %v23166_v53, %v9267_v34  ;;  %9632 = vmatpush.bf16.msra.mxu3 %v16113_v5  ;;  %v9210_v24 = vadd.f32 %v9168_v25, %v8979_v60  ;;  %v21889_v34 = vpop.f32.mrf.mxu3  ;;  %v16121_v25 = vld [vmem:[%s22711_s5 + $0x90] sm:$0xff]  ;;  %v16120_v53 = vld [vmem:[%s22711_s5 + $0x88] sm:$0xff]  ;;  %v16107_v63 = vld [vmem:[%s22711_s5 + $0x20] sm:$0xff]  ;;  %vm9575_vm0 = vcmask 1041409  }
 0xadd   :  { %v21845_v40 = vpop.f32.mrf.mxu0  ;;  %v8980_v36 = vadd.f32 %v8939_v38, %v8772_v52  ;;  %v16108_v5 = vld [vmem:[%s22711_s5 + $0x28] sm:$0xff]  ;;  %v16141_v8 = vld [vmem:[%s22711_s5 + $0x130] sm:$0xff] }
 0xade   :  { %v21880_v19 = vpop.f32.mrf.mxu1  ;;  %v16148_v52 = vld [vmem:[%s22711_s5 + $0x168] sm:$0xff] }
 0xadf   :  { %9788 = vmatpush.bf16.msra.mxu2 %v16123_v21  ;;  %v9211_v2 = vadd.f32 %v21843_v11, %v8980_v36  ;;  %10048 = vmatpush.bf16.msrb.mxu1 %v16149_v58  ;;  %v8775_v36 = vadd.f32 %v21889_v34, %v21783_v37  ;;  %v16146_v58 = vld [vmem:[%s22711_s5 + $0x158] sm:$0xff] }
 0xae0   :  { %9633 = vmatpush.bf16.msra.mxu3 %v16112_v35 }
 0xae3   :  { %9789 = vmatpush.bf16.msra.mxu2 %v16122_v46  ;;  %10049 = vmatpush.bf16.msrb.mxu1 %v16148_v52 }
 0xae4   :  { %9634 = vmatpush.bf16.msra.mxu3 %v16111_v55  ;;  %v8741_v11 = vpop.f32.mrf.mxu3 }
 0xae5   :  { %v9335_v3 = vpop.f32.mrf.mxu0 }
 0xae6   :  { %v9380_v0 = vadd.f32 %v9335_v3, %v9208_v62 }
 0xae7   :  { %9790 = vmatpush.bf16.msra.mxu2 %v16121_v25 }
 0xae8   :  { %9398 = vst [vmem:[#allocation3] sm:$0xff] %v9380_v0  ;;  %9374 = vmatmul.bf16.gmra.mxu0 %v9268_v16  ;;  %v21897_v0 = vpop.f32.mrf.mxu2  ;;  %9692 = vmatpush.bf16.msrb.mxu3 %v16110_v18  ;;  %v21905_v16 = vpop.f32.mrf.mxu1 }
 0xaeb   :  { %9791 = vmatpush.bf16.msra.mxu2 %v16120_v53  ;;  %v16104_v53 = vld [vmem:[%s22711_s5 + $0x8] sm:$0xff] }
 0xaec   :  { %9693 = vmatpush.bf16.msrb.mxu3 %v16109_v42 }
 0xaed   :  { %v9337_v15 = vpop.f32.mrf.mxu0 }
 0xaee   :  { %v9381_v59 = vadd.f32 %v9337_v15, %v9209_v31  ;;  %v16142_v31 = vld [vmem:[%s22711_s5 + $0x138] sm:$0xff]  ;;  %v8981_v15 = vadd.f32 %v21848_v6, %v8773_v51  ;;  %v8774_v6 = vadd.f32 %v8736_v28, %v21780_v23  ;;  %v16105_v28 = vld [vmem:[%s22711_s5 + $0x10] sm:$0xff]  ;;  %v16103_v51 = vld [vmem:[%s22711_s5] sm:$0xff] }
 0xaef   :  { %9792 = vmatpush.bf16.msra.mxu2 %v16119_v56  ;;  %v16137_v56 = vld [vmem:[%s22711_s5 + $0x110] sm:$0xff] }
 0xaf0   :  { %9399 = vst [vmem:[#allocation3 + $0x8] sm:$0xff] %v9381_v59  ;;  %9694 = vmatpush.bf16.msrb.mxu3 %v16108_v5  ;;  %v21928_v33 = vpop.f32.mrf.mxu2  ;;  %v9212_v59 = vadd.f32 %v21851_v1, %v8981_v15  ;;  %v21931_v21 = vpop.f32.mrf.mxu1  ;;  %v16140_v1 = vld [vmem:[%s22711_s5 + $0x128] sm:$0xff]  ;;  %v8982_v23 = vadd.f32 %v21878_v17, %v8774_v6  ;;  %v16139_v17 = vld [vmem:[%s22711_s5 + $0x120] sm:$0xff]  ;;  %v16145_v5 = vld [vmem:[%s22711_s5 + $0x150] sm:$0xff] }
 0xaf3   :  { %9963 = vmatpush.bf16.msrb.mxu2 %v16142_v31 }
 0xaf4   :  { %9695 = vmatpush.bf16.msrb.mxu3 %v16107_v63 }
 0xaf5   :  { %v9340_v48 = vpop.f32.mrf.mxu0 }
 0xaf6   :  { %v9382_v49 = vadd.f32 %v9340_v48, %v9210_v24  ;;  %v16106_v48 = vld [vmem:[%s22711_s5 + $0x18] sm:$0xff] }
 0xaf7   :  { %v9416_v57 = vld [vmem:[#allocation3] ss:$2 sm:$0xff]  ;;  %v9425_v62 = vld [vmem:[#allocation3 + $0x1] ss:$2 sm:$0xff]  ;;  %9964 = vmatpush.bf16.msrb.mxu2 %v16141_v8 }
 0xaf8   :  { %v9434_v3 = vmax.f32 %v9416_v57, %v9425_v62  ;;  %9400 = vst [vmem:[#allocation3 + $0x10] sm:$0xff] %v9382_v49  ;;  %9696 = vmatpush.bf16.msrb.mxu3 %v16106_v48  ;;  %v16147_v49 = vld [vmem:[%s22711_s5 + $0x160] sm:$0xff]  ;;  %v16198_v57 = vld [vmem:[%s22711_s5 + $0x2f8] sm:$0xff]  ;;  %v21953_v62 = vpop.f32.mrf.mxu3  ;;  %v21959_v25 = vpop.f32.mrf.mxu2 }
 0xaf9   :  { %10579 = vmatpush.bf16.msrb.mxu0 %v16198_v57  ;;  %10050 = vmatpush.bf16.msrb.mxu1 %v16147_v49  ;;  %v16136_v49 = vld [vmem:[%s22711_s5 + $0x108] sm:$0xff]  ;;  %v9705_v57 = vld [vmem:[#allocation5] sm:$0x2] }
 0xafa   :  { %9443 = vst [vmem:[#allocation4] sm:$0xff] %v9434_v3  ;;  %v9213_v3 = vadd.f32 %v21880_v19, %v8982_v23  ;;  %v16138_v19 = vld [vmem:[%s22711_s5 + $0x118] sm:$0xff] }
 0xafb   :  { %9965 = vmatpush.bf16.msrb.mxu2 %v16140_v1 }
 0xafc   :  { %9697 = vmatpush.bf16.msrb.mxu3 %v16105_v28  ;;  %v16197_v28 = vld [vmem:[%s22711_s5 + $0x2f0] sm:$0xff] }
 0xafd   :  { %v9342_v38 = vpop.f32.mrf.mxu0  ;;  %10051 = vmatpush.bf16.msrb.mxu1 %v16146_v58  ;;  %10580 = vmatpush.bf16.msrb.mxu0 %v16197_v28 }
 0xafe   :  { %v9383_v10 = vadd.f32 %v9342_v38, %v9211_v2  ;;  %v21969_v2 = vpop.f32.mrf.mxu1  ;;  %v8983_v38 = vadd.f32 %v21897_v0, %v8775_v36  ;;  %v21988_v0 = vld [vmem:[%s22710_s4] ss:$0 sm:$0xff] }
 0xaff   :  { %9966 = vmatpush.bf16.msrb.mxu2 %v16139_v17  ;;  %v16144_v17 = vld [vmem:[%s22711_s5 + $0x148] sm:$0xff] }
 0xb00   :  { %9401 = vst [vmem:[#allocation3 + $0x18] sm:$0xff] %v9383_v10  ;;  %9698 = vmatpush.bf16.msrb.mxu3 %v16104_v53  ;;  %v9214_v31 = vadd.f32 %v21905_v16, %v8983_v38  ;;  %v21991_v63 = vpop.f32.mrf.mxu3  ;;  %v21994_v16 = vpop.f32.mrf.mxu2  ;;  %v16143_v53 = vld [vmem:[%s22711_s5 + $0x140] sm:$0xff] }
 0xb01   :  { %v9452_v37 = vld [vmem:[#allocation4] sm:$0x1f]  ;;  %10052 = vmatpush.bf16.msrb.mxu1 %v16145_v5  ;;  %v16195_v38 = vld [vmem:[%s22711_s5 + $0x2e0] sm:$0xff] }
 0xb03   :  { %9967 = vmatpush.bf16.msrb.mxu2 %v16138_v19  ;;  %v9726_v19 = vunpack.c.l.b16 %v9705_v57 }
 0xb04   :  { %9699 = vmatpush.bf16.msrb.mxu3 %v16103_v51 }
 0xb05   :  { %v9345_v35 = vpop.f32.mrf.mxu0  ;;  %10053 = vmatpush.bf16.msrb.mxu1 %v16144_v17  ;;  %v16166_v17 = vld [vmem:[%s22711_s5 + $0x1f8] sm:$0xff] }
 0xb06   :  { %v9384_v60 = vadd.f32 %v9345_v35, %v9212_v59  ;;  %v8776_v59 = vadd.f32 %v8741_v11, %v21788_v20  ;;  %v21996_v1 = vpop.f32.mrf.mxu1  ;;  %v9531_v11 = vld [vmem:[#allocation5] sm:$0x1] }
 0xb07   :  { %v9417_v46 = vld [vmem:[#allocation3 + $0x10] ss:$2 sm:$0xff]  ;;  %v9426_v55 = vld [vmem:[#allocation3 + $0x11] ss:$2 sm:$0xff]  ;;  %9968 = vmatpush.bf16.msrb.mxu2 %v16137_v56  ;;  %v22033_v56 = vunpack.i.l.s16 %v9726_v19 }
 0xb08   :  { %v9435_v24 = vmax.f32 %v9417_v46, %v9426_v55  ;;  %9402 = vst [vmem:[#allocation3 + $0x20] sm:$0xff] %v9384_v60  ;;  %v9459_v55 = vld [vmem:[#allocation5 + $0x10] sm:$0x7]  ;;  %v8984_v52 = vadd.f32 %v21928_v33, %v8776_v59 }
 0xb09   :  { %10054 = vmatpush.bf16.msrb.mxu1 %v16143_v53 }
 0xb0a   :  { %9444 = vst [vmem:[#allocation4 + $0x8] sm:$0xff] %v9435_v24  ;;  %v9215_v33 = vadd.f32 %v21931_v21, %v8984_v52  ;;  %v8777_v21 = vadd.f32 %v21953_v62, %v21791_v9  ;;  %v9732_v52 = vrot.slane %v22033_v56, 2 }
 0xb0b   :  { %9969 = vmatpush.bf16.msrb.mxu2 %v16136_v49 }
 0xb0c   :  { %v8985_v9 = vadd.f32 %v21959_v25, %v8777_v21  ;;  %v16194_v25 = vld [vmem:[%s22711_s5 + $0x2d8] sm:$0xff] }
 0xb0d   :  { %v9347_v18 = vpop.f32.mrf.mxu0 }
 0xb0e   :  { %v9385_v42 = vadd.f32 %v9347_v18, %v9213_v3  ;;  %v16196_v3 = vld [vmem:[%s22711_s5 + $0x2e8] sm:$0xff]  ;;  %v16135_v18 = vld [vmem:[%s22711_s5 + $0x100] sm:$0xff] }
 0xb0f   :  { %10581 = vmatpush.bf16.msrb.mxu0 %v16196_v3  ;;  %9970 = vmatpush.bf16.msrb.mxu2 %v16135_v18  ;;  %v16172_v18 = vld [vmem:[%s22711_s5 + $0x228] sm:$0xff] }
 0xb10   :  { %9403 = vst [vmem:[#allocation3 + $0x28] sm:$0xff] %v9385_v42  ;;  %v9568_v42 = vunpack.c.l.b16 %v9531_v11  ;;  %v16134_v11 = vld [vmem:[%s22711_s5 + $0xf8] sm:$0xff] }
 0xb11   :  { %v9453_v34 = vld [vmem:[#allocation4 + $0x7] sm:$0x1f] }
 0xb12   :  { %v9454_v10 = vmax.f32 %v9452_v37, %v9453_v34  ;;  %v16174_v37 = vld [vmem:[%s22711_s5 + $0x238] sm:$0xff]  ;;  %v8749_v34 = vpop.f32.mrf.mxu3  ;;  %v22028_v51 = vunpack.i.l.s16 %v9568_v42  ;;  %v16193_v42 = vld [vmem:[%s22711_s5 + $0x2d0] sm:$0xff] }
 0xb13   :  { %10318 = vmatpush.bf16.msra.mxu1 %v16174_v37  ;;  %10582 = vmatpush.bf16.msrb.mxu0 %v16195_v38  ;;  %v16165_v37 = vld [vmem:[%s22711_s5 + $0x1f0] sm:$0xff]  ;;  %v16192_v38 = vld [vmem:[%s22711_s5 + $0x2c8] sm:$0xff] }
 0xb14   :  { %v9455_v15 = vadd.f32 %v21988_v0, %v9454_v10  ;;  %v22030_v10 = vpop.f32.mrf.mxu2 }
 0xb15   :  { %v9350_v8 = vpop.f32.mrf.mxu0 }
 0xb16   :  { %v9386_v35 = vadd.f32 %v9350_v8, %v9214_v31  ;;  %v9456_v6 = vmax.f32 %v9455_v15, 0.0  ;;  %v16173_v31 = vld [vmem:[%s22711_s5 + $0x230] sm:$0xff]  ;;  %v22038_v15 = vpop.f32.mrf.mxu1 }
 0xb17   :  { %v9418_v60 = vld [vmem:[#allocation3 + $0x20] ss:$2 sm:$0xff]  ;;  %v9427_v46 = vld [vmem:[#allocation3 + $0x21] ss:$2 sm:$0xff]  ;;  %10319 = vmatpush.bf16.msra.mxu1 %v16173_v31  ;;  %10583 = vmatpush.bf16.msrb.mxu0 %v16194_v25  ;;  %v16230_v25 = vld [vmem:[%s22711_s5 + $0x3f8] sm:$0xff] }
 0xb18   :  { %v9436_v24 = vmax.f32 %v9418_v60, %v9427_v46  ;;  %9404 = vst [vmem:[#allocation3 + $0x30] sm:$0xff] %v9386_v35  ;;  %v9457_v48 = vpack.c.bf16 %v9456_v6, %v9456_v6  ;;  %v9216_v35 = vadd.f32 %v21969_v2, %v8985_v9  ;;  %v9574_v46 = vrot.slane %v22028_v51, 1 }
 0xb1a   :  { %9445 = vst [vmem:[#allocation4 + $0x10] sm:$0xff] %v9436_v24  ;;  %v9460_v20 = vsel %vm19942_vm13, %v9457_v48, %v9459_v55  ;;  %v8778_v24 = vadd.f32 %v21991_v63, %v21796_v29  ;;  %v8751_v29 = vpop.f32.mrf.mxu3 }
 0xb1b   :  { %9461 = vst [vmem:[#allocation5 + $0x10] sm:$0x7] %v9460_v20  ;;  %10320 = vmatpush.bf16.msra.mxu1 %v16172_v18  ;;  %10584 = vmatpush.bf16.msrb.mxu0 %v16193_v42  ;;  %v16162_v18 = vld [vmem:[%s22711_s5 + $0x1d8] sm:$0xff] }
 0xb1c   :  { %v8959_v53 = vpop.f32.mrf.mxu2 }
 0xb1d   :  { %v9352_v36 = vpop.f32.mrf.mxu0 }
 0xb1e   :  { %v9387_v58 = vadd.f32 %v9352_v36, %v9215_v33  ;;  %v8986_v33 = vadd.f32 %v21994_v16, %v8778_v24  ;;  %v16133_v36 = vld [vmem:[%s22711_s5 + $0xf0] sm:$0xff]  ;;  %v16171_v16 = vld [vmem:[%s22711_s5 + $0x220] sm:$0xff] }
 0xb1f   :  { %10321 = vmatpush.bf16.msra.mxu1 %v16171_v16  ;;  %10585 = vmatpush.bf16.msrb.mxu0 %v16192_v38  ;;  %v16228_v16 = vld [vmem:[%s22711_s5 + $0x3e8] sm:$0xff] }
 0xb20   :  { %9405 = vst [vmem:[#allocation3 + $0x38] sm:$0xff] %v9387_v58  ;;  %v9217_v21 = vadd.f32 %v21996_v1, %v8986_v33  ;;  %v22076_v58 = vpop.f32.mrf.mxu1  ;;  %v8779_v1 = vadd.f32 %v8749_v34, %v21799_v39  ;;  %v16164_v39 = vld [vmem:[%s22711_s5 + $0x1e8] sm:$0xff]  ;;  %v16191_v34 = vld [vmem:[%s22711_s5 + $0x2c0] sm:$0xff]  ;;  %v16130_v33 = vld [vmem:[%s22711_s5 + $0xd8] sm:$0xff] }
 0xb21   :  { %v9462_v31 = vld [vmem:[#allocation4 + $0xe] sm:$0x1f] }
 0xb22   :  { %v9532_v62 = vld [vmem:[#allocation5 + $0x10] sm:$0x1]  ;;  %v9706_v5 = vld [vmem:[#allocation5 + $0x10] sm:$0x2] }
 0xb23   :  { %v9569_v8 = vunpack.c.l.b16 %v9532_v62  ;;  %v9727_v59 = vunpack.c.l.b16 %v9706_v5  ;;  %v16132_v62 = vld [vmem:[%s22711_s5 + $0xe8] sm:$0xff]  ;;  %v16170_v5 = vld [vmem:[%s22711_s5 + $0x218] sm:$0xff]  ;;  %10586 = vmatpush.bf16.msrb.mxu0 %v16191_v34  ;;  %v9479_v34 = vld [vmem:[#allocation5 + $0x10] sm:$0xc] }
 0xb24   :  { %10322 = vmatpush.bf16.msra.mxu1 %v16170_v5  ;;  %v16161_v5 = vld [vmem:[%s22711_s5 + $0x1d0] sm:$0xff] }
 0xb25   :  { %v9355_v6 = vpop.f32.mrf.mxu0  ;;  %v22044_v60 = vunpack.i.l.s16 %v9569_v8  ;;  %v22047_v55 = vunpack.i.l.s16 %v9727_v59 }
 0xb26   :  { %v9388_v48 = vadd.f32 %v9355_v6, %v9216_v35  ;;  %v8987_v35 = vadd.f32 %v22030_v10, %v8779_v1 }
 0xb27   :  { %v9419_v2 = vld [vmem:[#allocation3 + $0x30] ss:$2 sm:$0xff]  ;;  %v9428_v23 = vld [vmem:[#allocation3 + $0x31] ss:$2 sm:$0xff]  ;;  %v9576_v20 = vsel %vm9575_vm0, %v22044_v60, %v9574_v46  ;;  %v9733_v28 = vrot.slane %v22047_v55, 1  ;;  %v9640_v8 = vrot.slane %v22044_v60, 7  ;;  %v8754_v46 = vpop.f32.mrf.mxu3  ;;  %10935 = vmatpush.bf16.msra.mxu0 %v16230_v25 }
 0xb28   :  { %v9437_v49 = vmax.f32 %v9419_v2, %v9428_v23  ;;  %9406 = vst [vmem:[#allocation3 + $0x40] sm:$0xff] %v9388_v48  ;;  %v9577_v57 = vpack.c.b16 %v9576_v20, %v9576_v20  ;;  %v16131_v60 = vld [vmem:[%s22711_s5 + $0xe0] sm:$0xff]  ;;  %v9218_v24 = vadd.f32 %v22038_v15, %v8987_v35  ;;  %v16169_v48 = vld [vmem:[%s22711_s5 + $0x210] sm:$0xff]  ;;  %v8962_v20 = vpop.f32.mrf.mxu2  ;;  %v8780_v15 = vadd.f32 %v8751_v29, %v21804_v45 }
 0xb29   :  { %v9734_v63 = vsel %vm9575_vm0, %v9733_v28, %v9732_v52  ;;  %v9641_v2 = vsel %vm9575_vm0, %v9640_v8, %v22028_v51  ;;  %v16163_v23 = vld [vmem:[%s22711_s5 + $0x1e0] sm:$0xff]  ;;  %v16229_v28 = vld [vmem:[%s22711_s5 + $0x3f0] sm:$0xff]  ;;  %v22121_v51 = vpop.f32.mrf.mxu1  ;;  %10323 = vmatpush.bf16.msra.mxu1 %v16169_v48  ;;  %v9817_v25 = vrot.slane %v22047_v55, 2  ;;  %v16226_v55 = vld [vmem:[%s22711_s5 + $0x3d8] sm:$0xff] }
 0xb2a   :  { %9446 = vst [vmem:[#allocation4 + $0x18] sm:$0xff] %v9437_v49  ;;  %9635 = vmatmul.bf16.vlgmr.msra.gmra.mxu3 %v9577_v57  ;;  %v9735_v3 = vpack.c.b16 %v9734_v63, %v9734_v63  ;;  %v8050_v57 = vadd.f32 %v21697_v41, %v21709_v30  ;;  %v9642_v29 = vpack.c.b16 %v9641_v2, %v9641_v2  ;;  %v16168_v30 = vld [vmem:[%s22711_s5 + $0x208] sm:$0xff]  ;;  %v9883_v2 = vld [vmem:[#allocation5] sm:$0x4] }
 0xb2b   :  { %9869 = vmatpush.bf16.msra.mxu3 %v16134_v11  ;;  %v8988_v41 = vadd.f32 %v8959_v53, %v8780_v15  ;;  %10936 = vmatpush.bf16.msra.mxu0 %v16229_v28  ;;  %v16127_v15 = vld [vmem:[%s22711_s5 + $0xc0] sm:$0xff] }
 0xb2c   :  { %9793 = vmatmul.bf16.vlgmr.msra.gmra.mxu2 %v9735_v3  ;;  %v8207_v53 = vadd.f32 %v21704_v54, %v8050_v57 }
 0xb2d   :  { %v9357_v19 = vpop.f32.mrf.mxu0  ;;  %10225 = vmatpush.bf16.msra.mxu2 %v16166_v17  ;;  %10324 = vmatpush.bf16.msra.mxu1 %v16168_v30 }
 0xb2e   :  { %v9389_v9 = vadd.f32 %v9357_v19, %v9217_v21  ;;  %v16129_v21 = vld [vmem:[%s22711_s5 + $0xd0] sm:$0xff]  ;;  %v9219_v19 = vadd.f32 %v22076_v58, %v8988_v41  ;;  %v16227_v58 = vld [vmem:[%s22711_s5 + $0x3e0] sm:$0xff] }
 0xb2f   :  { %9870 = vmatpush.bf16.msra.mxu3 %v16133_v36  ;;  %10937 = vmatpush.bf16.msra.mxu0 %v16228_v16 }
 0xb30   :  { %9407 = vst [vmem:[#allocation3 + $0x48] sm:$0xff] %v9389_v9  ;;  %v8756_v9 = vpop.f32.mrf.mxu3  ;;  %v8964_v35 = vpop.f32.mrf.mxu2 }
 0xb31   :  { %10226 = vmatpush.bf16.msra.mxu2 %v16165_v37  ;;  %v9463_v59 = vld [vmem:[#allocation4 + $0x15] sm:$0x1f]  ;;  %v16167_v37 = vld [vmem:[%s22711_s5 + $0x200] sm:$0xff] }
 0xb32   :  { %v9464_v6 = vmax.f32 %v9462_v31, %v9463_v59  ;;  %v8781_v31 = vadd.f32 %v8754_v46, %v21813_v13  ;;  %v8438_v59 = vadd.f32 %v21724_v61, %v8207_v53  ;;  %v16160_v13 = vld [vmem:[%s22711_s5 + $0x1c8] sm:$0xff]  ;;  %10325 = vmatpush.bf16.msra.mxu1 %v16167_v37  ;;  %v8052_v37 = vadd.f32 %v21720_v27, %v21726_v12 }
 0xb33   :  { %9871 = vmatpush.bf16.msra.mxu3 %v16132_v62  ;;  %10938 = vmatpush.bf16.msra.mxu0 %v16227_v58 }
 0xb34   :  { %v9465_v10 = vadd.f32 %v21988_v0, %v9464_v6  ;;  %v8610_v61 = vadd.f32 %v21819_v26, %v8438_v59  ;;  %v16158_v26 = vld [vmem:[%s22711_s5 + $0x1b8] sm:$0xff] }
 0xb35   :  { %v9360_v52 = vpop.f32.mrf.mxu0  ;;  %10227 = vmatpush.bf16.msra.mxu2 %v16164_v39  ;;  %v16128_v39 = vld [vmem:[%s22711_s5 + $0xc8] sm:$0xff] }
 0xb36   :  { %v9390_v11 = vadd.f32 %v9360_v52, %v9218_v24  ;;  %v9466_v49 = vmax.f32 %v9465_v10, 0.0  ;;  %v9195_v24 = vpop.f32.mrf.mxu1  ;;  %v8989_v52 = vadd.f32 %v8962_v20, %v8781_v31 }
 0xb37   :  { %v9420_v63 = vld [vmem:[#allocation3 + $0x40] ss:$2 sm:$0xff]  ;;  %v9429_v17 = vld [vmem:[#allocation3 + $0x41] ss:$2 sm:$0xff]  ;;  %9872 = vmatpush.bf16.msra.mxu3 %v16131_v60  ;;  %10939 = vmatpush.bf16.msra.mxu0 %v16226_v55  ;;  %v16155_v55 = vld [vmem:[%s22711_s5 + $0x1a0] sm:$0xff] }
 0xb38   :  { %v9438_v45 = vmax.f32 %v9420_v63, %v9429_v17  ;;  %9408 = vst [vmem:[#allocation3 + $0x50] sm:$0xff] %v9390_v11  ;;  %v9467_v3 = vpack.c.bf16 %v9466_v49, %v9466_v49  ;;  %v9816_v11 = vrot.slane %v22033_v56, 3  ;;  %v9220_v28 = vadd.f32 %v22121_v51, %v8989_v52  ;;  %v16159_v63 = vld [vmem:[%s22711_s5 + $0x1c0] sm:$0xff]  ;;  %v16225_v56 = vld [vmem:[%s22711_s5 + $0x3d0] sm:$0xff]  ;;  %v16206_v52 = vld [vmem:[%s22711_s5 + $0x338] sm:$0xff] }
 0xb39   :  { %10228 = vmatpush.bf16.msra.mxu2 %v16163_v23  ;;  %v9904_v17 = vunpack.c.l.b16 %v9883_v2 }
 0xb3a   :  { %9447 = vst [vmem:[#allocation4 + $0x20] sm:$0xff] %v9438_v45  ;;  %9700 = vmatmul.bf16.vlgmr.msrb.gmra.mxu3 %v9642_v29  ;;  %v9469_v36 = vshrl.u32 %v9467_v3, 16  ;;  %v9472_v42 = vshll.u32 %v9467_v3, 16  ;;  %v9818_v57 = vsel %vm9575_vm0, %v9817_v25, %v9816_v11  ;;  %v8759_v29 = vpop.f32.mrf.mxu3  ;;  %v8209_v25 = vadd.f32 %v21728_v32, %v8052_v37  ;;  %v16204_v37 = vld [vmem:[%s22711_s5 + $0x328] sm:$0xff] }
 0xb3b   :  { %9873 = vmatpush.bf16.msra.mxu3 %v16130_v33  ;;  %v8782_v33 = vadd.f32 %v8756_v9, %v8610_v61  ;;  %v9819_v30 = vpack.c.b16 %v9818_v57, %v9818_v57  ;;  %v14567_v53 = vunpack.i.l.s16 %v9904_v17  ;;  %10940 = vmatpush.bf16.msra.mxu0 %v16225_v56  ;;  %v16190_v61 = vld [vmem:[%s22711_s5 + $0x2b8] sm:$0xff]  ;;  %v16189_v57 = vld [vmem:[%s22711_s5 + $0x2b0] sm:$0xff] }
 0xb3c   :  { %v9471_v38 = vrot.slane %v9469_v36, 5  ;;  %v9474_v1 = vrot.slane %v9472_v42, 6  ;;  %v16157_v36 = vld [vmem:[%s22711_s5 + $0x1b0] sm:$0xff]  ;;  %v8440_v32 = vadd.f32 %v21747_v47, %v8209_v25 }
 0xb3d   :  { %v9362_v62 = vpop.f32.mrf.mxu0  ;;  %10229 = vmatpush.bf16.msra.mxu2 %v16162_v18  ;;  %v9994_v59 = vrot.slane %v14567_v53, 5 }
 0xb3e   :  { %v9391_v8 = vadd.f32 %v9362_v62, %v9219_v19  ;;  %v9475_v54 = vor.u32 %v9474_v1, %v9471_v38  ;;  %v9492_v19 = vld [vmem:[#allocation5 + $0x14] sm:$0xe]  ;;  %v8967_v38 = vpop.f32.mrf.mxu2  ;;  %v8990_v1 = vadd.f32 %v8964_v35, %v8782_v33  ;;  %v16224_v62 = vld [vmem:[%s22711_s5 + $0x3c8] sm:$0xff] }
 0xb3f   :  { %9874 = vmatpush.bf16.msra.mxu3 %v16129_v21  ;;  %10941 = vmatpush.bf16.msra.mxu0 %v16224_v62 }
 0xb40   :  { %9409 = vst [vmem:[#allocation3 + $0x58] sm:$0xff] %v9391_v8  ;;  %v9480_v46 = vsel %vm20001_vm4, %v9475_v54, %v9479_v34  ;;  %v9476_v60 = vrot.slane %v9475_v54, 4  ;;  %v9221_v8 = vadd.f32 %v9195_v24, %v8990_v1  ;;  %v16156_v54 = vld [vmem:[%s22711_s5 + $0x1a8] sm:$0xff] }
 0xb41   :  { %10230 = vmatpush.bf16.msra.mxu2 %v16161_v5  ;;  %9481 = vst [vmem:[#allocation5 + $0x10] sm:$0xc] %v9480_v46  ;;  %v9483_v48 = vld [vmem:[#allocation4 + $0x1c] sm:$0x1f]  ;;  %v9484_v10 = vld [vmem:[#allocation4 + $0x23] sm:$0x1f]  ;;  %v9198_v5 = vpop.f32.mrf.mxu1 }
 0xb42   :  { %v9485_v23 = vmax.f32 %v9483_v48, %v9484_v10  ;;  %9482 = vst [vmem:[#allocation5 + $0x14] sm:$0x1] %v9476_v60  ;;  %v10415_v46 = vld [vmem:[#allocation5 + $0x4] sm:$0x2]  ;;  %v8761_v11 = vpop.f32.mrf.mxu3 }
 0xb43   :  { %9875 = vmatpush.bf16.msra.mxu3 %v16128_v39  ;;  %v9910_v39 = vrot.slane %v14567_v53, 4 }
 0xb44   :  { %v9486_v20 = vadd.f32 %v21988_v0, %v9485_v23  ;;  %v10061_v23 = vld [vmem:[#allocation5] sm:$0x8] }
 0xb45   :  { %v9365_v49 = vpop.f32.mrf.mxu0  ;;  %10231 = vmatpush.bf16.msra.mxu2 %v16160_v13  ;;  %v8783_v13 = vadd.f32 %v8759_v29, %v21822_v43  ;;  %v10082_v17 = vunpack.c.l.b16 %v10061_v23 }
 0xb46   :  { %v9392_v45 = vadd.f32 %v9365_v49, %v9220_v28  ;;  %v9487_v51 = vmax.f32 %v9486_v20, 0.0  ;;  %v10436_v28 = vunpack.c.l.b16 %v10415_v46  ;;  %v8612_v49 = vadd.f32 %v21831_v44, %v8440_v32  ;;  %v8969_v33 = vpop.f32.mrf.mxu2  ;;  %v16154_v44 = vld [vmem:[%s22711_s5 + $0x198] sm:$0xff] }
 0xb47   :  { %v9421_v3 = vld [vmem:[#allocation3 + $0x50] ss:$2 sm:$0xff]  ;;  %v9430_v18 = vld [vmem:[#allocation3 + $0x51] ss:$2 sm:$0xff]  ;;  %9876 = vmatpush.bf16.msra.mxu3 %v16127_v15  ;;  %v8991_v47 = vadd.f32 %v8967_v38, %v8783_v13  ;;  %v14665_v1 = vunpack.i.l.s16 %v10082_v17 }
 0xb48   :  { %v9439_v41 = vmax.f32 %v9421_v3, %v9430_v18  ;;  %9410 = vst [vmem:[#allocation3 + $0x60] sm:$0xff] %v9392_v45  ;;  %v9884_v42 = vld [vmem:[#allocation5 + $0x10] sm:$0x4]  ;;  %v9488_v21 = vpack.c.bf16 %v9487_v51, %v9487_v51  ;;  %v10062_v60 = vld [vmem:[#allocation5 + $0x10] sm:$0x8]  ;;  %v16223_v15 = vld [vmem:[%s22711_s5 + $0x3c0] sm:$0xff] }
 0xb49   :  { %10232 = vmatpush.bf16.msra.mxu2 %v16159_v63  ;;  %v9905_v16 = vunpack.c.l.b16 %v9884_v42  ;;  %v10240_v24 = vld [vmem:[#allocation5 + $0x14] sm:$0x1]  ;;  %v9222_v45 = vadd.f32 %v9198_v5, %v8991_v47  ;;  %v10239_v51 = vld [vmem:[#allocation5 + $0x4] sm:$0x1]  ;;  %10942 = vmatpush.bf16.msra.mxu0 %v16223_v15  ;;  %v9200_v29 = vpop.f32.mrf.mxu1  ;;  %v8784_v42 = vadd.f32 %v8761_v11, %v8612_v49  ;;  %v10172_v25 = vrot.slane %v14665_v1, 7  ;;  %v16262_v46 = vld [vmem:[%s22711_s5 + $0x4f8] sm:$0xff] }
 0xb4a   :  { %9448 = vst [vmem:[#allocation4 + $0x28] sm:$0xff] %v9439_v41  ;;  %9877 = vmatmul.bf16.vlgmr.msra.gmra.mxu3 %v9819_v30  ;;  %v9490_v9 = vrot.slane %v9488_v21, 7  ;;  %v10261_v20 = vunpack.c.l.b16 %v10240_v24  ;;  %v16205_v63 = vld [vmem:[%s22711_s5 + $0x330] sm:$0xff]  ;;  %v22220_v41 = vunpack.i.l.s16 %v10436_v28  ;;  %v10088_v23 = vrot.slane %v14665_v1, 6  ;;  %v10593_v49 = vld [vmem:[#allocation5 + $0x4] sm:$0x4] }
 0xb4b   :  { %10141 = vmatpush.bf16.msrb.mxu3 %v16158_v26  ;;  %v14568_v31 = vunpack.i.l.s16 %v9905_v16  ;;  %v10083_v26 = vunpack.c.l.b16 %v10062_v60  ;;  %v16188_v16 = vld [vmem:[%s22711_s5 + $0x2a8] sm:$0xff]  ;;  %v16153_v5 = vld [vmem:[%s22711_s5 + $0x190] sm:$0xff] }
 0xb4c   :  { %v9493_v27 = vsel %vm20024_vm12, %v9490_v9, %v9492_v19  ;;  %v10260_v9 = vunpack.c.l.b16 %v10239_v51 }
 0xb4d   :  { %v9367_v12 = vpop.f32.mrf.mxu0  ;;  %v9911_v34 = vrot.slane %v14568_v31, 3  ;;  %v9995_v35 = vrot.slane %v14568_v31, 4  ;;  %9494 = vst [vmem:[#allocation5 + $0x14] sm:$0xe] %v9493_v27  ;;  %v22222_v30 = vunpack.i.l.s16 %v10083_v26  ;;  %v10526_v31 = vrot.slane %v22220_v41, 3  ;;  %v16151_v26 = vld [vmem:[%s22711_s5 + $0x180] sm:$0xff] }
 0xb4e   :  { %v9393_v6 = vadd.f32 %v9367_v12, %v9221_v8  ;;  %v8054_v27 = vadd.f32 %v21806_v4, %v21749_v14  ;;  %v8992_v12 = vadd.f32 %v8969_v33, %v8784_v42  ;;  %v22250_v13 = vunpack.i.l.s16 %v10260_v9  ;;  %v16152_v4 = vld [vmem:[%s22711_s5 + $0x188] sm:$0xff] }
 0xb4f   :  { %10142 = vmatpush.bf16.msrb.mxu3 %v16157_v36  ;;  %v9912_v48 = vsel %vm9575_vm0, %v9911_v34, %v9910_v39  ;;  %v9996_v10 = vsel %vm9575_vm0, %v9995_v35, %v9994_v59  ;;  %v22224_v36 = vunpack.i.l.s16 %v10261_v20  ;;  %v8764_v39 = vpop.f32.mrf.mxu3  ;;  %v16187_v34 = vld [vmem:[%s22711_s5 + $0x2a0] sm:$0xff]  ;;  %v10089_v32 = vrot.slane %v22222_v30, 5  ;;  %v16261_v20 = vld [vmem:[%s22711_s5 + $0x4f0] sm:$0xff] }
 0xb50   :  { %9411 = vst [vmem:[#allocation3 + $0x68] sm:$0xff] %v9393_v6  ;;  %v9913_v43 = vpack.c.b16 %v9912_v48, %v9912_v48  ;;  %v9997_v2 = vpack.c.b16 %v9996_v10, %v9996_v10  ;;  %v16203_v35 = vld [vmem:[%s22711_s5 + $0x320] sm:$0xff]  ;;  %v9223_v6 = vadd.f32 %v9200_v29, %v8992_v12  ;;  %v8785_v60 = vadd.f32 %v8764_v39, %v21834_v22  ;;  %v16186_v22 = vld [vmem:[%s22711_s5 + $0x298] sm:$0xff]  ;;  %v16201_v29 = vld [vmem:[%s22711_s5 + $0x310] sm:$0xff] }
 0xb51   :  { %v10266_v58 = vrot.slane %v22224_v36, 7  ;;  %v10090_v33 = vsel %vm9575_vm0, %v10089_v32, %v10088_v23  ;;  %v16179_v32 = vld [vmem:[%s22711_s5 + $0x260] sm:$0xff]  ;;  %v16258_v23 = vld [vmem:[%s22711_s5 + $0x4d8] sm:$0xff] }
 0xb52   :  { %9971 = vmatmul.bf16.vlgmr.msrb.gmra.mxu2 %v9913_v43  ;;  %10055 = vmatmul.bf16.vlgmr.msrb.gmra.mxu1 %v9997_v2  ;;  %v8972_v43 = vpop.f32.mrf.mxu2  ;;  %v9203_v2 = vpop.f32.mrf.mxu1 }
 0xb53   :  { %10143 = vmatpush.bf16.msrb.mxu3 %v16156_v54  ;;  %10495 = vmatpush.bf16.msrb.mxu2 %v16190_v61  ;;  %v10173_v54 = vrot.slane %v22222_v30, 6  ;;  %v10267_v10 = vsel %vm9575_vm0, %v10266_v58, %v22250_v13  ;;  %v8211_v61 = vadd.f32 %v21808_v50, %v8054_v27  ;;  %v8993_v47 = vadd.f32 %v8972_v43, %v8785_v60 }
 0xb54   :  { %10673 = vmatpush.bf16.msrb.mxu1 %v16206_v52  ;;  %v10416_v56 = vld [vmem:[#allocation5 + $0x14] sm:$0x2]  ;;  %v10594_v15 = vld [vmem:[#allocation5 + $0x14] sm:$0x4]  ;;  %v10268_v28 = vpack.c.b16 %v10267_v10, %v10267_v10 }
 0xb55   :  { %v9370_v3 = vpop.f32.mrf.mxu0  ;;  %v10437_v18 = vunpack.c.l.b16 %v10416_v56  ;;  %v10174_v48 = vsel %vm9575_vm0, %v10173_v54, %v10172_v25  ;;  %v8442_v50 = vadd.f32 %v21810_v7, %v8211_v61  ;;  %v9495_v7 = vld [vmem:[#allocation4 + $0x2a] sm:$0x1f]  ;;  %v16185_v56 = vld [vmem:[%s22711_s5 + $0x290] sm:$0xff]  ;;  %v9224_v51 = vadd.f32 %v9203_v2, %v8993_v47 }
 0xb56   :  { %v9394_v21 = vadd.f32 %v9370_v3, %v9222_v45  ;;  %v10175_v11 = vpack.c.b16 %v10174_v48, %v10174_v48  ;;  %v10615_v45 = vunpack.c.l.b16 %v10594_v15  ;;  %v10614_v3 = vunpack.c.l.b16 %v10593_v49  ;;  %v16259_v54 = vld [vmem:[%s22711_s5 + $0x4e0] sm:$0xff]  ;;  %v9512_v2 = vld [vmem:[#allocation5 + $0x14] sm:$0x8]  ;;  %v16292_v15 = vld [vmem:[%s22711_s5 + $0x5e8] sm:$0xff] }
 0xb57   :  { %10144 = vmatpush.bf16.msrb.mxu3 %v16155_v55  ;;  %v9422_v53 = vld [vmem:[#allocation3 + $0x60] ss:$2 sm:$0xff]  ;;  %v9431_v19 = vld [vmem:[#allocation3 + $0x61] ss:$2 sm:$0xff]  ;;  %10496 = vmatpush.bf16.msrb.mxu2 %v16189_v57  ;;  %v22232_v38 = vunpack.i.l.s16 %v10437_v18  ;;  %v16202_v55 = vld [vmem:[%s22711_s5 + $0x318] sm:$0xff]  ;;  %v8614_v17 = vadd.f32 %v21845_v40, %v8442_v50  ;;  %v8766_v30 = vpop.f32.mrf.mxu3 }
 0xb58   :  { %10674 = vmatpush.bf16.msrb.mxu1 %v16205_v63  ;;  %v9440_v62 = vmax.f32 %v9422_v53, %v9431_v19  ;;  %9412 = vst [vmem:[#allocation3 + $0x70] sm:$0xff] %v9394_v21  ;;  %v16182_v57 = vld [vmem:[%s22711_s5 + $0x278] sm:$0xff]  ;;  %v16260_v40 = vld [vmem:[%s22711_s5 + $0x4e8] sm:$0xff]  ;;  %v10091_v21 = vpack.c.b16 %v10090_v33, %v10090_v33  ;;  %v22306_v58 = vunpack.i.l.s16 %v10614_v3 }
 0xb59   :  { %v10527_v8 = vrot.slane %v22232_v38, 2  ;;  %v8786_v53 = vadd.f32 %v8766_v30, %v8614_v17  ;;  %v16220_v33 = vld [vmem:[%s22711_s5 + $0x3a8] sm:$0xff] }
 0xb5a   :  { %9449 = vst [vmem:[#allocation4 + $0x30] sm:$0xff] %v9440_v62  ;;  %v8974_v12 = vpop.f32.mrf.mxu2  ;;  %v9205_v39 = vpop.f32.mrf.mxu1  ;;  %v10620_v48 = vrot.slane %v22306_v58, 4 }
 0xb5b   :  { %10145 = vmatpush.bf16.msrb.mxu3 %v16154_v44  ;;  %10497 = vmatpush.bf16.msrb.mxu2 %v16188_v16  ;;  %v10528_v59 = vsel %vm9575_vm0, %v10527_v8, %v10526_v31  ;;  %v16181_v16 = vld [vmem:[%s22711_s5 + $0x270] sm:$0xff]  ;;  %v16200_v8 = vld [vmem:[%s22711_s5 + $0x308] sm:$0xff] }
 0xb5c   :  { %10675 = vmatpush.bf16.msrb.mxu1 %v16204_v37  ;;  %v10529_v14 = vpack.c.b16 %v10528_v59, %v10528_v59  ;;  %v22295_v37 = vunpack.i.l.s16 %v10615_v45  ;;  %v10443_v59 = vrot.slane %v22232_v38, 1  ;;  %v16222_v38 = vld [vmem:[%s22711_s5 + $0x3b8] sm:$0xff]  ;;  %v16236_v45 = vld [vmem:[%s22711_s5 + $0x428] sm:$0xff] }
 0xb5d   :  { %v9372_v24 = vpop.f32.mrf.mxu0 }
 0xb5e   :  { %v9395_v52 = vadd.f32 %v9372_v24, %v9223_v6  ;;  %10587 = vmatmul.bf16.vlgmr.msrb.gmra.mxu0 %v10529_v14  ;;  %v10621_v25 = vrot.slane %v22295_v37, 3  ;;  %v16199_v24 = vld [vmem:[%s22711_s5 + $0x300] sm:$0xff] }
 0xb5f   :  { %10146 = vmatpush.bf16.msrb.mxu3 %v16153_v5  ;;  %10498 = vmatpush.bf16.msrb.mxu2 %v16187_v34  ;;  %v16184_v5 = vld [vmem:[%s22711_s5 + $0x288] sm:$0xff] }
 0xb60   :  { %10676 = vmatpush.bf16.msrb.mxu1 %v16203_v35  ;;  %9413 = vst [vmem:[#allocation3 + $0x78] sm:$0xff] %v9395_v52  ;;  %11289 = vmatpush.bf16.msrb.mxu0 %v16262_v46  ;;  %v16180_v34 = vld [vmem:[%s22711_s5 + $0x268] sm:$0xff]  ;;  %v8994_v35 = vadd.f32 %v8974_v12, %v8786_v53  ;;  %v10442_v46 = vrot.slane %v22220_v41, 2  ;;  %v16238_v41 = vld [vmem:[%s22711_s5 + $0x438] sm:$0xff]  ;;  %v10349_v12 = vrot.slane %v22250_v13, 1  ;;  %v16217_v13 = vld [vmem:[%s22711_s5 + $0x390] sm:$0xff] }
 0xb61   :  { %v9496_v63 = vld [vmem:[#allocation4 + $0x31] sm:$0x1f] }
 0xb62   :  { %10233 = vmatmul.bf16.vlgmr.msra.gmra.mxu2 %v10175_v11  ;;  %10326 = vmatmul.bf16.vlgmr.msra.gmra.mxu1 %v10268_v28  ;;  %v9497_v44 = vmax.f32 %v9495_v7, %v9496_v63  ;;  %v9225_v60 = vadd.f32 %v9205_v39, %v8994_v35  ;;  %v10444_v43 = vsel %vm9575_vm0, %v10443_v59, %v10442_v46  ;;  %v16178_v7 = vld [vmem:[%s22711_s5 + $0x258] sm:$0xff]  ;;  %v16257_v63 = vld [vmem:[%s22711_s5 + $0x4d0] sm:$0xff]  ;;  %v11125_v35 = vld [vmem:[#allocation5 + $0x8] sm:$0x2] }
 0xb63   :  { %10147 = vmatpush.bf16.msrb.mxu3 %v16152_v4  ;;  %10499 = vmatpush.bf16.msrb.mxu2 %v16186_v22  ;;  %v16183_v4 = vld [vmem:[%s22711_s5 + $0x280] sm:$0xff]  ;;  %v10445_v28 = vpack.c.b16 %v10444_v43, %v10444_v43  ;;  %v16294_v59 = vld [vmem:[%s22711_s5 + $0x5f8] sm:$0xff]  ;;  %v11146_v46 = vunpack.c.l.b16 %v11125_v35  ;;  %v16208_v35 = vld [vmem:[%s22711_s5 + $0x348] sm:$0xff] }
 0xb64   :  { %10677 = vmatpush.bf16.msrb.mxu1 %v16202_v55  ;;  %11290 = vmatpush.bf16.msrb.mxu0 %v16261_v20  ;;  %v9498_v18 = vadd.f32 %v21988_v0, %v9497_v44  ;;  %v10622_v55 = vsel %vm9575_vm0, %v10621_v25, %v10620_v48  ;;  %v10771_v20 = vld [vmem:[#allocation5 + $0x4] sm:$0x8]  ;;  %v16177_v44 = vld [vmem:[%s22711_s5 + $0x250] sm:$0xff]  ;;  %v10350_v25 = vsel %vm9575_vm0, %v22224_v36, %v10349_v12 }
 0xb65   :  { %v9375_v42 = vpop.f32.mrf.mxu0  ;;  %v10623_v47 = vpack.c.b16 %v10622_v55, %v10622_v55  ;;  %v10792_v17 = vunpack.c.l.b16 %v10771_v20  ;;  %v10351_v36 = vpack.c.b16 %v10350_v25, %v10350_v25  ;;  %v16293_v48 = vld [vmem:[%s22711_s5 + $0x5f0] sm:$0xff]  ;;  %v22421_v55 = vunpack.i.l.s16 %v11146_v46 }
 0xb66   :  { %v9396_v19 = vadd.f32 %v9375_v42, %v9224_v51  ;;  %v9499_v1 = vmax.f32 %v9498_v18, 0.0  ;;  %v16219_v42 = vld [vmem:[%s22711_s5 + $0x3a0] sm:$0xff] }
 0xb67   :  { %10148 = vmatpush.bf16.msrb.mxu3 %v16151_v26  ;;  %v9423_v9 = vld [vmem:[#allocation3 + $0x70] ss:$2 sm:$0xff]  ;;  %v9432_v62 = vld [vmem:[#allocation3 + $0x71] ss:$2 sm:$0xff]  ;;  %10500 = vmatpush.bf16.msrb.mxu2 %v16185_v56  ;;  %v16221_v26 = vld [vmem:[%s22711_s5 + $0x3b0] sm:$0xff]  ;;  %v22361_v18 = vunpack.i.l.s16 %v10792_v17 }
 0xb68   :  { %v9441_v31 = vmax.f32 %v9423_v9, %v9432_v62  ;;  %9414 = vst [vmem:[#allocation3 + $0x80] sm:$0xff] %v9396_v19  ;;  %10678 = vmatpush.bf16.msrb.mxu1 %v16201_v29  ;;  %11291 = vmatpush.bf16.msrb.mxu0 %v16260_v40  ;;  %v9500_v27 = vpack.c.bf16 %v9499_v1, %v9499_v1  ;;  %v16256_v56 = vld [vmem:[%s22711_s5 + $0x4c8] sm:$0xff]  ;;  %v16255_v19 = vld [vmem:[%s22711_s5 + $0x4c0] sm:$0xff]  ;;  %v16218_v62 = vld [vmem:[%s22711_s5 + $0x398] sm:$0xff] }
 0xb69   :  { %v10882_v1 = vrot.slane %v22361_v18, 7  ;;  %v10798_v20 = vrot.slane %v22361_v18, 6  ;;  %v16270_v17 = vld [vmem:[%s22711_s5 + $0x538] sm:$0xff] }
 0xb6a   :  { %10149 = vmatmul.bf16.vlgmr.msrb.gmra.mxu3 %v10091_v21  ;;  %9450 = vst [vmem:[#allocation4 + $0x38] sm:$0xff] %v9441_v31  ;;  %v9502_v6 = vshll.u32 %v9500_v27, 16  ;;  %v9505_v14 = vshrl.u32 %v9500_v27, 16  ;;  %v16235_v21 = vld [vmem:[%s22711_s5 + $0x420] sm:$0xff] }
 0xb6b   :  { %10401 = vmatpush.bf16.msra.mxu3 %v16182_v57  ;;  %10501 = vmatpush.bf16.msrb.mxu2 %v16184_v5  ;;  %v16237_v57 = vld [vmem:[%s22711_s5 + $0x430] sm:$0xff] }
 0xb6c   :  { %10679 = vmatpush.bf16.msrb.mxu1 %v16200_v8  ;;  %11292 = vmatpush.bf16.msrb.mxu0 %v16259_v54  ;;  %v9504_v10 = vrot.slane %v9502_v6, 5  ;;  %v9507_v61 = vrot.slane %v9505_v14, 4  ;;  %v16234_v8 = vld [vmem:[%s22711_s5 + $0x418] sm:$0xff]  ;;  %v16175_v54 = vld [vmem:[%s22711_s5 + $0x240] sm:$0xff] }
 0xb6d   :  { %v9377_v52 = vpop.f32.mrf.mxu0 }
 0xb6e   :  { %v9397_v22 = vadd.f32 %v9377_v52, %v9225_v60  ;;  %v9513_v50 = vsel %vm20053_vm15, %v9504_v10, %v9512_v2  ;;  %v9508_v11 = vor.u32 %v9507_v61, %v9504_v10  ;;  %v10949_v10 = vld [vmem:[#allocation5 + $0x8] sm:$0x1] }
 0xb6f   :  { %10402 = vmatpush.bf16.msra.mxu3 %v16181_v16  ;;  %10502 = vmatpush.bf16.msrb.mxu2 %v16183_v4  ;;  %9514 = vst [vmem:[#allocation5 + $0x14] sm:$0x8] %v9513_v50  ;;  %v16176_v16 = vld [vmem:[%s22711_s5 + $0x248] sm:$0xff]  ;;  %v16233_v4 = vld [vmem:[%s22711_s5 + $0x410] sm:$0xff] }
 0xb70   :  { %9415 = vst [vmem:[#allocation3 + $0x88] sm:$0xff] %v9397_v22  ;;  %10680 = vmatpush.bf16.msrb.mxu1 %v16199_v24  ;;  %v9509_v49 = vrot.slane %v9508_v11, 4  ;;  %11293 = vmatpush.bf16.msrb.mxu0 %v16258_v23  ;;  %v16232_v2 = vld [vmem:[%s22711_s5 + $0x408] sm:$0xff]  ;;  %v10970_v22 = vunpack.c.l.b16 %v10949_v10 }
 0xb71   :  { %v9516_v60 = vld [vmem:[#allocation4 + $0x38] sm:$0x1f]  ;;  %v16212_v23 = vld [vmem:[%s22711_s5 + $0x368] sm:$0xff] }
 0xb72   :  { %10503 = vmatmul.bf16.vlgmr.msrb.gmra.mxu2 %v10445_v28  ;;  %9515 = vst [vmem:[#allocation5 + $0x18] sm:$0x3] %v9509_v49 }
 0xb73   :  { %10403 = vmatpush.bf16.msra.mxu3 %v16180_v34  ;;  %10851 = vmatpush.bf16.msra.mxu2 %v16222_v38  ;;  %v16214_v34 = vld [vmem:[%s22711_s5 + $0x378] sm:$0xff]  ;;  %v16213_v38 = vld [vmem:[%s22711_s5 + $0x370] sm:$0xff] }
 0xb74   :  { %11028 = vmatpush.bf16.msra.mxu1 %v16238_v41  ;;  %11294 = vmatpush.bf16.msrb.mxu0 %v16257_v63  ;;  %v11236_v63 = vrot.slane %v22421_v55, 3 }
 0xb75   :  { %10681 = vmatmul.bf16.vlgmr.msrb.gmra.mxu1 %v10623_v47  ;;  %v16231_v47 = vld [vmem:[%s22711_s5 + $0x400] sm:$0xff] }
 0xb76   :  { %v10772_v51 = vld [vmem:[#allocation5 + $0x14] sm:$0x8] }
 0xb77   :  { %10404 = vmatpush.bf16.msra.mxu3 %v16179_v32  ;;  %10852 = vmatpush.bf16.msra.mxu2 %v16221_v26  ;;  %v9424_v29 = vld [vmem:[#allocation3 + $0x80] ss:$2 sm:$0x3f]  ;;  %v9433_v40 = vld [vmem:[#allocation3 + $0x81] ss:$2 sm:$0x3f]  ;;  %v10793_v3 = vunpack.c.l.b16 %v10772_v51 }
 0xb78   :  { %11029 = vmatpush.bf16.msra.mxu1 %v16237_v57  ;;  %v9442_v30 = vmax.f32 %v9424_v29, %v9433_v40  ;;  %11295 = vmatpush.bf16.msrb.mxu0 %v16256_v56  ;;  %v16216_v32 = vld [vmem:[%s22711_s5 + $0x388] sm:$0xff]  ;;  %v16215_v26 = vld [vmem:[%s22711_s5 + $0x380] sm:$0xff]  ;;  %v16254_v57 = vld [vmem:[%s22711_s5 + $0x4b8] sm:$0xff] }
 0xb79   :  { %v22372_v53 = vunpack.i.l.s16 %v10793_v3  ;;  %v10950_v5 = vld [vmem:[#allocation5 + $0x18] sm:$0x1]  ;;  %v11126_v31 = vld [vmem:[#allocation5 + $0x18] sm:$0x2]  ;;  %v16291_v56 = vld [vmem:[%s22711_s5 + $0x5e0] sm:$0xff] }
 0xb7a   :  { %9451 = vst [vmem:[#allocation4 + $0x40] sm:$0x3f] %v9442_v30  ;;  %v10971_v6 = vunpack.c.l.b16 %v10950_v5  ;;  %v11147_v14 = vunpack.c.l.b16 %v11126_v31  ;;  %v9528_v40 = vld [vmem:[#allocation5 + $0x1c] sm:$0x1]  ;;  %v16253_v30 = vld [vmem:[%s22711_s5 + $0x4b0] sm:$0xff]  ;;  %v16252_v5 = vld [vmem:[%s22711_s5 + $0x4a8] sm:$0xff] }
 0xb7b   :  { %10405 = vmatpush.bf16.msra.mxu3 %v16178_v7  ;;  %10853 = vmatpush.bf16.msra.mxu2 %v16220_v33  ;;  %v10883_v9 = vrot.slane %v22372_v53, 6  ;;  %v22442_v7 = vunpack.i.l.s16 %v10970_v22  ;;  %v16211_v33 = vld [vmem:[%s22711_s5 + $0x360] sm:$0xff]  ;;  %v16268_v31 = vld [vmem:[%s22711_s5 + $0x528] sm:$0xff]  ;;  %v16265_v22 = vld [vmem:[%s22711_s5 + $0x510] sm:$0xff] }
 0xb7c   :  { %11030 = vmatpush.bf16.msra.mxu1 %v16236_v45  ;;  %11296 = vmatpush.bf16.msrb.mxu0 %v16255_v19  ;;  %v22410_v52 = vunpack.i.l.s16 %v10971_v6  ;;  %v22412_v41 = vunpack.i.l.s16 %v11147_v14  ;;  %v16288_v6 = vld [vmem:[%s22711_s5 + $0x5c8] sm:$0xff]  ;;  %v16241_v19 = vld [vmem:[%s22711_s5 + $0x450] sm:$0xff] }
 0xb7d   :  { %v10884_v27 = vsel %vm9575_vm0, %v10883_v9, %v10882_v1  ;;  %v16290_v9 = vld [vmem:[%s22711_s5 + $0x5d8] sm:$0xff] }
 0xb7e   :  { %v10885_v39 = vpack.c.b16 %v10884_v27, %v10884_v27  ;;  %v10976_v11 = vrot.slane %v22410_v52, 7  ;;  %v11237_v28 = vrot.slane %v22412_v41, 2 }
 0xb7f   :  { %10406 = vmatpush.bf16.msra.mxu3 %v16177_v44  ;;  %10854 = vmatpush.bf16.msra.mxu2 %v16219_v42 }
 0xb80   :  { %11031 = vmatpush.bf16.msra.mxu1 %v16235_v21  ;;  %10943 = vmatmul.bf16.vlgmr.msra.gmra.mxu0 %v10885_v39  ;;  %v10977_v51 = vsel %vm9575_vm0, %v10976_v11, %v22442_v7  ;;  %v11238_v29 = vsel %vm9575_vm0, %v11237_v28, %v11236_v63  ;;  %v16248_v28 = vld [vmem:[%s22711_s5 + $0x488] sm:$0xff]  ;;  %v16247_v63 = vld [vmem:[%s22711_s5 + $0x480] sm:$0xff] }
 0xb81   :  { %v9517_v24 = vld [vmem:[#allocation4 + $0x3f] sm:$0x1f]  ;;  %11645 = vmatpush.bf16.msra.mxu0 %v16294_v59  ;;  %v10978_v42 = vpack.c.b16 %v10977_v51, %v10977_v51  ;;  %v11239_v21 = vpack.c.b16 %v11238_v29, %v11238_v29  ;;  %v16267_v59 = vld [vmem:[%s22711_s5 + $0x520] sm:$0xff] }
 0xb82   :  { %v9518_v61 = vmax.f32 %v9516_v60, %v9517_v24  ;;  %v16266_v24 = vld [vmem:[%s22711_s5 + $0x518] sm:$0xff] }
 0xb83   :  { %10407 = vmatpush.bf16.msra.mxu3 %v16176_v16  ;;  %10855 = vmatpush.bf16.msra.mxu2 %v16218_v62  ;;  %v16269_v16 = vld [vmem:[%s22711_s5 + $0x530] sm:$0xff]  ;;  %v11481_v62 = vld [vmem:[#allocation5 + $0x8] sm:$0x8] }
 0xb84   :  { %11032 = vmatpush.bf16.msra.mxu1 %v16234_v8  ;;  %v9519_v43 = vadd.f32 %v21988_v0, %v9518_v61  ;;  %v10799_v0 = vrot.slane %v22372_v53, 5  ;;  %v16210_v53 = vld [vmem:[%s22711_s5 + $0x358] sm:$0xff]  ;;  %v16209_v8 = vld [vmem:[%s22711_s5 + $0x350] sm:$0xff]  ;;  %v11502_v12 = vunpack.c.l.b16 %v11481_v62  ;;  %v11303_v61 = vld [vmem:[#allocation5 + $0x8] sm:$0x4] }
 0xb85   :  { %11646 = vmatpush.bf16.msra.mxu0 %v16293_v48  ;;  %v16246_v48 = vld [vmem:[%s22711_s5 + $0x478] sm:$0xff]  ;;  %v16240_v62 = vld [vmem:[%s22711_s5 + $0x448] sm:$0xff] }
 0xb86   :  { %v9520_v50 = vmax.f32 %v9519_v43, 0.0  ;;  %v10800_v45 = vsel %vm9575_vm0, %v10799_v0, %v10798_v20  ;;  %v22498_v14 = vunpack.i.l.s16 %v11502_v12  ;;  %v16245_v0 = vld [vmem:[%s22711_s5 + $0x470] sm:$0xff]  ;;  %v16239_v12 = vld [vmem:[%s22711_s5 + $0x440] sm:$0xff] }
 0xb87   :  { %10408 = vmatpush.bf16.msra.mxu3 %v16175_v54  ;;  %10856 = vmatpush.bf16.msra.mxu2 %v16217_v13  ;;  %v10801_v18 = vpack.c.b16 %v10800_v45, %v10800_v45  ;;  %v16289_v54 = vld [vmem:[%s22711_s5 + $0x5d0] sm:$0xff]  ;;  %v10705_v13 = vrot.slane %v22295_v37, 4  ;;  %v10704_v37 = vrot.slane %v22306_v58, 5  ;;  %v16286_v45 = vld [vmem:[%s22711_s5 + $0x5b8] sm:$0xff] }
 0xb88   :  { %11033 = vmatpush.bf16.msra.mxu1 %v16233_v4  ;;  %v9521_v49 = vpack.c.bf16 %v9520_v50, %v9520_v50  ;;  %v16250_v4 = vld [vmem:[%s22711_s5 + $0x498] sm:$0xff]  ;;  %v11592_v10 = vrot.slane %v22498_v14, 7  ;;  %v16249_v58 = vld [vmem:[%s22711_s5 + $0x490] sm:$0xff] }
 0xb89   :  { %11647 = vmatpush.bf16.msra.mxu0 %v16292_v15 }
 0xb8a   :  { %10409 = vmatmul.bf16.vlgmr.msra.gmra.mxu3 %v10351_v36  ;;  %v9523_v44 = vrot.slane %v9521_v49, 6  ;;  %v16207_v36 = vld [vmem:[%s22711_s5 + $0x340] sm:$0xff]  ;;  %v16244_v49 = vld [vmem:[%s22711_s5 + $0x468] sm:$0xff] }
 0xb8b   :  { %10757 = vmatpush.bf16.msrb.mxu3 %v16214_v34  ;;  %10857 = vmatpush.bf16.msra.mxu2 %v16216_v32  ;;  %v16251_v34 = vld [vmem:[%s22711_s5 + $0x4a0] sm:$0xff]  ;;  %v10706_v32 = vsel %vm9575_vm0, %v10705_v13, %v10704_v37  ;;  %v16297_v13 = vld [vmem:[%s22711_s5 + $0x610] sm:$0xff]  ;;  %v16296_v37 = vld [vmem:[%s22711_s5 + $0x608] sm:$0xff] }
 0xb8c   :  { %11034 = vmatpush.bf16.msra.mxu1 %v16232_v2  ;;  %9527 = vst [vmem:[#allocation5 + $0x18] sm:$0xc] %v9523_v44  ;;  %v9524_v3 = vrot.slane %v9523_v44, 4  ;;  %v10707_v15 = vpack.c.b16 %v10706_v32, %v10706_v32  ;;  %v16302_v44 = vld [vmem:[%s22711_s5 + $0x638] sm:$0xff] }
 0xb8d   :  { %11648 = vmatpush.bf16.msra.mxu0 %v16291_v56 }
 0xb8e   :  { %v9529_v1 = vsel %vm20093_vm14, %v9524_v3, %v9528_v40  ;;  %v16285_v40 = vld [vmem:[%s22711_s5 + $0x5b0] sm:$0xff] }
 0xb8f   :  { %10758 = vmatpush.bf16.msrb.mxu3 %v16213_v38  ;;  %10858 = vmatpush.bf16.msra.mxu2 %v16215_v26  ;;  %9530 = vst [vmem:[#allocation5 + $0x1c] sm:$0x1] %v9529_v1  ;;  %v16287_v38 = vld [vmem:[%s22711_s5 + $0x5c0] sm:$0xff]  ;;  %v16264_v26 = vld [vmem:[%s22711_s5 + $0x508] sm:$0xff] }
 0xb90   :  { %11035 = vmatpush.bf16.msra.mxu1 %v16231_v47  ;;  %11297 = vmatmul.bf16.vlgmr.msrb.gmra.mxu0 %v11239_v21  ;;  %v11153_v47 = vrot.slane %v22412_v41, 1  ;;  %v16284_v21 = vld [vmem:[%s22711_s5 + $0x5a8] sm:$0xff]  ;;  %v16283_v1 = vld [vmem:[%s22711_s5 + $0x5a0] sm:$0xff] }
 0xb91   :  { %11649 = vmatpush.bf16.msra.mxu0 %v16290_v9  ;;  %v16299_v9 = vld [vmem:[%s22711_s5 + $0x620] sm:$0xff] }
 0xb92   :  { %10859 = vmatmul.bf16.vlgmr.msra.gmra.mxu2 %v10801_v18  ;;  %v16301_v18 = vld [vmem:[%s22711_s5 + $0x630] sm:$0xff] }
 0xb93   :  { %10759 = vmatpush.bf16.msrb.mxu3 %v16212_v23  ;;  %11205 = vmatpush.bf16.msrb.mxu2 %v16254_v57  ;;  %v11482_v27 = vld [vmem:[#allocation5 + $0x18] sm:$0x8]  ;;  %v11304_v60 = vld [vmem:[#allocation5 + $0x18] sm:$0x4]  ;;  %v11324_v23 = vunpack.c.l.b16 %v11303_v61 }
 0xb94   :  { %11383 = vmatpush.bf16.msrb.mxu1 %v16270_v17  ;;  %v11503_v39 = vunpack.c.l.b16 %v11482_v27  ;;  %v11325_v43 = vunpack.c.l.b16 %v11304_v60  ;;  %v11152_v17 = vrot.slane %v22421_v55, 2  ;;  %v16243_v55 = vld [vmem:[%s22711_s5 + $0x460] sm:$0xff]  ;;  %v16298_v27 = vld [vmem:[%s22711_s5 + $0x618] sm:$0xff] }
 0xb95   :  { %11036 = vmatmul.bf16.vlgmr.msra.gmra.mxu1 %v10978_v42  ;;  %11650 = vmatpush.bf16.msra.mxu0 %v16289_v54  ;;  %v22538_v20 = vunpack.i.l.s16 %v11324_v23 }
 0xb96   :  { %v22493_v25 = vunpack.i.l.s16 %v11503_v39  ;;  %v22530_v11 = vunpack.i.l.s16 %v11325_v43  ;;  %v11154_v56 = vsel %vm9575_vm0, %v11153_v47, %v11152_v17  ;;  %v11059_v39 = vrot.slane %v22442_v7, 1  ;;  %v16279_v43 = vld [vmem:[%s22711_s5 + $0x580] sm:$0xff] }
 0xb97   :  { %10760 = vmatpush.bf16.msrb.mxu3 %v16211_v33  ;;  %11206 = vmatpush.bf16.msrb.mxu2 %v16253_v30  ;;  %v16263_v33 = vld [vmem:[%s22711_s5 + $0x500] sm:$0xff]  ;;  %v11330_v41 = vrot.slane %v22538_v20, 4  ;;  %v11155_v29 = vpack.c.b16 %v11154_v56, %v11154_v56  ;;  %v16242_v30 = vld [vmem:[%s22711_s5 + $0x458] sm:$0xff] }
 0xb98   :  { %11384 = vmatpush.bf16.msrb.mxu1 %v16269_v16  ;;  %v11593_v46 = vrot.slane %v22493_v25, 6  ;;  %v11331_v57 = vrot.slane %v22530_v11, 3  ;;  %v11415_v17 = vrot.slane %v22530_v11, 4 }
 0xb99   :  { %11651 = vmatpush.bf16.msra.mxu0 %v16288_v6  ;;  %v16281_v6 = vld [vmem:[%s22711_s5 + $0x590] sm:$0xff] }
 0xb9a   :  { %v11594_v2 = vsel %vm9575_vm0, %v11593_v46, %v11592_v10  ;;  %v11332_v51 = vsel %vm9575_vm0, %v11331_v57, %v11330_v41  ;;  %v11659_v46 = vld [vmem:[#allocation5 + $0xc] sm:$0x1]  ;;  %v11509_v10 = vrot.slane %v22493_v25, 5  ;;  %v16275_v25 = vld [vmem:[%s22711_s5 + $0x560] sm:$0xff] }
 0xb9b   :  { %10761 = vmatpush.bf16.msrb.mxu3 %v16210_v53  ;;  %11207 = vmatpush.bf16.msrb.mxu2 %v16252_v5  ;;  %v11595_v50 = vpack.c.b16 %v11594_v2, %v11594_v2  ;;  %v11333_v3 = vpack.c.b16 %v11332_v51, %v11332_v51  ;;  %v16300_v53 = vld [vmem:[%s22711_s5 + $0x628] sm:$0xff]  ;;  %v16295_v2 = vld [vmem:[%s22711_s5 + $0x600] sm:$0xff] }
 0xb9c   :  { %11385 = vmatpush.bf16.msrb.mxu1 %v16268_v31  ;;  %v16282_v31 = vld [vmem:[%s22711_s5 + $0x598] sm:$0xff] }
 0xb9d   :  { %11652 = vmatpush.bf16.msra.mxu0 %v16287_v38  ;;  %v11680_v38 = vunpack.c.l.b16 %v11659_v46 }
 0xb9f   :  { %10762 = vmatpush.bf16.msrb.mxu3 %v16209_v8  ;;  %11208 = vmatpush.bf16.msrb.mxu2 %v16251_v34  ;;  %v11660_v8 = vld [vmem:[#allocation5 + $0x1c] sm:$0x1] }
 0xba0   :  { %11386 = vmatpush.bf16.msrb.mxu1 %v16267_v59  ;;  %11653 = vmatmul.bf16.vlgmr.msra.gmra.mxu0 %v11595_v50  ;;  %v16278_v34 = vld [vmem:[%s22711_s5 + $0x578] sm:$0xff]  ;;  %v11060_v59 = vsel %vm9575_vm0, %v22410_v52, %v11059_v39 }
 0xba1   :  { %v11061_v7 = vpack.c.b16 %v11060_v59, %v11060_v59 }
 0xba3   :  { %10763 = vmatpush.bf16.msrb.mxu3 %v16208_v35  ;;  %11209 = vmatpush.bf16.msrb.mxu2 %v16250_v4  ;;  %v11681_v35 = vunpack.c.l.b16 %v11660_v8  ;;  %v16277_v4 = vld [vmem:[%s22711_s5 + $0x570] sm:$0xff] }
 0xba4   :  { %11387 = vmatpush.bf16.msrb.mxu1 %v16266_v24 }
 0xba5   :  { %v15548_v60 = vunpack.i.l.s16 %v11681_v35 }
 0xba7   :  { %10764 = vmatpush.bf16.msrb.mxu3 %v16207_v36  ;;  %11210 = vmatpush.bf16.msrb.mxu2 %v16249_v58  ;;  %v16280_v36 = vld [vmem:[%s22711_s5 + $0x588] sm:$0xff]  ;;  %v11686_v32 = vrot.slane %v15548_v60, 7  ;;  %v11508_v58 = vrot.slane %v22498_v14, 6 }
 0xba8   :  { %11388 = vmatpush.bf16.msrb.mxu1 %v16265_v22  ;;  %v15547_v22 = vunpack.i.l.s16 %v11680_v38 }
 0xba9   :  { %v11510_v23 = vsel %vm9575_vm0, %v11509_v10, %v11508_v58 }
 0xbaa   :  { %10765 = vmatmul.bf16.vlgmr.msrb.gmra.mxu3 %v10707_v15  ;;  %v11511_v50 = vpack.c.b16 %v11510_v23, %v11510_v23 }
 0xbab   :  { %11111 = vmatpush.bf16.msra.mxu3 %v16246_v48  ;;  %11211 = vmatpush.bf16.msrb.mxu2 %v16248_v28  ;;  %v16276_v48 = vld [vmem:[%s22711_s5 + $0x568] sm:$0xff]  ;;  %v16274_v28 = vld [vmem:[%s22711_s5 + $0x558] sm:$0xff] }
 0xbac   :  { %11389 = vmatpush.bf16.msrb.mxu1 %v16264_v26  ;;  %v16273_v26 = vld [vmem:[%s22711_s5 + $0x550] sm:$0xff] }
 0xbad   :  { %v9636_v42 = vpop.f32.mrf.mxu3 }
 0xbaf   :  { %11112 = vmatpush.bf16.msra.mxu3 %v16245_v0  ;;  %11212 = vmatpush.bf16.msrb.mxu2 %v16247_v63  ;;  %v9794_v16 = vpop.f32.mrf.mxu2  ;;  %v11687_v0 = vsel %vm9575_vm0, %v11686_v32, %v15547_v22  ;;  %v16272_v63 = vld [vmem:[%s22711_s5 + $0x548] sm:$0xff] }
 0xbb0   :  { %11390 = vmatpush.bf16.msrb.mxu1 %v16263_v33  ;;  %v11688_v14 = vpack.c.b16 %v11687_v0, %v11687_v0  ;;  %v16271_v33 = vld [vmem:[%s22711_s5 + $0x540] sm:$0xff]  ;;  %v16309_v0 = vld [vmem:[%s22713_s7 + $0x30] sm:$0xff] }
 0xbb2   :  { %11213 = vmatmul.bf16.vlgmr.msrb.gmra.mxu2 %v11155_v29 }
 0xbb3   :  { %11113 = vmatpush.bf16.msra.mxu3 %v16244_v49  ;;  %11561 = vmatpush.bf16.msra.mxu2 %v16286_v45  ;;  %v11414_v45 = vrot.slane %v22538_v20, 5 }
 0xbb4   :  { %11738 = vmatpush.bf16.msra.mxu1 %v16302_v44 }
 0xbb5   :  { %11391 = vmatmul.bf16.vlgmr.msrb.gmra.mxu1 %v11333_v3  ;;  %v9638_v5 = vpop.f32.mrf.mxu3  ;;  %v11416_v56 = vsel %vm9575_vm0, %v11415_v17, %v11414_v45 }
 0xbb7   :  { %11114 = vmatpush.bf16.msra.mxu3 %v16243_v55  ;;  %11562 = vmatpush.bf16.msra.mxu2 %v16285_v40  ;;  %v9796_v54 = vpop.f32.mrf.mxu2  ;;  %v11417_v40 = vpack.c.b16 %v11416_v56, %v11416_v56 }
 0xbb8   :  { %11739 = vmatpush.bf16.msra.mxu1 %v16301_v18 }
 0xbbb   :  { %11115 = vmatpush.bf16.msra.mxu3 %v16242_v30  ;;  %11563 = vmatpush.bf16.msra.mxu2 %v16284_v21 }
 0xbbc   :  { %11740 = vmatpush.bf16.msra.mxu1 %v16300_v53 }
 0xbbd   :  { %v9701_v52 = vpop.f32.mrf.mxu3 }
 0xbbe   :  { %v9702_v24 = vadd.f32 %v9701_v52, %v9636_v42 }
 0xbbf   :  { %11116 = vmatpush.bf16.msra.mxu3 %v16241_v19  ;;  %11564 = vmatpush.bf16.msra.mxu2 %v16283_v1 }
 0xbc0   :  { %11741 = vmatpush.bf16.msra.mxu1 %v16299_v9  ;;  %v9798_v61 = vadd.f32 %v9794_v16, %v9702_v24 }
 0xbc3   :  { %11117 = vmatpush.bf16.msra.mxu3 %v16240_v62  ;;  %11565 = vmatpush.bf16.msra.mxu2 %v16282_v31 }
 0xbc4   :  { %11742 = vmatpush.bf16.msra.mxu1 %v16298_v27 }
 0xbc5   :  { %v9703_v15 = vpop.f32.mrf.mxu3 }
 0xbc7   :  { %11118 = vmatpush.bf16.msra.mxu3 %v16239_v12  ;;  %11566 = vmatpush.bf16.msra.mxu2 %v16281_v6 }
 0xbc8   :  { %11743 = vmatpush.bf16.msra.mxu1 %v16297_v13 }
 0xbca   :  { %11119 = vmatmul.bf16.vlgmr.msra.gmra.mxu3 %v11061_v7 }
 0xbcb   :  { %11467 = vmatpush.bf16.msrb.mxu3 %v16278_v34  ;;  %11567 = vmatpush.bf16.msra.mxu2 %v16280_v36 }
 0xbcc   :  { %11744 = vmatpush.bf16.msra.mxu1 %v16296_v37 }
 0xbcd   :  { %v9878_v49 = vpop.f32.mrf.mxu3 }
 0xbce   :  { %v9882_v47 = vadd.f32 %v9878_v49, %v9798_v61 }
 0xbcf   :  { %11468 = vmatpush.bf16.msrb.mxu3 %v16277_v4  ;;  %11568 = vmatpush.bf16.msra.mxu2 %v16279_v43  ;;  %v10056_v57 = vpop.f32.mrf.mxu1 }
 0xbd0   :  { %11745 = vmatpush.bf16.msra.mxu1 %v16295_v2  ;;  %v11773_v2 = vld [vmem:[%s22713_s7 + $0x38] sm:$0xf] }
 0xbd1   :  { %v11807_v22 = vunpack.c.l.b16 %v11773_v2 }
 0xbd2   :  { %11569 = vmatmul.bf16.vlgmr.msra.gmra.mxu2 %v11511_v50 }
 0xbd3   :  { %11469 = vmatpush.bf16.msrb.mxu3 %v16276_v48  ;;  %11746 = vmatmul.bf16.vlgmr.msra.gmra.mxu1 %v11688_v14  ;;  %v11815_v23 = vpack.c.b16 %v11807_v22, %v11807_v22  ;;  %v16308_v14 = vld [vmem:[%s22713_s7 + $0x28] sm:$0xff] }
 0xbd5   :  { %v9880_v41 = vpop.f32.mrf.mxu3  ;;  %v9972_v44 = vpop.f32.mrf.mxu2  ;;  %v11829_v15 = vsel %vm11827_vm1, %v11815_v23, 0 }
 0xbd6   :  { %v9976_v55 = vadd.f32 %v9972_v44, %v9882_v47  ;;  %v16305_v41 = vld [vmem:[%s22713_s7 + $0x10] sm:$0xff]  ;;  %v11856_v44 = vld [vmem:[%s22715_s9 + $0x28] sm:$0x3] }
 0xbd7   :  { %11470 = vmatpush.bf16.msrb.mxu3 %v16275_v25  ;;  %v10058_v51 = vpop.f32.mrf.mxu1 }
 0xbd8   :  { %v10060_v29 = vadd.f32 %v10056_v57, %v9976_v55  ;;  %v11882_v55 = vunpack.c.l.b16 %v11856_v44 }
 0xbda   :  { %v11888_v51 = vpack.c.b16 %v11882_v55, %v11882_v55 }
 0xbdb   :  { %11471 = vmatpush.bf16.msrb.mxu3 %v16274_v28  ;;  %v10588_v3 = vpop.f32.mrf.mxu0  ;;  %v16307_v28 = vld [vmem:[%s22713_s7 + $0x20] sm:$0xff] }
 0xbdd   :  { %v9974_v18 = vpop.f32.mrf.mxu2 }
 0xbdf   :  { %11472 = vmatpush.bf16.msrb.mxu3 %v16273_v26  ;;  %v10327_v11 = vpop.f32.mrf.mxu1 }
 0xbe3   :  { %11473 = vmatpush.bf16.msrb.mxu3 %v16272_v63  ;;  %v10590_v30 = vpop.f32.mrf.mxu0 }
 0xbe4   :  { %v16313_v30 = vld [vmem:[%s22715_s9 + $0x18] sm:$0xff] }
 0xbe5   :  { %v10234_v42 = vpop.f32.mrf.mxu2 }
 0xbe7   :  { %11474 = vmatpush.bf16.msrb.mxu3 %v16271_v33  ;;  %v10329_v21 = vpop.f32.mrf.mxu1  ;;  %v16306_v33 = vld [vmem:[%s22713_s7 + $0x18] sm:$0xff] }
 0xbea   :  { %11475 = vmatmul.bf16.vlgmr.msrb.gmra.mxu3 %v11417_v40  ;;  %v11900_v40 = vsel %vm11898_vm2, %v11888_v51, 0 }
 0xbeb   :  { %11831 = vmatpush.bf16.msra.mxu3 %v11829_v15  ;;  %11904 = vmatpush.bf16.msrb.mxu2 %v11900_v40 }
 0xbed   :  { %v10150_v16 = vpop.f32.mrf.mxu3  ;;  %v10236_v20 = vpop.f32.mrf.mxu2 }
 0xbee   :  { %v10154_v53 = vadd.f32 %v10150_v16, %v10060_v29  ;;  %v16304_v29 = vld [vmem:[%s22713_s7 + $0x8] sm:$0xff] }
 0xbef   :  { %11832 = vmatpush.bf16.msra.mxu3 %v16309_v0 }
 0xbf0   :  { %v10238_v19 = vadd.f32 %v10234_v42, %v10154_v53  ;;  %v16312_v42 = vld [vmem:[%s22715_s9 + $0x10] sm:$0xff] }
 0xbf2   :  { %v10331_v1 = vadd.f32 %v10327_v11, %v10238_v19  ;;  %v10682_v9 = vpop.f32.mrf.mxu1  ;;  %v16303_v11 = vld [vmem:[%s22713_s7] sm:$0xff] }
 0xbf3   :  { %11833 = vmatpush.bf16.msra.mxu3 %v16308_v14 }
 0xbf5   :  { %v10152_v62 = vpop.f32.mrf.mxu3  ;;  %v10504_v5 = vpop.f32.mrf.mxu2 }
 0xbf7   :  { %11834 = vmatpush.bf16.msra.mxu3 %v16307_v28 }
 0xbfa   :  { %v10684_v31 = vpop.f32.mrf.mxu1 }
 0xbfb   :  { %11835 = vmatpush.bf16.msra.mxu3 %v16306_v33 }
 0xbfd   :  { %v10506_v8 = vpop.f32.mrf.mxu2  ;;  %v10944_v54 = vpop.f32.mrf.mxu0 }
 0xbff   :  { %11836 = vmatpush.bf16.msra.mxu3 %v16305_v41 }
 0xc03   :  { %11837 = vmatpush.bf16.msra.mxu3 %v16304_v29 }
 0xc05   :  { %v10946_v27 = vpop.f32.mrf.mxu0 }
 0xc06   :  { %v16310_v27 = vld [vmem:[%s22715_s9] sm:$0xff] }
 0xc07   :  { %11838 = vmatpush.bf16.msra.mxu3 %v16303_v11 }
 0xc0d   :  { %v10410_v12 = vpop.f32.mrf.mxu3  ;;  %v11298_v6 = vpop.f32.mrf.mxu0 }
 0xc0e   :  { %v10414_v39 = vadd.f32 %v10410_v12, %v10331_v1  ;;  %v16694_v1 = vld [vmem:[%s22712_s6] ss:$0 sm:$0xff] }
 0xc0f   :  { %v16695_v12 = vld [vmem:[%s22714_s8] ss:$0 sm:$0xff] }
 0xc10   :  { %v10508_v34 = vadd.f32 %v10504_v5, %v10414_v39 }
 0xc12   :  { %v10592_v59 = vadd.f32 %v10588_v3, %v10508_v34  ;;  %v11037_v35 = vpop.f32.mrf.mxu1  ;;  %v16314_v3 = vld [vmem:[%s22715_s9 + $0x20] sm:$0xff] }
 0xc13   :  { %11905 = vmatpush.bf16.msrb.mxu2 %v16314_v3 }
 0xc14   :  { %v10686_v13 = vadd.f32 %v10682_v9, %v10592_v59 }
 0xc15   :  { %v10412_v7 = vpop.f32.mrf.mxu3  ;;  %v10860_v4 = vpop.f32.mrf.mxu2 }
 0xc16   :  { %v11300_v52 = vpop.f32.mrf.mxu0 }
 0xc17   :  { %11906 = vmatpush.bf16.msrb.mxu2 %v16313_v30 }
 0xc1a   :  { %v11039_v46 = vpop.f32.mrf.mxu1 }
 0xc1b   :  { %11907 = vmatpush.bf16.msrb.mxu2 %v16312_v42 }
 0xc1d   :  { %v10862_v60 = vpop.f32.mrf.mxu2 }
 0xc1e   :  { %v11654_v24 = vpop.f32.mrf.mxu0 }
 0xc26   :  { %v11656_v48 = vpop.f32.mrf.mxu0 }
 0xc2d   :  { %v10766_v36 = vpop.f32.mrf.mxu3 }
 0xc2e   :  { %v10770_v37 = vadd.f32 %v10766_v36, %v10686_v13  ;;  %v16696_v13 = vld [vmem:[%s22716_s10] ss:$0 sm:$0xff] }
 0xc30   :  { %v10864_v38 = vadd.f32 %v10860_v4, %v10770_v37 }
 0xc32   :  { %v10948_v10 = vadd.f32 %v10944_v54, %v10864_v38  ;;  %v11392_v61 = vpop.f32.mrf.mxu1  ;;  %v16311_v54 = vld [vmem:[%s22715_s9 + $0x8] sm:$0xff] }
 0xc33   :  { %11908 = vmatpush.bf16.msrb.mxu2 %v16311_v54 }
 0xc34   :  { %v11041_v32 = vadd.f32 %v11037_v35, %v10948_v10 }
 0xc35   :  { %v10768_v43 = vpop.f32.mrf.mxu3  ;;  %v11214_v58 = vpop.f32.mrf.mxu2 }
 0xc37   :  { %11909 = vmatpush.bf16.msrb.mxu2 %v16310_v27 }
 0xc3a   :  { %v11394_v25 = vpop.f32.mrf.mxu1 }
 0xc3d   :  { %v11216_v50 = vpop.f32.mrf.mxu2 }
 0xc4d   :  { %v11120_v26 = vpop.f32.mrf.mxu3 }
 0xc4e   :  { %v11124_v49 = vadd.f32 %v11120_v26, %v11041_v32 }
 0xc50   :  { %v11218_v47 = vadd.f32 %v11214_v58, %v11124_v49  ;;  %v11747_v63 = vpop.f32.mrf.mxu1 }
 0xc52   :  { %v11302_v57 = vadd.f32 %v11298_v6, %v11218_v47 }
 0xc54   :  { %v11396_v21 = vadd.f32 %v11392_v61, %v11302_v57 }
 0xc55   :  { %v11122_v17 = vpop.f32.mrf.mxu3  ;;  %v11570_v45 = vpop.f32.mrf.mxu2 }
 0xc58   :  { %v11749_v56 = vpop.f32.mrf.mxu1 }
 0xc5d   :  { %v11572_v18 = vpop.f32.mrf.mxu2 }
 0xc6d   :  { %v11476_v16 = vpop.f32.mrf.mxu3 }
 0xc6e   :  { %v11480_v53 = vadd.f32 %v11476_v16, %v11396_v21 }
 0xc70   :  { %v11574_v19 = vadd.f32 %v11570_v45, %v11480_v53 }
 0xc72   :  { %v11658_v20 = vadd.f32 %v11654_v24, %v11574_v19 }
 0xc74   :  { %v11751_v9 = vadd.f32 %v11747_v63, %v11658_v20 }
 0xc75   :  { %v11478_v62 = vpop.f32.mrf.mxu3 }
 0xc76   :  { %v11756_v5 = vadd.f32 %v16694_v1, %v11751_v9 }
 0xc78   :  { %v11757_v31 = vmax.f32 %v11756_v5, 0.0 }
 0xc7a   :  { %v11758_v8 = vpack.c.bf16 %v11757_v31, %v11757_v31 }
 0xc7c   :  { %15609 = vmatmul.msk.bf16.vlgmr.msra.gmra.mxu3 %vm11823_vm5, %v11758_v8 }
 0xcff   :  { %v11840_v39 = vpop.f32.mrf.mxu3 }
 0xd00   :  { %v11841_v34 = vadd.f32 %v16695_v12, %v11840_v39 }
 0xd02   :  { %v11844_v59 = vmax.f32 %v11841_v34, 0.0 }
 0xd04   :  { %v11845_v35 = vpack.c.bf16 %v11844_v59, %v11844_v59 }
 0xd06   :  { %15630 = vmatmul.msk.bf16.vlgmr.msrb.gmra.mxu2 %vm11894_vm6, %v11845_v35 }
 0xd07   :  { %v11842_v6 = vpop.f32.mrf.mxu3 }
 0xd89   :  { %v11911_v7 = vpop.f32.mrf.mxu2 }
 0xd8a   :  { %v11912_v4 = vadd.f32 %v16696_v13, %v11911_v7 }
 0xd8c   :  { %11916 = vst.msk [vmem:[#allocation6] sm:$0x3] %vm11915_vm7, %v11912_v4 }
 0xd8d   :  { %11927 = dma.vmem_to_hbm [thread:$0]  %s11923_s22, 32, %s11925_s24, [#allocation7]  }
 0xd91   :  { %v11913_v46 = vpop.f32.mrf.mxu2 }
 0xd92   :  { %16742 = dma.done.wait [#allocation7], 32  }
 0xd93   :  { %16743 = vsyncadd [#allocation7], 4294967264 }
 0xd94   :  { %11932 = vsyncpa [#allocation7], 1 }

</bundles_post_ra>
